<compile_context>
chip_gen: v5e
topology: v5e:2x2
jax: 0.10.0
libtpu: 0.0.40
codegen_flags: <defaults>
</compile_context>

<pallas_src>
import functools
import math

import jax
import jax.numpy as jnp
from jax.experimental import pallas as pl
from jax.experimental.pallas import tpu as pltpu


# ------------------------------------------------------------------ kernels ---

def mha_addnorm_kernel(*refs, num_heads, cross):
    """LayerNorm(x + MHA(x, kv, kv, mask)) for one batch element (grid = batch).

    If `cross` is False, the K/V source is x itself (self-attention) and no kv
    operand is passed.  Weights are bf16; activations arrive f32, matmuls run
    with bf16 inputs and f32 accumulation; softmax / LayerNorm stay f32.
    """
    if cross:
        (x_ref, kv_ref, mask_ref, wq_ref, bq_ref, wk_ref, bk_ref,
         wv_ref, bv_ref, wo_ref, bo_ref, gamma_ref, beta_ref, out_ref) = refs
    else:
        (x_ref, mask_ref, wq_ref, bq_ref, wk_ref, bk_ref,
         wv_ref, bv_ref, wo_ref, bo_ref, gamma_ref, beta_ref, out_ref) = refs

    x = x_ref[0]                                  # (Sq, D) f32 (query + residual)
    kv = kv_ref[0] if cross else x                # (Sk, D) f32
    sq, d = x.shape
    dk = d // num_heads
    scale = 1.0 / math.sqrt(dk)

    # Additive mask bias, computed once per invocation (not per head).
    mask_bias = (mask_ref[...] - 1.0) * 1e9       # (Sq, Sk): 0 keep, -1e9 mask

    x_bf = x.astype(jnp.bfloat16)
    kv_bf = kv.astype(jnp.bfloat16) if cross else x_bf

    # QKV projections: bf16 inputs, f32 accumulation, results kept bf16 for the
    # attention matmuls.
    q = (jnp.dot(x_bf, wq_ref[...], preferred_element_type=jnp.float32)
         + bq_ref[...]).astype(jnp.bfloat16)
    k = (jnp.dot(kv_bf, wk_ref[...], preferred_element_type=jnp.float32)
         + bk_ref[...]).astype(jnp.bfloat16)
    v = (jnp.dot(kv_bf, wv_ref[...], preferred_element_type=jnp.float32)
         + bv_ref[...]).astype(jnp.bfloat16)

    # Per-head attention; contexts accumulate straight through W_o (no concat).
    o_acc = jnp.zeros((sq, d), jnp.float32)
    for h in range(num_heads):                    # static loop, lane-aligned slices
        sl = slice(h * dk, (h + 1) * dk)
        qh, kh, vh = q[:, sl], k[:, sl], v[:, sl]
        s = jax.lax.dot_general(qh, kh, (((1,), (1,)), ((), ())),
                                preferred_element_type=jnp.float32)
        s = s * scale + mask_bias                 # (Sq, Sk) f32
        s = s - jnp.max(s, axis=-1, keepdims=True)
        p = jnp.exp(s)
        p = p * pl.reciprocal(jnp.sum(p, axis=-1, keepdims=True), approx=True)
        ctx = jnp.dot(p.astype(jnp.bfloat16), vh,
                      preferred_element_type=jnp.float32)           # (Sq, dk)
        o_acc = o_acc + jnp.dot(ctx.astype(jnp.bfloat16), wo_ref[sl, :],
                                preferred_element_type=jnp.float32)

    # Fused epilogue: output-projection bias, residual add, LayerNorm (f32).
    z = x + o_acc + bo_ref[...]
    mean = jnp.mean(z, axis=-1, keepdims=True)
    var = jnp.mean((z - mean) ** 2, axis=-1, keepdims=True)
    out_ref[0] = ((z - mean) * jax.lax.rsqrt(var + 1e-5)
                  * gamma_ref[...] + beta_ref[...])


def ffn_addnorm_kernel(x_ref, w1_ref, b1_ref, w2_ref, b2_ref,
                       gamma_ref, beta_ref, out_ref):
    """LayerNorm(x + fc2(relu(fc1(x)))) on a row tile of (B*S, D)."""
    x = x_ref[...]                                                  # (rows, D) f32
    h = jnp.dot(x.astype(jnp.bfloat16), w1_ref[...],
                preferred_element_type=jnp.float32) + b1_ref[...]
    h = jnp.maximum(h, 0.0)
    ff = jnp.dot(h.astype(jnp.bfloat16), w2_ref[...],
                 preferred_element_type=jnp.float32) + b2_ref[...]
    z = x + ff
    mean = jnp.mean(z, axis=-1, keepdims=True)
    var = jnp.mean((z - mean) ** 2, axis=-1, keepdims=True)
    out_ref[...] = ((z - mean) * jax.lax.rsqrt(var + 1e-5)
                    * gamma_ref[...] + beta_ref[...])


# ----------------------------------------------------------------- wrappers ---

def mha_addnorm_forward(x, kv, mask, p, gamma, beta, *, num_heads):
    """Fused MHA + residual + LayerNorm.

    x is both the query input and the residual.  kv=None means self-attention
    (K/V source = x) and x is DMA'd only once.
    """
    B, Sq, D = x.shape
    cross = kv is not None
    Sk = kv.shape[1] if cross else Sq
    Wq, bq, Wk, bk, Wv, bv, Wo, bo = p
    kern = functools.partial(mha_addnorm_kernel, num_heads=num_heads, cross=cross)
    wspec = pl.BlockSpec((D, D), lambda b: (0, 0))
    bspec = pl.BlockSpec((1, D), lambda b: (0, 0))

    in_specs = [pl.BlockSpec((1, Sq, D), lambda b: (b, 0, 0))]      # x
    args = [x]
    if cross:
        in_specs.append(pl.BlockSpec((1, Sk, D), lambda b: (b, 0, 0)))  # kv source
        args.append(kv)
    in_specs += [
        pl.BlockSpec((Sq, Sk), lambda b: (0, 0)),                   # mask (shared)
        wspec, bspec, wspec, bspec, wspec, bspec, wspec, bspec,     # Wq..bo
        bspec, bspec,                                               # gamma, beta
    ]
    args += [mask, Wq, bq, Wk, bk, Wv, bv, Wo, bo, gamma, beta]

    return pl.pallas_call(
        kern,
        out_shape=jax.ShapeDtypeStruct((B, Sq, D), jnp.float32),
        grid=(B,),
        in_specs=in_specs,
        out_specs=pl.BlockSpec((1, Sq, D), lambda b: (b, 0, 0)),
        compiler_params=pltpu.CompilerParams(
            dimension_semantics=("parallel",)),
    )(*args)


def ffn_addnorm_forward(x, p, gamma, beta, *, block_rows=64):
    """Fused FFN + residual + LayerNorm, row-tiled over (B*S, D)."""
    W1, b1, W2, b2 = p
    B, S, D = x.shape
    d_ff = W1.shape[1]
    R = B * S
    block_rows = min(block_rows, R)
    x2 = x.reshape(R, D)
    out = pl.pallas_call(
        ffn_addnorm_kernel,
        out_shape=jax.ShapeDtypeStruct((R, D), jnp.float32),
        grid=(pl.cdiv(R, block_rows),),
        in_specs=[
            pl.BlockSpec((block_rows, D), lambda i: (i, 0)),
            pl.BlockSpec((D, d_ff), lambda i: (0, 0)),
            pl.BlockSpec((1, d_ff), lambda i: (0, 0)),
            pl.BlockSpec((d_ff, D), lambda i: (0, 0)),
            pl.BlockSpec((1, D), lambda i: (0, 0)),
            pl.BlockSpec((1, D), lambda i: (0, 0)),
            pl.BlockSpec((1, D), lambda i: (0, 0)),
        ],
        out_specs=pl.BlockSpec((block_rows, D), lambda i: (i, 0)),
        compiler_params=pltpu.CompilerParams(
            dimension_semantics=("parallel",)),
    )(x2, W1, b1, W2, b2, gamma, beta)
    return out.reshape(B, S, D)


def decoder_layer_forward(x, enc_output, src_mask, tgt_mask, params, num_heads):
    # dropout == identity (eval mode)
    x = mha_addnorm_forward(x, None, tgt_mask, params["self_attn"],
                            *params["norm1"], num_heads=num_heads)
    x = mha_addnorm_forward(x, enc_output, src_mask, params["cross_attn"],
                            *params["norm2"], num_heads=num_heads)
    x = ffn_addnorm_forward(x, params["ffn"], *params["norm3"])
    return x


# ------------------------------------------------------- pure-JAX reference ---

def _mha_ref(q, k, v, mask, p, num_heads):
    Wq, bq, Wk, bk, Wv, bv, Wo, bo = p
    B, Sq, D = q.shape
    dk = D // num_heads
    Q = (q @ Wq + bq).reshape(B, Sq, num_heads, dk).transpose(0, 2, 1, 3)
    K = (k @ Wk + bk).reshape(B, -1, num_heads, dk).transpose(0, 2, 1, 3)
    V = (v @ Wv + bv).reshape(B, -1, num_heads, dk).transpose(0, 2, 1, 3)
    s = jnp.einsum("bhqd,bhkd->bhqk", Q, K) / math.sqrt(dk)
    s = jnp.where(mask[None, None] == 0, -1e9, s)
    a = jax.nn.softmax(s, axis=-1)
    o = jnp.einsum("bhqk,bhkd->bhqd", a, V).transpose(0, 2, 1, 3).reshape(B, Sq, D)
    return o @ Wo + bo


def _ln_ref(z, gamma, beta):
    mean = z.mean(-1, keepdims=True)
    var = ((z - mean) ** 2).mean(-1, keepdims=True)
    return (z - mean) / jnp.sqrt(var + 1e-5) * gamma + beta


def _decoder_ref(x, enc, src_mask, tgt_mask, params, num_heads):
    a = _mha_ref(x, x, x, tgt_mask, params["self_attn"], num_heads)
    x = _ln_ref(x + a, *params["norm1"])
    a = _mha_ref(x, enc, enc, src_mask, params["cross_attn"], num_heads)
    x = _ln_ref(x + a, *params["norm2"])
    W1, b1, W2, b2 = params["ffn"]
    ff = jnp.maximum(x @ W1 + b1, 0.0) @ W2 + b2
    x = _ln_ref(x + ff, *params["norm3"])
    return x


# --------------------------------------------------------------------- main ---

def _init_linear(key, din, dout, scale=0.05):
    kw, kb = jax.random.split(key)
    W = jax.random.normal(kw, (din, dout), jnp.float32) * scale
    b = jax.random.normal(kb, (1, dout), jnp.float32) * scale
    return W, b


def _init_mha(key, d_model):
    ks = jax.random.split(key, 4)
    p = []
    for kk in ks:
        W, b = _init_linear(kk, d_model, d_model)
        p += [W, b]
    return tuple(p)


def _cast_matmul_weights_bf16(params):
    """Store matmul weights in bf16 for the kernels (biases/norms stay f32)."""
    c = lambda w: w.astype(jnp.bfloat16)

    def cast_attn(p):
        Wq, bq, Wk, bk, Wv, bv, Wo, bo = p
        return (c(Wq), bq, c(Wk), bk, c(Wv), bv, c(Wo), bo)

    W1, b1, W2, b2 = params["ffn"]
    return {
        "self_attn": cast_attn(params["self_attn"]),
        "cross_attn": cast_attn(params["cross_attn"]),
        "ffn": (c(W1), b1, c(W2), b2),
        "norm1": params["norm1"],
        "norm2": params["norm2"],
        "norm3": params["norm3"],
    }


if __name__ == "__main__":
    # Small, lane-friendly shapes consistent with the module:
    # D multiple of 128, per-head dk = 128, d_ff multiple of 128.
    B, S_TGT, S_SRC = 2, 64, 64
    D_MODEL, NUM_HEADS, D_FF = 256, 2, 512

    key = jax.random.PRNGKey(0)
    k_x, k_enc, k_sa, k_ca, k_f1, k_f2 = jax.random.split(key, 6)

    x = jax.random.normal(k_x, (B, S_TGT, D_MODEL), jnp.float32)
    enc_output = jax.random.normal(k_enc, (B, S_SRC, D_MODEL), jnp.float32)
    tgt_mask = jnp.tril(jnp.ones((S_TGT, S_TGT), jnp.float32))   # causal
    src_mask = jnp.ones((S_TGT, S_SRC), jnp.float32)             # no masking

    W1, b1 = _init_linear(k_f1, D_MODEL, D_FF)
    W2, b2 = _init_linear(k_f2, D_FF, D_MODEL)
    params = {
        "self_attn": _init_mha(k_sa, D_MODEL),
        "cross_attn": _init_mha(k_ca, D_MODEL),
        "ffn": (W1, b1, W2, b2),
        # LayerNorm params at PyTorch defaults (weight=1, bias=0), eps=1e-5
        "norm1": (jnp.ones((1, D_MODEL), jnp.float32), jnp.zeros((1, D_MODEL), jnp.float32)),
        "norm2": (jnp.ones((1, D_MODEL), jnp.float32), jnp.zeros((1, D_MODEL), jnp.float32)),
        "norm3": (jnp.ones((1, D_MODEL), jnp.float32), jnp.zeros((1, D_MODEL), jnp.float32)),
    }

    kparams = _cast_matmul_weights_bf16(params)

    fwd = jax.jit(functools.partial(decoder_layer_forward, num_heads=NUM_HEADS))
    out = fwd(x, enc_output, src_mask, tgt_mask, kparams)
    out = jax.block_until_ready(out)

    # Reference is pure f32; the kernels use bf16 matmul inputs with f32
    # accumulation, so the tolerance reflects bf16 mixed precision.
    ref = _decoder_ref(x, enc_output, src_mask, tgt_mask, params, NUM_HEADS)
    assert out.shape == (B, S_TGT, D_MODEL)
    err = float(jnp.max(jnp.abs(out - ref)))
    assert err < 1e-1, f"max abs err {err}"

    print("KERNEL_OK")
</pallas_src>

<mosaic_0001>
module attributes {stable_mosaic.version = 11 : i64} {
  func.func @ffn_addnorm_kernel(%arg0: i32, %arg1: memref<64x256xf32, #tpu.memory_space<vmem>>, %arg2: memref<256x512xbf16, #tpu.memory_space<vmem>>, %arg3: memref<1x512xf32, #tpu.memory_space<vmem>>, %arg4: memref<512x256xbf16, #tpu.memory_space<vmem>>, %arg5: memref<1x256xf32, #tpu.memory_space<vmem>>, %arg6: memref<1x256xf32, #tpu.memory_space<vmem>>, %arg7: memref<1x256xf32, #tpu.memory_space<vmem>>, %arg8: memref<64x256xf32, #tpu.memory_space<vmem>>) attributes {dimension_semantics = [#tpu.dimension_semantics<parallel>], iteration_bounds = array<i64: 2>, scalar_prefetch = 0 : i64, scratch_operands = 0 : i64, tpu.core_type = #tpu.core_type<tc>, window_params = [{transform_indices = @transform_0, window_bounds = array<i64: 64, 256>}, {pipeline_mode = #tpu.pipeline_mode<synchronous>, transform_indices = @transform_1, window_bounds = array<i64: 256, 512>}, {pipeline_mode = #tpu.pipeline_mode<synchronous>, transform_indices = @transform_2, window_bounds = array<i64: 1, 512>}, {pipeline_mode = #tpu.pipeline_mode<synchronous>, transform_indices = @transform_3, window_bounds = array<i64: 512, 256>}, {pipeline_mode = #tpu.pipeline_mode<synchronous>, transform_indices = @transform_4, window_bounds = array<i64: 1, 256>}, {pipeline_mode = #tpu.pipeline_mode<synchronous>, transform_indices = @transform_5, window_bounds = array<i64: 1, 256>}, {pipeline_mode = #tpu.pipeline_mode<synchronous>, transform_indices = @transform_6, window_bounds = array<i64: 1, 256>}, {transform_indices = @transform_7, window_bounds = array<i64: 64, 256>}]} {
    %c0 = arith.constant 0 : index
    %c0_0 = arith.constant 0 : index
    %0 = vector.load %arg1[%c0, %c0_0] : memref<64x256xf32, #tpu.memory_space<vmem>>, vector<64x256xf32>
    %1 = arith.truncf %0 : vector<64x256xf32> to vector<64x256xbf16>
    %c0_1 = arith.constant 0 : index
    %c0_2 = arith.constant 0 : index
    %2 = vector.load %arg2[%c0_1, %c0_2] : memref<256x512xbf16, #tpu.memory_space<vmem>>, vector<256x512xbf16>
    %cst = arith.constant dense<0.000000e+00> : vector<64x512xf32>
    %3 = tpu.matmul %1, %2, %cst {dimension_numbers = #tpu.dot_dimension_numbers<[1], [0], [0], [1], [0, 0, 1, 1], [], []>} : vector<64x256xbf16>, vector<256x512xbf16>, vector<64x512xf32> -> vector<64x512xf32>
    %c0_3 = arith.constant 0 : index
    %c0_4 = arith.constant 0 : index
    %4 = vector.load %arg3[%c0_3, %c0_4] : memref<1x512xf32, #tpu.memory_space<vmem>>, vector<1x512xf32>
    %5 = vector.broadcast %4 : vector<1x512xf32> to vector<64x512xf32>
    %6 = arith.addf %3, %5 : vector<64x512xf32>
    %cst_5 = arith.constant 0.000000e+00 : f32
    %7 = vector.broadcast %cst_5 : f32 to vector<64x512xf32>
    %8 = arith.maximumf %6, %7 : vector<64x512xf32>
    %9 = arith.truncf %8 : vector<64x512xf32> to vector<64x512xbf16>
    %c0_6 = arith.constant 0 : index
    %c0_7 = arith.constant 0 : index
    %10 = vector.load %arg4[%c0_6, %c0_7] : memref<512x256xbf16, #tpu.memory_space<vmem>>, vector<512x256xbf16>
    %cst_8 = arith.constant dense<0.000000e+00> : vector<64x256xf32>
    %11 = tpu.matmul %9, %10, %cst_8 {dimension_numbers = #tpu.dot_dimension_numbers<[1], [0], [0], [1], [0, 0, 1, 1], [], []>} : vector<64x512xbf16>, vector<512x256xbf16>, vector<64x256xf32> -> vector<64x256xf32>
    %c0_9 = arith.constant 0 : index
    %c0_10 = arith.constant 0 : index
    %12 = vector.load %arg5[%c0_9, %c0_10] : memref<1x256xf32, #tpu.memory_space<vmem>>, vector<1x256xf32>
    %13 = vector.broadcast %12 : vector<1x256xf32> to vector<64x256xf32>
    %14 = arith.addf %11, %13 : vector<64x256xf32>
    %15 = arith.addf %0, %14 : vector<64x256xf32>
    %cst_11 = arith.constant dense<0.000000e+00> : vector<64xf32>
    %16 = vector.multi_reduction <add>, %15, %cst_11 [1] : vector<64x256xf32> to vector<64xf32>
    %17 = vector.shape_cast %16 : vector<64xf32> to vector<64x1xf32>
    %cst_12 = arith.constant 2.560000e+02 : f32
    %18 = vector.broadcast %cst_12 : f32 to vector<64x1xf32>
    %19 = arith.divf %17, %18 : vector<64x1xf32>
    %20 = vector.broadcast %19 : vector<64x1xf32> to vector<64x256xf32>
    %21 = arith.subf %15, %20 : vector<64x256xf32>
    %22 = arith.mulf %21, %21 : vector<64x256xf32>
    %cst_13 = arith.constant dense<0.000000e+00> : vector<64xf32>
    %23 = vector.multi_reduction <add>, %22, %cst_13 [1] : vector<64x256xf32> to vector<64xf32>
    %24 = vector.shape_cast %23 : vector<64xf32> to vector<64x1xf32>
    %cst_14 = arith.constant 2.560000e+02 : f32
    %25 = vector.broadcast %cst_14 : f32 to vector<64x1xf32>
    %26 = arith.divf %24, %25 : vector<64x1xf32>
    %27 = vector.broadcast %19 : vector<64x1xf32> to vector<64x256xf32>
    %28 = arith.subf %15, %27 : vector<64x256xf32>
    %cst_15 = arith.constant 9.99999974E-6 : f32
    %29 = vector.broadcast %cst_15 : f32 to vector<64x1xf32>
    %30 = arith.addf %26, %29 : vector<64x1xf32>
    %31 = math.rsqrt %30 : vector<64x1xf32>
    %32 = vector.broadcast %31 : vector<64x1xf32> to vector<64x256xf32>
    %33 = arith.mulf %28, %32 : vector<64x256xf32>
    %c0_16 = arith.constant 0 : index
    %c0_17 = arith.constant 0 : index
    %34 = vector.load %arg6[%c0_16, %c0_17] : memref<1x256xf32, #tpu.memory_space<vmem>>, vector<1x256xf32>
    %35 = vector.broadcast %34 : vector<1x256xf32> to vector<64x256xf32>
    %36 = arith.mulf %33, %35 : vector<64x256xf32>
    %c0_18 = arith.constant 0 : index
    %c0_19 = arith.constant 0 : index
    %37 = vector.load %arg7[%c0_18, %c0_19] : memref<1x256xf32, #tpu.memory_space<vmem>>, vector<1x256xf32>
    %38 = vector.broadcast %37 : vector<1x256xf32> to vector<64x256xf32>
    %39 = arith.addf %36, %38 : vector<64x256xf32>
    %c0_20 = arith.constant 0 : index
    %c0_21 = arith.constant 0 : index
    %40 = vector.load %arg8[%c0_20, %c0_21] : memref<64x256xf32, #tpu.memory_space<vmem>>, vector<64x256xf32>
    tpu.vector_store %arg8[%c0_20, %c0_21], %39 {strides = array<i32>} : memref<64x256xf32, #tpu.memory_space<vmem>>, vector<64x256xf32>,
    return
  }
  func.func @transform_0(%arg0: i32) -> (i32, i32) {
    %c0_i32 = arith.constant 0 : i32
    %c0_i32_0 = arith.constant 0 : i32
    return %arg0, %c0_i32 : i32, i32
  }
  func.func @transform_1(%arg0: i32) -> (i32, i32) {
    %c0_i32 = arith.constant 0 : i32
    %c0_i32_0 = arith.constant 0 : i32
    %c0_i32_1 = arith.constant 0 : i32
    return %c0_i32, %c0_i32_0 : i32, i32
  }
  func.func @transform_2(%arg0: i32) -> (i32, i32) {
    %c0_i32 = arith.constant 0 : i32
    %c0_i32_0 = arith.constant 0 : i32
    %c0_i32_1 = arith.constant 0 : i32
    return %c0_i32, %c0_i32_0 : i32, i32
  }
  func.func @transform_3(%arg0: i32) -> (i32, i32) {
    %c0_i32 = arith.constant 0 : i32
    %c0_i32_0 = arith.constant 0 : i32
    %c0_i32_1 = arith.constant 0 : i32
    return %c0_i32, %c0_i32_0 : i32, i32
  }
  func.func @transform_4(%arg0: i32) -> (i32, i32) {
    %c0_i32 = arith.constant 0 : i32
    %c0_i32_0 = arith.constant 0 : i32
    %c0_i32_1 = arith.constant 0 : i32
    return %c0_i32, %c0_i32_0 : i32, i32
  }
  func.func @transform_5(%arg0: i32) -> (i32, i32) {
    %c0_i32 = arith.constant 0 : i32
    %c0_i32_0 = arith.constant 0 : i32
    %c0_i32_1 = arith.constant 0 : i32
    return %c0_i32, %c0_i32_0 : i32, i32
  }
  func.func @transform_6(%arg0: i32) -> (i32, i32) {
    %c0_i32 = arith.constant 0 : i32
    %c0_i32_0 = arith.constant 0 : i32
    %c0_i32_1 = arith.constant 0 : i32
    return %c0_i32, %c0_i32_0 : i32, i32
  }
  func.func @transform_7(%arg0: i32) -> (i32, i32) {
    %c0_i32 = arith.constant 0 : i32
    %c0_i32_0 = arith.constant 0 : i32
    return %arg0, %c0_i32 : i32, i32
  }
}

module attributes {stable_mosaic.version = 11 : i64} {
  func.func @mha_addnorm_kernel(%arg0: i32, %arg1: memref<1x64x256xf32, #tpu.memory_space<vmem>>, %arg2: memref<64x64xf32, #tpu.memory_space<vmem>>, %arg3: memref<256x256xbf16, #tpu.memory_space<vmem>>, %arg4: memref<1x256xf32, #tpu.memory_space<vmem>>, %arg5: memref<256x256xbf16, #tpu.memory_space<vmem>>, %arg6: memref<1x256xf32, #tpu.memory_space<vmem>>, %arg7: memref<256x256xbf16, #tpu.memory_space<vmem>>, %arg8: memref<1x256xf32, #tpu.memory_space<vmem>>, %arg9: memref<256x256xbf16, #tpu.memory_space<vmem>>, %arg10: memref<1x256xf32, #tpu.memory_space<vmem>>, %arg11: memref<1x256xf32, #tpu.memory_space<vmem>>, %arg12: memref<1x256xf32, #tpu.memory_space<vmem>>, %arg13: memref<1x64x256xf32, #tpu.memory_space<vmem>>) attributes {dimension_semantics = [#tpu.dimension_semantics<parallel>], iteration_bounds = array<i64: 2>, scalar_prefetch = 0 : i64, scratch_operands = 0 : i64, tpu.core_type = #tpu.core_type<tc>, window_params = [{transform_indices = @transform_0, window_bounds = array<i64: 1, 64, 256>}, {pipeline_mode = #tpu.pipeline_mode<synchronous>, transform_indices = @transform_1, window_bounds = array<i64: 64, 64>}, {pipeline_mode = #tpu.pipeline_mode<synchronous>, transform_indices = @transform_2, window_bounds = array<i64: 256, 256>}, {pipeline_mode = #tpu.pipeline_mode<synchronous>, transform_indices = @transform_3, window_bounds = array<i64: 1, 256>}, {pipeline_mode = #tpu.pipeline_mode<synchronous>, transform_indices = @transform_4, window_bounds = array<i64: 256, 256>}, {pipeline_mode = #tpu.pipeline_mode<synchronous>, transform_indices = @transform_5, window_bounds = array<i64: 1, 256>}, {pipeline_mode = #tpu.pipeline_mode<synchronous>, transform_indices = @transform_6, window_bounds = array<i64: 256, 256>}, {pipeline_mode = #tpu.pipeline_mode<synchronous>, transform_indices = @transform_7, window_bounds = array<i64: 1, 256>}, {pipeline_mode = #tpu.pipeline_mode<synchronous>, transform_indices = @transform_8, window_bounds = array<i64: 256, 256>}, {pipeline_mode = #tpu.pipeline_mode<synchronous>, transform_indices = @transform_9, window_bounds = array<i64: 1, 256>}, {pipeline_mode = #tpu.pipeline_mode<synchronous>, transform_indices = @transform_10, window_bounds = array<i64: 1, 256>}, {pipeline_mode = #tpu.pipeline_mode<synchronous>, transform_indices = @transform_11, window_bounds = array<i64: 1, 256>}, {transform_indices = @transform_12, window_bounds = array<i64: 1, 64, 256>}]} {
    %c0 = arith.constant 0 : index
    %c0_0 = arith.constant 0 : index
    %c0_1 = arith.constant 0 : index
    %0 = vector.load %arg1[%c0, %c0_0, %c0_1] : memref<1x64x256xf32, #tpu.memory_space<vmem>>, vector<1x64x256xf32>
    %1 = vector.shape_cast %0 : vector<1x64x256xf32> to vector<64x256xf32>
    %c0_2 = arith.constant 0 : index
    %c0_3 = arith.constant 0 : index
    %2 = vector.load %arg2[%c0_2, %c0_3] : memref<64x64xf32, #tpu.memory_space<vmem>>, vector<64x64xf32>
    %cst = arith.constant 1.000000e+00 : f32
    %3 = vector.broadcast %cst : f32 to vector<64x64xf32>
    %4 = arith.subf %2, %3 : vector<64x64xf32>
    %cst_4 = arith.constant 1.000000e+09 : f32
    %5 = vector.broadcast %cst_4 : f32 to vector<64x64xf32>
    %6 = arith.mulf %4, %5 : vector<64x64xf32>
    %7 = arith.truncf %1 : vector<64x256xf32> to vector<64x256xbf16>
    %c0_5 = arith.constant 0 : index
    %c0_6 = arith.constant 0 : index
    %8 = vector.load %arg3[%c0_5, %c0_6] : memref<256x256xbf16, #tpu.memory_space<vmem>>, vector<256x256xbf16>
    %cst_7 = arith.constant dense<0.000000e+00> : vector<64x256xf32>
    %9 = tpu.matmul %7, %8, %cst_7 {dimension_numbers = #tpu.dot_dimension_numbers<[1], [0], [0], [1], [0, 0, 1, 1], [], []>} : vector<64x256xbf16>, vector<256x256xbf16>, vector<64x256xf32> -> vector<64x256xf32>
    %c0_8 = arith.constant 0 : index
    %c0_9 = arith.constant 0 : index
    %10 = vector.load %arg4[%c0_8, %c0_9] : memref<1x256xf32, #tpu.memory_space<vmem>>, vector<1x256xf32>
    %11 = vector.broadcast %10 : vector<1x256xf32> to vector<64x256xf32>
    %12 = arith.addf %9, %11 : vector<64x256xf32>
    %13 = arith.truncf %12 : vector<64x256xf32> to vector<64x256xbf16>
    %c0_10 = arith.constant 0 : index
    %c0_11 = arith.constant 0 : index
    %14 = vector.load %arg5[%c0_10, %c0_11] : memref<256x256xbf16, #tpu.memory_space<vmem>>, vector<256x256xbf16>
    %cst_12 = arith.constant dense<0.000000e+00> : vector<64x256xf32>
    %15 = tpu.matmul %7, %14, %cst_12 {dimension_numbers = #tpu.dot_dimension_numbers<[1], [0], [0], [1], [0, 0, 1, 1], [], []>} : vector<64x256xbf16>, vector<256x256xbf16>, vector<64x256xf32> -> vector<64x256xf32>
    %c0_13 = arith.constant 0 : index
    %c0_14 = arith.constant 0 : index
    %16 = vector.load %arg6[%c0_13, %c0_14] : memref<1x256xf32, #tpu.memory_space<vmem>>, vector<1x256xf32>
    %17 = vector.broadcast %16 : vector<1x256xf32> to vector<64x256xf32>
    %18 = arith.addf %15, %17 : vector<64x256xf32>
    %19 = arith.truncf %18 : vector<64x256xf32> to vector<64x256xbf16>
    %c0_15 = arith.constant 0 : index
    %c0_16 = arith.constant 0 : index
    %20 = vector.load %arg7[%c0_15, %c0_16] : memref<256x256xbf16, #tpu.memory_space<vmem>>, vector<256x256xbf16>
    %cst_17 = arith.constant dense<0.000000e+00> : vector<64x256xf32>
    %21 = tpu.matmul %7, %20, %cst_17 {dimension_numbers = #tpu.dot_dimension_numbers<[1], [0], [0], [1], [0, 0, 1, 1], [], []>} : vector<64x256xbf16>, vector<256x256xbf16>, vector<64x256xf32> -> vector<64x256xf32>
    %c0_18 = arith.constant 0 : index
    %c0_19 = arith.constant 0 : index
    %22 = vector.load %arg8[%c0_18, %c0_19] : memref<1x256xf32, #tpu.memory_space<vmem>>, vector<1x256xf32>
    %23 = vector.broadcast %22 : vector<1x256xf32> to vector<64x256xf32>
    %24 = arith.addf %21, %23 : vector<64x256xf32>
    %25 = arith.truncf %24 : vector<64x256xf32> to vector<64x256xbf16>
    %cst_20 = arith.constant 0.000000e+00 : f32
    %26 = vector.broadcast %cst_20 : f32 to vector<64x256xf32>
    %27 = vector.extract_strided_slice %13 {offsets = [0, 0], sizes = [64, 128], strides = [1, 1]} : vector<64x256xbf16> to vector<64x128xbf16>
    %28 = vector.extract_strided_slice %19 {offsets = [0, 0], sizes = [64, 128], strides = [1, 1]} : vector<64x256xbf16> to vector<64x128xbf16>
    %29 = vector.extract_strided_slice %25 {offsets = [0, 0], sizes = [64, 128], strides = [1, 1]} : vector<64x256xbf16> to vector<64x128xbf16>
    %cst_21 = arith.constant dense<0.000000e+00> : vector<64x64xf32>
    %30 = tpu.matmul %27, %28, %cst_21 {dimension_numbers = #tpu.dot_dimension_numbers<[1], [1], [0], [0], [0, 0, 1, 0], [], []>} : vector<64x128xbf16>, vector<64x128xbf16>, vector<64x64xf32> -> vector<64x64xf32>
    %cst_22 = arith.constant 0.0883883461 : f32
    %31 = vector.broadcast %cst_22 : f32 to vector<64x64xf32>
    %32 = arith.mulf %30, %31 : vector<64x64xf32>
    %33 = arith.addf %32, %6 : vector<64x64xf32>
    %cst_23 = arith.constant dense<0xFF800000> : vector<64xf32>
    %34 = vector.multi_reduction <maximumf>, %33, %cst_23 [1] : vector<64x64xf32> to vector<64xf32>
    %35 = vector.shape_cast %34 : vector<64xf32> to vector<64x1xf32>
    %36 = vector.broadcast %35 : vector<64x1xf32> to vector<64x64xf32>
    %37 = arith.subf %33, %36 : vector<64x64xf32>
    %38 = math.exp %37 : vector<64x64xf32>
    %cst_24 = arith.constant dense<0.000000e+00> : vector<64xf32>
    %39 = vector.multi_reduction <add>, %38, %cst_24 [1] : vector<64x64xf32> to vector<64xf32>
    %40 = vector.shape_cast %39 : vector<64xf32> to vector<64x1xf32>
    %41 = tpu.reciprocal %40 {approx = true} : vector<64x1xf32> -> vector<64x1xf32>
    %42 = vector.broadcast %41 : vector<64x1xf32> to vector<64x64xf32>
    %43 = arith.mulf %38, %42 : vector<64x64xf32>
    %44 = arith.truncf %43 : vector<64x64xf32> to vector<64x64xbf16>
    %cst_25 = arith.constant dense<0.000000e+00> : vector<64x128xf32>
    %45 = tpu.matmul %44, %29, %cst_25 {dimension_numbers = #tpu.dot_dimension_numbers<[1], [0], [0], [1], [0, 0, 1, 1], [], []>} : vector<64x64xbf16>, vector<64x128xbf16>, vector<64x128xf32> -> vector<64x128xf32>
    %46 = arith.truncf %45 : vector<64x128xf32> to vector<64x128xbf16>
    %c0_26 = arith.constant 0 : index
    %c0_27 = arith.constant 0 : index
    %47 = vector.load %arg9[%c0_26, %c0_27] : memref<256x256xbf16, #tpu.memory_space<vmem>>, vector<128x256xbf16>
    %cst_28 = arith.constant dense<0.000000e+00> : vector<64x256xf32>
    %48 = tpu.matmul %46, %47, %cst_28 {dimension_numbers = #tpu.dot_dimension_numbers<[1], [0], [0], [1], [0, 0, 1, 1], [], []>} : vector<64x128xbf16>, vector<128x256xbf16>, vector<64x256xf32> -> vector<64x256xf32>
    %49 = arith.addf %26, %48 : vector<64x256xf32>
    %50 = vector.extract_strided_slice %13 {offsets = [0, 128], sizes = [64, 128], strides = [1, 1]} : vector<64x256xbf16> to vector<64x128xbf16>
    %51 = vector.extract_strided_slice %19 {offsets = [0, 128], sizes = [64, 128], strides = [1, 1]} : vector<64x256xbf16> to vector<64x128xbf16>
    %52 = vector.extract_strided_slice %25 {offsets = [0, 128], sizes = [64, 128], strides = [1, 1]} : vector<64x256xbf16> to vector<64x128xbf16>
    %cst_29 = arith.constant dense<0.000000e+00> : vector<64x64xf32>
    %53 = tpu.matmul %50, %51, %cst_29 {dimension_numbers = #tpu.dot_dimension_numbers<[1], [1], [0], [0], [0, 0, 1, 0], [], []>} : vector<64x128xbf16>, vector<64x128xbf16>, vector<64x64xf32> -> vector<64x64xf32>
    %cst_30 = arith.constant 0.0883883461 : f32
    %54 = vector.broadcast %cst_30 : f32 to vector<64x64xf32>
    %55 = arith.mulf %53, %54 : vector<64x64xf32>
    %56 = arith.addf %55, %6 : vector<64x64xf32>
    %cst_31 = arith.constant dense<0xFF800000> : vector<64xf32>
    %57 = vector.multi_reduction <maximumf>, %56, %cst_31 [1] : vector<64x64xf32> to vector<64xf32>
    %58 = vector.shape_cast %57 : vector<64xf32> to vector<64x1xf32>
    %59 = vector.broadcast %58 : vector<64x1xf32> to vector<64x64xf32>
    %60 = arith.subf %56, %59 : vector<64x64xf32>
    %61 = math.exp %60 : vector<64x64xf32>
    %cst_32 = arith.constant dense<0.000000e+00> : vector<64xf32>
    %62 = vector.multi_reduction <add>, %61, %cst_32 [1] : vector<64x64xf32> to vector<64xf32>
    %63 = vector.shape_cast %62 : vector<64xf32> to vector<64x1xf32>
    %64 = tpu.reciprocal %63 {approx = true} : vector<64x1xf32> -> vector<64x1xf32>
    %65 = vector.broadcast %64 : vector<64x1xf32> to vector<64x64xf32>
    %66 = arith.mulf %61, %65 : vector<64x64xf32>
    %67 = arith.truncf %66 : vector<64x64xf32> to vector<64x64xbf16>
    %cst_33 = arith.constant dense<0.000000e+00> : vector<64x128xf32>
    %68 = tpu.matmul %67, %52, %cst_33 {dimension_numbers = #tpu.dot_dimension_numbers<[1], [0], [0], [1], [0, 0, 1, 1], [], []>} : vector<64x64xbf16>, vector<64x128xbf16>, vector<64x128xf32> -> vector<64x128xf32>
    %69 = arith.truncf %68 : vector<64x128xf32> to vector<64x128xbf16>
    %c128 = arith.constant 128 : index
    %c0_34 = arith.constant 0 : index
    %70 = vector.load %arg9[%c128, %c0_34] : memref<256x256xbf16, #tpu.memory_space<vmem>>, vector<128x256xbf16>
    %cst_35 = arith.constant dense<0.000000e+00> : vector<64x256xf32>
    %71 = tpu.matmul %69, %70, %cst_35 {dimension_numbers = #tpu.dot_dimension_numbers<[1], [0], [0], [1], [0, 0, 1, 1], [], []>} : vector<64x128xbf16>, vector<128x256xbf16>, vector<64x256xf32> -> vector<64x256xf32>
    %72 = arith.addf %49, %71 : vector<64x256xf32>
    %73 = arith.addf %1, %72 : vector<64x256xf32>
    %c0_36 = arith.constant 0 : index
    %c0_37 = arith.constant 0 : index
    %74 = vector.load %arg10[%c0_36, %c0_37] : memref<1x256xf32, #tpu.memory_space<vmem>>, vector<1x256xf32>
    %75 = vector.broadcast %74 : vector<1x256xf32> to vector<64x256xf32>
    %76 = arith.addf %73, %75 : vector<64x256xf32>
    %cst_38 = arith.constant dense<0.000000e+00> : vector<64xf32>
    %77 = vector.multi_reduction <add>, %76, %cst_38 [1] : vector<64x256xf32> to vector<64xf32>
    %78 = vector.shape_cast %77 : vector<64xf32> to vector<64x1xf32>
    %cst_39 = arith.constant 2.560000e+02 : f32
    %79 = vector.broadcast %cst_39 : f32 to vector<64x1xf32>
    %80 = arith.divf %78, %79 : vector<64x1xf32>
    %81 = vector.broadcast %80 : vector<64x1xf32> to vector<64x256xf32>
    %82 = arith.subf %76, %81 : vector<64x256xf32>
    %83 = arith.mulf %82, %82 : vector<64x256xf32>
    %cst_40 = arith.constant dense<0.000000e+00> : vector<64xf32>
    %84 = vector.multi_reduction <add>, %83, %cst_40 [1] : vector<64x256xf32> to vector<64xf32>
    %85 = vector.shape_cast %84 : vector<64xf32> to vector<64x1xf32>
    %cst_41 = arith.constant 2.560000e+02 : f32
    %86 = vector.broadcast %cst_41 : f32 to vector<64x1xf32>
    %87 = arith.divf %85, %86 : vector<64x1xf32>
    %88 = vector.broadcast %80 : vector<64x1xf32> to vector<64x256xf32>
    %89 = arith.subf %76, %88 : vector<64x256xf32>
    %cst_42 = arith.constant 9.99999974E-6 : f32
    %90 = vector.broadcast %cst_42 : f32 to vector<64x1xf32>
    %91 = arith.addf %87, %90 : vector<64x1xf32>
    %92 = math.rsqrt %91 : vector<64x1xf32>
    %93 = vector.broadcast %92 : vector<64x1xf32> to vector<64x256xf32>
    %94 = arith.mulf %89, %93 : vector<64x256xf32>
    %c0_43 = arith.constant 0 : index
    %c0_44 = arith.constant 0 : index
    %95 = vector.load %arg11[%c0_43, %c0_44] : memref<1x256xf32, #tpu.memory_space<vmem>>, vector<1x256xf32>
    %96 = vector.broadcast %95 : vector<1x256xf32> to vector<64x256xf32>
    %97 = arith.mulf %94, %96 : vector<64x256xf32>
    %c0_45 = arith.constant 0 : index
    %c0_46 = arith.constant 0 : index
    %98 = vector.load %arg12[%c0_45, %c0_46] : memref<1x256xf32, #tpu.memory_space<vmem>>, vector<1x256xf32>
    %99 = vector.broadcast %98 : vector<1x256xf32> to vector<64x256xf32>
    %100 = arith.addf %97, %99 : vector<64x256xf32>
    %c0_47 = arith.constant 0 : index
    %c0_48 = arith.constant 0 : index
    %c0_49 = arith.constant 0 : index
    %101 = vector.load %arg13[%c0_47, %c0_48, %c0_49] : memref<1x64x256xf32, #tpu.memory_space<vmem>>, vector<1x64x256xf32>
    %102 = vector.shape_cast %101 : vector<1x64x256xf32> to vector<64x256xf32>
    %103 = vector.shape_cast %100 : vector<64x256xf32> to vector<1x64x256xf32>
    tpu.vector_store %arg13[%c0_47, %c0_48, %c0_49], %103 {strides = array<i32>} : memref<1x64x256xf32, #tpu.memory_space<vmem>>, vector<1x64x256xf32>,
    return
  }
  func.func @transform_0(%arg0: i32) -> (i32, i32, i32) {
    %c0_i32 = arith.constant 0 : i32
    %c0_i32_0 = arith.constant 0 : i32
    %c0_i32_1 = arith.constant 0 : i32
    return %arg0, %c0_i32, %c0_i32_0 : i32, i32, i32
  }
  func.func @transform_1(%arg0: i32) -> (i32, i32) {
    %c0_i32 = arith.constant 0 : i32
    %c0_i32_0 = arith.constant 0 : i32
    %c0_i32_1 = arith.constant 0 : i32
    return %c0_i32, %c0_i32_0 : i32, i32
  }
  func.func @transform_2(%arg0: i32) -> (i32, i32) {
    %c0_i32 = arith.constant 0 : i32
    %c0_i32_0 = arith.constant 0 : i32
    %c0_i32_1 = arith.constant 0 : i32
    return %c0_i32, %c0_i32_0 : i32, i32
  }
  func.func @transform_3(%arg0: i32) -> (i32, i32) {
    %c0_i32 = arith.constant 0 : i32
    %c0_i32_0 = arith.constant 0 : i32
    %c0_i32_1 = arith.constant 0 : i32
    return %c0_i32, %c0_i32_0 : i32, i32
  }
  func.func @transform_4(%arg0: i32) -> (i32, i32) {
    %c0_i32 = arith.constant 0 : i32
    %c0_i32_0 = arith.constant 0 : i32
    %c0_i32_1 = arith.constant 0 : i32
    return %c0_i32, %c0_i32_0 : i32, i32
  }
  func.func @transform_5(%arg0: i32) -> (i32, i32) {
    %c0_i32 = arith.constant 0 : i32
    %c0_i32_0 = arith.constant 0 : i32
    %c0_i32_1 = arith.constant 0 : i32
    return %c0_i32, %c0_i32_0 : i32, i32
  }
  func.func @transform_6(%arg0: i32) -> (i32, i32) {
    %c0_i32 = arith.constant 0 : i32
    %c0_i32_0 = arith.constant 0 : i32
    %c0_i32_1 = arith.constant 0 : i32
    return %c0_i32, %c0_i32_0 : i32, i32
  }
  func.func @transform_7(%arg0: i32) -> (i32, i32) {
    %c0_i32 = arith.constant 0 : i32
    %c0_i32_0 = arith.constant 0 : i32
    %c0_i32_1 = arith.constant 0 : i32
    return %c0_i32, %c0_i32_0 : i32, i32
  }
  func.func @transform_8(%arg0: i32) -> (i32, i32) {
    %c0_i32 = arith.constant 0 : i32
    %c0_i32_0 = arith.constant 0 : i32
    %c0_i32_1 = arith.constant 0 : i32
    return %c0_i32, %c0_i32_0 : i32, i32
  }
  func.func @transform_9(%arg0: i32) -> (i32, i32) {
    %c0_i32 = arith.constant 0 : i32
    %c0_i32_0 = arith.constant 0 : i32
    %c0_i32_1 = arith.constant 0 : i32
    return %c0_i32, %c0_i32_0 : i32, i32
  }
  func.func @transform_10(%arg0: i32) -> (i32, i32) {
    %c0_i32 = arith.constant 0 : i32
    %c0_i32_0 = arith.constant 0 : i32
    %c0_i32_1 = arith.constant 0 : i32
    return %c0_i32, %c0_i32_0 : i32, i32
  }
  func.func @transform_11(%arg0: i32) -> (i32, i32) {
    %c0_i32 = arith.constant 0 : i32
    %c0_i32_0 = arith.constant 0 : i32
    %c0_i32_1 = arith.constant 0 : i32
    return %c0_i32, %c0_i32_0 : i32, i32
  }
  func.func @transform_12(%arg0: i32) -> (i32, i32, i32) {
    %c0_i32 = arith.constant 0 : i32
    %c0_i32_0 = arith.constant 0 : i32
    %c0_i32_1 = arith.constant 0 : i32
    return %arg0, %c0_i32, %c0_i32_0 : i32, i32, i32
  }
}

module attributes {stable_mosaic.version = 11 : i64} {
  func.func @mha_addnorm_kernel(%arg0: i32, %arg1: memref<1x64x256xf32, #tpu.memory_space<vmem>>, %arg2: memref<1x64x256xf32, #tpu.memory_space<vmem>>, %arg3: memref<64x64xf32, #tpu.memory_space<vmem>>, %arg4: memref<256x256xbf16, #tpu.memory_space<vmem>>, %arg5: memref<1x256xf32, #tpu.memory_space<vmem>>, %arg6: memref<256x256xbf16, #tpu.memory_space<vmem>>, %arg7: memref<1x256xf32, #tpu.memory_space<vmem>>, %arg8: memref<256x256xbf16, #tpu.memory_space<vmem>>, %arg9: memref<1x256xf32, #tpu.memory_space<vmem>>, %arg10: memref<256x256xbf16, #tpu.memory_space<vmem>>, %arg11: memref<1x256xf32, #tpu.memory_space<vmem>>, %arg12: memref<1x256xf32, #tpu.memory_space<vmem>>, %arg13: memref<1x256xf32, #tpu.memory_space<vmem>>, %arg14: memref<1x64x256xf32, #tpu.memory_space<vmem>>) attributes {dimension_semantics = [#tpu.dimension_semantics<parallel>], iteration_bounds = array<i64: 2>, scalar_prefetch = 0 : i64, scratch_operands = 0 : i64, tpu.core_type = #tpu.core_type<tc>, window_params = [{transform_indices = @transform_0, window_bounds = array<i64: 1, 64, 256>}, {transform_indices = @transform_1, window_bounds = array<i64: 1, 64, 256>}, {pipeline_mode = #tpu.pipeline_mode<synchronous>, transform_indices = @transform_2, window_bounds = array<i64: 64, 64>}, {pipeline_mode = #tpu.pipeline_mode<synchronous>, transform_indices = @transform_3, window_bounds = array<i64: 256, 256>}, {pipeline_mode = #tpu.pipeline_mode<synchronous>, transform_indices = @transform_4, window_bounds = array<i64: 1, 256>}, {pipeline_mode = #tpu.pipeline_mode<synchronous>, transform_indices = @transform_5, window_bounds = array<i64: 256, 256>}, {pipeline_mode = #tpu.pipeline_mode<synchronous>, transform_indices = @transform_6, window_bounds = array<i64: 1, 256>}, {pipeline_mode = #tpu.pipeline_mode<synchronous>, transform_indices = @transform_7, window_bounds = array<i64: 256, 256>}, {pipeline_mode = #tpu.pipeline_mode<synchronous>, transform_indices = @transform_8, window_bounds = array<i64: 1, 256>}, {pipeline_mode = #tpu.pipeline_mode<synchronous>, transform_indices = @transform_9, window_bounds = array<i64: 256, 256>}, {pipeline_mode = #tpu.pipeline_mode<synchronous>, transform_indices = @transform_10, window_bounds = array<i64: 1, 256>}, {pipeline_mode = #tpu.pipeline_mode<synchronous>, transform_indices = @transform_11, window_bounds = array<i64: 1, 256>}, {pipeline_mode = #tpu.pipeline_mode<synchronous>, transform_indices = @transform_12, window_bounds = array<i64: 1, 256>}, {transform_indices = @transform_13, window_bounds = array<i64: 1, 64, 256>}]} {
    %c0 = arith.constant 0 : index
    %c0_0 = arith.constant 0 : index
    %c0_1 = arith.constant 0 : index
    %0 = vector.load %arg1[%c0, %c0_0, %c0_1] : memref<1x64x256xf32, #tpu.memory_space<vmem>>, vector<1x64x256xf32>
    %1 = vector.shape_cast %0 : vector<1x64x256xf32> to vector<64x256xf32>
    %c0_2 = arith.constant 0 : index
    %c0_3 = arith.constant 0 : index
    %c0_4 = arith.constant 0 : index
    %2 = vector.load %arg2[%c0_2, %c0_3, %c0_4] : memref<1x64x256xf32, #tpu.memory_space<vmem>>, vector<1x64x256xf32>
    %3 = vector.shape_cast %2 : vector<1x64x256xf32> to vector<64x256xf32>
    %c0_5 = arith.constant 0 : index
    %c0_6 = arith.constant 0 : index
    %4 = vector.load %arg3[%c0_5, %c0_6] : memref<64x64xf32, #tpu.memory_space<vmem>>, vector<64x64xf32>
    %cst = arith.constant 1.000000e+00 : f32
    %5 = vector.broadcast %cst : f32 to vector<64x64xf32>
    %6 = arith.subf %4, %5 : vector<64x64xf32>
    %cst_7 = arith.constant 1.000000e+09 : f32
    %7 = vector.broadcast %cst_7 : f32 to vector<64x64xf32>
    %8 = arith.mulf %6, %7 : vector<64x64xf32>
    %9 = arith.truncf %1 : vector<64x256xf32> to vector<64x256xbf16>
    %10 = arith.truncf %3 : vector<64x256xf32> to vector<64x256xbf16>
    %c0_8 = arith.constant 0 : index
    %c0_9 = arith.constant 0 : index
    %11 = vector.load %arg4[%c0_8, %c0_9] : memref<256x256xbf16, #tpu.memory_space<vmem>>, vector<256x256xbf16>
    %cst_10 = arith.constant dense<0.000000e+00> : vector<64x256xf32>
    %12 = tpu.matmul %9, %11, %cst_10 {dimension_numbers = #tpu.dot_dimension_numbers<[1], [0], [0], [1], [0, 0, 1, 1], [], []>} : vector<64x256xbf16>, vector<256x256xbf16>, vector<64x256xf32> -> vector<64x256xf32>
    %c0_11 = arith.constant 0 : index
    %c0_12 = arith.constant 0 : index
    %13 = vector.load %arg5[%c0_11, %c0_12] : memref<1x256xf32, #tpu.memory_space<vmem>>, vector<1x256xf32>
    %14 = vector.broadcast %13 : vector<1x256xf32> to vector<64x256xf32>
    %15 = arith.addf %12, %14 : vector<64x256xf32>
    %16 = arith.truncf %15 : vector<64x256xf32> to vector<64x256xbf16>
    %c0_13 = arith.constant 0 : index
    %c0_14 = arith.constant 0 : index
    %17 = vector.load %arg6[%c0_13, %c0_14] : memref<256x256xbf16, #tpu.memory_space<vmem>>, vector<256x256xbf16>
    %cst_15 = arith.constant dense<0.000000e+00> : vector<64x256xf32>
    %18 = tpu.matmul %10, %17, %cst_15 {dimension_numbers = #tpu.dot_dimension_numbers<[1], [0], [0], [1], [0, 0, 1, 1], [], []>} : vector<64x256xbf16>, vector<256x256xbf16>, vector<64x256xf32> -> vector<64x256xf32>
    %c0_16 = arith.constant 0 : index
    %c0_17 = arith.constant 0 : index
    %19 = vector.load %arg7[%c0_16, %c0_17] : memref<1x256xf32, #tpu.memory_space<vmem>>, vector<1x256xf32>
    %20 = vector.broadcast %19 : vector<1x256xf32> to vector<64x256xf32>
    %21 = arith.addf %18, %20 : vector<64x256xf32>
    %22 = arith.truncf %21 : vector<64x256xf32> to vector<64x256xbf16>
    %c0_18 = arith.constant 0 : index
    %c0_19 = arith.constant 0 : index
    %23 = vector.load %arg8[%c0_18, %c0_19] : memref<256x256xbf16, #tpu.memory_space<vmem>>, vector<256x256xbf16>
    %cst_20 = arith.constant dense<0.000000e+00> : vector<64x256xf32>
    %24 = tpu.matmul %10, %23, %cst_20 {dimension_numbers = #tpu.dot_dimension_numbers<[1], [0], [0], [1], [0, 0, 1, 1], [], []>} : vector<64x256xbf16>, vector<256x256xbf16>, vector<64x256xf32> -> vector<64x256xf32>
    %c0_21 = arith.constant 0 : index
    %c0_22 = arith.constant 0 : index
    %25 = vector.load %arg9[%c0_21, %c0_22] : memref<1x256xf32, #tpu.memory_space<vmem>>, vector<1x256xf32>
    %26 = vector.broadcast %25 : vector<1x256xf32> to vector<64x256xf32>
    %27 = arith.addf %24, %26 : vector<64x256xf32>
    %28 = arith.truncf %27 : vector<64x256xf32> to vector<64x256xbf16>
    %cst_23 = arith.constant 0.000000e+00 : f32
    %29 = vector.broadcast %cst_23 : f32 to vector<64x256xf32>
    %30 = vector.extract_strided_slice %16 {offsets = [0, 0], sizes = [64, 128], strides = [1, 1]} : vector<64x256xbf16> to vector<64x128xbf16>
    %31 = vector.extract_strided_slice %22 {offsets = [0, 0], sizes = [64, 128], strides = [1, 1]} : vector<64x256xbf16> to vector<64x128xbf16>
    %32 = vector.extract_strided_slice %28 {offsets = [0, 0], sizes = [64, 128], strides = [1, 1]} : vector<64x256xbf16> to vector<64x128xbf16>
    %cst_24 = arith.constant dense<0.000000e+00> : vector<64x64xf32>
    %33 = tpu.matmul %30, %31, %cst_24 {dimension_numbers = #tpu.dot_dimension_numbers<[1], [1], [0], [0], [0, 0, 1, 0], [], []>} : vector<64x128xbf16>, vector<64x128xbf16>, vector<64x64xf32> -> vector<64x64xf32>
    %cst_25 = arith.constant 0.0883883461 : f32
    %34 = vector.broadcast %cst_25 : f32 to vector<64x64xf32>
    %35 = arith.mulf %33, %34 : vector<64x64xf32>
    %36 = arith.addf %35, %8 : vector<64x64xf32>
    %cst_26 = arith.constant dense<0xFF800000> : vector<64xf32>
    %37 = vector.multi_reduction <maximumf>, %36, %cst_26 [1] : vector<64x64xf32> to vector<64xf32>
    %38 = vector.shape_cast %37 : vector<64xf32> to vector<64x1xf32>
    %39 = vector.broadcast %38 : vector<64x1xf32> to vector<64x64xf32>
    %40 = arith.subf %36, %39 : vector<64x64xf32>
    %41 = math.exp %40 : vector<64x64xf32>
    %cst_27 = arith.constant dense<0.000000e+00> : vector<64xf32>
    %42 = vector.multi_reduction <add>, %41, %cst_27 [1] : vector<64x64xf32> to vector<64xf32>
    %43 = vector.shape_cast %42 : vector<64xf32> to vector<64x1xf32>
    %44 = tpu.reciprocal %43 {approx = true} : vector<64x1xf32> -> vector<64x1xf32>
    %45 = vector.broadcast %44 : vector<64x1xf32> to vector<64x64xf32>
    %46 = arith.mulf %41, %45 : vector<64x64xf32>
    %47 = arith.truncf %46 : vector<64x64xf32> to vector<64x64xbf16>
    %cst_28 = arith.constant dense<0.000000e+00> : vector<64x128xf32>
    %48 = tpu.matmul %47, %32, %cst_28 {dimension_numbers = #tpu.dot_dimension_numbers<[1], [0], [0], [1], [0, 0, 1, 1], [], []>} : vector<64x64xbf16>, vector<64x128xbf16>, vector<64x128xf32> -> vector<64x128xf32>
    %49 = arith.truncf %48 : vector<64x128xf32> to vector<64x128xbf16>
    %c0_29 = arith.constant 0 : index
    %c0_30 = arith.constant 0 : index
    %50 = vector.load %arg10[%c0_29, %c0_30] : memref<256x256xbf16, #tpu.memory_space<vmem>>, vector<128x256xbf16>
    %cst_31 = arith.constant dense<0.000000e+00> : vector<64x256xf32>
    %51 = tpu.matmul %49, %50, %cst_31 {dimension_numbers = #tpu.dot_dimension_numbers<[1], [0], [0], [1], [0, 0, 1, 1], [], []>} : vector<64x128xbf16>, vector<128x256xbf16>, vector<64x256xf32> -> vector<64x256xf32>
    %52 = arith.addf %29, %51 : vector<64x256xf32>
    %53 = vector.extract_strided_slice %16 {offsets = [0, 128], sizes = [64, 128], strides = [1, 1]} : vector<64x256xbf16> to vector<64x128xbf16>
    %54 = vector.extract_strided_slice %22 {offsets = [0, 128], sizes = [64, 128], strides = [1, 1]} : vector<64x256xbf16> to vector<64x128xbf16>
    %55 = vector.extract_strided_slice %28 {offsets = [0, 128], sizes = [64, 128], strides = [1, 1]} : vector<64x256xbf16> to vector<64x128xbf16>
    %cst_32 = arith.constant dense<0.000000e+00> : vector<64x64xf32>
    %56 = tpu.matmul %53, %54, %cst_32 {dimension_numbers = #tpu.dot_dimension_numbers<[1], [1], [0], [0], [0, 0, 1, 0], [], []>} : vector<64x128xbf16>, vector<64x128xbf16>, vector<64x64xf32> -> vector<64x64xf32>
    %cst_33 = arith.constant 0.0883883461 : f32
    %57 = vector.broadcast %cst_33 : f32 to vector<64x64xf32>
    %58 = arith.mulf %56, %57 : vector<64x64xf32>
    %59 = arith.addf %58, %8 : vector<64x64xf32>
    %cst_34 = arith.constant dense<0xFF800000> : vector<64xf32>
    %60 = vector.multi_reduction <maximumf>, %59, %cst_34 [1] : vector<64x64xf32> to vector<64xf32>
    %61 = vector.shape_cast %60 : vector<64xf32> to vector<64x1xf32>
    %62 = vector.broadcast %61 : vector<64x1xf32> to vector<64x64xf32>
    %63 = arith.subf %59, %62 : vector<64x64xf32>
    %64 = math.exp %63 : vector<64x64xf32>
    %cst_35 = arith.constant dense<0.000000e+00> : vector<64xf32>
    %65 = vector.multi_reduction <add>, %64, %cst_35 [1] : vector<64x64xf32> to vector<64xf32>
    %66 = vector.shape_cast %65 : vector<64xf32> to vector<64x1xf32>
    %67 = tpu.reciprocal %66 {approx = true} : vector<64x1xf32> -> vector<64x1xf32>
    %68 = vector.broadcast %67 : vector<64x1xf32> to vector<64x64xf32>
    %69 = arith.mulf %64, %68 : vector<64x64xf32>
    %70 = arith.truncf %69 : vector<64x64xf32> to vector<64x64xbf16>
    %cst_36 = arith.constant dense<0.000000e+00> : vector<64x128xf32>
    %71 = tpu.matmul %70, %55, %cst_36 {dimension_numbers = #tpu.dot_dimension_numbers<[1], [0], [0], [1], [0, 0, 1, 1], [], []>} : vector<64x64xbf16>, vector<64x128xbf16>, vector<64x128xf32> -> vector<64x128xf32>
    %72 = arith.truncf %71 : vector<64x128xf32> to vector<64x128xbf16>
    %c128 = arith.constant 128 : index
    %c0_37 = arith.constant 0 : index
    %73 = vector.load %arg10[%c128, %c0_37] : memref<256x256xbf16, #tpu.memory_space<vmem>>, vector<128x256xbf16>
    %cst_38 = arith.constant dense<0.000000e+00> : vector<64x256xf32>
    %74 = tpu.matmul %72, %73, %cst_38 {dimension_numbers = #tpu.dot_dimension_numbers<[1], [0], [0], [1], [0, 0, 1, 1], [], []>} : vector<64x128xbf16>, vector<128x256xbf16>, vector<64x256xf32> -> vector<64x256xf32>
    %75 = arith.addf %52, %74 : vector<64x256xf32>
    %76 = arith.addf %1, %75 : vector<64x256xf32>
    %c0_39 = arith.constant 0 : index
    %c0_40 = arith.constant 0 : index
    %77 = vector.load %arg11[%c0_39, %c0_40] : memref<1x256xf32, #tpu.memory_space<vmem>>, vector<1x256xf32>
    %78 = vector.broadcast %77 : vector<1x256xf32> to vector<64x256xf32>
    %79 = arith.addf %76, %78 : vector<64x256xf32>
    %cst_41 = arith.constant dense<0.000000e+00> : vector<64xf32>
    %80 = vector.multi_reduction <add>, %79, %cst_41 [1] : vector<64x256xf32> to vector<64xf32>
    %81 = vector.shape_cast %80 : vector<64xf32> to vector<64x1xf32>
    %cst_42 = arith.constant 2.560000e+02 : f32
    %82 = vector.broadcast %cst_42 : f32 to vector<64x1xf32>
    %83 = arith.divf %81, %82 : vector<64x1xf32>
    %84 = vector.broadcast %83 : vector<64x1xf32> to vector<64x256xf32>
    %85 = arith.subf %79, %84 : vector<64x256xf32>
    %86 = arith.mulf %85, %85 : vector<64x256xf32>
    %cst_43 = arith.constant dense<0.000000e+00> : vector<64xf32>
    %87 = vector.multi_reduction <add>, %86, %cst_43 [1] : vector<64x256xf32> to vector<64xf32>
    %88 = vector.shape_cast %87 : vector<64xf32> to vector<64x1xf32>
    %cst_44 = arith.constant 2.560000e+02 : f32
    %89 = vector.broadcast %cst_44 : f32 to vector<64x1xf32>
    %90 = arith.divf %88, %89 : vector<64x1xf32>
    %91 = vector.broadcast %83 : vector<64x1xf32> to vector<64x256xf32>
    %92 = arith.subf %79, %91 : vector<64x256xf32>
    %cst_45 = arith.constant 9.99999974E-6 : f32
    %93 = vector.broadcast %cst_45 : f32 to vector<64x1xf32>
    %94 = arith.addf %90, %93 : vector<64x1xf32>
    %95 = math.rsqrt %94 : vector<64x1xf32>
    %96 = vector.broadcast %95 : vector<64x1xf32> to vector<64x256xf32>
    %97 = arith.mulf %92, %96 : vector<64x256xf32>
    %c0_46 = arith.constant 0 : index
    %c0_47 = arith.constant 0 : index
    %98 = vector.load %arg12[%c0_46, %c0_47] : memref<1x256xf32, #tpu.memory_space<vmem>>, vector<1x256xf32>
    %99 = vector.broadcast %98 : vector<1x256xf32> to vector<64x256xf32>
    %100 = arith.mulf %97, %99 : vector<64x256xf32>
    %c0_48 = arith.constant 0 : index
    %c0_49 = arith.constant 0 : index
    %101 = vector.load %arg13[%c0_48, %c0_49] : memref<1x256xf32, #tpu.memory_space<vmem>>, vector<1x256xf32>
    %102 = vector.broadcast %101 : vector<1x256xf32> to vector<64x256xf32>
    %103 = arith.addf %100, %102 : vector<64x256xf32>
    %c0_50 = arith.constant 0 : index
    %c0_51 = arith.constant 0 : index
    %c0_52 = arith.constant 0 : index
    %104 = vector.load %arg14[%c0_50, %c0_51, %c0_52] : memref<1x64x256xf32, #tpu.memory_space<vmem>>, vector<1x64x256xf32>
    %105 = vector.shape_cast %104 : vector<1x64x256xf32> to vector<64x256xf32>
    %106 = vector.shape_cast %103 : vector<64x256xf32> to vector<1x64x256xf32>
    tpu.vector_store %arg14[%c0_50, %c0_51, %c0_52], %106 {strides = array<i32>} : memref<1x64x256xf32, #tpu.memory_space<vmem>>, vector<1x64x256xf32>,
    return
  }
  func.func @transform_0(%arg0: i32) -> (i32, i32, i32) {
    %c0_i32 = arith.constant 0 : i32
    %c0_i32_0 = arith.constant 0 : i32
    %c0_i32_1 = arith.constant 0 : i32
    return %arg0, %c0_i32, %c0_i32_0 : i32, i32, i32
  }
  func.func @transform_1(%arg0: i32) -> (i32, i32, i32) {
    %c0_i32 = arith.constant 0 : i32
    %c0_i32_0 = arith.constant 0 : i32
    %c0_i32_1 = arith.constant 0 : i32
    return %arg0, %c0_i32, %c0_i32_0 : i32, i32, i32
  }
  func.func @transform_2(%arg0: i32) -> (i32, i32) {
    %c0_i32 = arith.constant 0 : i32
    %c0_i32_0 = arith.constant 0 : i32
    %c0_i32_1 = arith.constant 0 : i32
    return %c0_i32, %c0_i32_0 : i32, i32
  }
  func.func @transform_3(%arg0: i32) -> (i32, i32) {
    %c0_i32 = arith.constant 0 : i32
    %c0_i32_0 = arith.constant 0 : i32
    %c0_i32_1 = arith.constant 0 : i32
    return %c0_i32, %c0_i32_0 : i32, i32
  }
  func.func @transform_4(%arg0: i32) -> (i32, i32) {
    %c0_i32 = arith.constant 0 : i32
    %c0_i32_0 = arith.constant 0 : i32
    %c0_i32_1 = arith.constant 0 : i32
    return %c0_i32, %c0_i32_0 : i32, i32
  }
  func.func @transform_5(%arg0: i32) -> (i32, i32) {
    %c0_i32 = arith.constant 0 : i32
    %c0_i32_0 = arith.constant 0 : i32
    %c0_i32_1 = arith.constant 0 : i32
    return %c0_i32, %c0_i32_0 : i32, i32
  }
  func.func @transform_6(%arg0: i32) -> (i32, i32) {
    %c0_i32 = arith.constant 0 : i32
    %c0_i32_0 = arith.constant 0 : i32
    %c0_i32_1 = arith.constant 0 : i32
    return %c0_i32, %c0_i32_0 : i32, i32
  }
  func.func @transform_7(%arg0: i32) -> (i32, i32) {
    %c0_i32 = arith.constant 0 : i32
    %c0_i32_0 = arith.constant 0 : i32
    %c0_i32_1 = arith.constant 0 : i32
    return %c0_i32, %c0_i32_0 : i32, i32
  }
  func.func @transform_8(%arg0: i32) -> (i32, i32) {
    %c0_i32 = arith.constant 0 : i32
    %c0_i32_0 = arith.constant 0 : i32
    %c0_i32_1 = arith.constant 0 : i32
    return %c0_i32, %c0_i32_0 : i32, i32
  }
  func.func @transform_9(%arg0: i32) -> (i32, i32) {
    %c0_i32 = arith.constant 0 : i32
    %c0_i32_0 = arith.constant 0 : i32
    %c0_i32_1 = arith.constant 0 : i32
    return %c0_i32, %c0_i32_0 : i32, i32
  }
  func.func @transform_10(%arg0: i32) -> (i32, i32) {
    %c0_i32 = arith.constant 0 : i32
    %c0_i32_0 = arith.constant 0 : i32
    %c0_i32_1 = arith.constant 0 : i32
    return %c0_i32, %c0_i32_0 : i32, i32
  }
  func.func @transform_11(%arg0: i32) -> (i32, i32) {
    %c0_i32 = arith.constant 0 : i32
    %c0_i32_0 = arith.constant 0 : i32
    %c0_i32_1 = arith.constant 0 : i32
    return %c0_i32, %c0_i32_0 : i32, i32
  }
  func.func @transform_12(%arg0: i32) -> (i32, i32) {
    %c0_i32 = arith.constant 0 : i32
    %c0_i32_0 = arith.constant 0 : i32
    %c0_i32_1 = arith.constant 0 : i32
    return %c0_i32, %c0_i32_0 : i32, i32
  }
  func.func @transform_13(%arg0: i32) -> (i32, i32, i32) {
    %c0_i32 = arith.constant 0 : i32
    %c0_i32_0 = arith.constant 0 : i32
    %c0_i32_1 = arith.constant 0 : i32
    return %arg0, %c0_i32, %c0_i32_0 : i32, i32, i32
  }
}

</mosaic_0001>

<bundles_post_ra>
// kernel: decoder_layer_forward.5
= control target key start
LH: loop header
LB: loop body
LE: loop exit
PB: predicated region body
PF: predicated region fallthrough
CT: control target
= control target key end

     0   :  { %s3677_s0 = inlined_call_operand.vmem [shape: f32[128,256], index: 0, kind: input, shape index: {}]   ;;  %s3678_s1 = inlined_call_operand.hbm [shape: bf16[256,512], index: 1, kind: input, shape index: {}]   ;;  %s3679_s2 = inlined_call_operand.vmem [shape: f32[1,512], index: 2, kind: input, shape index: {}]   ;;  %s3680_s3 = inlined_call_operand.hbm [shape: bf16[512,256], index: 3, kind: input, shape index: {}]   ;;  %s3681_s4 = inlined_call_operand.hbm [shape: f32[1,256], index: 4, kind: input, shape index: {}]   ;;  %s3682_s5 = inlined_call_operand.vmem [shape: f32[1,256], index: 5, kind: input, shape index: {}]   ;;  %s3683_s6 = inlined_call_operand.hbm [shape: f32[1,256], index: 6, kind: input, shape index: {}]   ;;  %s3684_s7 = inlined_call_operand.hbm [shape: f32[128,256], index: 7, kind: output, shape index: {}]  }
   0x1   :  { %3686 = sst [smem:[#allocation17_spill]] %s3678_s1 }
   0x2   :  { %3687 = sst [smem:[#allocation18_spill]] %s3680_s3 }
   0x3   :  { %12 = vsyncpa [#allocation3], 0 }
   0x4   :  { %13 = vsyncpa [#allocation6], 0 }
   0x5   :  { %14 = vsyncpa [#allocation9], 0 }
   0x6   :  { %15 = vsyncpa [#allocation4], 0 }
   0x7   :  { %17 = vsyncpa [#allocation4 + $0x1], 0  ;;  %s3102_s24 = smov 0   ;;  %s3104_s25 = smov 0  }
   0x8   :  { %s3106_s26 = smov 0   ;;  %s3108_s27 = smov 0  }
   0x9 LB: > { %3688 = sst [smem:[#allocation15_spill]] %s3045_s26  ;;  %s3123_s28 = sadd.s32 4294967295, %s3049_s27   ;;  %s3049_s27 = sphi %s3108_s27, %s3701_s27   ;;  %s3045_s26 = sphi %s3106_s26, %s3698_s26   ;;  %s3041_s25 = sphi %s3104_s25, %s3700_s25   ;;  %s3037_s24 = sphi %s3102_s24, %s3699_s24  }
   0xa   : > { %s2069_s29 = sadd.s32 4294967294, %s3049_s27   ;;  %s3127_s30 = sadd.s32 1, %s3049_s27  }
   0xb   : > { %s182_s8 = sadd.s32 1, %s3045_s26  ;;  %s179_s9 = ssub.s32 %s3049_s27, %s3127_s30 }
   0xc   : > { %p192_p0 = scmp.ne.s32.totalorder %s3045_s26, %s3041_s25  ;;  %p180_p1 = scmp.eq.s32.totalorder %s179_s9, 0 }
   0xd   : > { %p193_p2 = scmp.eq.s32.totalorder %s3123_s28, 1  ;;  %p198_p3 = scmp.ne.s32.totalorder %s3041_s25, %s3037_s24 }
   0xe   : > { %p199_p4 = scmp.eq.s32.totalorder %s2069_s29, 1  ;;  %p2070_p7 = scmp.ge.s32.totalorder %s3049_s27, 1 }
   0xf   : > { %s3138_s10 = scalar_select %p180_p1, %s3045_s26, %s182_s8  }
  0x10   : > { %p3140_p5 = por %p193_p2, %p192_p0  ;;  %p3144_p6 = por %p199_p4, %p198_p3 }
  0x11   : > { %3689 = sst [smem:[#allocation16_spill]] %s3138_s10  ;;  %p206_p8 = scmp.lt.s32.totalorder %s3049_s27, 3 }
  0x12   : > { %p2769_p9 = scmp.eq.s32.totalorder %s3123_s28, 0  ;;  %s3693_s3 = sld [smem:[#allocation18_spill]] }
  0x13   : > { %p3151_p10 = pnand %p2070_p7, %p206_p8  ;;  %s3051_s17 = smov [#allocation5]  }
  0x14   : > { %s236_s18 = sshll.u32 %s3051_s17, 4  ;;  %s3695_s1 = sld [smem:[#allocation17_spill]]  ;;  %s237_s18 = int_to_ptr.vmem [resolvable:$true] %s236_s18 }
  0x15   : > { %p2752_p11 = pneg %p3151_p10  ;;  %s3052_s23 = smov 128  }
  0x16   : > { %s3053_s29 = smov 8   ;;  %s3054_s8 = smov [#allocation2]  }
  0x17   : > { %p3162_p12 = pnand %p2769_p9, %p2752_p11  ;;  %s219_s9 = sshll.u32 %s3054_s8, 4  ;;  %s220_s9 = int_to_ptr.vmem [resolvable:$true] %s219_s9 }
  0x18   : > { %s234_s16 = sshll.u32 %s3693_s3, 4  ;;  %s3055_s14 = smov 256   ;;  %s235_s16 = int_to_ptr.hbm [resolvable:$true] %s234_s16 }
  0x19   : > { %2758 = dma.hbm_to_vmem [thread:$0]  (!%p3162_p12), %s235_s16, 8192, %s237_s18, [#allocation6], %s3052_s23, %s3052_s23, %s3053_s29  }
  0x1a   : > { %s217_s22 = sshll.u32 %s3695_s1, 4  ;;  %s3056_s15 = smov 16   ;;  %s218_s22 = int_to_ptr.hbm [resolvable:$true] %s217_s22 }
  0x1b   : > { %2755 = dma.hbm_to_vmem [thread:$0]  (!%p3162_p12), %s218_s22, 8192, %s220_s9, [#allocation3], %s3055_s14, %s3055_s14, %s3056_s15  }
  0x1c   : > { %s249_s20 = sshll.u32 %s3681_s4, 4  ;;  %s3057_s21 = smov [#allocation7]   ;;  %s250_s20 = int_to_ptr.hbm [resolvable:$true] %s249_s20 }
  0x1d   : > { %s251_s1 = sshll.u32 %s3057_s21, 4  ;;  %s264_s16 = sshll.u32 %s3683_s6, 4  ;;  %s252_s1 = int_to_ptr.vmem [resolvable:$true] %s251_s1  ;;  %s265_s16 = int_to_ptr.hbm [resolvable:$true] %s264_s16 }
  0x1e   : > { %2761 = dma.hbm_to_vmem [thread:$0]  (!%p3162_p12), %s250_s20, 32, %s252_s1, [#allocation6]  }
  0x1f   : > { %s3058_s18 = smov [#allocation8]   ;;  %289 = sbr.rel (%p3151_p10) target bundleno = 820 (0x334), region = 48 }
  0x20   : > { %s266_s23 = sshll.u32 %s3058_s18, 4  ;;  %s267_s23 = int_to_ptr.vmem [resolvable:$true] %s266_s23 }
  0x21   : > { %2764 = dma.hbm_to_vmem [thread:$0]  (!%p3162_p12), %s265_s16, 32, %s267_s23, [#allocation9]  }
  0x24   : > { %3020 = dma.done.wait (%p2769_p9), [#allocation3], 8192  }
  0x25   : > { %3022 = vsyncadd (%p2769_p9), [#allocation3], 4294959104 }
  0x26   : > { %3024 = dma.done.wait (%p2769_p9), [#allocation6], 8224  }
  0x27   : > { %3026 = vsyncadd (%p2769_p9), [#allocation6], 4294959072 }
  0x28   : > { %3028 = dma.done.wait (%p2769_p9), [#allocation9], 32  }
  0x29   : > { %3030 = vsyncadd (%p2769_p9), [#allocation9], 4294967264  ;;  %s2082_s1 = sshll.u32 %s3123_s28, 3  ;;  %v2199_v0 = vld [vmem:[#allocation2 + $0xe0] sm:$0xf]  ;;  %s335_s14 = sand.u32 1, %s3041_s25  }
  0x2a   : > { %v2634_v1 = vld [vmem:[#allocation2 + $0xec] sm:$0xf0]  ;;  %v2327_v2 = vld [vmem:[#allocation2 + $0x1e0] sm:$0xf]  ;;  %v2632_v5 = vld [vmem:[#allocation2 + $0xe4] sm:$0xf] }
  0x2b   : > { %v2200_v3 = vor.u32 %v2634_v1, %v2199_v0  ;;  %v2666_v4 = vld [vmem:[#allocation2 + $0x1ec] sm:$0xf0]  ;;  %v2201_v6 = vld [vmem:[#allocation2 + $0xf0] sm:$0xf0]  ;;  %v2664_v9 = vld [vmem:[#allocation2 + $0x1e4] sm:$0xf] }
  0x2c   : > { %v2328_v7 = vor.u32 %v2666_v4, %v2327_v2  ;;  %v2204_v8 = vor.u32 %v2632_v5, %v2201_v6  ;;  %v2329_v10 = vld [vmem:[#allocation2 + $0x1f0] sm:$0xf0]  ;;  %v2183_v11 = vld [vmem:[#allocation2 + $0xc0] sm:$0xf]  ;;  %v2630_v13 = vld [vmem:[#allocation2 + $0xcc] sm:$0xf0] }
  0x2d   : > { %764 = vmatpush.bf16.msra.mxu0 %v2200_v3  ;;  %v2332_v12 = vor.u32 %v2664_v9, %v2329_v10  ;;  %v2311_v14 = vld [vmem:[#allocation2 + $0x1c0] sm:$0xf]  ;;  %v2662_v15 = vld [vmem:[#allocation2 + $0x1cc] sm:$0xf0]  ;;  %v2184_v16 = vor.u32 %v2630_v13, %v2183_v11  ;;  %v2628_v18 = vld [vmem:[#allocation2 + $0xc4] sm:$0xf] }
  0x2e   : > { %793 = vmatpush.bf16.msra.mxu1 %v2328_v7  ;;  %822 = vmatpush.bf16.msra.mxu2 %v2204_v8  ;;  %v2312_v17 = vor.u32 %v2662_v15, %v2311_v14  ;;  %v2185_v19 = vld [vmem:[#allocation2 + $0xd0] sm:$0xf0]  ;;  %v2660_v20 = vld [vmem:[#allocation2 + $0x1c4] sm:$0xf]  ;;  %v2167_v23 = vld [vmem:[#allocation2 + $0xa0] sm:$0xf] }
  0x2f   : > { %851 = vmatpush.bf16.msra.mxu3 %v2332_v12  ;;  %v2188_v21 = vor.u32 %v2628_v18, %v2185_v19  ;;  %v2313_v22 = vld [vmem:[#allocation2 + $0x1d0] sm:$0xf0]  ;;  %v2626_v24 = vld [vmem:[#allocation2 + $0xac] sm:$0xf0]  ;;  %v2295_v26 = vld [vmem:[#allocation2 + $0x1a0] sm:$0xf] }
  0x30   : > { %v2316_v25 = vor.u32 %v2660_v20, %v2313_v22  ;;  %v2658_v27 = vld [vmem:[#allocation2 + $0x1ac] sm:$0xf0]  ;;  %v2624_v28 = vld [vmem:[#allocation2 + $0xa4] sm:$0xf]  ;;  %v2168_v29 = vor.u32 %v2626_v24, %v2167_v23  ;;  %v2169_v30 = vld [vmem:[#allocation2 + $0xb0] sm:$0xf0] }
  0x31   : > { %765 = vmatpush.bf16.msra.mxu0 %v2184_v16  ;;  %v2656_v31 = vld [vmem:[#allocation2 + $0x1a4] sm:$0xf]  ;;  %v2297_v32 = vld [vmem:[#allocation2 + $0x1b0] sm:$0xf0]  ;;  %v2296_v33 = vor.u32 %v2658_v27, %v2295_v26  ;;  %v2172_v34 = vor.u32 %v2624_v28, %v2169_v30  ;;  %v2151_v35 = vld [vmem:[#allocation2 + $0x80] sm:$0xf] }
  0x32   : > { %794 = vmatpush.bf16.msra.mxu1 %v2312_v17  ;;  %823 = vmatpush.bf16.msra.mxu2 %v2188_v21  ;;  %v2622_v36 = vld [vmem:[#allocation2 + $0x8c] sm:$0xf0]  ;;  %v2279_v37 = vld [vmem:[#allocation2 + $0x180] sm:$0xf]  ;;  %v2300_v38 = vor.u32 %v2656_v31, %v2297_v32  ;;  %v2620_v40 = vld [vmem:[#allocation2 + $0x84] sm:$0xf] }
  0x33   : > { %852 = vmatpush.bf16.msra.mxu3 %v2316_v25  ;;  %v2654_v39 = vld [vmem:[#allocation2 + $0x18c] sm:$0xf0]  ;;  %v2153_v41 = vld [vmem:[#allocation2 + $0x90] sm:$0xf0]  ;;  %v2652_v42 = vld [vmem:[#allocation2 + $0x184] sm:$0xf]  ;;  %v2152_v44 = vor.u32 %v2622_v36, %v2151_v35 }
  0x34   : > { %v2281_v43 = vld [vmem:[#allocation2 + $0x190] sm:$0xf0]  ;;  %p3200_p13 = scmp.lt.s32.totalorder %s2082_s1, 15  ;;  %v2280_v45 = vor.u32 %v2654_v39, %v2279_v37  ;;  %v2156_v46 = vor.u32 %v2620_v40, %v2153_v41  ;;  %v2135_v47 = vld [vmem:[#allocation2 + $0x60] sm:$0xf]  ;;  %s2081_s15 = sshll.u32 %s335_s14, 7 }
  0x35   : > { %766 = vmatpush.bf16.msra.mxu0 %v2168_v29  ;;  %v2618_v48 = vld [vmem:[#allocation2 + $0x6c] sm:$0xf0]  ;;  %v2263_v49 = vld [vmem:[#allocation2 + $0x160] sm:$0xf]  ;;  %v2284_v50 = vor.u32 %v2652_v42, %v2281_v43  ;;  %v2616_v52 = vld [vmem:[#allocation2 + $0x64] sm:$0xf] }
  0x36   : > { %795 = vmatpush.bf16.msra.mxu1 %v2296_v33  ;;  %824 = vmatpush.bf16.msra.mxu2 %v2172_v34  ;;  %v2650_v51 = vld [vmem:[#allocation2 + $0x16c] sm:$0xf0]  ;;  %v2137_v53 = vld [vmem:[#allocation2 + $0x70] sm:$0xf0]  ;;  %v2648_v54 = vld [vmem:[#allocation2 + $0x164] sm:$0xf]  ;;  %v2136_v56 = vor.u32 %v2618_v48, %v2135_v47 }
  0x37   : > { %853 = vmatpush.bf16.msra.mxu3 %v2300_v38  ;;  %v2265_v55 = vld [vmem:[#allocation2 + $0x170] sm:$0xf0]  ;;  %s3703_s1 = smov (!%p3200_p13, %s2082_s1), 15  ;;  %v2264_v57 = vor.u32 %v2650_v51, %v2263_v49  ;;  %v2140_v58 = vor.u32 %v2616_v52, %v2137_v53  ;;  %v2119_v59 = vld [vmem:[#allocation2 + $0x40] sm:$0xf]  ;;  %s3579_s17 = scalar_lea.vmem [#allocation10], %s2081_s15 }
  0x38   : > { %v2614_v60 = vld [vmem:[#allocation2 + $0x4c] sm:$0xf0]  ;;  %v2247_v61 = vld [vmem:[#allocation2 + $0x140] sm:$0xf]  ;;  %v2268_v62 = vor.u32 %v2648_v54, %v2265_v55  ;;  %v2612_v0 = vld [vmem:[#allocation2 + $0x44] sm:$0xf] }
  0x39   : > { %767 = vmatpush.bf16.msra.mxu0 %v2152_v44  ;;  %v2646_v63 = vld [vmem:[#allocation2 + $0x14c] sm:$0xf0]  ;;  %v2121_v1 = vld [vmem:[#allocation2 + $0x50] sm:$0xf0]  ;;  %v2644_v2 = vld [vmem:[#allocation2 + $0x144] sm:$0xf]  ;;  %v2120_v4 = vor.u32 %v2614_v60, %v2119_v59 }
  0x3a   : > { %796 = vmatpush.bf16.msra.mxu1 %v2280_v45  ;;  %825 = vmatpush.bf16.msra.mxu2 %v2156_v46  ;;  %v2249_v3 = vld [vmem:[#allocation2 + $0x150] sm:$0xf0]  ;;  %s2603_s26 = sshll.u32 %s3703_s1, 4  ;;  %v2248_v5 = vor.u32 %v2646_v63, %v2247_v61  ;;  %v2124_v6 = vor.u32 %v2612_v0, %v2121_v1  ;;  %v2103_v7 = vld [vmem:[#allocation2 + $0x20] sm:$0xf]  ;;  %s2733_s20 = sshll.u32 %s3123_s28, 7 }
  0x3b   : > { %854 = vmatpush.bf16.msra.mxu3 %v2284_v50  ;;  %v2610_v8 = vld [vmem:[#allocation2 + $0x2c] sm:$0xf0]  ;;  %v2231_v9 = vld [vmem:[#allocation2 + $0x120] sm:$0xf]  ;;  %v2252_v10 = vor.u32 %v2644_v2, %v2249_v3  ;;  %v2608_v12 = vld [vmem:[#allocation2 + $0x24] sm:$0xf]  ;;  %s3214_s19 = scalar_lea.vmem %s3677_s0, %s2603_s26  ;;  %s1962_s18 = scalar_lea.hbm %s3684_s7, %s2733_s20 }
  0x3c   : > { %v2642_v11 = vld [vmem:[#allocation2 + $0x12c] sm:$0xf0]  ;;  %v2105_v13 = vld [vmem:[#allocation2 + $0x30] sm:$0xf0]  ;;  %v2640_v14 = vld [vmem:[#allocation2 + $0x124] sm:$0xf]  ;;  %v2104_v16 = vor.u32 %v2610_v8, %v2103_v7 }
  0x3d   : > { %768 = vmatpush.bf16.msra.mxu0 %v2136_v56  ;;  %v2233_v15 = vld [vmem:[#allocation2 + $0x130] sm:$0xf0]  ;;  %v2087_v17 = vld [vmem:[#allocation2] sm:$0xf]  ;;  %v2606_v18 = vld [vmem:[#allocation2 + $0xc] sm:$0xf0]  ;;  %v2232_v19 = vor.u32 %v2642_v11, %v2231_v9  ;;  %v2108_v20 = vor.u32 %v2608_v12, %v2105_v13 }
  0x3e   : > { %797 = vmatpush.bf16.msra.mxu1 %v2264_v57  ;;  %826 = vmatpush.bf16.msra.mxu2 %v2140_v58  ;;  %v2215_v21 = vld [vmem:[#allocation2 + $0x100] sm:$0xf]  ;;  %v2638_v22 = vld [vmem:[#allocation2 + $0x10c] sm:$0xf0]  ;;  %v2604_v23 = vld [vmem:[#allocation2 + $0x4] sm:$0xf]  ;;  %v2236_v24 = vor.u32 %v2640_v14, %v2233_v15  ;;  %v2088_v31 = vor.u32 %v2606_v18, %v2087_v17 }
  0x3f   : > { %855 = vmatpush.bf16.msra.mxu3 %v2268_v62  ;;  %v2089_v25 = vld [vmem:[#allocation2 + $0x10] sm:$0xf0]  ;;  %v2636_v26 = vld [vmem:[#allocation2 + $0x104] sm:$0xf]  ;;  %v2633_v29 = vld [vmem:[#allocation2 + $0xec] sm:$0xf]  ;;  %v2216_v35 = vor.u32 %v2638_v22, %v2215_v21 }
  0x40   : > { %v2217_v27 = vld [vmem:[#allocation2 + $0x110] sm:$0xf0]  ;;  %v346_v28 = vld [vmem:[%s3214_s19] sm:$0xff]  ;;  %v2209_v30 = vld [vmem:[#allocation2 + $0xf8] sm:$0xf0]  ;;  %v2092_v36 = vor.u32 %v2604_v23, %v2089_v25  ;;  %s1963_s28 = sshll.u32 %s3579_s17, 4  ;;  %s1964_s28 = int_to_ptr.vmem [resolvable:$true] %s1963_s28 }
  0x41   : > { %769 = vmatpush.bf16.msra.mxu0 %v2120_v4  ;;  %v348_v32 = vld [vmem:[%s3214_s19 + $0x10] sm:$0xff]  ;;  %v2665_v33 = vld [vmem:[#allocation2 + $0x1ec] sm:$0xf]  ;;  %v2337_v34 = vld [vmem:[#allocation2 + $0x1f8] sm:$0xf0]  ;;  %v2220_v39 = vor.u32 %v2636_v26, %v2217_v27  ;;  %v2212_v40 = vor.u32 %v2633_v29, %v2209_v30  ;;  %s1965_s23 = sshll.u32 %s1962_s18, 4  ;;  %s1966_s23 = int_to_ptr.hbm [resolvable:$true] %s1965_s23 }
  0x42   : > { %798 = vmatpush.bf16.msra.mxu1 %v2248_v5  ;;  %827 = vmatpush.bf16.msra.mxu2 %v2124_v6  ;;  %v347_v37 = vld [vmem:[%s3214_s19 + $0x8] sm:$0xff]  ;;  %v349_v38 = vld [vmem:[%s3214_s19 + $0x18] sm:$0xff]  ;;  %v3220_v44 = vpack.c.bf16 %v348_v32, %v346_v28  ;;  %v2340_v45 = vor.u32 %v2665_v33, %v2337_v34  ;;  %v350_v13 = vld [vmem:[%s3214_s19 + $0x20] sm:$0xff]  ;;  %s1950_s1 = scalar_lea.sflag [#allocation4], %s335_s14  ;;  %s2989_s3 = sshra.s32 %s1966_s23, 4  ;;  %s2990_s3 = int_to_ptr.hbm [resolvable:$true] %s2989_s3 }
  0x43   : > { %856 = vmatpush.bf16.msra.mxu3 %v2252_v10  ;;  %v2207_v41 = vld [vmem:[#allocation2 + $0xe8] sm:$0xf]  ;;  %v2635_v42 = vld [vmem:[#allocation2 + $0xf4] sm:$0xf0]  ;;  %v2629_v47 = vld [vmem:[#allocation2 + $0xcc] sm:$0xf]  ;;  %v3222_v49 = vpack.c.bf16 %v349_v38, %v347_v37  ;;  %p2996_p3 = scmp.lt.s32.totalorder %s2990_s3, %s3684_s7 }
  0x44   : > { %v2335_v43 = vld [vmem:[#allocation2 + $0x1e8] sm:$0xf]  ;;  %v2667_v46 = vld [vmem:[#allocation2 + $0x1f4] sm:$0xf0]  ;;  %v2193_v48 = vld [vmem:[#allocation2 + $0xd8] sm:$0xf0]  ;;  %v2208_v52 = vor.u32 %v2635_v42, %v2207_v41 }
  0x45   : > { %770 = vmatpush.bf16.msra.mxu0 %v2104_v16  ;;  %v2661_v50 = vld [vmem:[#allocation2 + $0x1cc] sm:$0xf]  ;;  %v2321_v51 = vld [vmem:[#allocation2 + $0x1d8] sm:$0xf0]  ;;  %v2336_v53 = vor.u32 %v2667_v46, %v2335_v43  ;;  %v2196_v54 = vor.u32 %v2629_v47, %v2193_v48  ;;  %v2191_v55 = vld [vmem:[#allocation2 + $0xc8] sm:$0xf] }
  0x46   : > { %799 = vmatpush.bf16.msra.mxu1 %v2232_v19  ;;  %828 = vmatpush.bf16.msra.mxu2 %v2108_v20  ;;  %v2631_v56 = vld [vmem:[#allocation2 + $0xd4] sm:$0xf0]  ;;  %v2319_v57 = vld [vmem:[#allocation2 + $0x1c8] sm:$0xf]  ;;  %v2324_v58 = vor.u32 %v2661_v50, %v2321_v51  ;;  %v2625_v60 = vld [vmem:[#allocation2 + $0xac] sm:$0xf] }
  0x47   : > { %857 = vmatpush.bf16.msra.mxu3 %v2236_v24  ;;  %v2663_v59 = vld [vmem:[#allocation2 + $0x1d4] sm:$0xf0]  ;;  %v2177_v61 = vld [vmem:[#allocation2 + $0xb8] sm:$0xf0]  ;;  %v2657_v62 = vld [vmem:[#allocation2 + $0x1ac] sm:$0xf]  ;;  %v2192_v0 = vor.u32 %v2631_v56, %v2191_v55 }
  0x48   : > { %v2305_v63 = vld [vmem:[#allocation2 + $0x1b8] sm:$0xf0]  ;;  %v2320_v1 = vor.u32 %v2663_v59, %v2319_v57  ;;  %v2180_v2 = vor.u32 %v2625_v60, %v2177_v61  ;;  %v2175_v3 = vld [vmem:[#allocation2 + $0xa8] sm:$0xf]  ;;  %v2627_v4 = vld [vmem:[#allocation2 + $0xb4] sm:$0xf0] }
  0x49   : > { %771 = vmatpush.bf16.msra.mxu0 %v2088_v31  ;;  %v2303_v5 = vld [vmem:[#allocation2 + $0x1a8] sm:$0xf]  ;;  %v2308_v6 = vor.u32 %v2657_v62, %v2305_v63  ;;  %v2659_v7 = vld [vmem:[#allocation2 + $0x1b4] sm:$0xf0]  ;;  %v2621_v8 = vld [vmem:[#allocation2 + $0x8c] sm:$0xf]  ;;  %v2176_v12 = vor.u32 %v2627_v4, %v2175_v3 }
  0x4a   : > { %800 = vmatpush.bf16.msra.mxu1 %v2216_v35  ;;  %829 = vmatpush.bf16.msra.mxu2 %v2092_v36  ;;  %v2161_v9 = vld [vmem:[#allocation2 + $0x98] sm:$0xf0]  ;;  %v2653_v10 = vld [vmem:[#allocation2 + $0x18c] sm:$0xf]  ;;  %v2304_v14 = vor.u32 %v2659_v7, %v2303_v5  ;;  %v2159_v16 = vld [vmem:[#allocation2 + $0x88] sm:$0xf] }
  0x4b   : > { %858 = vmatpush.bf16.msra.mxu3 %v2220_v39  ;;  %v2289_v11 = vld [vmem:[#allocation2 + $0x198] sm:$0xf0]  ;;  %v2164_v15 = vor.u32 %v2621_v8, %v2161_v9  ;;  %v2623_v17 = vld [vmem:[#allocation2 + $0x94] sm:$0xf0]  ;;  %v2287_v18 = vld [vmem:[#allocation2 + $0x188] sm:$0xf] }
  0x4c   : > { %772 = vmatmul.bf16.vlgmr.msra.gmra.mxu0 %v3220_v44  ;;  %v2292_v19 = vor.u32 %v2653_v10, %v2289_v11  ;;  %v2655_v20 = vld [vmem:[#allocation2 + $0x194] sm:$0xf0]  ;;  %v2617_v21 = vld [vmem:[#allocation2 + $0x6c] sm:$0xf]  ;;  %v2145_v22 = vld [vmem:[#allocation2 + $0x78] sm:$0xf0]  ;;  %v2160_v28 = vor.u32 %v2623_v17, %v2159_v16 }
  0x4d   : > { %801 = vmatmul.bf16.vlgmr.msra.gmra.mxu1 %v3222_v49  ;;  %830 = vmatmul.bf16.vlgmr.msra.gmra.mxu2 %v3220_v44  ;;  %v352_v23 = vld [vmem:[%s3214_s19 + $0x30] sm:$0xff]  ;;  %v2649_v24 = vld [vmem:[#allocation2 + $0x16c] sm:$0xf]  ;;  %v2273_v25 = vld [vmem:[#allocation2 + $0x178] sm:$0xf0]  ;;  %v2288_v29 = vor.u32 %v2655_v20, %v2287_v18  ;;  %v2148_v30 = vor.u32 %v2617_v21, %v2145_v22  ;;  %s2991_s26 = scalar_lea.hbm %s2990_s3, 128 }
  0x4e   : > { %938 = vmatpush.bf16.msrb.mxu2 %v2212_v40  ;;  %859 = vmatmul.bf16.vlgmr.msra.gmra.mxu3 %v3222_v49  ;;  %v351_v26 = vld [vmem:[%s3214_s19 + $0x28] sm:$0xff]  ;;  %v353_v27 = vld [vmem:[%s3214_s19 + $0x38] sm:$0xff]  ;;  %v3232_v34 = vpack.c.bf16 %v352_v23, %v350_v13  ;;  %v2276_v35 = vor.u32 %v2649_v24, %v2273_v25  ;;  %v356_v13 = vld [vmem:[%s3214_s19 + $0x50] sm:$0xff]  ;;  %p2992_p0 = scmp.ne.s32.totalorder %s2990_s3, %s2991_s26 }
  0x4f   : > { %967 = vmatpush.bf16.msrb.mxu3 %v2340_v45  ;;  %880 = vmatpush.bf16.msrb.mxu0 %v2208_v52  ;;  %v2143_v31 = vld [vmem:[#allocation2 + $0x68] sm:$0xf]  ;;  %v2619_v32 = vld [vmem:[#allocation2 + $0x74] sm:$0xf0]  ;;  %v2613_v37 = vld [vmem:[#allocation2 + $0x4c] sm:$0xf]  ;;  %v3234_v39 = vpack.c.bf16 %v353_v27, %v351_v26 }
  0x50   : > { %909 = vmatpush.bf16.msrb.mxu1 %v2336_v53  ;;  %v2271_v33 = vld [vmem:[#allocation2 + $0x168] sm:$0xf]  ;;  %v2651_v36 = vld [vmem:[#allocation2 + $0x174] sm:$0xf0]  ;;  %v2129_v38 = vld [vmem:[#allocation2 + $0x58] sm:$0xf0]  ;;  %v2144_v42 = vor.u32 %v2619_v32, %v2143_v31  ;;  %p2993_p1 = pnand %p2992_p0, %p3140_p5 }
  0x51   : > { %v2645_v40 = vld [vmem:[#allocation2 + $0x14c] sm:$0xf]  ;;  %v2257_v41 = vld [vmem:[#allocation2 + $0x158] sm:$0xf0]  ;;  %v2272_v43 = vor.u32 %v2651_v36, %v2271_v33  ;;  %v2132_v45 = vor.u32 %v2613_v37, %v2129_v38  ;;  %v2127_v46 = vld [vmem:[#allocation2 + $0x48] sm:$0xf] }
  0x52   : > { %939 = vmatpush.bf16.msrb.mxu2 %v2196_v54  ;;  %v2615_v47 = vld [vmem:[#allocation2 + $0x54] sm:$0xf0]  ;;  %v2260_v48 = vor.u32 %v2645_v40, %v2257_v41  ;;  %v2255_v50 = vld [vmem:[#allocation2 + $0x148] sm:$0xf]  ;;  %v2609_v53 = vld [vmem:[#allocation2 + $0x2c] sm:$0xf]  ;;  %p2994_p2 = pneg %p2993_p1 }
  0x53   : > { %968 = vmatpush.bf16.msrb.mxu3 %v2324_v58  ;;  %881 = vmatpush.bf16.msrb.mxu0 %v2192_v0  ;;  %v2647_v51 = vld [vmem:[#allocation2 + $0x154] sm:$0xf0]  ;;  %v2128_v52 = vor.u32 %v2615_v47, %v2127_v46  ;;  %v2113_v54 = vld [vmem:[#allocation2 + $0x38] sm:$0xf0]  ;;  %v2641_v55 = vld [vmem:[#allocation2 + $0x12c] sm:$0xf] }
  0x54   : > { %910 = vmatpush.bf16.msrb.mxu1 %v2320_v1  ;;  %v2256_v56 = vor.u32 %v2647_v51, %v2255_v50  ;;  %v2116_v57 = vor.u32 %v2609_v53, %v2113_v54  ;;  %v2241_v58 = vld [vmem:[#allocation2 + $0x138] sm:$0xf0]  ;;  %v2111_v59 = vld [vmem:[#allocation2 + $0x28] sm:$0xf]  ;;  %v2611_v60 = vld [vmem:[#allocation2 + $0x34] sm:$0xf0] }
  0x55   : > { %v2244_v61 = vor.u32 %v2641_v55, %v2241_v58  ;;  %v2239_v62 = vld [vmem:[#allocation2 + $0x128] sm:$0xf]  ;;  %v2643_v63 = vld [vmem:[#allocation2 + $0x134] sm:$0xf0]  ;;  %v2605_v0 = vld [vmem:[#allocation2 + $0xc] sm:$0xf]  ;;  %v2112_v4 = vor.u32 %v2611_v60, %v2111_v59 }
  0x56   : > { %940 = vmatpush.bf16.msrb.mxu2 %v2180_v2  ;;  %v2097_v1 = vld [vmem:[#allocation2 + $0x18] sm:$0xf0]  ;;  %v2637_v2 = vld [vmem:[#allocation2 + $0x10c] sm:$0xf]  ;;  %v2240_v5 = vor.u32 %v2643_v63, %v2239_v62  ;;  %v2095_v7 = vld [vmem:[#allocation2 + $0x8] sm:$0xf] }
  0x57   : > { %969 = vmatpush.bf16.msrb.mxu3 %v2308_v6  ;;  %882 = vmatpush.bf16.msrb.mxu0 %v2176_v12  ;;  %v2225_v3 = vld [vmem:[#allocation2 + $0x118] sm:$0xf0]  ;;  %v2100_v6 = vor.u32 %v2605_v0, %v2097_v1  ;;  %v2607_v8 = vld [vmem:[#allocation2 + $0x14] sm:$0xf0]  ;;  %v2223_v10 = vld [vmem:[#allocation2 + $0x108] sm:$0xf] }
  0x58   : > { %911 = vmatpush.bf16.msrb.mxu1 %v2304_v14  ;;  %v2228_v9 = vor.u32 %v2637_v2, %v2225_v3  ;;  %v2639_v11 = vld [vmem:[#allocation2 + $0x114] sm:$0xf0]  ;;  %v354_v12 = vld [vmem:[%s3214_s19 + $0x40] sm:$0xff]  ;;  %v355_v14 = vld [vmem:[%s3214_s19 + $0x48] sm:$0xff]  ;;  %v2096_v16 = vor.u32 %v2607_v8, %v2095_v7 }
  0x59   : > { %v2224_v17 = vor.u32 %v2639_v11, %v2223_v10  ;;  %v366_v18 = vpack.c.bf16 %v356_v13, %v354_v12  ;;  %v358_v20 = vld [vmem:[%s3214_s19 + $0x60] sm:$0xff]  ;;  %v360_v21 = vld [vmem:[%s3214_s19 + $0x70] sm:$0xff]  ;;  %v359_v22 = vld [vmem:[%s3214_s19 + $0x68] sm:$0xff] }
  0x5a   : > { %941 = vmatpush.bf16.msrb.mxu2 %v2164_v15  ;;  %v357_v15 = vld [vmem:[%s3214_s19 + $0x58] sm:$0xff]  ;;  %v3248_v24 = vpack.c.bf16 %v360_v21, %v358_v20  ;;  %v2399_v26 = vld [vmem:[#allocation5 + $0x70] sm:$0xf]  ;;  %v2455_v36 = vld [vmem:[#allocation5 + $0xe0] sm:$0xf] }
  0x5b   : > { %970 = vmatpush.bf16.msrb.mxu3 %v2292_v19  ;;  %883 = vmatpush.bf16.msrb.mxu0 %v2160_v28  ;;  %v367_v19 = vpack.c.bf16 %v357_v15, %v355_v14  ;;  %v361_v23 = vld [vmem:[%s3214_s19 + $0x78] sm:$0xff]  ;;  %v2463_v31 = vld [vmem:[#allocation5 + $0xf0] sm:$0xf]  ;;  %v2697_v37 = vld [vmem:[#allocation5 + $0xe4] sm:$0xf0] }
  0x5c   : > { %912 = vmatpush.bf16.msrb.mxu1 %v2288_v29  ;;  %777 = vmatmul.bf16.gmra.mxu0 %v3232_v34  ;;  %v3250_v25 = vpack.c.bf16 %v361_v23, %v359_v22  ;;  %v2683_v27 = vld [vmem:[#allocation5 + $0x74] sm:$0xf0]  ;;  %v2391_v29 = vld [vmem:[#allocation5 + $0x60] sm:$0xf]  ;;  %v2456_v40 = vor.u32 %v2697_v37, %v2455_v36  ;;  %v2367_v46 = vld [vmem:[#allocation5 + $0x30] sm:$0xf] }
  0x5d   : > { %806 = vmatmul.bf16.gmra.mxu1 %v3234_v39  ;;  %835 = vmatmul.bf16.gmra.mxu2 %v3232_v34  ;;  %v2400_v28 = vor.u32 %v2683_v27, %v2399_v26  ;;  %v2699_v33 = vld [vmem:[#allocation5 + $0xf4] sm:$0xf0]  ;;  %v2375_v41 = vld [vmem:[#allocation5 + $0x40] sm:$0xf]  ;;  %v2693_v51 = vld [vmem:[#allocation5 + $0xc4] sm:$0xf0] }
  0x5e   : > { %942 = vmatpush.bf16.msrb.mxu2 %v2148_v30  ;;  %864 = vmatmul.bf16.gmra.mxu3 %v3234_v39  ;;  %v2681_v30 = vld [vmem:[#allocation5 + $0x64] sm:$0xf0]  ;;  %v2675_v47 = vld [vmem:[#allocation5 + $0x34] sm:$0xf0]  ;;  %v2439_v50 = vld [vmem:[#allocation5 + $0xc0] sm:$0xf] }
  0x5f   : > { %971 = vmatpush.bf16.msrb.mxu3 %v2276_v35  ;;  %884 = vmatpush.bf16.msrb.mxu0 %v2144_v42  ;;  %v2392_v32 = vor.u32 %v2681_v30, %v2391_v29  ;;  %v2679_v35 = vld [vmem:[#allocation5 + $0x54] sm:$0xf0]  ;;  %v2677_v42 = vld [vmem:[#allocation5 + $0x44] sm:$0xf0]  ;;  %v2359_v53 = vld [vmem:[#allocation5 + $0x20] sm:$0xf] }
  0x60   : > { %913 = vmatpush.bf16.msrb.mxu1 %v2272_v43  ;;  %v2695_v43 = vld [vmem:[#allocation5 + $0xd4] sm:$0xf0]  ;;  %v2673_v54 = vld [vmem:[#allocation5 + $0x24] sm:$0xf0]  ;;  %v2351_v59 = vld [vmem:[#allocation5 + $0x10] sm:$0xf] }
  0x61   : > { %v2360_v55 = vor.u32 %v2673_v54, %v2359_v53  ;;  %v2671_v60 = vld [vmem:[#allocation5 + $0x14] sm:$0xf0]  ;;  %v2423_v62 = vld [vmem:[#allocation5 + $0xa0] sm:$0xf]  ;;  %v2689_v63 = vld [vmem:[#allocation5 + $0xa4] sm:$0xf0] }
  0x62   : > { %943 = vmatpush.bf16.msrb.mxu2 %v2132_v45  ;;  %v2424_v0 = vor.u32 %v2689_v63, %v2423_v62  ;;  %v2343_v1 = vld [vmem:[#allocation5] sm:$0xf]  ;;  %v2669_v2 = vld [vmem:[#allocation5 + $0x4] sm:$0xf0]  ;;  %v2527_v10 = vld [vmem:[#allocation5 + $0x170] sm:$0xf] }
  0x63   : > { %972 = vmatpush.bf16.msrb.mxu3 %v2260_v48  ;;  %885 = vmatpush.bf16.msrb.mxu0 %v2128_v52  ;;  %v2368_v48 = vor.u32 %v2675_v47, %v2367_v46  ;;  %v2440_v52 = vor.u32 %v2693_v51, %v2439_v50  ;;  %v2344_v3 = vor.u32 %v2669_v2, %v2343_v1  ;;  %v2407_v7 = vld [vmem:[#allocation5 + $0x80] sm:$0xf]  ;;  %v2685_v8 = vld [vmem:[#allocation5 + $0x84] sm:$0xf0]  ;;  %v2715_v11 = vld [vmem:[#allocation5 + $0x174] sm:$0xf0] }
  0x64   : > { %914 = vmatpush.bf16.msrb.mxu1 %v2256_v56  ;;  %v2431_v56 = vld [vmem:[#allocation5 + $0xb0] sm:$0xf]  ;;  %v2528_v12 = vor.u32 %v2715_v11, %v2527_v10  ;;  %v2731_v14 = vld [vmem:[#allocation5 + $0x1f4] sm:$0xf0]  ;;  %v2583_v23 = vld [vmem:[#allocation5 + $0x1e0] sm:$0xf] }
  0x65   : > { %v2591_v13 = vld [vmem:[#allocation5 + $0x1f0] sm:$0xf]  ;;  %v2682_v54 = vld [vmem:[#allocation5 + $0x74] sm:$0xf]  ;;  %v2707_v1 = vld [vmem:[#allocation5 + $0x134] sm:$0xf0] }
  0x66   : > { %944 = vmatpush.bf16.msrb.mxu2 %v2116_v57  ;;  %v2691_v57 = vld [vmem:[#allocation5 + $0xb4] sm:$0xf0]  ;;  %v2592_v15 = vor.u32 %v2731_v14, %v2591_v13  ;;  %v2511_v27 = vld [vmem:[#allocation5 + $0x150] sm:$0xf] }
  0x67   : > { %973 = vmatpush.bf16.msrb.mxu3 %v2244_v61  ;;  %886 = vmatpush.bf16.msrb.mxu0 %v2112_v4  ;;  %v2432_v58 = vor.u32 %v2691_v57, %v2431_v56  ;;  %v2352_v61 = vor.u32 %v2671_v60, %v2351_v59  ;;  %v2415_v4 = vld [vmem:[#allocation5 + $0x90] sm:$0xf]  ;;  %v2567_v60 = vld [vmem:[#allocation5 + $0x1c0] sm:$0xf] }
  0x68   : > { %915 = vmatpush.bf16.msrb.mxu1 %v2240_v5  ;;  %v2687_v5 = vld [vmem:[#allocation5 + $0x94] sm:$0xf0] }
  0x6a   : > { %945 = vmatpush.bf16.msrb.mxu2 %v2100_v6  ;;  %v2416_v6 = vor.u32 %v2687_v5, %v2415_v4  ;;  %v2680_v4 = vld [vmem:[#allocation5 + $0x64] sm:$0xf]  ;;  %v2393_v5 = vld [vmem:[#allocation5 + $0x68] sm:$0xf0] }
  0x6b   : > { %974 = vmatpush.bf16.msrb.mxu3 %v2228_v9  ;;  %887 = vmatpush.bf16.msrb.mxu0 %v2096_v16  ;;  %v2408_v9 = vor.u32 %v2685_v8, %v2407_v7  ;;  %v2519_v16 = vld [vmem:[#allocation5 + $0x160] sm:$0xf]  ;;  %v2396_v7 = vor.u32 %v2680_v4, %v2393_v5  ;;  %v2698_v8 = vld [vmem:[#allocation5 + $0xf4] sm:$0xf]  ;;  %v2361_v4 = vld [vmem:[#allocation5 + $0x28] sm:$0xf0] }
  0x6c   : > { %916 = vmatpush.bf16.msrb.mxu1 %v2224_v17  ;;  %782 = vmatmul.bf16.gmra.mxu0 %v366_v18  ;;  %v2713_v17 = vld [vmem:[#allocation5 + $0x164] sm:$0xf0] }
  0x6d   : > { %811 = vmatmul.bf16.gmra.mxu1 %v367_v19  ;;  %840 = vmatmul.bf16.gmra.mxu2 %v366_v18 }
  0x6e   : > { %869 = vmatmul.bf16.gmra.mxu3 %v367_v19  ;;  %1492 = vmatpush.bf16.msra.mxu2 %v2528_v12 }
  0x6f   : > { %1434 = vmatpush.bf16.msra.mxu0 %v2400_v28  ;;  %1521 = vmatpush.bf16.msra.mxu3 %v2592_v15  ;;  %v2711_v28 = vld [vmem:[#allocation5 + $0x154] sm:$0xf0] }
  0x70   : > { %v2512_v29 = vor.u32 %v2711_v28, %v2511_v27 }
  0x73   : > { %1435 = vmatpush.bf16.msra.mxu0 %v2392_v32 }
  0x7c   : > { %787 = vmatmul.bf16.gmra.mxu0 %v3248_v24 }
  0x7d   : > { %816 = vmatmul.bf16.gmra.mxu1 %v3250_v25  ;;  %845 = vmatmul.bf16.gmra.mxu2 %v3248_v24 }
  0x7e   : > { %874 = vmatmul.bf16.gmra.mxu3 %v3250_v25 }
  0x8c   : > { %888 = vmatmul.bf16.vlgmr.msrb.gmra.mxu0 %v3220_v44 }
  0x8d   : > { %917 = vmatmul.bf16.vlgmr.msrb.gmra.mxu1 %v3222_v49  ;;  %946 = vmatmul.bf16.vlgmr.msrb.gmra.mxu2 %v3220_v44  ;;  %v2383_v44 = vld [vmem:[#allocation5 + $0x50] sm:$0xf] }
  0x8e   : > { %975 = vmatmul.bf16.vlgmr.msrb.gmra.mxu3 %v3222_v49  ;;  %v2464_v49 = vor.u32 %v2699_v33, %v2463_v31  ;;  %v2384_v38 = vor.u32 %v2679_v35, %v2383_v44 }
  0x90   : > { %1463 = vmatpush.bf16.msra.mxu1 %v2464_v49  ;;  %1436 = vmatpush.bf16.msra.mxu0 %v2384_v38  ;;  %v2575_v38 = vld [vmem:[#allocation5 + $0x1d0] sm:$0xf] }
  0x94   : > { %1464 = vmatpush.bf16.msra.mxu1 %v2456_v40  ;;  %v2727_v40 = vld [vmem:[#allocation5 + $0x1d4] sm:$0xf0] }
  0x9c   : > { %893 = vmatmul.bf16.gmra.mxu0 %v3232_v34 }
  0x9d   : > { %922 = vmatmul.bf16.gmra.mxu1 %v3234_v39  ;;  %951 = vmatmul.bf16.gmra.mxu2 %v3232_v34  ;;  %v2376_v34 = vor.u32 %v2677_v42, %v2375_v41 }
  0x9e   : > { %980 = vmatmul.bf16.gmra.mxu3 %v3234_v39  ;;  %v2447_v39 = vld [vmem:[#allocation5 + $0xd0] sm:$0xf] }
  0x9f   : > { %1437 = vmatpush.bf16.msra.mxu0 %v2376_v34  ;;  %v2448_v45 = vor.u32 %v2695_v43, %v2447_v39  ;;  %v2576_v34 = vor.u32 %v2727_v40, %v2575_v38  ;;  %v2503_v39 = vld [vmem:[#allocation5 + $0x140] sm:$0xf]  ;;  %v2709_v43 = vld [vmem:[#allocation5 + $0x144] sm:$0xf0]  ;;  %v2694_v40 = vld [vmem:[#allocation5 + $0xd4] sm:$0xf] }
  0xa1   : > { %1465 = vmatpush.bf16.msra.mxu1 %v2448_v45  ;;  %v2504_v45 = vor.u32 %v2709_v43, %v2503_v39 }
  0xa3   : > { %1438 = vmatpush.bf16.msra.mxu0 %v2368_v48 }
  0xa5   : > { %1466 = vmatpush.bf16.msra.mxu1 %v2440_v52 }
  0xa7   : > { %1439 = vmatpush.bf16.msra.mxu0 %v2360_v55  ;;  %v2401_v55 = vld [vmem:[#allocation5 + $0x78] sm:$0xf0] }
  0xa8   : > { %v2404_v57 = vor.u32 %v2682_v54, %v2401_v55  ;;  %v2441_v54 = vld [vmem:[#allocation5 + $0xc8] sm:$0xf0] }
  0xa9   : > { %1467 = vmatpush.bf16.msra.mxu1 %v2432_v58 }
  0xab   : > { %1440 = vmatpush.bf16.msra.mxu0 %v2352_v61  ;;  %v2725_v61 = vld [vmem:[#allocation5 + $0x1c4] sm:$0xf0] }
  0xac   : > { %898 = vmatmul.bf16.gmra.mxu0 %v366_v18  ;;  %v2568_v63 = vor.u32 %v2725_v61, %v2567_v60 }
  0xad   : > { %927 = vmatmul.bf16.gmra.mxu1 %v367_v19  ;;  %956 = vmatmul.bf16.gmra.mxu2 %v366_v18  ;;  %v3271_v18 = vld [vmem:[%s3679_s2] sm:$0xf] }
  0xae   : > { %985 = vmatmul.bf16.gmra.mxu3 %v367_v19  ;;  %1468 = vmatpush.bf16.msra.mxu1 %v2424_v0  ;;  %v2520_v19 = vor.u32 %v2713_v17, %v2519_v16  ;;  %v3274_v21 = vperm.slane %v3271_v18, 0  ;;  %v3278_v31 = vperm.slane %v3271_v18, 1  ;;  %v2495_v0 = vld [vmem:[#allocation5 + $0x130] sm:$0xf]  ;;  %v2678_v16 = vld [vmem:[#allocation5 + $0x54] sm:$0xf] }
  0xaf   : > { %1441 = vmatpush.bf16.msra.mxu0 %v2344_v3  ;;  %v2496_v3 = vor.u32 %v2707_v1, %v2495_v0  ;;  %v2385_v17 = vld [vmem:[#allocation5 + $0x58] sm:$0xf0] }
  0xb0   : > { %1493 = vmatpush.bf16.msra.mxu2 %v2520_v19  ;;  %v2388_v19 = vor.u32 %v2678_v16, %v2385_v17  ;;  %v2353_v16 = vld [vmem:[#allocation5 + $0x18] sm:$0xf0] }
  0xb2   : > { %1469 = vmatpush.bf16.msra.mxu1 %v2416_v6 }
  0xb3   : > { %1550 = vmatpush.bf16.msrb.mxu0 %v2404_v57  ;;  %v2551_v57 = vld [vmem:[#allocation5 + $0x1a0] sm:$0xf] }
  0xb4   : > { %1494 = vmatpush.bf16.msra.mxu2 %v2512_v29 }
  0xb6   : > { %1470 = vmatpush.bf16.msra.mxu1 %v2408_v9  ;;  %v2465_v9 = vld [vmem:[#allocation5 + $0xf8] sm:$0xf0] }
  0xb7   : > { %v2468_v12 = vor.u32 %v2698_v8, %v2465_v9  ;;  %1551 = vmatpush.bf16.msrb.mxu0 %v2396_v7  ;;  %v2690_v7 = vld [vmem:[#allocation5 + $0xb4] sm:$0xf]  ;;  %v2433_v8 = vld [vmem:[#allocation5 + $0xb8] sm:$0xf0] }
  0xb8   : > { %1495 = vmatpush.bf16.msra.mxu2 %v2504_v45 }
  0xba   : > { %1579 = vmatpush.bf16.msrb.mxu1 %v2468_v12 }
  0xbb   : > { %1552 = vmatpush.bf16.msrb.mxu0 %v2388_v19 }
  0xbc   : > { %903 = vmatmul.bf16.gmra.mxu0 %v3248_v24  ;;  %1496 = vmatpush.bf16.msra.mxu2 %v2496_v3  ;;  %v2672_v3 = vld [vmem:[#allocation5 + $0x24] sm:$0xf] }
  0xbd   : > { %932 = vmatmul.bf16.gmra.mxu1 %v3250_v25  ;;  %961 = vmatmul.bf16.gmra.mxu2 %v3248_v24  ;;  %v2729_v24 = vld [vmem:[#allocation5 + $0x1e4] sm:$0xf0] }
  0xbe   : > { %990 = vmatmul.bf16.gmra.mxu3 %v3250_v25  ;;  %v2584_v26 = vor.u32 %v2729_v24, %v2583_v23  ;;  %v2457_v23 = vld [vmem:[#allocation5 + $0xe8] sm:$0xf0] }
  0xc0   : > { %1522 = vmatpush.bf16.msra.mxu3 %v2584_v26  ;;  %v2723_v26 = vld [vmem:[#allocation5 + $0x1b4] sm:$0xf0] }
  0xc4   : > { %1523 = vmatpush.bf16.msra.mxu3 %v2576_v34 }
  0xc8   : > { %1524 = vmatpush.bf16.msra.mxu3 %v2568_v63  ;;  %v2703_v63 = vld [vmem:[#allocation5 + $0x114] sm:$0xf0] }
  0xc9   : > { %v773_v20 = vpop.f32.mrf.mxu0 }
  0xca   : > { %v802_v22 = vpop.f32.mrf.mxu1  ;;  %v774_v25 = vadd.f32 %v773_v20, %v3274_v21 }
  0xcc   : > { %v803_v44 = vadd.f32 %v802_v22, %v774_v25  ;;  %v2696_v22 = vld [vmem:[#allocation5 + $0xe4] sm:$0xf]  ;;  %v2559_v25 = vld [vmem:[#allocation5 + $0x1b0] sm:$0xf] }
  0xcd   : > { %v2460_v27 = vor.u32 %v2696_v22, %v2457_v23  ;;  %v2425_v22 = vld [vmem:[#allocation5 + $0xa8] sm:$0xf0] }
  0xce   : > { %v996_v41 = vmax.f32 %v803_v44, 0.0 }
  0xcf   : > { %1580 = vmatpush.bf16.msrb.mxu1 %v2460_v27 }
  0xd0   : > { %v831_v30 = vpop.f32.mrf.mxu2 }
  0xd1   : > { %v860_v32 = vpop.f32.mrf.mxu3  ;;  %v775_v33 = vpop.f32.mrf.mxu0  ;;  %v832_v37 = vadd.f32 %v831_v30, %v3278_v31  ;;  %v2560_v30 = vor.u32 %v2723_v26, %v2559_v25  ;;  %v2719_v25 = vld [vmem:[#allocation5 + $0x194] sm:$0xf0] }
  0xd2   : > { %v776_v35 = vadd.f32 %v775_v33, %v3274_v21  ;;  %v804_v49 = vpop.f32.mrf.mxu1  ;;  %v2705_v33 = vld [vmem:[#allocation5 + $0x124] sm:$0xf0] }
  0xd3   : > { %v861_v48 = vadd.f32 %v860_v32, %v832_v37  ;;  %v2487_v32 = vld [vmem:[#allocation5 + $0x120] sm:$0xf]  ;;  %1525 = vmatpush.bf16.msra.mxu3 %v2560_v30 }
  0xd4   : > { %v805_v36 = vadd.f32 %v804_v49, %v776_v35  ;;  %v2488_v44 = vor.u32 %v2705_v33, %v2487_v32  ;;  %v2676_v35 = vld [vmem:[#allocation5 + $0x44] sm:$0xf]  ;;  %v2377_v49 = vld [vmem:[#allocation5 + $0x48] sm:$0xf0]  ;;  %v2471_v30 = vld [vmem:[#allocation5 + $0x100] sm:$0xf] }
  0xd5   : > { %v997_v58 = vmax.f32 %v861_v48, 0.0  ;;  %v2380_v38 = vor.u32 %v2676_v35, %v2377_v49  ;;  %v2674_v48 = vld [vmem:[#allocation5 + $0x34] sm:$0xf]  ;;  %v2701_v32 = vld [vmem:[#allocation5 + $0x104] sm:$0xf0] }
  0xd6   : > { %v1000_v42 = vmax.f32 %v805_v36, 0.0  ;;  %1497 = vmatpush.bf16.msra.mxu2 %v2488_v44  ;;  %v2472_v33 = vor.u32 %v2701_v32, %v2471_v30  ;;  %v2668_v44 = vld [vmem:[#allocation5 + $0x4] sm:$0xf]  ;;  %v2345_v35 = vld [vmem:[#allocation5 + $0x8] sm:$0xf0] }
  0xd7   : > { %1553 = vmatpush.bf16.msrb.mxu0 %v2380_v38  ;;  %v2348_v38 = vor.u32 %v2668_v44, %v2345_v35  ;;  %v2585_v30 = vld [vmem:[#allocation5 + $0x1e8] sm:$0xf0]  ;;  %v2710_v44 = vld [vmem:[#allocation5 + $0x154] sm:$0xf]  ;;  %v2513_v35 = vld [vmem:[#allocation5 + $0x158] sm:$0xf0] }
  0xd8   : > { %v3282_v46 = vpack.c.bf16 %v1000_v42, %v996_v41  ;;  %v833_v47 = vpop.f32.mrf.mxu2  ;;  %v2449_v41 = vld [vmem:[#allocation5 + $0xd8] sm:$0xf0] }
  0xd9   : > { %v834_v50 = vadd.f32 %v833_v47, %v3278_v31  ;;  %v862_v51 = vpop.f32.mrf.mxu3  ;;  %v778_v52 = vpop.f32.mrf.mxu0  ;;  %v2452_v45 = vor.u32 %v2694_v40, %v2449_v41  ;;  %v2686_v40 = vld [vmem:[#allocation5 + $0x94] sm:$0xf]  ;;  %v2417_v41 = vld [vmem:[#allocation5 + $0x98] sm:$0xf0] }
  0xda   : > { %v807_v53 = vpop.f32.mrf.mxu1  ;;  %1442 = vmatmul.bf16.vlgmr.msra.gmra.mxu0 %v3282_v46  ;;  %v779_v62 = vadd.f32 %v778_v52, %v3274_v21 }
  0xdb   : > { %v863_v56 = vadd.f32 %v862_v51, %v834_v50  ;;  %v2369_v50 = vld [vmem:[#allocation5 + $0x38] sm:$0xf0]  ;;  %1581 = vmatpush.bf16.msrb.mxu1 %v2452_v45  ;;  %v2420_v45 = vor.u32 %v2686_v40, %v2417_v41  ;;  %v3323_v40 = vperm.slane %v3271_v18, 3 }
  0xdc   : > { %v808_v13 = vadd.f32 %v807_v53, %v779_v62  ;;  %v2372_v52 = vor.u32 %v2674_v48, %v2369_v50  ;;  %v2692_v53 = vld [vmem:[#allocation5 + $0xc4] sm:$0xf]  ;;  %v2479_v62 = vld [vmem:[#allocation5 + $0x110] sm:$0xf]  ;;  %v2535_v50 = vld [vmem:[#allocation5 + $0x180] sm:$0xf] }
  0xdd   : > { %v1001_v59 = vmax.f32 %v863_v56, 0.0  ;;  %v2480_v1 = vor.u32 %v2703_v63, %v2479_v62 }
  0xde   : > { %v1004_v28 = vmax.f32 %v808_v13, 0.0  ;;  %1554 = vmatpush.bf16.msrb.mxu0 %v2372_v52  ;;  %v2684_v52 = vld [vmem:[#allocation5 + $0x84] sm:$0xf] }
  0xdf   : > { %v3287_v2 = vpack.c.bf16 %v1001_v59, %v997_v58  ;;  %v2721_v58 = vld [vmem:[#allocation5 + $0x1a4] sm:$0xf0]  ;;  %v2444_v59 = vor.u32 %v2692_v53, %v2441_v54  ;;  %1498 = vmatpush.bf16.msra.mxu2 %v2480_v1 }
  0xe0   : > { %v836_v6 = vpop.f32.mrf.mxu2  ;;  %v2552_v61 = vor.u32 %v2721_v58, %v2551_v57 }
  0xe1   : > { %v865_v10 = vpop.f32.mrf.mxu3  ;;  %1471 = vmatmul.bf16.vlgmr.msra.gmra.mxu1 %v3287_v2  ;;  %v780_v11 = vpop.f32.mrf.mxu0  ;;  %v837_v24 = vadd.f32 %v836_v6, %v3278_v31  ;;  %v2364_v6 = vor.u32 %v2672_v3, %v2361_v4 }
  0xe2   : > { %v781_v14 = vadd.f32 %v780_v11, %v3274_v21  ;;  %v809_v15 = vpop.f32.mrf.mxu1  ;;  %1582 = vmatpush.bf16.msrb.mxu1 %v2444_v59  ;;  %1526 = vmatpush.bf16.msra.mxu3 %v2552_v61  ;;  %v2436_v11 = vor.u32 %v2690_v7, %v2433_v8  ;;  %v2529_v61 = vld [vmem:[#allocation5 + $0x178] sm:$0xf0] }
  0xe3   : > { %v866_v42 = vadd.f32 %v865_v10, %v837_v24  ;;  %1555 = vmatpush.bf16.msrb.mxu0 %v2364_v6  ;;  %v2543_v24 = vld [vmem:[#allocation5 + $0x190] sm:$0xf]  ;;  %1499 = vmatpush.bf16.msra.mxu2 %v2472_v33 }
  0xe4   : > { %v810_v20 = vadd.f32 %v809_v15, %v781_v14  ;;  %v2670_v15 = vld [vmem:[#allocation5 + $0x14] sm:$0xf] }
  0xe5   : > { %v1005_v55 = vmax.f32 %v866_v42, 0.0  ;;  %v2356_v17 = vor.u32 %v2670_v15, %v2353_v16  ;;  %v2521_v15 = vld [vmem:[#allocation5 + $0x168] sm:$0xf0] }
  0xe6   : > { %v1008_v29 = vmax.f32 %v810_v20, 0.0  ;;  %1583 = vmatpush.bf16.msrb.mxu1 %v2436_v11  ;;  %v2688_v20 = vld [vmem:[#allocation5 + $0xa4] sm:$0xf] }
  0xe7   : > { %v2428_v26 = vor.u32 %v2688_v20, %v2425_v22  ;;  %1556 = vmatpush.bf16.msrb.mxu0 %v2356_v17 }
  0xe8   : > { %v838_v36 = vpop.f32.mrf.mxu2  ;;  %v3292_v37 = vpack.c.bf16 %v1008_v29, %v1004_v28  ;;  %v2544_v29 = vor.u32 %v2719_v25, %v2543_v24  ;;  %v3316_v24 = vperm.slane %v3271_v18, 2  ;;  %v2505_v18 = vld [vmem:[#allocation5 + $0x148] sm:$0xf0] }
  0xe9   : > { %v839_v34 = vadd.f32 %v838_v36, %v3278_v31  ;;  %v867_v39 = vpop.f32.mrf.mxu3  ;;  %v783_v43 = vpop.f32.mrf.mxu0 }
  0xea   : > { %v812_v47 = vpop.f32.mrf.mxu1  ;;  %1447 = vmatmul.bf16.gmra.mxu0 %v3292_v37  ;;  %v784_v60 = vadd.f32 %v783_v43, %v3274_v21  ;;  %1584 = vmatpush.bf16.msrb.mxu1 %v2428_v26 }
  0xeb   : > { %v868_v51 = vadd.f32 %v867_v39, %v839_v34  ;;  %1527 = vmatpush.bf16.msra.mxu3 %v2544_v29  ;;  %1557 = vmatpush.bf16.msrb.mxu0 %v2348_v38  ;;  %v2728_v29 = vld [vmem:[#allocation5 + $0x1e4] sm:$0xf] }
  0xec   : > { %v813_v12 = vadd.f32 %v812_v47, %v784_v60  ;;  %v2714_v60 = vld [vmem:[#allocation5 + $0x174] sm:$0xf]  ;;  %v2588_v33 = vor.u32 %v2728_v29, %v2585_v30  ;;  %v2489_v29 = vld [vmem:[#allocation5 + $0x128] sm:$0xf0] }
  0xed   : > { %v1009_v56 = vmax.f32 %v868_v51, 0.0  ;;  %v2717_v51 = vld [vmem:[#allocation5 + $0x184] sm:$0xf0]  ;;  %v2532_v63 = vor.u32 %v2714_v60, %v2529_v61 }
  0xee   : > { %v1012_v27 = vmax.f32 %v813_v12, 0.0  ;;  %1585 = vmatpush.bf16.msrb.mxu1 %v2420_v45 }
  0xef   : > { %v3297_v0 = vpack.c.bf16 %v1009_v56, %v1005_v55  ;;  %v2536_v55 = vor.u32 %v2717_v51, %v2535_v50  ;;  %v2409_v56 = vld [vmem:[#allocation5 + $0x88] sm:$0xf0]  ;;  %1608 = vmatpush.bf16.msrb.mxu2 %v2532_v63  ;;  %v2577_v50 = vld [vmem:[#allocation5 + $0x1d8] sm:$0xf0] }
  0xf0   : > { %v841_v5 = vpop.f32.mrf.mxu2  ;;  %v2412_v58 = vor.u32 %v2684_v52, %v2409_v56 }
  0xf1   : > { %v870_v9 = vpop.f32.mrf.mxu3  ;;  %1476 = vmatmul.bf16.gmra.mxu1 %v3297_v0  ;;  %v785_v10 = vpop.f32.mrf.mxu0  ;;  %v842_v23 = vadd.f32 %v841_v5, %v3278_v31  ;;  %1528 = vmatpush.bf16.msra.mxu3 %v2536_v55 }
  0xf2   : > { %v786_v13 = vadd.f32 %v785_v10, %v3274_v21  ;;  %v814_v14 = vpop.f32.mrf.mxu1  ;;  %1586 = vmatpush.bf16.msrb.mxu1 %v2412_v58  ;;  %v2593_v10 = vld [vmem:[#allocation5 + $0x1f8] sm:$0xf0] }
  0xf3   : > { %v871_v42 = vadd.f32 %v870_v9, %v842_v23  ;;  %v2730_v9 = vld [vmem:[#allocation5 + $0x1f4] sm:$0xf] }
  0xf4   : > { %v815_v19 = vadd.f32 %v814_v14, %v786_v13  ;;  %v2596_v13 = vor.u32 %v2730_v9, %v2593_v10  ;;  %v2712_v14 = vld [vmem:[#allocation5 + $0x164] sm:$0xf]  ;;  %v2706_v9 = vld [vmem:[#allocation5 + $0x134] sm:$0xf]  ;;  %v2497_v10 = vld [vmem:[#allocation5 + $0x138] sm:$0xf0] }
  0xf5   : > { %v1013_v53 = vmax.f32 %v871_v42, 0.0  ;;  %v2524_v16 = vor.u32 %v2712_v14, %v2521_v15 }
  0xf6   : > { %v1016_v28 = vmax.f32 %v815_v19, 0.0  ;;  %1637 = vmatpush.bf16.msrb.mxu3 %v2596_v13 }
  0xf7   : > { %1609 = vmatpush.bf16.msrb.mxu2 %v2524_v16 }
  0xf8   : > { %v843_v49 = vpop.f32.mrf.mxu2  ;;  %v3302_v36 = vpack.c.bf16 %v1016_v28, %v1012_v27 }
  0xf9   : > { %v844_v34 = vadd.f32 %v843_v49, %v3278_v31  ;;  %v872_v39 = vpop.f32.mrf.mxu3  ;;  %v788_v43 = vpop.f32.mrf.mxu0  ;;  %v2516_v49 = vor.u32 %v2710_v44, %v2513_v35 }
  0xfa   : > { %v817_v47 = vpop.f32.mrf.mxu1  ;;  %1452 = vmatmul.bf16.gmra.mxu0 %v3302_v36  ;;  %v789_v57 = vadd.f32 %v788_v43, %v3274_v21  ;;  %1638 = vmatpush.bf16.msrb.mxu3 %v2588_v33 }
  0xfb   : > { %v873_v48 = vadd.f32 %v872_v39, %v844_v34  ;;  %1610 = vmatpush.bf16.msrb.mxu2 %v2516_v49 }
  0xfc   : > { %v818_v4 = vadd.f32 %v817_v47, %v789_v57 }
  0xfd   : > { %v1017_v54 = vmax.f32 %v873_v48, 0.0  ;;  %v2726_v48 = vld [vmem:[#allocation5 + $0x1d4] sm:$0xf] }
  0xfe   : > { %v1020_v11 = vmax.f32 %v818_v4, 0.0 }
  0xff   : > { %v3307_v59 = vpack.c.bf16 %v1017_v54, %v1013_v53  ;;  %v2580_v53 = vor.u32 %v2726_v48, %v2577_v50  ;;  %v2708_v54 = vld [vmem:[#allocation5 + $0x144] sm:$0xf]  ;;  %v2702_v48 = vld [vmem:[#allocation5 + $0x114] sm:$0xf]  ;;  %v2481_v50 = vld [vmem:[#allocation5 + $0x118] sm:$0xf0] }
 0x100   : > { %v846_v62 = vpop.f32.mrf.mxu2  ;;  %v2508_v55 = vor.u32 %v2708_v54, %v2505_v18  ;;  %v2718_v18 = vld [vmem:[#allocation5 + $0x194] sm:$0xf] }
 0x101   : > { %v875_v1 = vpop.f32.mrf.mxu3  ;;  %1481 = vmatmul.bf16.gmra.mxu1 %v3307_v59  ;;  %v790_v3 = vpop.f32.mrf.mxu0  ;;  %v847_v8 = vadd.f32 %v846_v62, %v3278_v31  ;;  %1639 = vmatpush.bf16.msrb.mxu3 %v2580_v53 }
 0x102   : > { %v791_v5 = vadd.f32 %v790_v3, %v3274_v21  ;;  %v819_v6 = vpop.f32.mrf.mxu1  ;;  %1611 = vmatpush.bf16.msrb.mxu2 %v2508_v55  ;;  %v2545_v55 = vld [vmem:[#allocation5 + $0x198] sm:$0xf0] }
 0x103   : > { %v876_v20 = vadd.f32 %v875_v1, %v847_v8 }
 0x104   : > { %v820_v7 = vadd.f32 %v819_v6, %v791_v5  ;;  %v2724_v5 = vld [vmem:[#allocation5 + $0x1c4] sm:$0xf]  ;;  %v2569_v6 = vld [vmem:[#allocation5 + $0x1c8] sm:$0xf0] }
 0x105   : > { %v1021_v27 = vmax.f32 %v876_v20, 0.0  ;;  %v2572_v8 = vor.u32 %v2724_v5, %v2569_v6 }
 0x106   : > { %v1024_v12 = vmax.f32 %v820_v7, 0.0 }
 0x107   : > { %1640 = vmatpush.bf16.msrb.mxu3 %v2572_v8  ;;  %v2716_v8 = vld [vmem:[#allocation5 + $0x184] sm:$0xf] }
 0x108   : > { %v848_v17 = vpop.f32.mrf.mxu2  ;;  %v3312_v19 = vpack.c.bf16 %v1024_v12, %v1020_v11  ;;  %v2500_v12 = vor.u32 %v2706_v9, %v2497_v10  ;;  %v2537_v9 = vld [vmem:[#allocation5 + $0x188] sm:$0xf0] }
 0x109   : > { %v849_v21 = vadd.f32 %v848_v17, %v3278_v31  ;;  %v877_v22 = vpop.f32.mrf.mxu3  ;;  %v889_v23 = vpop.f32.mrf.mxu0 }
 0x10a   : > { %v918_v25 = vpop.f32.mrf.mxu1  ;;  %1457 = vmatmul.bf16.gmra.mxu0 %v3312_v19  ;;  %v890_v32 = vadd.f32 %v889_v23, %v3316_v24  ;;  %1612 = vmatpush.bf16.msrb.mxu2 %v2500_v12  ;;  %v2561_v23 = vld [vmem:[#allocation5 + $0x1b8] sm:$0xf0] }
 0x10b   : > { %v878_v26 = vadd.f32 %v877_v22, %v849_v21  ;;  %v2722_v22 = vld [vmem:[#allocation5 + $0x1b4] sm:$0xf] }
 0x10c   : > { %v919_v34 = vadd.f32 %v918_v25, %v890_v32 }
 0x10d   : > { %v1025_v28 = vmax.f32 %v878_v26, 0.0 }
 0x10e   : > { %v998_v51 = vmax.f32 %v919_v34, 0.0 }
 0x10f   : > { %v3320_v31 = vpack.c.bf16 %v1025_v28, %v1021_v27  ;;  %v2564_v27 = vor.u32 %v2722_v22, %v2561_v23  ;;  %v2704_v28 = vld [vmem:[#allocation5 + $0x124] sm:$0xf] }
 0x110   : > { %v947_v38 = vpop.f32.mrf.mxu2  ;;  %v2492_v30 = vor.u32 %v2704_v28, %v2489_v29 }
 0x111   : > { %v976_v41 = vpop.f32.mrf.mxu3  ;;  %1486 = vmatmul.bf16.gmra.mxu1 %v3320_v31  ;;  %v891_v42 = vpop.f32.mrf.mxu0  ;;  %v948_v47 = vadd.f32 %v947_v38, %v3323_v40  ;;  %1641 = vmatpush.bf16.msrb.mxu3 %v2564_v27 }
 0x112   : > { %v892_v39 = vadd.f32 %v891_v42, %v3316_v24  ;;  %v920_v43 = vpop.f32.mrf.mxu1  ;;  %1613 = vmatpush.bf16.msrb.mxu2 %v2492_v30 }
 0x113   : > { %v977_v58 = vadd.f32 %v976_v41, %v948_v47 }
 0x114   : > { %v921_v45 = vadd.f32 %v920_v43, %v892_v39  ;;  %v2720_v39 = vld [vmem:[#allocation5 + $0x1a4] sm:$0xf]  ;;  %v2553_v43 = vld [vmem:[#allocation5 + $0x1a8] sm:$0xf0] }
 0x115   : > { %v999_v3 = vmax.f32 %v977_v58, 0.0  ;;  %v2556_v47 = vor.u32 %v2720_v39, %v2553_v43 }
 0x116   : > { %v1002_v52 = vmax.f32 %v921_v45, 0.0 }
 0x117   : > { %1642 = vmatpush.bf16.msrb.mxu3 %v2556_v47 }
 0x118   : > { %v3328_v56 = vpack.c.bf16 %v1002_v52, %v998_v51  ;;  %v949_v57 = vpop.f32.mrf.mxu2  ;;  %v2484_v52 = vor.u32 %v2702_v48, %v2481_v50 }
 0x119   : > { %v950_v60 = vadd.f32 %v949_v57, %v3323_v40  ;;  %v978_v61 = vpop.f32.mrf.mxu3  ;;  %v894_v62 = vpop.f32.mrf.mxu0  ;;  %v2700_v57 = vld [vmem:[#allocation5 + $0x104] sm:$0xf] }
 0x11a   : > { %v923_v63 = vpop.f32.mrf.mxu1  ;;  %1500 = vmatmul.bf16.vlgmr.msra.gmra.mxu2 %v3328_v56  ;;  %1558 = vmatmul.bf16.vlgmr.msrb.gmra.mxu0 %v3282_v46  ;;  %v895_v7 = vadd.f32 %v894_v62, %v3316_v24  ;;  %v2548_v62 = vor.u32 %v2718_v18, %v2545_v55 }
 0x11b   : > { %v979_v1 = vadd.f32 %v978_v61, %v950_v60  ;;  %1614 = vmatpush.bf16.msrb.mxu2 %v2484_v52 }
 0x11c   : > { %v924_v15 = vadd.f32 %v923_v63, %v895_v7  ;;  %v2473_v63 = vld [vmem:[#allocation5 + $0x108] sm:$0xf0]  ;;  %1643 = vmatpush.bf16.msrb.mxu3 %v2548_v62 }
 0x11d   : > { %v1003_v4 = vmax.f32 %v979_v1, 0.0  ;;  %v2476_v1 = vor.u32 %v2700_v57, %v2473_v63 }
 0x11e   : > { %v1006_v25 = vmax.f32 %v924_v15, 0.0 }
 0x11f   : > { %v3334_v11 = vpack.c.bf16 %v1003_v4, %v999_v3  ;;  %1615 = vmatpush.bf16.msrb.mxu2 %v2476_v1 }
 0x120   : > { %v952_v13 = vpop.f32.mrf.mxu2 }
 0x121   : > { %v981_v14 = vpop.f32.mrf.mxu3  ;;  %1529 = vmatmul.bf16.vlgmr.msra.gmra.mxu3 %v3334_v11  ;;  %1587 = vmatmul.bf16.vlgmr.msrb.gmra.mxu1 %v3287_v2  ;;  %v896_v46 = vpop.f32.mrf.mxu0  ;;  %v953_v21 = vadd.f32 %v952_v13, %v3323_v40 }
 0x122   : > { %v897_v16 = vadd.f32 %v896_v46, %v3316_v24  ;;  %v925_v17 = vpop.f32.mrf.mxu1  ;;  %v2540_v46 = vor.u32 %v2716_v8, %v2537_v9 }
 0x123   : > { %v982_v2 = vadd.f32 %v981_v14, %v953_v21 }
 0x124   : > { %v926_v20 = vadd.f32 %v925_v17, %v897_v16  ;;  %1644 = vmatpush.bf16.msrb.mxu3 %v2540_v46 }
 0x125   : > { %v1007_v42 = vmax.f32 %v982_v2, 0.0 }
 0x126   : > { %v1010_v26 = vmax.f32 %v926_v20, 0.0 }
 0x128   : > { %v954_v32 = vpop.f32.mrf.mxu2  ;;  %v3340_v33 = vpack.c.bf16 %v1010_v26, %v1006_v25 }
 0x129   : > { %v955_v44 = vadd.f32 %v954_v32, %v3323_v40  ;;  %v983_v35 = vpop.f32.mrf.mxu3  ;;  %v899_v49 = vpop.f32.mrf.mxu0 }
 0x12a   : > { %v928_v38 = vpop.f32.mrf.mxu1  ;;  %1505 = vmatmul.bf16.gmra.mxu2 %v3340_v33  ;;  %1563 = vmatmul.bf16.gmra.mxu0 %v3292_v37  ;;  %v900_v45 = vadd.f32 %v899_v49, %v3316_v24 }
 0x12b   : > { %v984_v41 = vadd.f32 %v983_v35, %v955_v44 }
 0x12c   : > { %v929_v58 = vadd.f32 %v928_v38, %v900_v45 }
 0x12d   : > { %v1011_v34 = vmax.f32 %v984_v41, 0.0 }
 0x12e   : > { %v1014_v5 = vmax.f32 %v929_v58, 0.0 }
 0x12f   : > { %v3346_v51 = vpack.c.bf16 %v1011_v34, %v1007_v42 }
 0x130   : > { %v957_v53 = vpop.f32.mrf.mxu2 }
 0x131   : > { %v986_v54 = vpop.f32.mrf.mxu3  ;;  %1534 = vmatmul.bf16.gmra.mxu3 %v3346_v51  ;;  %1592 = vmatmul.bf16.gmra.mxu1 %v3297_v0  ;;  %v901_v37 = vpop.f32.mrf.mxu0  ;;  %v958_v4 = vadd.f32 %v957_v53, %v3323_v40 }
 0x132   : > { %v902_v60 = vadd.f32 %v901_v37, %v3316_v24  ;;  %v930_v61 = vpop.f32.mrf.mxu1 }
 0x133   : > { %v987_v10 = vadd.f32 %v986_v54, %v958_v4 }
 0x134   : > { %v931_v3 = vadd.f32 %v930_v61, %v902_v60 }
 0x135   : > { %v1015_v17 = vmax.f32 %v987_v10, 0.0 }
 0x136   : > { %v1018_v6 = vmax.f32 %v931_v3, 0.0 }
 0x138   : > { %v959_v0 = vpop.f32.mrf.mxu2  ;;  %v3352_v7 = vpack.c.bf16 %v1018_v6, %v1014_v5 }
 0x139   : > { %v960_v12 = vadd.f32 %v959_v0, %v3323_v40  ;;  %v988_v13 = vpop.f32.mrf.mxu3  ;;  %v904_v14 = vpop.f32.mrf.mxu0 }
 0x13a   : > { %v933_v15 = vpop.f32.mrf.mxu1  ;;  %1510 = vmatmul.bf16.gmra.mxu2 %v3352_v7  ;;  %1568 = vmatmul.bf16.gmra.mxu0 %v3302_v36  ;;  %v905_v21 = vadd.f32 %v904_v14, %v3316_v24 }
 0x13b   : > { %v989_v16 = vadd.f32 %v988_v13, %v960_v12 }
 0x13c   : > { %v934_v27 = vadd.f32 %v933_v15, %v905_v21 }
 0x13d   : > { %v1019_v20 = vmax.f32 %v989_v16, 0.0 }
 0x13e   : > { %v1022_v32 = vmax.f32 %v934_v27, 0.0 }
 0x13f   : > { %v1039_v22 = vpack.c.bf16 %v1019_v20, %v1015_v17 }
 0x140   : > { %v962_v23 = vpop.f32.mrf.mxu2 }
 0x141   : > { %v991_v25 = vpop.f32.mrf.mxu3  ;;  %1539 = vmatmul.bf16.gmra.mxu3 %v1039_v22  ;;  %1597 = vmatmul.bf16.gmra.mxu1 %v3307_v59  ;;  %v906_v26 = vpop.f32.mrf.mxu0  ;;  %v963_v36 = vadd.f32 %v962_v23, %v3323_v40 }
 0x142   : > { %v907_v28 = vadd.f32 %v906_v26, %v3316_v24  ;;  %v935_v29 = vpop.f32.mrf.mxu1  ;;  %v3364_v24 = vld [vmem:[#allocation7] sm:$0x3] }
 0x143   : > { %v992_v49 = vadd.f32 %v991_v25, %v963_v36  ;;  %v1110_v45 = vperm.slane %v3364_v24, 0 }
 0x144   : > { %v936_v30 = vadd.f32 %v935_v29, %v907_v28 }
 0x145   : > { %v1023_v42 = vmax.f32 %v992_v49, 0.0 }
 0x146   : > { %v1026_v2 = vmax.f32 %v936_v30, 0.0 }
 0x148   : > { %v964_v44 = vpop.f32.mrf.mxu2  ;;  %v1042_v35 = vpack.c.bf16 %v1026_v2, %v1022_v32 }
 0x149   : > { %v965_v38 = vadd.f32 %v964_v44, %v3323_v40  ;;  %v993_v41 = vpop.f32.mrf.mxu3 }
 0x14a   : > { %1515 = vmatmul.bf16.gmra.mxu2 %v1042_v35  ;;  %1573 = vmatmul.bf16.gmra.mxu0 %v3312_v19 }
 0x14b   : > { %v994_v59 = vadd.f32 %v993_v41, %v965_v38 }
 0x14d   : > { %v1027_v34 = vmax.f32 %v994_v59, 0.0 }
 0x14f   : > { %v1043_v39 = vpack.c.bf16 %v1027_v34, %v1023_v42 }
 0x151   : > { %1544 = vmatmul.bf16.gmra.mxu3 %v1043_v39  ;;  %1602 = vmatmul.bf16.gmra.mxu1 %v3320_v31 }
 0x157   : > { %v1443_v43 = vpop.f32.mrf.mxu0 }
 0x158   : > { %v1444_v47 = vadd.f32 %v1443_v43, %v1110_v45 }
 0x15a   : > { %1616 = vmatmul.bf16.vlgmr.msrb.gmra.mxu2 %v3328_v56 }
 0x15e   : > { %v1472_v40 = vpop.f32.mrf.mxu1 }
 0x15f   : > { %v1473_v48 = vadd.f32 %v1472_v40, %v1444_v47  ;;  %v1445_v50 = vpop.f32.mrf.mxu0 }
 0x160   : > { %v1446_v19 = vadd.f32 %v1445_v50, %v1110_v45 }
 0x161   : > { %1645 = vmatmul.bf16.vlgmr.msrb.gmra.mxu3 %v3334_v11 }
 0x166   : > { %v1474_v52 = vpop.f32.mrf.mxu1 }
 0x167   : > { %v1475_v53 = vadd.f32 %v1474_v52, %v1446_v19  ;;  %v1448_v54 = vpop.f32.mrf.mxu0 }
 0x168   : > { %v1449_v31 = vadd.f32 %v1448_v54, %v1110_v45 }
 0x16a   : > { %1621 = vmatmul.bf16.gmra.mxu2 %v3340_v33 }
 0x16e   : > { %v1477_v37 = vpop.f32.mrf.mxu1 }
 0x16f   : > { %v1478_v18 = vadd.f32 %v1477_v37, %v1449_v31  ;;  %v1450_v55 = vpop.f32.mrf.mxu0 }
 0x170   : > { %v1451_v57 = vadd.f32 %v1450_v55, %v1110_v45 }
 0x171   : > { %1650 = vmatmul.bf16.gmra.mxu3 %v3346_v51 }
 0x176   : > { %v1479_v56 = vpop.f32.mrf.mxu1 }
 0x177   : > { %v1480_v58 = vadd.f32 %v1479_v56, %v1451_v57  ;;  %v1453_v60 = vpop.f32.mrf.mxu0 }
 0x178   : > { %v1454_v61 = vadd.f32 %v1453_v60, %v1110_v45  ;;  %v2839_v60 = vld [vmem:[%s3214_s19] sm:$0xff] }
 0x17a   : > { %1626 = vmatmul.bf16.gmra.mxu2 %v3352_v7 }
 0x17e   : > { %v1482_v11 = vpop.f32.mrf.mxu1 }
 0x17f   : > { %v1483_v62 = vadd.f32 %v1482_v11, %v1454_v61  ;;  %v1455_v63 = vpop.f32.mrf.mxu0  ;;  %v2840_v61 = vld [vmem:[%s3214_s19 + $0x8] sm:$0xff] }
 0x180   : > { %v1456_v1 = vadd.f32 %v1455_v63, %v1110_v45 }
 0x181   : > { %1655 = vmatmul.bf16.gmra.mxu3 %v1039_v22 }
 0x186   : > { %v1484_v3 = vpop.f32.mrf.mxu1 }
 0x187   : > { %v1485_v33 = vadd.f32 %v1484_v3, %v1456_v1  ;;  %v1458_v4 = vpop.f32.mrf.mxu0 }
 0x188   : > { %v1459_v5 = vadd.f32 %v1458_v4, %v1110_v45 }
 0x18a   : > { %1631 = vmatmul.bf16.gmra.mxu2 %v1042_v35 }
 0x18e   : > { %v1487_v6 = vpop.f32.mrf.mxu1 }
 0x18f   : > { %v1488_v0 = vadd.f32 %v1487_v6, %v1459_v5  ;;  %v1460_v51 = vpop.f32.mrf.mxu0 }
 0x190   : > { %v1461_v8 = vadd.f32 %v1460_v51, %v1110_v45  ;;  %v2841_v51 = vld [vmem:[%s3214_s19 + $0x10] sm:$0xff] }
 0x191   : > { %1660 = vmatmul.bf16.gmra.mxu3 %v1043_v39 }
 0x196   : > { %v1489_v9 = vpop.f32.mrf.mxu1 }
 0x197   : > { %v1490_v10 = vadd.f32 %v1489_v9, %v1461_v8  ;;  %v1559_v41 = vpop.f32.mrf.mxu0  ;;  %v2842_v9 = vld [vmem:[%s3214_s19 + $0x18] sm:$0xff] }
 0x19d   : > { %v1501_v12 = vpop.f32.mrf.mxu2 }
 0x19e   : > { %v1502_v7 = vadd.f32 %v1501_v12, %v1473_v48  ;;  %v1588_v42 = vpop.f32.mrf.mxu1  ;;  %v3383_v48 = vperm.slane %v3364_v24, 1 }
 0x19f   : > { %v1561_v47 = vpop.f32.mrf.mxu0 }
 0x1a4   : > { %v1530_v13 = vpop.f32.mrf.mxu3 }
 0x1a5   : > { %v1531_v14 = vadd.f32 %v1530_v13, %v1502_v7  ;;  %v1503_v46 = vpop.f32.mrf.mxu2 }
 0x1a6   : > { %v1504_v15 = vadd.f32 %v1503_v46, %v1475_v53  ;;  %v1590_v40 = vpop.f32.mrf.mxu1  ;;  %v1560_v53 = vadd.f32 %v1559_v41, %v3383_v48  ;;  %v2846_v41 = vld [vmem:[%s3214_s19 + $0x38] sm:$0xff] }
 0x1a7   : > { %v1564_v31 = vpop.f32.mrf.mxu0  ;;  %v3390_v24 = vadd.f32 %v2839_v60, %v1531_v14 }
 0x1a8   : > { %v1589_v54 = vadd.f32 %v1588_v42, %v1560_v53 }
 0x1ac   : > { %v1532_v16 = vpop.f32.mrf.mxu3 }
 0x1ad   : > { %v1533_v17 = vadd.f32 %v1532_v16, %v1504_v15  ;;  %v1506_v20 = vpop.f32.mrf.mxu2 }
 0x1ae   : > { %v1507_v21 = vadd.f32 %v1506_v20, %v1478_v18  ;;  %v1593_v18 = vpop.f32.mrf.mxu1 }
 0x1af   : > { %v1566_v3 = vpop.f32.mrf.mxu0  ;;  %v3399_v8 = vadd.f32 %v2841_v51, %v1533_v17 }
 0x1b0   : > { %v1567_v20 = vadd.f32 %v1566_v3, %v3383_v48  ;;  %v2850_v3 = vld [vmem:[%s3214_s19 + $0x58] sm:$0xff] }
 0x1b4   : > { %v1535_v22 = vpop.f32.mrf.mxu3 }
 0x1b5   : > { %v3372_v23 = vadd.f32 %v1535_v22, %v1507_v21  ;;  %v1508_v25 = vpop.f32.mrf.mxu2  ;;  %v2843_v21 = vld [vmem:[%s3214_s19 + $0x20] sm:$0xff]  ;;  %v2844_v22 = vld [vmem:[%s3214_s19 + $0x28] sm:$0xff] }
 0x1b6   : > { %v1509_v26 = vadd.f32 %v1508_v25, %v1480_v58  ;;  %v1562_v58 = vadd.f32 %v1561_v47, %v3383_v48  ;;  %v1595_v6 = vpop.f32.mrf.mxu1 }
 0x1b7   : > { %v1569_v16 = vpop.f32.mrf.mxu0  ;;  %v3409_v17 = vadd.f32 %v2843_v21, %v3372_v23 }
 0x1bc   : > { %v1537_v27 = vpop.f32.mrf.mxu3 }
 0x1bd   : > { %v3374_v28 = vadd.f32 %v1537_v27, %v1509_v26  ;;  %v1511_v29 = vpop.f32.mrf.mxu2  ;;  %v1596_v27 = vadd.f32 %v1595_v6, %v1567_v20 }
 0x1be   : > { %v1512_v30 = vadd.f32 %v1511_v29, %v1483_v62  ;;  %v1591_v62 = vadd.f32 %v1590_v40, %v1562_v58  ;;  %v1598_v26 = vpop.f32.mrf.mxu1 }
 0x1bf   : > { %v1571_v42 = vpop.f32.mrf.mxu0 }
 0x1c0   : > { %v1572_v53 = vadd.f32 %v1571_v42, %v3383_v48 }
 0x1c4   : > { %v1540_v36 = vpop.f32.mrf.mxu3 }
 0x1c5   : > { %v3376_v32 = vadd.f32 %v1540_v36, %v1512_v30  ;;  %v1513_v2 = vpop.f32.mrf.mxu2 }
 0x1c6   : > { %v1514_v44 = vadd.f32 %v1513_v2, %v1485_v33 }
 0x1cc   : > { %v1542_v35 = vpop.f32.mrf.mxu3 }
 0x1cd   : > { %v3378_v49 = vadd.f32 %v1542_v35, %v1514_v44  ;;  %v1516_v38 = vpop.f32.mrf.mxu2  ;;  %v1570_v35 = vadd.f32 %v1569_v16, %v3383_v48 }
 0x1ce   : > { %v1517_v59 = vadd.f32 %v1516_v38, %v1488_v0  ;;  %v1565_v0 = vadd.f32 %v1564_v31, %v3383_v48  ;;  %v2845_v38 = vld [vmem:[%s3214_s19 + $0x30] sm:$0xff]  ;;  %v2848_v31 = vld [vmem:[%s3214_s19 + $0x48] sm:$0xff] }
 0x1cf   : > { %v3419_v23 = vadd.f32 %v2845_v38, %v3374_v28 }
 0x1d0   : > { %v1594_v12 = vadd.f32 %v1593_v18, %v1565_v0 }
 0x1d4   : > { %v1545_v34 = vpop.f32.mrf.mxu3 }
 0x1d5   : > { %v3380_v39 = vadd.f32 %v1545_v34, %v1517_v59  ;;  %v1518_v43 = vpop.f32.mrf.mxu2  ;;  %v1599_v34 = vadd.f32 %v1598_v26, %v1570_v35 }
 0x1d6   : > { %v1519_v45 = vadd.f32 %v1518_v43, %v1490_v10 }
 0x1dc   : > { %v1547_v50 = vpop.f32.mrf.mxu3 }
 0x1dd   : > { %v3385_v19 = vadd.f32 %v1547_v50, %v1519_v45  ;;  %v1617_v52 = vpop.f32.mrf.mxu2  ;;  %v1600_v45 = vpop.f32.mrf.mxu1 }
 0x1de   : > { %v1618_v37 = vadd.f32 %v1617_v52, %v1589_v54  ;;  %v2847_v54 = vld [vmem:[%s3214_s19 + $0x40] sm:$0xff]  ;;  %v1601_v18 = vadd.f32 %v1600_v45, %v1572_v53 }
 0x1df   : > { %v3429_v28 = vadd.f32 %v2847_v54, %v3376_v32  ;;  %v2849_v32 = vld [vmem:[%s3214_s19 + $0x50] sm:$0xff] }
 0x1e4   : > { %v1646_v55 = vpop.f32.mrf.mxu3 }
 0x1e5   : > { %v1647_v57 = vadd.f32 %v1646_v55, %v1618_v37  ;;  %v1619_v56 = vpop.f32.mrf.mxu2  ;;  %v1603_v58 = vpop.f32.mrf.mxu1 }
 0x1e6   : > { %v1620_v1 = vadd.f32 %v1619_v56, %v1591_v62 }
 0x1e7   : > { %v3393_v11 = vadd.f32 %v2840_v61, %v1647_v57  ;;  %v1574_v57 = vpop.f32.mrf.mxu0 }
 0x1e9   : > { %v1682_v63 = vadd.f32 %v3393_v11, %v3390_v24 }
 0x1eb   : > { %1683 = vadd.xlane.f32.xlu0 %v1682_v63  ;;  %v1575_v63 = vadd.f32 %v1574_v57, %v3383_v48 }
 0x1ec   : > { %v1648_v33 = vpop.f32.mrf.mxu3 }
 0x1ed   : > { %v1649_v4 = vadd.f32 %v1648_v33, %v1620_v1  ;;  %v1622_v5 = vpop.f32.mrf.mxu2  ;;  %v3439_v1 = vadd.f32 %v2849_v32, %v3378_v49 }
 0x1ee   : > { %v1623_v13 = vadd.f32 %v1622_v5, %v1594_v12  ;;  %v1605_v12 = vpop.f32.mrf.mxu1 }
 0x1ef   : > { %v3402_v10 = vadd.f32 %v2842_v9, %v1649_v4  ;;  %v1604_v4 = vadd.f32 %v1603_v58, %v1575_v63  ;;  %v1576_v0 = vpop.f32.mrf.mxu0 }
 0x1f1   : > { %v1685_v7 = vadd.f32 %v3402_v10, %v3399_v8 }
 0x1f3   : > { %1686 = vadd.xlane.f32.xlu0 %v1685_v7  ;;  %v1577_v7 = vadd.f32 %v1576_v0, %v3383_v48  ;;  %v2854_v48 = vld [vmem:[%s3214_s19 + $0x78] sm:$0xff] }
 0x1f4   : > { %v1651_v14 = vpop.f32.mrf.mxu3 }
 0x1f5   : > { %v1652_v46 = vadd.f32 %v1651_v14, %v1623_v13  ;;  %v1624_v15 = vpop.f32.mrf.mxu2  ;;  %v2851_v13 = vld [vmem:[%s3214_s19 + $0x60] sm:$0xff]  ;;  %v2852_v14 = vld [vmem:[%s3214_s19 + $0x68] sm:$0xff]  ;;  %v1606_v16 = vadd.f32 %v1605_v12, %v1577_v7 }
 0x1f6   : > { %v1625_v30 = vadd.f32 %v1624_v15, %v1596_v27  ;;  %v3449_v49 = vadd.f32 %v2851_v13, %v3380_v39  ;;  %v2853_v27 = vld [vmem:[%s3214_s19 + $0x70] sm:$0xff]  ;;  %s2995_s19 = scalar_lea.hbm %s3684_s7, 256 }
 0x1f7   : > { %v3412_v25 = vadd.f32 %v2844_v22, %v1652_v46  ;;  %p2997_p4 = scmp.lt.s32.totalorder %s2995_s19, %s2991_s26 }
 0x1f9   : > { %v1688_v29 = vadd.f32 %v3412_v25, %v3409_v17  ;;  %p2998_p7 = por %p2997_p4, %p2996_p3 }
 0x1fb   : > { %1689 = vadd.xlane.f32.xlu1 %v1688_v29  ;;  %v3458_v29 = vadd.f32 %v2853_v27, %v3385_v19  ;;  %p2999_p8 = pnand %p2998_p7, %p2994_p2 }
 0x1fc   : > { %v1653_v36 = vpop.f32.mrf.mxu3 }
 0x1fd   : > { %v1654_v2 = vadd.f32 %v1653_v36, %v1625_v30  ;;  %v1627_v44 = vpop.f32.mrf.mxu2  ;;  %v3059_v36 = vmov 256.0  }
 0x1fe   : > { %v1628_v47 = vadd.f32 %v1627_v44, %v1599_v34  ;;  %2821 = vrcp.f32 %v3059_v36 }
 0x1ff   : > { %v3422_v59 = vadd.f32 %v2846_v41, %v1654_v2 }
 0x201   : > { %v1691_v43 = vadd.f32 %v3422_v59, %v3419_v23 }
 0x203   : > { %1692 = vadd.xlane.f32.xlu1 %v1691_v43 }
 0x204   : > { %v1656_v40 = vpop.f32.mrf.mxu3  ;;  %v2822_v2 = vpop.eup %2821 }
 0x205   : > { %v1657_v50 = vadd.f32 %v1656_v40, %v1628_v47  ;;  %v1629_v52 = vpop.f32.mrf.mxu2  ;;  %v1707_v44 = vmul.f32 256.0, %v2822_v2  ;;  %vm1711_vm0 = vweird.f32 %v2822_v2 }
 0x206   : > { %v1630_v56 = vadd.f32 %v1629_v52, %v1601_v18 }
 0x207   : > { %v3432_v37 = vadd.f32 %v2848_v31, %v1657_v50  ;;  %v1708_v35 = vsub.f32 1.0, %v1707_v44 }
 0x209   : > { %v1694_v55 = vadd.f32 %v3432_v37, %v3429_v28  ;;  %v1709_v38 = vmul.f32 %v2822_v2, %v1708_v35 }
 0x20b   : > { %1695 = vadd.xlane.f32.xlu2 %v1694_v55  ;;  %v1710_v41 = vadd.f32 %v2822_v2, %v1709_v38 }
 0x20c   : > { %v1658_v60 = vpop.f32.mrf.mxu3 }
 0x20d   : > { %v1659_v61 = vadd.f32 %v1658_v60, %v1630_v56  ;;  %v1632_v62 = vpop.f32.mrf.mxu2  ;;  %v3465_v42 = vsel %vm1711_vm0, %v2822_v2, %v1710_v41 }
 0x20e   : > { %v1633_v6 = vadd.f32 %v1632_v62, %v1604_v4 }
 0x20f   : > { %v3442_v33 = vadd.f32 %v2850_v3, %v1659_v61 }
 0x211   : > { %v1697_v5 = vadd.f32 %v3442_v33, %v3439_v1 }
 0x213   : > { %1698 = vadd.xlane.f32.xlu2 %v1697_v5 }
 0x214   : > { %v1661_v51 = vpop.f32.mrf.mxu3 }
 0x215   : > { %v1662_v9 = vadd.f32 %v1661_v51, %v1633_v6  ;;  %v1634_v15 = vpop.f32.mrf.mxu2 }
 0x216   : > { %v1635_v21 = vadd.f32 %v1634_v15, %v1606_v16 }
 0x217   : > { %v3452_v46 = vadd.f32 %v2852_v14, %v1662_v9 }
 0x219   : > { %v1700_v20 = vadd.f32 %v3452_v46, %v3449_v49 }
 0x21b   : > { %1701 = vadd.xlane.f32.xlu0 %v1700_v20 }
 0x21c   : > { %v1663_v22 = vpop.f32.mrf.mxu3 }
 0x21d   : > { %v1664_v26 = vadd.f32 %v1663_v22, %v1635_v21 }
 0x21f   : > { %v3461_v30 = vadd.f32 %v2854_v48, %v1664_v26 }
 0x221   : > { %v1703_v39 = vadd.f32 %v3461_v30, %v3458_v29 }
 0x223   : > { %1704 = vadd.xlane.f32.xlu1 %v1703_v39 }
 0x25e   : > { %v1684_v34 = vpop.xlane.xlu0 %1683 }
 0x25f   : > { %v1713_v19 = vmul.f32 %v3465_v42, %v1684_v34 }
 0x261   : > { %v3469_v43 = vsub.f32 %v3390_v24, %v1713_v19  ;;  %v3472_v45 = vsub.f32 %v3393_v11, %v1713_v19 }
 0x263   : > { %v1737_v47 = vmul.f32 %v3469_v43, %v3469_v43  ;;  %v1738_v40 = vmul.f32 %v3472_v45, %v3472_v45 }
 0x265   : > { %v1753_v50 = vadd.f32 %v1738_v40, %v1737_v47 }
 0x266   : > { %v1687_v52 = vpop.xlane.xlu0 %1686 }
 0x267   : > { %v1714_v53 = vmul.f32 %v3465_v42, %v1687_v52  ;;  %1754 = vadd.xlane.f32.xlu2 %v1753_v50  ;;  %v1889_v52 = vld [vmem:[%s3682_s5] sm:$0x3] }
 0x269   : > { %v3480_v54 = vsub.f32 %v3399_v8, %v1714_v53  ;;  %v3483_v24 = vsub.f32 %v3402_v10, %v1714_v53 }
 0x26b   : > { %v1739_v11 = vmul.f32 %v3480_v54, %v3480_v54  ;;  %v1740_v31 = vmul.f32 %v3483_v24, %v3483_v24 }
 0x26d   : > { %v1756_v18 = vadd.f32 %v1740_v31, %v1739_v11 }
 0x26e   : > { %v1690_v55 = vpop.xlane.xlu1 %1689 }
 0x26f   : > { %v1715_v57 = vmul.f32 %v3465_v42, %v1690_v55  ;;  %1757 = vadd.xlane.f32.xlu0 %v1756_v18  ;;  %v1911_v18 = vld [vmem:[#allocation8] sm:$0x3] }
 0x271   : > { %v3491_v56 = vsub.f32 %v3409_v17, %v1715_v57  ;;  %v3494_v8 = vsub.f32 %v3412_v25, %v1715_v57 }
 0x273   : > { %v1741_v10 = vmul.f32 %v3491_v56, %v3491_v56  ;;  %v1742_v58 = vmul.f32 %v3494_v8, %v3494_v8 }
 0x275   : > { %v1759_v60 = vadd.f32 %v1742_v58, %v1741_v10  ;;  %v3562_v10 = vperm.slane %v1889_v52, 0  ;;  %v3564_v58 = vperm.slane %v1889_v52, 1 }
 0x276   : > { %v1693_v61 = vpop.xlane.xlu1 %1692 }
 0x277   : > { %v1716_v62 = vmul.f32 %v3465_v42, %v1693_v61  ;;  %1760 = vadd.xlane.f32.xlu1 %v1759_v60 }
 0x279   : > { %v3502_v63 = vsub.f32 %v3419_v23, %v1716_v62  ;;  %v3505_v17 = vsub.f32 %v3422_v59, %v1716_v62  ;;  %v3568_v62 = vperm.slane %v1911_v18, 0 }
 0x27b   : > { %v1743_v25 = vmul.f32 %v3502_v63, %v3502_v63  ;;  %v1744_v32 = vmul.f32 %v3505_v17, %v3505_v17 }
 0x27d   : > { %v1762_v3 = vadd.f32 %v1744_v32, %v1743_v25  ;;  %v3570_v25 = vperm.slane %v1911_v18, 1 }
 0x27e   : > { %v1696_v4 = vpop.xlane.xlu2 %1695 }
 0x27f   : > { %v1717_v5 = vmul.f32 %v3465_v42, %v1696_v4  ;;  %1763 = vadd.xlane.f32.xlu2 %v1762_v3 }
 0x281   : > { %v3513_v6 = vsub.f32 %v3429_v28, %v1717_v5  ;;  %v3516_v23 = vsub.f32 %v3432_v37, %v1717_v5 }
 0x283   : > { %v1745_v59 = vmul.f32 %v3513_v6, %v3513_v6  ;;  %v1746_v0 = vmul.f32 %v3516_v23, %v3516_v23 }
 0x285   : > { %v1765_v51 = vadd.f32 %v1746_v0, %v1745_v59 }
 0x286   : > { %v1699_v9 = vpop.xlane.xlu2 %1698 }
 0x287   : > { %v1718_v12 = vmul.f32 %v3465_v42, %v1699_v9  ;;  %1766 = vadd.xlane.f32.xlu0 %v1765_v51 }
 0x289   : > { %v3524_v7 = vsub.f32 %v3439_v1, %v1718_v12  ;;  %v3527_v28 = vsub.f32 %v3442_v33, %v1718_v12 }
 0x28b   : > { %v1747_v37 = vmul.f32 %v3524_v7, %v3524_v7  ;;  %v1748_v13 = vmul.f32 %v3527_v28, %v3527_v28 }
 0x28d   : > { %v1768_v14 = vadd.f32 %v1748_v13, %v1747_v37 }
 0x28e   : > { %v1702_v15 = vpop.xlane.xlu0 %1701 }
 0x28f   : > { %v1719_v16 = vmul.f32 %v3465_v42, %v1702_v15  ;;  %1769 = vadd.xlane.f32.xlu1 %v1768_v14 }
 0x291   : > { %v3535_v20 = vsub.f32 %v3449_v49, %v1719_v16  ;;  %v3538_v1 = vsub.f32 %v3452_v46, %v1719_v16 }
 0x293   : > { %v1749_v33 = vmul.f32 %v3535_v20, %v3535_v20  ;;  %v1750_v21 = vmul.f32 %v3538_v1, %v3538_v1 }
 0x295   : > { %v1771_v22 = vadd.f32 %v1750_v21, %v1749_v33 }
 0x296   : > { %v1705_v26 = vpop.xlane.xlu1 %1704 }
 0x297   : > { %v1720_v27 = vmul.f32 %v3465_v42, %v1705_v26  ;;  %1772 = vadd.xlane.f32.xlu2 %v1771_v22 }
 0x299   : > { %v3546_v48 = vsub.f32 %v3458_v29, %v1720_v27  ;;  %v3549_v49 = vsub.f32 %v3461_v30, %v1720_v27 }
 0x29b   : > { %v1751_v46 = vmul.f32 %v3546_v48, %v3546_v48  ;;  %v1752_v39 = vmul.f32 %v3549_v49, %v3549_v49 }
 0x29d   : > { %v1774_v36 = vadd.f32 %v1752_v39, %v1751_v46 }
 0x29f   : > { %1775 = vadd.xlane.f32.xlu0 %v1774_v36 }
 0x2da   : > { %v1755_v2 = vpop.xlane.xlu2 %1754 }
 0x2db   : > { %v1777_v44 = vmul.f32 %v1755_v2, %v3465_v42 }
 0x2dd   : > { %v1785_v35 = vadd.f32 1e-05, %v1777_v44 }
 0x2df   : > { %2823 = vrsqrt.f32 %v1785_v35  ;;  %vm1799_vm2 = vweird.f32 %v1785_v35 }
 0x2e2   : > { %v1758_v38 = vpop.xlane.xlu0 %1757 }
 0x2e3   : > { %v1778_v29 = vmul.f32 %v1758_v38, %v3465_v42 }
 0x2e5   : > { %v2824_v41 = vpop.eup %2823  ;;  %v1786_v30 = vadd.f32 1e-05, %v1778_v29 }
 0x2e6   : > { %v1794_v34 = vmul.f32 %v2824_v41, %v1785_v35  ;;  %vm1800_vm1 = vweird.f32 %v2824_v41 }
 0x2e7   : > { %2825 = vrsqrt.f32 %v1786_v30  ;;  %vm1801_vm3 = vmor %vm1799_vm2, %vm1800_vm1  ;;  %vm1809_vm5 = vweird.f32 %v1786_v30 }
 0x2e8   : > { %v1795_v19 = vmul.f32 %v2824_v41, %v1794_v34 }
 0x2ea   : > { %v1796_v47 = vmul.f32 0.5, %v1795_v19  ;;  %v1761_v40 = vpop.xlane.xlu1 %1760 }
 0x2eb   : > { %v1779_v50 = vmul.f32 %v1761_v40, %v3465_v42 }
 0x2ec   : > { %v1797_v53 = vsub.f32 1.5, %v1796_v47 }
 0x2ed   : > { %v2826_v11 = vpop.eup %2825  ;;  %v1787_v31 = vadd.f32 1e-05, %v1779_v50 }
 0x2ee   : > { %v1798_v55 = vmul.f32 %v2824_v41, %v1797_v53  ;;  %v1804_v57 = vmul.f32 %v2826_v11, %v1786_v30  ;;  %vm1810_vm4 = vweird.f32 %v2826_v11 }
 0x2ef   : > { %2827 = vrsqrt.f32 %v1787_v31  ;;  %vm1811_vm6 = vmor %vm1809_vm5, %vm1810_vm4  ;;  %vm1819_vm8 = vweird.f32 %v1787_v31 }
 0x2f0   : > { %v1802_v60 = vsel %vm1801_vm3, %v2824_v41, %v1798_v55  ;;  %v1805_v61 = vmul.f32 %v2826_v11, %v1804_v57 }
 0x2f1   : > { %v1873_v32 = vmul.f32 %v1802_v60, %v3469_v43  ;;  %v1874_v3 = vmul.f32 %v1802_v60, %v3472_v45 }
 0x2f2   : > { %v1806_v4 = vmul.f32 0.5, %v1805_v61  ;;  %v1764_v5 = vpop.xlane.xlu2 %1763 }
 0x2f3   : > { %v1895_v59 = vmul.f32 %v3562_v10, %v1873_v32  ;;  %v1896_v0 = vmul.f32 %v3564_v58, %v1874_v3  ;;  %v1780_v51 = vmul.f32 %v1764_v5, %v3465_v42 }
 0x2f4   : > { %v1807_v9 = vsub.f32 1.5, %v1806_v4 }
 0x2f5   : > { %v2828_v12 = vpop.eup %2827  ;;  %v1917_v37 = vadd.f32 %v3568_v62, %v1895_v59  ;;  %v1918_v13 = vadd.f32 %v3570_v25, %v1896_v0  ;;  %v1788_v14 = vadd.f32 1e-05, %v1780_v51 }
 0x2f6   : > { %v1808_v15 = vmul.f32 %v2826_v11, %v1807_v9  ;;  %v1814_v43 = vmul.f32 %v2828_v12, %v1787_v31  ;;  %vm1820_vm7 = vweird.f32 %v2828_v12 }
 0x2f7   : > { %1933 = vst [vmem:[%s3579_s17] sm:$0xff] %v1917_v37  ;;  %2829 = vrsqrt.f32 %v1788_v14  ;;  %vm1821_vm9 = vmor %vm1819_vm8, %vm1820_vm7  ;;  %vm1829_vm11 = vweird.f32 %v1788_v14 }
 0x2f8   : > { %1934 = vst [vmem:[%s3579_s17 + $0x8] sm:$0xff] %v1918_v13  ;;  %v1812_v45 = vsel %vm1811_vm6, %v2826_v11, %v1808_v15  ;;  %v1815_v16 = vmul.f32 %v2828_v12, %v1814_v43 }
 0x2f9   : > { %v1875_v33 = vmul.f32 %v1812_v45, %v3480_v54  ;;  %v1876_v21 = vmul.f32 %v1812_v45, %v3483_v24 }
 0x2fa   : > { %v1816_v22 = vmul.f32 0.5, %v1815_v16  ;;  %v1767_v26 = vpop.xlane.xlu0 %1766 }
 0x2fb   : > { %v1897_v27 = vmul.f32 %v3562_v10, %v1875_v33  ;;  %v1898_v46 = vmul.f32 %v3564_v58, %v1876_v21  ;;  %v1781_v39 = vmul.f32 %v1767_v26, %v3465_v42 }
 0x2fc   : > { %v1817_v36 = vsub.f32 1.5, %v1816_v22 }
 0x2fd   : > { %v2830_v2 = vpop.eup %2829  ;;  %v1919_v44 = vadd.f32 %v3568_v62, %v1897_v27  ;;  %v1920_v35 = vadd.f32 %v3570_v25, %v1898_v46  ;;  %v1789_v54 = vadd.f32 1e-05, %v1781_v39 }
 0x2fe   : > { %v1818_v38 = vmul.f32 %v2828_v12, %v1817_v36  ;;  %v1824_v24 = vmul.f32 %v2830_v2, %v1788_v14  ;;  %vm1830_vm10 = vweird.f32 %v2830_v2 }
 0x2ff   : > { %1935 = vst [vmem:[%s3579_s17 + $0x10] sm:$0xff] %v1919_v44  ;;  %2831 = vrsqrt.f32 %v1789_v54  ;;  %vm1831_vm12 = vmor %vm1829_vm11, %vm1830_vm10  ;;  %vm1839_vm14 = vweird.f32 %v1789_v54 }
 0x300   : > { %1936 = vst [vmem:[%s3579_s17 + $0x18] sm:$0xff] %v1920_v35  ;;  %v1822_v29 = vsel %vm1821_vm9, %v2828_v12, %v1818_v38  ;;  %v1825_v41 = vmul.f32 %v2830_v2, %v1824_v24 }
 0x301   : > { %v1877_v30 = vmul.f32 %v1822_v29, %v3491_v56  ;;  %v1878_v34 = vmul.f32 %v1822_v29, %v3494_v8 }
 0x302   : > { %v1826_v19 = vmul.f32 0.5, %v1825_v41  ;;  %v1770_v47 = vpop.xlane.xlu1 %1769 }
 0x303   : > { %v1899_v40 = vmul.f32 %v3562_v10, %v1877_v30  ;;  %v1900_v50 = vmul.f32 %v3564_v58, %v1878_v34  ;;  %v1782_v52 = vmul.f32 %v1770_v47, %v3465_v42 }
 0x304   : > { %v1827_v53 = vsub.f32 1.5, %v1826_v19 }
 0x305   : > { %v2832_v11 = vpop.eup %2831  ;;  %v1921_v31 = vadd.f32 %v3568_v62, %v1899_v40  ;;  %v1922_v18 = vadd.f32 %v3570_v25, %v1900_v50  ;;  %v1790_v56 = vadd.f32 1e-05, %v1782_v52 }
 0x306   : > { %v1828_v55 = vmul.f32 %v2830_v2, %v1827_v53  ;;  %v1834_v8 = vmul.f32 %v2832_v11, %v1789_v54  ;;  %vm1840_vm13 = vweird.f32 %v2832_v11 }
 0x307   : > { %1937 = vst [vmem:[%s3579_s17 + $0x20] sm:$0xff] %v1921_v31  ;;  %2833 = vrsqrt.f32 %v1790_v56  ;;  %vm1841_vm15 = vmor %vm1839_vm14, %vm1840_vm13  ;;  %vm1849_vm1 = vweird.f32 %v1790_v56 }
 0x308   : > { %1938 = vst [vmem:[%s3579_s17 + $0x28] sm:$0xff] %v1922_v18  ;;  %v1832_v57 = vsel %vm1831_vm12, %v2830_v2, %v1828_v55  ;;  %v1835_v60 = vmul.f32 %v2832_v11, %v1834_v8 }
 0x309   : > { %v1879_v61 = vmul.f32 %v1832_v57, %v3502_v63  ;;  %v1880_v32 = vmul.f32 %v1832_v57, %v3505_v17 }
 0x30a   : > { %v1836_v3 = vmul.f32 0.5, %v1835_v60  ;;  %v1773_v4 = vpop.xlane.xlu2 %1772 }
 0x30b   : > { %v1901_v5 = vmul.f32 %v3562_v10, %v1879_v61  ;;  %v1902_v59 = vmul.f32 %v3564_v58, %v1880_v32  ;;  %v1783_v0 = vmul.f32 %v1773_v4, %v3465_v42 }
 0x30c   : > { %v1837_v51 = vsub.f32 1.5, %v1836_v3 }
 0x30d   : > { %v2834_v9 = vpop.eup %2833  ;;  %v1923_v12 = vadd.f32 %v3568_v62, %v1901_v5  ;;  %v1924_v37 = vadd.f32 %v3570_v25, %v1902_v59  ;;  %v1791_v63 = vadd.f32 1e-05, %v1783_v0 }
 0x30e   : > { %v1838_v13 = vmul.f32 %v2832_v11, %v1837_v51  ;;  %v1844_v17 = vmul.f32 %v2834_v9, %v1790_v56  ;;  %vm1850_vm0 = vweird.f32 %v2834_v9 }
 0x30f   : > { %1939 = vst [vmem:[%s3579_s17 + $0x30] sm:$0xff] %v1923_v12  ;;  %2835 = vrsqrt.f32 %v1791_v63  ;;  %vm1851_vm2 = vmor %vm1849_vm1, %vm1850_vm0  ;;  %vm1859_vm4 = vweird.f32 %v1791_v63 }
 0x310   : > { %1940 = vst [vmem:[%s3579_s17 + $0x38] sm:$0xff] %v1924_v37  ;;  %v1842_v14 = vsel %vm1841_vm15, %v2832_v11, %v1838_v13  ;;  %v1845_v15 = vmul.f32 %v2834_v9, %v1844_v17 }
 0x311   : > { %v1881_v43 = vmul.f32 %v1842_v14, %v3513_v6  ;;  %v1882_v45 = vmul.f32 %v1842_v14, %v3516_v23 }
 0x312   : > { %v1846_v16 = vmul.f32 0.5, %v1845_v15  ;;  %v1776_v33 = vpop.xlane.xlu0 %1775 }
 0x313   : > { %v1903_v21 = vmul.f32 %v3562_v10, %v1881_v43  ;;  %v1904_v22 = vmul.f32 %v3564_v58, %v1882_v45  ;;  %v1784_v26 = vmul.f32 %v1776_v33, %v3465_v42 }
 0x314   : > { %v1847_v27 = vsub.f32 1.5, %v1846_v16 }
 0x315   : > { %v2836_v46 = vpop.eup %2835  ;;  %v1925_v39 = vadd.f32 %v3568_v62, %v1903_v21  ;;  %v1926_v36 = vadd.f32 %v3570_v25, %v1904_v22  ;;  %v1792_v6 = vadd.f32 1e-05, %v1784_v26 }
 0x316   : > { %v1848_v2 = vmul.f32 %v2834_v9, %v1847_v27  ;;  %v1854_v23 = vmul.f32 %v2836_v46, %v1791_v63  ;;  %vm1860_vm3 = vweird.f32 %v2836_v46 }
 0x317   : > { %1941 = vst [vmem:[%s3579_s17 + $0x40] sm:$0xff] %v1925_v39  ;;  %2837 = vrsqrt.f32 %v1792_v6  ;;  %vm1861_vm5 = vmor %vm1859_vm4, %vm1860_vm3  ;;  %vm1869_vm7 = vweird.f32 %v1792_v6 }
 0x318   : > { %1942 = vst [vmem:[%s3579_s17 + $0x48] sm:$0xff] %v1926_v36  ;;  %v1852_v44 = vsel %vm1851_vm2, %v2834_v9, %v1848_v2  ;;  %v1855_v35 = vmul.f32 %v2836_v46, %v1854_v23 }
 0x319   : > { %v1883_v42 = vmul.f32 %v1852_v44, %v3524_v7  ;;  %v1884_v54 = vmul.f32 %v1852_v44, %v3527_v28 }
 0x31a   : > { %v1856_v38 = vmul.f32 0.5, %v1855_v35 }
 0x31b   : > { %v1905_v24 = vmul.f32 %v3562_v10, %v1883_v42  ;;  %v1906_v29 = vmul.f32 %v3564_v58, %v1884_v54 }
 0x31c   : > { %v1857_v41 = vsub.f32 1.5, %v1856_v38 }
 0x31d   : > { %v2838_v30 = vpop.eup %2837  ;;  %v1927_v34 = vadd.f32 %v3568_v62, %v1905_v24  ;;  %v1928_v19 = vadd.f32 %v3570_v25, %v1906_v29 }
 0x31e   : > { %v1858_v47 = vmul.f32 %v2836_v46, %v1857_v41  ;;  %v1864_v40 = vmul.f32 %v2838_v30, %v1792_v6  ;;  %vm1870_vm6 = vweird.f32 %v2838_v30 }
 0x31f   : > { %1943 = vst [vmem:[%s3579_s17 + $0x50] sm:$0xff] %v1927_v34  ;;  %vm1871_vm8 = vmor %vm1869_vm7, %vm1870_vm6 }
 0x320   : > { %1944 = vst [vmem:[%s3579_s17 + $0x58] sm:$0xff] %v1928_v19  ;;  %v1862_v7 = vsel %vm1861_vm5, %v2836_v46, %v1858_v47  ;;  %v1865_v28 = vmul.f32 %v2838_v30, %v1864_v40 }
 0x321   : > { %v1885_v50 = vmul.f32 %v1862_v7, %v3535_v20  ;;  %v1886_v52 = vmul.f32 %v1862_v7, %v3538_v1 }
 0x322   : > { %v1866_v53 = vmul.f32 0.5, %v1865_v28 }
 0x323   : > { %v1907_v11 = vmul.f32 %v3562_v10, %v1885_v50  ;;  %v1908_v31 = vmul.f32 %v3564_v58, %v1886_v52 }
 0x324   : > { %v1867_v18 = vsub.f32 1.5, %v1866_v53 }
 0x325   : > { %v1929_v56 = vadd.f32 %v3568_v62, %v1907_v11  ;;  %v1930_v55 = vadd.f32 %v3570_v25, %v1908_v31 }
 0x326   : > { %v1868_v8 = vmul.f32 %v2838_v30, %v1867_v18 }
 0x327   : > { %1945 = vst [vmem:[%s3579_s17 + $0x60] sm:$0xff] %v1929_v56 }
 0x328   : > { %1946 = vst [vmem:[%s3579_s17 + $0x68] sm:$0xff] %v1930_v55  ;;  %v1872_v20 = vsel %vm1871_vm8, %v2838_v30, %v1868_v8 }
 0x329   : > { %v1887_v1 = vmul.f32 %v1872_v20, %v3546_v48  ;;  %v1888_v57 = vmul.f32 %v1872_v20, %v3549_v49 }
 0x32b   : > { %v1909_v60 = vmul.f32 %v3562_v10, %v1887_v1  ;;  %v1910_v61 = vmul.f32 %v3564_v58, %v1888_v57 }
 0x32d   : > { %v1931_v32 = vadd.f32 %v3568_v62, %v1909_v60  ;;  %v1932_v3 = vadd.f32 %v3570_v25, %v1910_v61 }
 0x32f   : > { %1947 = vst [vmem:[%s3579_s17 + $0x70] sm:$0xff] %v1931_v32 }
 0x330   : > { %1948 = vst [vmem:[%s3579_s17 + $0x78] sm:$0xff] %v1932_v3 }
 0x331   : > { %3002 = shalt.err (!%p2999_p8)
}
 0x332   : > { %s3060_s8 = smov 256   ;;  %s3061_s9 = smov 16  }
 0x333   : > { %2750 = dma.vmem_to_hbm [thread:$0]  (%p3140_p5), %s1964_s28, 2048, %s1966_s23, %s1950_s1, %s3060_s8, %s3060_s8, %s3061_s9  }
 0x334 PF: > { %p2777_p9 = scmp.ge.s32.totalorder %s3049_s27, 2  ;;  %s1980_s14 = sand.u32 1, %s3037_s24  }
 0x335   : > { %s1981_s15 = scalar_lea.sflag [#allocation4], %s1980_s14 }
 0x336   : > { %p2766_p10 = pnand %p2777_p9, %p3144_p6 }
 0x338   : > { %p2767_p11 = pneg %p2766_p10 }
 0x33a   : > { %3032 = dma.done.wait (%p2767_p11), %s1981_s15, 2048  }
 0x33b   : > { %3034 = vsyncadd (%p2767_p11), %s1981_s15, 4294965248  ;;  %s3697_s17 = sld [smem:[#allocation15_spill]]  ;;  %p20_p12 = scmp.ge.s32.totalorder %s3127_s30, 4  }
 0x33c   : > { %s3698_s26 = sld [smem:[#allocation16_spill]]  ;;  %s3699_s24 = smov %s3041_s25 }
 0x33d   : > { %s3701_s27 = smov %s3127_s30  ;;  %22 = sbr.rel (!%p20_p12) target bundleno = 9 (0x9), region = 100 }
 0x341   : > { %s3700_s25 = smov %s3697_s17 }
 0x342   :  { %1987 = vsyncpa [#allocation3], 1 }
 0x343   :  { %1989 = vsyncpa [#allocation3 + $0x1], 1 }
 0x344   :  { %1990 = vsyncpa [#allocation6], 1 }
 0x345   :  { %1991 = vsyncpa [#allocation9], 1 }
 0x346   :  { %1992 = vsyncpa [#allocation4], 1 }
 0x347   :  { %1994 = vsyncpa [#allocation4 + $0x1], 1 }

// kernel: decoder_layer_forward.3
= control target key start
LH: loop header
LB: loop body
LE: loop exit
PB: predicated region body
PF: predicated region fallthrough
CT: control target
= control target key end

     0   :  { %s4773_s0 = inlined_call_operand.hbm [shape: f32[2,64,256], index: 0, kind: input, shape index: {}]   ;;  %s4774_s1 = inlined_call_operand.hbm [shape: f32[64,64], index: 1, kind: input, shape index: {}]   ;;  %s4775_s2 = inlined_call_operand.hbm [shape: bf16[256,256], index: 2, kind: input, shape index: {}]   ;;  %s4776_s3 = inlined_call_operand.vmem [shape: f32[1,256], index: 3, kind: input, shape index: {}]   ;;  %s4777_s4 = inlined_call_operand.hbm [shape: bf16[256,256], index: 4, kind: input, shape index: {}]   ;;  %s4778_s5 = inlined_call_operand.vmem [shape: f32[1,256], index: 5, kind: input, shape index: {}]   ;;  %s4779_s6 = inlined_call_operand.hbm [shape: bf16[256,256], index: 6, kind: input, shape index: {}]   ;;  %s4780_s7 = inlined_call_operand.vmem [shape: f32[1,256], index: 7, kind: input, shape index: {}]   ;;  %s4781_s8 = inlined_call_operand.hbm [shape: bf16[256,256], index: 8, kind: input, shape index: {}]   ;;  %s4782_s9 = inlined_call_operand.vmem [shape: f32[1,256], index: 9, kind: input, shape index: {}]   ;;  %s4783_s10 = inlined_call_operand.vmem [shape: f32[1,256], index: 10, kind: input, shape index: {}]   ;;  %s4784_s11 = inlined_call_operand.vmem [shape: f32[1,256], index: 11, kind: input, shape index: {}]   ;;  %s4785_s12 = inlined_call_operand.vmem [shape: f32[2,64,256], index: 12, kind: output, shape index: {}]  }
   0x1   :  { %4787 = sst [smem:[#allocation20_spill]] %s4774_s1 }
   0x2   :  { %4788 = sst [smem:[#allocation21_spill]] %s4775_s2 }
   0x3   :  { %4789 = sst [smem:[#allocation22_spill]] %s4777_s4 }
   0x4   :  { %4790 = sst [smem:[#allocation23_spill]] %s4785_s12 }
   0x5   :  { %17 = vsyncpa [#allocation3], 0 }
   0x6   :  { %19 = vsyncpa [#allocation3 + $0x1], 0 }
   0x7   :  { %20 = vsyncpa [#allocation5], 0 }
   0x8   :  { %21 = vsyncpa [#allocation8], 0 }
   0x9   :  { %22 = vsyncpa [#allocation11], 0  ;;  %s3923_s21 = smov 0   ;;  %s3925_s22 = smov 0  }
   0xa   :  { %s3927_s23 = smov 0   ;;  %s3929_s24 = smov 0  }
   0xb LB: > { %s4791_s1 = sld [smem:[#allocation20_spill]]  ;;  %s3947_s28 = sadd.s32 4294967295, %s3846_s24   ;;  %s3846_s24 = sphi %s3929_s24, %s4810_s24   ;;  %s3842_s23 = sphi %s3927_s23, %s4809_s23   ;;  %s3838_s22 = sphi %s3925_s22, %s4808_s22   ;;  %s3834_s21 = sphi %s3923_s21, %s4807_s21  }
   0xc   : > { %p2748_p0 = scmp.ge.s32.totalorder %s3846_s24, 1  ;;  %p49_p1 = scmp.eq.s32.totalorder %s3947_s28, 0 }
   0xd   : > { %p316_p2 = scmp.lt.s32.totalorder %s3846_s24, 3  ;;  %s3848_s30 = smov [#allocation4]  }
   0xe   : > { %s329_s13 = sshll.u32 %s3848_s30, 4  ;;  %s4793_s4 = sld [smem:[#allocation22_spill]]  ;;  %s330_s13 = int_to_ptr.vmem [resolvable:$true] %s329_s13 }
   0xf   : > { %p3952_p3 = pnand %p2748_p0, %p316_p2  ;;  %s4795_s2 = sld [smem:[#allocation21_spill]] }
  0x10   : > { %s3849_s25 = smov [#allocation7]   ;;  %s3850_s30 = smov 128  }
  0x11   : > { %s327_s27 = sshll.u32 %s4791_s1, 4  ;;  %p3449_p4 = pneg %p3952_p3  ;;  %s328_s27 = int_to_ptr.hbm [resolvable:$true] %s327_s27 }
  0x12   : > { %s360_s26 = sshll.u32 %s3849_s25, 4  ;;  %s3851_s1 = smov 8   ;;  %s361_s26 = int_to_ptr.vmem [resolvable:$true] %s360_s26 }
  0x13   : > { %p3963_p5 = pnand %p3449_p4, %p49_p1  ;;  %s3852_s12 = smov [#allocation6]  }
  0x14   : > { %s358_s16 = sshll.u32 %s4793_s4, 4  ;;  %s375_s4 = sshll.u32 %s4779_s6, 4  ;;  %s359_s16 = int_to_ptr.hbm [resolvable:$true] %s358_s16  ;;  %s376_s4 = int_to_ptr.hbm [resolvable:$true] %s375_s4 }
  0x15   : > { %s341_s20 = sshll.u32 %s4795_s2, 4  ;;  %s343_s18 = sshll.u32 %s3852_s12, 4  ;;  %s342_s20 = int_to_ptr.hbm [resolvable:$true] %s341_s20  ;;  %s344_s18 = int_to_ptr.vmem [resolvable:$true] %s343_s18 }
  0x16   : > { %3452 = dma.hbm_to_vmem [thread:$0]  (!%p3963_p5), %s328_s27, 1024, %s330_s13, [#allocation5], %s3850_s30, %s3850_s30, %s3851_s1  }
  0x17   : > { %3458 = dma.hbm_to_vmem [thread:$0]  (!%p3963_p5), %s359_s16, 4096, %s361_s26, [#allocation8], %s3850_s30, %s3850_s30, %s3851_s1  }
  0x18   : > { %3455 = dma.hbm_to_vmem [thread:$0]  (!%p3963_p5), %s342_s20, 4096, %s344_s18, [#allocation5], %s3850_s30, %s3850_s30, %s3851_s1  }
  0x19   : > { %s3853_s27 = smov [#allocation9]   ;;  %s392_s25 = sshll.u32 %s4781_s8, 4  ;;  %s393_s25 = int_to_ptr.hbm [resolvable:$true] %s392_s25 }
  0x1a   : > { %s377_s13 = sshll.u32 %s3853_s27, 4  ;;  %s3854_s12 = smov [#allocation10]   ;;  %s378_s13 = int_to_ptr.vmem [resolvable:$true] %s377_s13 }
  0x1b   : > { %3461 = dma.hbm_to_vmem [thread:$0]  (!%p3963_p5), %s376_s4, 4096, %s378_s13, [#allocation8], %s3850_s30, %s3850_s30, %s3851_s1  }
  0x1c   : > { %s394_s26 = sshll.u32 %s3854_s12, 4  ;;  %s3987_s20 = sadd.s32 1, %s3846_s24   ;;  %s395_s26 = int_to_ptr.vmem [resolvable:$true] %s394_s26 }
  0x1d   : > { %3464 = dma.hbm_to_vmem [thread:$0]  (!%p3963_p5), %s393_s25, 4096, %s395_s26, [#allocation11], %s3850_s30, %s3850_s30, %s3851_s1  }
  0x1e   : > { %s32_s14 = ssub.s32 %s3846_s24, %s3987_s20  ;;  %s35_s15 = sadd.s32 1, %s3842_s23 }
  0x1f   : > { %p33_p6 = scmp.eq.s32.totalorder %s32_s14, 0  ;;  %p42_p7 = scmp.ne.s32.totalorder %s3842_s23, %s3838_s22 }
  0x20   : > { %p43_p8 = scmp.eq.s32.totalorder %s3846_s24, 0  ;;  %p48_p9 = scmp.ne.s32.totalorder %s3838_s22, %s3834_s21 }
  0x21   : > { %s3998_s18 = scalar_select %p33_p6, %s3842_s23, %s35_s15  }
  0x22   : > { %p44_p10 = por %p43_p8, %p42_p7  ;;  %p4002_p11 = por %p49_p1, %p48_p9 }
  0x23   : > { %p3474_p12 = scmp.lt.s32.totalorder %s3846_s24, 2  ;;  %s417_s17 = sand.u32 1, %s3842_s23  }
  0x24   : > { %s2755_s1 = sshll.u32 %s417_s17, 7  ;;  %s3297_s30 = sshll.u32 %s3846_s24, 7 }
  0x25   : > { %s426_s16 = scalar_lea.hbm %s4773_s0, %s3297_s30  ;;  %s421_s19 = scalar_lea.vmem [#allocation2], %s2755_s1 }
  0x26   : > { %s429_s25 = sshll.u32 %s421_s19, 4  ;;  %s427_s12 = sshll.u32 %s426_s16, 4  ;;  %s430_s25 = int_to_ptr.vmem [resolvable:$true] %s429_s25  ;;  %s428_s12 = int_to_ptr.hbm [resolvable:$true] %s427_s12 }
  0x27   : > { %p4012_p13 = pnand %p3474_p12, %p44_p10  ;;  %s418_s26 = scalar_lea.sflag [#allocation3], %s417_s17 }
  0x28   : > { %s3770_s14 = sshra.s32 %s428_s12, 4  ;;  %s3777_s30 = scalar_lea.hbm %s4773_s0, 256  ;;  %s3771_s14 = int_to_ptr.hbm [resolvable:$true] %s3770_s14 }
  0x29   : > { %s3772_s15 = scalar_lea.hbm %s3771_s14, 128  ;;  %p3774_p2 = pneg %p4012_p13 }
  0x2a   : > { %p3773_p0 = scmp.ne.s32.totalorder %s3771_s14, %s3772_s15  ;;  %p3778_p6 = scmp.lt.s32.totalorder %s3771_s14, %s4773_s0 }
  0x2b   : > { %p3779_p7 = scmp.lt.s32.totalorder %s3777_s30, %s3772_s15 }
  0x2c   : > { %p3775_p4 = pnand %p3774_p2, %p3773_p0 }
  0x2d   : > { %p3780_p8 = por %p3779_p7, %p3778_p6 }
  0x2e   : > { %p3776_p5 = pneg %p3775_p4 }
  0x30   : > { %p3781_p9 = pnand %p3780_p8, %p3776_p5 }
  0x32   : > { %3784 = shalt.err (!%p3781_p9)
}
  0x33   : > { %s3855_s17 = smov 256   ;;  %s3856_s16 = smov 16  }
  0x34   : > { %3468 = dma.hbm_to_vmem [thread:$0]  (!%p4012_p13), %s428_s12, 2048, %s430_s25, %s418_s26, %s3855_s17, %s3855_s17, %s3856_s16  }
  0x35   : > { %441 = sbr.rel (%p3952_p3) target bundleno = 1399 (0x577), region = 68 }
  0x3a   : > { %s443_s19 = sand.u32 1, %s3838_s22  }
  0x3b   : > { %s2759_s24 = sshll.u32 %s443_s19, 7  ;;  %s444_s1 = scalar_lea.sflag [#allocation3], %s443_s19 }
  0x3c   : > { %s4029_s2 = scalar_lea.vmem [#allocation2], %s2759_s24 }
  0x3d   : > { %3817 = dma.done.wait (%p4002_p11), %s444_s1, 2048  }
  0x3e   : > { %3819 = vsyncadd (%p4002_p11), %s444_s1, 4294965248 }
  0x3f   : > { %3821 = dma.done.wait (%p49_p1), [#allocation5], 5120  }
  0x40   : > { %3823 = vsyncadd (%p49_p1), [#allocation5], 4294962176 }
  0x41   : > { %3825 = dma.done.wait (%p49_p1), [#allocation8], 8192  }
  0x42   : > { %3827 = vsyncadd (%p49_p1), [#allocation8], 4294959104 }
  0x43   : > { %3829 = dma.done.wait (%p49_p1), [#allocation11], 4096  }
  0x44   : > { %3831 = vsyncadd (%p49_p1), [#allocation11], 4294963200  ;;  %v2833_v0 = vld [vmem:[#allocation6 + $0x70] sm:$0xf]  ;;  %v3314_v1 = vld [vmem:[#allocation6 + $0x74] sm:$0xf0] }
  0x45   : > { %v2897_v2 = vld [vmem:[#allocation6 + $0xf0] sm:$0xf]  ;;  %v2834_v3 = vor.u32 %v3314_v1, %v2833_v0  ;;  %v3330_v4 = vld [vmem:[#allocation6 + $0xf4] sm:$0xf0]  ;;  %v3313_v5 = vld [vmem:[#allocation6 + $0x74] sm:$0xf] }
  0x46   : > { %v2835_v6 = vld [vmem:[#allocation6 + $0x78] sm:$0xf0]  ;;  %v2898_v7 = vor.u32 %v3330_v4, %v2897_v2  ;;  %v3329_v9 = vld [vmem:[#allocation6 + $0xf4] sm:$0xf]  ;;  %v2825_v11 = vld [vmem:[#allocation6 + $0x60] sm:$0xf] }
  0x47   : > { %v2838_v8 = vor.u32 %v3313_v5, %v2835_v6  ;;  %v2899_v10 = vld [vmem:[#allocation6 + $0xf8] sm:$0xf0]  ;;  %766 = vmatpush.bf16.msra.mxu0 %v2834_v3  ;;  %v3312_v13 = vld [vmem:[#allocation6 + $0x64] sm:$0xf0]  ;;  %v2889_v14 = vld [vmem:[#allocation6 + $0xe0] sm:$0xf] }
  0x48   : > { %v2902_v12 = vor.u32 %v3329_v9, %v2899_v10  ;;  %v3328_v15 = vld [vmem:[#allocation6 + $0xe4] sm:$0xf0]  ;;  %795 = vmatpush.bf16.msra.mxu1 %v2898_v7  ;;  %v2826_v16 = vor.u32 %v3312_v13, %v2825_v11  ;;  %v3311_v18 = vld [vmem:[#allocation6 + $0x64] sm:$0xf]  ;;  %v2827_v19 = vld [vmem:[#allocation6 + $0x68] sm:$0xf0] }
  0x49   : > { %824 = vmatpush.bf16.msra.mxu2 %v2838_v8  ;;  %v2890_v17 = vor.u32 %v3328_v15, %v2889_v14  ;;  %v3327_v20 = vld [vmem:[#allocation6 + $0xe4] sm:$0xf]  ;;  %v2830_v21 = vor.u32 %v3311_v18, %v2827_v19  ;;  %v2891_v22 = vld [vmem:[#allocation6 + $0xe8] sm:$0xf0]  ;;  %v2817_v23 = vld [vmem:[#allocation6 + $0x50] sm:$0xf] }
  0x4a   : > { %853 = vmatpush.bf16.msra.mxu3 %v2902_v12  ;;  %v3310_v24 = vld [vmem:[#allocation6 + $0x54] sm:$0xf0]  ;;  %v2894_v25 = vor.u32 %v3327_v20, %v2891_v22  ;;  %v2881_v26 = vld [vmem:[#allocation6 + $0xd0] sm:$0xf]  ;;  %v3309_v28 = vld [vmem:[#allocation6 + $0x54] sm:$0xf] }
  0x4b   : > { %v3326_v27 = vld [vmem:[#allocation6 + $0xd4] sm:$0xf0]  ;;  %767 = vmatpush.bf16.msra.mxu0 %v2826_v16  ;;  %v2818_v29 = vor.u32 %v3310_v24, %v2817_v23  ;;  %v2819_v30 = vld [vmem:[#allocation6 + $0x58] sm:$0xf0]  ;;  %v3325_v31 = vld [vmem:[#allocation6 + $0xd4] sm:$0xf] }
  0x4c   : > { %v2883_v32 = vld [vmem:[#allocation6 + $0xd8] sm:$0xf0]  ;;  %796 = vmatpush.bf16.msra.mxu1 %v2890_v17  ;;  %v2882_v33 = vor.u32 %v3326_v27, %v2881_v26  ;;  %v2822_v34 = vor.u32 %v3309_v28, %v2819_v30  ;;  %v2809_v35 = vld [vmem:[#allocation6 + $0x40] sm:$0xf]  ;;  %v3308_v36 = vld [vmem:[#allocation6 + $0x44] sm:$0xf0] }
  0x4d   : > { %825 = vmatpush.bf16.msra.mxu2 %v2830_v21  ;;  %v2873_v37 = vld [vmem:[#allocation6 + $0xc0] sm:$0xf]  ;;  %v2886_v38 = vor.u32 %v3325_v31, %v2883_v32  ;;  %v3324_v39 = vld [vmem:[#allocation6 + $0xc4] sm:$0xf0]  ;;  %v3307_v40 = vld [vmem:[#allocation6 + $0x44] sm:$0xf]  ;;  %v2810_v44 = vor.u32 %v3308_v36, %v2809_v35 }
  0x4e   : > { %854 = vmatpush.bf16.msra.mxu3 %v2894_v25  ;;  %v2811_v41 = vld [vmem:[#allocation6 + $0x48] sm:$0xf0]  ;;  %v3323_v42 = vld [vmem:[#allocation6 + $0xc4] sm:$0xf]  ;;  %v2874_v45 = vor.u32 %v3324_v39, %v2873_v37  ;;  %v2801_v47 = vld [vmem:[#allocation6 + $0x30] sm:$0xf] }
  0x4f   : > { %v2875_v43 = vld [vmem:[#allocation6 + $0xc8] sm:$0xf0]  ;;  %768 = vmatpush.bf16.msra.mxu0 %v2818_v29  ;;  %v2814_v46 = vor.u32 %v3307_v40, %v2811_v41  ;;  %v3306_v48 = vld [vmem:[#allocation6 + $0x34] sm:$0xf0]  ;;  %v2865_v49 = vld [vmem:[#allocation6 + $0xb0] sm:$0xf] }
  0x50   : > { %797 = vmatpush.bf16.msra.mxu1 %v2882_v33  ;;  %v2878_v50 = vor.u32 %v3323_v42, %v2875_v43  ;;  %v3322_v51 = vld [vmem:[#allocation6 + $0xb4] sm:$0xf0]  ;;  %v3305_v52 = vld [vmem:[#allocation6 + $0x34] sm:$0xf]  ;;  %v2803_v53 = vld [vmem:[#allocation6 + $0x38] sm:$0xf0]  ;;  %v2802_v56 = vor.u32 %v3306_v48, %v2801_v47 }
  0x51   : > { %826 = vmatpush.bf16.msra.mxu2 %v2822_v34  ;;  %v3321_v54 = vld [vmem:[#allocation6 + $0xb4] sm:$0xf]  ;;  %v2867_v55 = vld [vmem:[#allocation6 + $0xb8] sm:$0xf0]  ;;  %v2866_v57 = vor.u32 %v3322_v51, %v2865_v49  ;;  %v2806_v58 = vor.u32 %v3305_v52, %v2803_v53  ;;  %v2793_v59 = vld [vmem:[#allocation6 + $0x20] sm:$0xf] }
  0x52   : > { %855 = vmatpush.bf16.msra.mxu3 %v2886_v38  ;;  %v3304_v60 = vld [vmem:[#allocation6 + $0x24] sm:$0xf0]  ;;  %v2857_v61 = vld [vmem:[#allocation6 + $0xa0] sm:$0xf]  ;;  %v2870_v62 = vor.u32 %v3321_v54, %v2867_v55  ;;  %v3303_v0 = vld [vmem:[#allocation6 + $0x24] sm:$0xf] }
  0x53   : > { %769 = vmatpush.bf16.msra.mxu0 %v2810_v44  ;;  %v3320_v63 = vld [vmem:[#allocation6 + $0xa4] sm:$0xf0]  ;;  %v2795_v1 = vld [vmem:[#allocation6 + $0x28] sm:$0xf0]  ;;  %v3319_v2 = vld [vmem:[#allocation6 + $0xa4] sm:$0xf]  ;;  %v2794_v4 = vor.u32 %v3304_v60, %v2793_v59 }
  0x54   : > { %798 = vmatpush.bf16.msra.mxu1 %v2874_v45  ;;  %v2859_v3 = vld [vmem:[#allocation6 + $0xa8] sm:$0xf0]  ;;  %v2858_v5 = vor.u32 %v3320_v63, %v2857_v61  ;;  %v2798_v6 = vor.u32 %v3303_v0, %v2795_v1  ;;  %v2785_v7 = vld [vmem:[#allocation6 + $0x10] sm:$0xf]  ;;  %v3302_v8 = vld [vmem:[#allocation6 + $0x14] sm:$0xf0] }
  0x55   : > { %827 = vmatpush.bf16.msra.mxu2 %v2814_v46  ;;  %v2849_v9 = vld [vmem:[#allocation6 + $0x90] sm:$0xf]  ;;  %v2862_v10 = vor.u32 %v3319_v2, %v2859_v3  ;;  %v3318_v11 = vld [vmem:[#allocation6 + $0x94] sm:$0xf0]  ;;  %v3301_v12 = vld [vmem:[#allocation6 + $0x14] sm:$0xf]  ;;  %v2786_v16 = vor.u32 %v3302_v8, %v2785_v7 }
  0x56   : > { %856 = vmatpush.bf16.msra.mxu3 %v2878_v50  ;;  %v2787_v13 = vld [vmem:[#allocation6 + $0x18] sm:$0xf0]  ;;  %v3317_v14 = vld [vmem:[#allocation6 + $0x94] sm:$0xf]  ;;  %v2850_v17 = vor.u32 %v3318_v11, %v2849_v9  ;;  %v2777_v19 = vld [vmem:[#allocation6] sm:$0xf] }
  0x57   : > { %770 = vmatpush.bf16.msra.mxu0 %v2802_v56  ;;  %v2851_v15 = vld [vmem:[#allocation6 + $0x98] sm:$0xf0]  ;;  %v2790_v18 = vor.u32 %v3301_v12, %v2787_v13  ;;  %v3300_v20 = vld [vmem:[#allocation6 + $0x4] sm:$0xf0]  ;;  %v2841_v21 = vld [vmem:[#allocation6 + $0x80] sm:$0xf] }
  0x58   : > { %799 = vmatpush.bf16.msra.mxu1 %v2866_v57  ;;  %v2854_v22 = vor.u32 %v3317_v14, %v2851_v15  ;;  %v3316_v23 = vld [vmem:[#allocation6 + $0x84] sm:$0xf0]  ;;  %v3299_v24 = vld [vmem:[#allocation6 + $0x4] sm:$0xf]  ;;  %v2779_v25 = vld [vmem:[#allocation6 + $0x8] sm:$0xf0]  ;;  %v2778_v28 = vor.u32 %v3300_v20, %v2777_v19 }
  0x59   : > { %828 = vmatpush.bf16.msra.mxu2 %v2806_v58  ;;  %v3315_v26 = vld [vmem:[#allocation6 + $0x84] sm:$0xf]  ;;  %v2843_v27 = vld [vmem:[#allocation6 + $0x88] sm:$0xf0]  ;;  %v522_v30 = vld [vmem:[%s4029_s2 + $0x10] sm:$0xff]  ;;  %v2842_v31 = vor.u32 %v3316_v23, %v2841_v21  ;;  %v2782_v32 = vor.u32 %v3299_v24, %v2779_v25  ;;  %vm1627_vm0 = vcmask 523264  }
  0x5a   : > { %857 = vmatpush.bf16.msra.mxu3 %v2870_v62  ;;  %v520_v29 = vld [vmem:[%s4029_s2] sm:$0xff]  ;;  %v521_v33 = vld [vmem:[%s4029_s2 + $0x8] sm:$0xff]  ;;  %v523_v34 = vld [vmem:[%s4029_s2 + $0x18] sm:$0xff]  ;;  %v2846_v35 = vor.u32 %v3315_v26, %v2843_v27  ;;  %p514_p1 = scmp.lt.s32.totalorder %s3947_s28, 1  ;;  %s4806_s24 = sld [smem:[#allocation23_spill]] }
  0x5b   : > { %771 = vmatpush.bf16.msra.mxu0 %v2794_v4  ;;  %v4051_v36 = vpack.c.bf16 %v522_v30, %v520_v29  ;;  %v4053_v37 = vpack.c.bf16 %v523_v34, %v521_v33  ;;  %v2961_v38 = vld [vmem:[#allocation7 + $0x70] sm:$0xf]  ;;  %v3346_v39 = vld [vmem:[#allocation7 + $0x74] sm:$0xf0]  ;;  %v3345_v43 = vld [vmem:[#allocation7 + $0x74] sm:$0xf] }
  0x5c   : > { %800 = vmatpush.bf16.msra.mxu1 %v2858_v5  ;;  %v3025_v40 = vld [vmem:[#allocation7 + $0xf0] sm:$0xf]  ;;  %v2962_v41 = vor.u32 %v3346_v39, %v2961_v38  ;;  %v3362_v42 = vld [vmem:[#allocation7 + $0xf4] sm:$0xf0]  ;;  %v2963_v44 = vld [vmem:[#allocation7 + $0x78] sm:$0xf0] }
  0x5d   : > { %829 = vmatpush.bf16.msra.mxu2 %v2798_v6  ;;  %v3026_v45 = vor.u32 %v3362_v42, %v3025_v40  ;;  %v2966_v46 = vor.u32 %v3345_v43, %v2963_v44  ;;  %v3361_v47 = vld [vmem:[#allocation7 + $0xf4] sm:$0xf]  ;;  %v3027_v48 = vld [vmem:[#allocation7 + $0xf8] sm:$0xf0]  ;;  %v2953_v49 = vld [vmem:[#allocation7 + $0x60] sm:$0xf] }
  0x5e   : > { %858 = vmatpush.bf16.msra.mxu3 %v2862_v10  ;;  %v3030_v50 = vor.u32 %v3361_v47, %v3027_v48  ;;  %v3344_v51 = vld [vmem:[#allocation7 + $0x64] sm:$0xf0]  ;;  %v3017_v52 = vld [vmem:[#allocation7 + $0xe0] sm:$0xf]  ;;  %v3343_v56 = vld [vmem:[#allocation7 + $0x64] sm:$0xf] }
  0x5f   : > { %772 = vmatpush.bf16.msra.mxu0 %v2786_v16  ;;  %v3360_v53 = vld [vmem:[#allocation7 + $0xe4] sm:$0xf0]  ;;  %v2954_v54 = vor.u32 %v3344_v51, %v2953_v49  ;;  %v2955_v57 = vld [vmem:[#allocation7 + $0x68] sm:$0xf0]  ;;  %v3359_v58 = vld [vmem:[#allocation7 + $0xe4] sm:$0xf] }
  0x60   : > { %801 = vmatpush.bf16.msra.mxu1 %v2850_v17  ;;  %v3018_v55 = vor.u32 %v3360_v53, %v3017_v52  ;;  %v2958_v59 = vor.u32 %v3343_v56, %v2955_v57  ;;  %v3019_v60 = vld [vmem:[#allocation7 + $0xe8] sm:$0xf0]  ;;  %v2945_v61 = vld [vmem:[#allocation7 + $0x50] sm:$0xf]  ;;  %v3342_v62 = vld [vmem:[#allocation7 + $0x54] sm:$0xf0] }
  0x61   : > { %830 = vmatpush.bf16.msra.mxu2 %v2790_v18  ;;  %v3022_v63 = vor.u32 %v3359_v58, %v3019_v60  ;;  %v3009_v0 = vld [vmem:[#allocation7 + $0xd0] sm:$0xf]  ;;  %v3358_v1 = vld [vmem:[#allocation7 + $0xd4] sm:$0xf0]  ;;  %v3341_v2 = vld [vmem:[#allocation7 + $0x54] sm:$0xf]  ;;  %v2946_v3 = vor.u32 %v3342_v62, %v2945_v61 }
  0x62   : > { %859 = vmatpush.bf16.msra.mxu3 %v2854_v22  ;;  %v2947_v4 = vld [vmem:[#allocation7 + $0x58] sm:$0xf0]  ;;  %v3357_v5 = vld [vmem:[#allocation7 + $0xd4] sm:$0xf]  ;;  %v524_v7 = vld [vmem:[%s4029_s2 + $0x20] sm:$0xff]  ;;  %v3010_v8 = vor.u32 %v3358_v1, %v3009_v0  ;;  %s4812_s28 = smov (!%p514_p1, %s3947_s28), 1 }
  0x63   : > { %773 = vmatpush.bf16.msra.mxu0 %v2778_v28  ;;  %v3011_v6 = vld [vmem:[#allocation7 + $0xd8] sm:$0xf0]  ;;  %v2950_v9 = vor.u32 %v3341_v2, %v2947_v4  ;;  %v2937_v10 = vld [vmem:[#allocation7 + $0x40] sm:$0xf]  ;;  %v3340_v11 = vld [vmem:[#allocation7 + $0x44] sm:$0xf0] }
  0x64   : > { %802 = vmatpush.bf16.msra.mxu1 %v2842_v31  ;;  %v526_v12 = vld [vmem:[%s4029_s2 + $0x30] sm:$0xff]  ;;  %v3014_v13 = vor.u32 %v3357_v5, %v3011_v6  ;;  %v3001_v14 = vld [vmem:[#allocation7 + $0xc0] sm:$0xf]  ;;  %v3356_v15 = vld [vmem:[#allocation7 + $0xc4] sm:$0xf0]  ;;  %v2938_v18 = vor.u32 %v3340_v11, %v2937_v10  ;;  %s3298_s17 = sshll.u32 %s4812_s28, 7 }
  0x65   : > { %831 = vmatpush.bf16.msra.mxu2 %v2782_v32  ;;  %v525_v16 = vld [vmem:[%s4029_s2 + $0x28] sm:$0xff]  ;;  %v527_v17 = vld [vmem:[%s4029_s2 + $0x38] sm:$0xff]  ;;  %v3339_v19 = vld [vmem:[#allocation7 + $0x44] sm:$0xf]  ;;  %v4063_v21 = vpack.c.bf16 %v526_v12, %v524_v7  ;;  %v3002_v22 = vor.u32 %v3356_v15, %v3001_v14  ;;  %s4694_s28 = scalar_lea.vmem %s4806_s24, %s3298_s17 }
  0x66   : > { %860 = vmatpush.bf16.msra.mxu3 %v2846_v35  ;;  %774 = vmatmul.bf16.vlgmr.msra.gmra.mxu0 %v4051_v36  ;;  %v2939_v20 = vld [vmem:[#allocation7 + $0x48] sm:$0xf0]  ;;  %v3355_v23 = vld [vmem:[#allocation7 + $0xc4] sm:$0xf]  ;;  %v4065_v25 = vpack.c.bf16 %v527_v17, %v525_v16  ;;  %v2929_v28 = vld [vmem:[#allocation7 + $0x30] sm:$0xf] }
  0x67   : > { %803 = vmatmul.bf16.vlgmr.msra.gmra.mxu1 %v4053_v37  ;;  %1088 = vmatpush.bf16.msrb.mxu0 %v2962_v41  ;;  %v3003_v24 = vld [vmem:[#allocation7 + $0xc8] sm:$0xf0]  ;;  %v2942_v26 = vor.u32 %v3339_v19, %v2939_v20  ;;  %v3338_v29 = vld [vmem:[#allocation7 + $0x34] sm:$0xf0]  ;;  %v2993_v30 = vld [vmem:[#allocation7 + $0xb0] sm:$0xf] }
  0x68   : > { %832 = vmatmul.bf16.vlgmr.msra.gmra.mxu2 %v4051_v36  ;;  %1117 = vmatpush.bf16.msrb.mxu1 %v3026_v45  ;;  %v3006_v27 = vor.u32 %v3355_v23, %v3003_v24  ;;  %v2930_v31 = vor.u32 %v3338_v29, %v2929_v28  ;;  %v3354_v32 = vld [vmem:[#allocation7 + $0xb4] sm:$0xf0]  ;;  %v3337_v33 = vld [vmem:[#allocation7 + $0x34] sm:$0xf]  ;;  %v2931_v34 = vld [vmem:[#allocation7 + $0x38] sm:$0xf0] }
  0x69   : > { %861 = vmatmul.bf16.vlgmr.msra.gmra.mxu3 %v4053_v37  ;;  %1146 = vmatpush.bf16.msrb.mxu2 %v2966_v46  ;;  %v2994_v35 = vor.u32 %v3354_v32, %v2993_v30  ;;  %v2934_v38 = vor.u32 %v3337_v33, %v2931_v34  ;;  %v3353_v39 = vld [vmem:[#allocation7 + $0xb4] sm:$0xf]  ;;  %v2995_v40 = vld [vmem:[#allocation7 + $0xb8] sm:$0xf0]  ;;  %v2921_v41 = vld [vmem:[#allocation7 + $0x20] sm:$0xf] }
  0x6a   : > { %1175 = vmatpush.bf16.msrb.mxu3 %v3030_v50  ;;  %v2998_v42 = vor.u32 %v3353_v39, %v2995_v40  ;;  %v3336_v43 = vld [vmem:[#allocation7 + $0x24] sm:$0xf0]  ;;  %v2985_v44 = vld [vmem:[#allocation7 + $0xa0] sm:$0xf]  ;;  %v3335_v48 = vld [vmem:[#allocation7 + $0x24] sm:$0xf] }
  0x6b   : > { %1089 = vmatpush.bf16.msrb.mxu0 %v2954_v54  ;;  %v3352_v45 = vld [vmem:[#allocation7 + $0xa4] sm:$0xf0]  ;;  %v2922_v46 = vor.u32 %v3336_v43, %v2921_v41  ;;  %v2923_v49 = vld [vmem:[#allocation7 + $0x28] sm:$0xf0]  ;;  %v3351_v50 = vld [vmem:[#allocation7 + $0xa4] sm:$0xf] }
  0x6c   : > { %1118 = vmatpush.bf16.msrb.mxu1 %v3018_v55  ;;  %v2986_v47 = vor.u32 %v3352_v45, %v2985_v44  ;;  %v2987_v51 = vld [vmem:[#allocation7 + $0xa8] sm:$0xf0]  ;;  %v2913_v52 = vld [vmem:[#allocation7 + $0x10] sm:$0xf]  ;;  %v3334_v53 = vld [vmem:[#allocation7 + $0x14] sm:$0xf0]  ;;  %v2926_v54 = vor.u32 %v3335_v48, %v2923_v49 }
  0x6d   : > { %1147 = vmatpush.bf16.msrb.mxu2 %v2958_v59  ;;  %v2977_v55 = vld [vmem:[#allocation7 + $0x90] sm:$0xf]  ;;  %v3350_v56 = vld [vmem:[#allocation7 + $0x94] sm:$0xf0]  ;;  %v528_v57 = vld [vmem:[%s4029_s2 + $0x40] sm:$0xff]  ;;  %v2990_v58 = vor.u32 %v3351_v50, %v2987_v51  ;;  %v2914_v59 = vor.u32 %v3334_v53, %v2913_v52 }
  0x6e   : > { %1176 = vmatpush.bf16.msrb.mxu3 %v3022_v63  ;;  %v3333_v60 = vld [vmem:[#allocation7 + $0x14] sm:$0xf]  ;;  %v2915_v61 = vld [vmem:[#allocation7 + $0x18] sm:$0xf0]  ;;  %v2978_v63 = vor.u32 %v3350_v56, %v2977_v55  ;;  %v2905_v1 = vld [vmem:[#allocation7] sm:$0xf] }
  0x6f   : > { %1090 = vmatpush.bf16.msrb.mxu0 %v2946_v3  ;;  %v3349_v62 = vld [vmem:[#allocation7 + $0x94] sm:$0xf]  ;;  %v2979_v0 = vld [vmem:[#allocation7 + $0x98] sm:$0xf0]  ;;  %v3332_v2 = vld [vmem:[#allocation7 + $0x4] sm:$0xf0] }
  0x70   : > { %1119 = vmatpush.bf16.msrb.mxu1 %v3010_v8  ;;  %v530_v3 = vld [vmem:[%s4029_s2 + $0x50] sm:$0xff]  ;;  %v2969_v4 = vld [vmem:[#allocation7 + $0x80] sm:$0xf]  ;;  %v3348_v5 = vld [vmem:[#allocation7 + $0x84] sm:$0xf0]  ;;  %v2918_v8 = vor.u32 %v3333_v60, %v2915_v61  ;;  %v2906_v10 = vor.u32 %v3332_v2, %v2905_v1 }
  0x71   : > { %1148 = vmatpush.bf16.msrb.mxu2 %v2950_v9  ;;  %v529_v6 = vld [vmem:[%s4029_s2 + $0x48] sm:$0xff]  ;;  %v531_v7 = vld [vmem:[%s4029_s2 + $0x58] sm:$0xff]  ;;  %v2982_v9 = vor.u32 %v3349_v62, %v2979_v0  ;;  %v3331_v11 = vld [vmem:[#allocation7 + $0x4] sm:$0xf]  ;;  %v2970_v14 = vor.u32 %v3348_v5, %v2969_v4 }
  0x72   : > { %1177 = vmatpush.bf16.msrb.mxu3 %v3014_v13  ;;  %v2907_v12 = vld [vmem:[#allocation7 + $0x8] sm:$0xf0]  ;;  %v4075_v13 = vpack.c.bf16 %v530_v3, %v528_v57  ;;  %v3347_v15 = vld [vmem:[#allocation7 + $0x84] sm:$0xf]  ;;  %v4077_v17 = vpack.c.bf16 %v531_v7, %v529_v6  ;;  %v535_v24 = vld [vmem:[%s4029_s2 + $0x78] sm:$0xff] }
  0x73   : > { %1091 = vmatpush.bf16.msrb.mxu0 %v2938_v18  ;;  %v2971_v16 = vld [vmem:[#allocation7 + $0x88] sm:$0xf0]  ;;  %v2910_v18 = vor.u32 %v3331_v11, %v2907_v12  ;;  %v532_v20 = vld [vmem:[%s4029_s2 + $0x60] sm:$0xff]  ;;  %v3377_v28 = vld [vmem:[#allocation9 + $0x74] sm:$0xf] }
  0x74   : > { %1120 = vmatpush.bf16.msrb.mxu1 %v3002_v22  ;;  %v2974_v19 = vor.u32 %v3347_v15, %v2971_v16  ;;  %v534_v22 = vld [vmem:[%s4029_s2 + $0x70] sm:$0xff]  ;;  %v533_v23 = vld [vmem:[%s4029_s2 + $0x68] sm:$0xff]  ;;  %v3091_v29 = vld [vmem:[#allocation9 + $0x78] sm:$0xf0] }
  0x75   : > { %1149 = vmatpush.bf16.msrb.mxu2 %v2942_v26  ;;  %v4087_v26 = vpack.c.bf16 %v534_v22, %v532_v20  ;;  %v3094_v30 = vor.u32 %v3377_v28, %v3091_v29  ;;  %v3155_v32 = vld [vmem:[#allocation9 + $0xf8] sm:$0xf0]  ;;  %v3375_v34 = vld [vmem:[#allocation9 + $0x64] sm:$0xf]  ;;  %v3089_v39 = vld [vmem:[#allocation9 + $0x70] sm:$0xf] }
  0x76   : > { %779 = vmatmul.bf16.gmra.mxu0 %v4063_v21  ;;  %1178 = vmatpush.bf16.msrb.mxu3 %v3006_v27  ;;  %v4089_v27 = vpack.c.bf16 %v535_v24, %v533_v23  ;;  %v3378_v40 = vld [vmem:[#allocation9 + $0x74] sm:$0xf0]  ;;  %v3391_v41 = vld [vmem:[#allocation9 + $0xe4] sm:$0xf]  ;;  %v3147_v43 = vld [vmem:[#allocation9 + $0xe8] sm:$0xf0] }
  0x77   : > { %808 = vmatmul.bf16.gmra.mxu1 %v4065_v25  ;;  %1092 = vmatpush.bf16.msrb.mxu0 %v2930_v31  ;;  %v3393_v31 = vld [vmem:[#allocation9 + $0xf4] sm:$0xf]  ;;  %v3150_v44 = vor.u32 %v3391_v41, %v3147_v43  ;;  %v3153_v45 = vld [vmem:[#allocation9 + $0xf0] sm:$0xf]  ;;  %v3075_v49 = vld [vmem:[#allocation9 + $0x58] sm:$0xf0] }
  0x78   : > { %837 = vmatmul.bf16.gmra.mxu2 %v4063_v21  ;;  %1121 = vmatpush.bf16.msrb.mxu1 %v2994_v35  ;;  %v3158_v33 = vor.u32 %v3393_v31, %v3155_v32  ;;  %v3083_v35 = vld [vmem:[#allocation9 + $0x68] sm:$0xf0]  ;;  %v3081_v51 = vld [vmem:[#allocation9 + $0x60] sm:$0xf]  ;;  %v3376_v52 = vld [vmem:[#allocation9 + $0x64] sm:$0xf0] }
  0x79   : > { %866 = vmatmul.bf16.gmra.mxu3 %v4065_v25  ;;  %1150 = vmatpush.bf16.msrb.mxu2 %v2934_v38  ;;  %v3086_v38 = vor.u32 %v3375_v34, %v3083_v35  ;;  %v3389_v53 = vld [vmem:[#allocation9 + $0xd4] sm:$0xf]  ;;  %v3139_v55 = vld [vmem:[#allocation9 + $0xd8] sm:$0xf0]  ;;  %v3145_v57 = vld [vmem:[#allocation9 + $0xe0] sm:$0xf] }
  0x7a   : > { %1179 = vmatpush.bf16.msrb.mxu3 %v2998_v42  ;;  %v3090_v42 = vor.u32 %v3378_v40, %v3089_v39  ;;  %v3142_v56 = vor.u32 %v3389_v53, %v3139_v55  ;;  %v3067_v61 = vld [vmem:[#allocation9 + $0x48] sm:$0xf0]  ;;  %v3374_v0 = vld [vmem:[#allocation9 + $0x54] sm:$0xf0]  ;;  %v3387_v1 = vld [vmem:[#allocation9 + $0xc4] sm:$0xf] }
  0x7b   : > { %1093 = vmatpush.bf16.msrb.mxu0 %v2922_v46  ;;  %v3394_v46 = vld [vmem:[#allocation9 + $0xf4] sm:$0xf0]  ;;  %v3131_v3 = vld [vmem:[#allocation9 + $0xc8] sm:$0xf0]  ;;  %v3137_v5 = vld [vmem:[#allocation9 + $0xd0] sm:$0xf] }
  0x7c   : > { %1122 = vmatpush.bf16.msrb.mxu1 %v2986_v47  ;;  %v3373_v47 = vld [vmem:[#allocation9 + $0x54] sm:$0xf]  ;;  %v3154_v48 = vor.u32 %v3394_v46, %v3153_v45  ;;  %v3134_v4 = vor.u32 %v3387_v1, %v3131_v3  ;;  %v3390_v6 = vld [vmem:[#allocation9 + $0xd4] sm:$0xf0]  ;;  %v3065_v11 = vld [vmem:[#allocation9 + $0x40] sm:$0xf] }
  0x7d   : > { %1151 = vmatpush.bf16.msrb.mxu2 %v2926_v54  ;;  %v3078_v50 = vor.u32 %v3373_v47, %v3075_v49  ;;  %v3082_v54 = vor.u32 %v3376_v52, %v3081_v51  ;;  %v3369_v7 = vld [vmem:[#allocation9 + $0x34] sm:$0xf]  ;;  %v3372_v12 = vld [vmem:[#allocation9 + $0x44] sm:$0xf0]  ;;  %v3123_v16 = vld [vmem:[#allocation9 + $0xb8] sm:$0xf0] }
  0x7e   : > { %1180 = vmatpush.bf16.msrb.mxu3 %v2990_v58  ;;  %v3392_v58 = vld [vmem:[#allocation9 + $0xe4] sm:$0xf0]  ;;  %v3066_v15 = vor.u32 %v3372_v12, %v3065_v11  ;;  %v3367_v22 = vld [vmem:[#allocation9 + $0x24] sm:$0xf]  ;;  %v600_v23 = vld [vmem:[%s4776_s3] sm:$0x3] }
  0x7f   : > { %1094 = vmatpush.bf16.msrb.mxu0 %v2914_v59  ;;  %v3371_v59 = vld [vmem:[#allocation9 + $0x44] sm:$0xf]  ;;  %v3146_v60 = vor.u32 %v3392_v58, %v3145_v57  ;;  %v3388_v20 = vld [vmem:[#allocation9 + $0xc4] sm:$0xf0]  ;;  %v3051_v28 = vld [vmem:[#allocation9 + $0x28] sm:$0xf0] }
  0x80   : > { %1123 = vmatpush.bf16.msrb.mxu1 %v2978_v63  ;;  %v3070_v62 = vor.u32 %v3371_v59, %v3067_v61  ;;  %v3073_v63 = vld [vmem:[#allocation9 + $0x50] sm:$0xf]  ;;  %v3054_v29 = vor.u32 %v3367_v22, %v3051_v28  ;;  %v3370_v31 = vld [vmem:[#allocation9 + $0x34] sm:$0xf0]  ;;  %v3383_v32 = vld [vmem:[#allocation9 + $0xa4] sm:$0xf] }
  0x81   : > { %1152 = vmatpush.bf16.msrb.mxu2 %v2918_v8  ;;  %v3074_v2 = vor.u32 %v3374_v0, %v3073_v63  ;;  %v3138_v8 = vor.u32 %v3390_v6, %v3137_v5  ;;  %v3115_v34 = vld [vmem:[#allocation9 + $0xa8] sm:$0xf0]  ;;  %v3386_v39 = vld [vmem:[#allocation9 + $0xb4] sm:$0xf0]  ;;  %v3365_v40 = vld [vmem:[#allocation9 + $0x14] sm:$0xf] }
  0x82   : > { %1181 = vmatpush.bf16.msrb.mxu3 %v2982_v9  ;;  %v3059_v9 = vld [vmem:[#allocation9 + $0x38] sm:$0xf0]  ;;  %v3118_v35 = vor.u32 %v3383_v32, %v3115_v34  ;;  %v4114_v41 = vperm.slane %v600_v23, 0  ;;  %v3049_v45 = vld [vmem:[#allocation9 + $0x20] sm:$0xf] }
  0x83   : > { %1095 = vmatpush.bf16.msrb.mxu0 %v2906_v10  ;;  %v3062_v10 = vor.u32 %v3369_v7, %v3059_v9  ;;  %v3043_v43 = vld [vmem:[#allocation9 + $0x18] sm:$0xf0]  ;;  %v3368_v46 = vld [vmem:[#allocation9 + $0x24] sm:$0xf0]  ;;  %v3381_v47 = vld [vmem:[#allocation9 + $0x94] sm:$0xf] }
  0x84   : > { %1124 = vmatpush.bf16.msrb.mxu1 %v2970_v14  ;;  %v3385_v14 = vld [vmem:[#allocation9 + $0xb4] sm:$0xf]  ;;  %v3107_v49 = vld [vmem:[#allocation9 + $0x98] sm:$0xf0]  ;;  %v3113_v52 = vld [vmem:[#allocation9 + $0xa0] sm:$0xf] }
  0x85   : > { %1153 = vmatpush.bf16.msrb.mxu2 %v2910_v18  ;;  %v3126_v18 = vor.u32 %v3385_v14, %v3123_v16  ;;  %v3110_v51 = vor.u32 %v3381_v47, %v3107_v49  ;;  %v3384_v53 = vld [vmem:[#allocation9 + $0xa4] sm:$0xf0]  ;;  %v3035_v58 = vld [vmem:[#allocation9 + $0x8] sm:$0xf0]  ;;  %v3366_v61 = vld [vmem:[#allocation9 + $0x14] sm:$0xf0] }
  0x86   : > { %784 = vmatmul.bf16.gmra.mxu0 %v4075_v13  ;;  %1182 = vmatpush.bf16.msrb.mxu3 %v2974_v19  ;;  %v3129_v19 = vld [vmem:[#allocation9 + $0xc0] sm:$0xf]  ;;  %v3114_v57 = vor.u32 %v3384_v53, %v3113_v52  ;;  %v3099_v1 = vld [vmem:[#allocation9 + $0x88] sm:$0xf0]  ;;  %v3382_v5 = vld [vmem:[#allocation9 + $0x94] sm:$0xf0] }
  0x87   : > { %813 = vmatmul.bf16.gmra.mxu1 %v4077_v17  ;;  %1410 = vmatpush.bf16.msra.mxu0 %v3090_v42  ;;  %v3130_v24 = vor.u32 %v3388_v20, %v3129_v19  ;;  %v3033_v7 = vld [vmem:[#allocation9] sm:$0xf]  ;;  %v3380_v16 = vld [vmem:[#allocation9 + $0x84] sm:$0xf0] }
  0x88   : > { %842 = vmatmul.bf16.gmra.mxu2 %v4075_v13  ;;  %1439 = vmatpush.bf16.msra.mxu1 %v3154_v48  ;;  %v3050_v48 = vor.u32 %v3368_v46, %v3049_v45 }
  0x89   : > { %871 = vmatmul.bf16.gmra.mxu3 %v4077_v17  ;;  %1468 = vmatpush.bf16.msra.mxu2 %v3094_v30  ;;  %v3057_v30 = vld [vmem:[#allocation9 + $0x30] sm:$0xf] }
  0x8a   : > { %1497 = vmatpush.bf16.msra.mxu3 %v3158_v33  ;;  %v3058_v33 = vor.u32 %v3370_v31, %v3057_v30 }
  0x8b   : > { %1411 = vmatpush.bf16.msra.mxu0 %v3082_v54  ;;  %v3363_v54 = vld [vmem:[#allocation9 + $0x4] sm:$0xf] }
  0x8c   : > { %1440 = vmatpush.bf16.msra.mxu1 %v3146_v60  ;;  %v3038_v59 = vor.u32 %v3363_v54, %v3035_v58  ;;  %v3041_v60 = vld [vmem:[#allocation9 + $0x10] sm:$0xf] }
  0x8d   : > { %1469 = vmatpush.bf16.msra.mxu2 %v3086_v38  ;;  %v3121_v38 = vld [vmem:[#allocation9 + $0xb0] sm:$0xf]  ;;  %v3042_v0 = vor.u32 %v3366_v61, %v3041_v60  ;;  %v922_v61 = vld [vmem:[%s4778_s5] sm:$0x3] }
  0x8e   : > { %1498 = vmatpush.bf16.msra.mxu3 %v3150_v44  ;;  %v3122_v42 = vor.u32 %v3386_v39, %v3121_v38  ;;  %v3046_v44 = vor.u32 %v3365_v40, %v3043_v43 }
  0x8f   : > { %1412 = vmatpush.bf16.msra.mxu0 %v3074_v2  ;;  %v4117_v2 = vperm.slane %v600_v23, 1 }
  0x90   : > { %1441 = vmatpush.bf16.msra.mxu1 %v3138_v8  ;;  %v3364_v8 = vld [vmem:[#allocation9 + $0x4] sm:$0xf0] }
  0x91   : > { %1470 = vmatpush.bf16.msra.mxu2 %v3078_v50 }
  0x92   : > { %1499 = vmatpush.bf16.msra.mxu3 %v3142_v56 }
  0x93   : > { %1413 = vmatpush.bf16.msra.mxu0 %v3066_v15  ;;  %v3097_v15 = vld [vmem:[#allocation9 + $0x80] sm:$0xf] }
  0x94   : > { %1442 = vmatpush.bf16.msra.mxu1 %v3130_v24  ;;  %v3098_v19 = vor.u32 %v3380_v16, %v3097_v15 }
  0x95   : > { %1471 = vmatpush.bf16.msra.mxu2 %v3070_v62  ;;  %v3379_v62 = vld [vmem:[#allocation9 + $0x84] sm:$0xf] }
  0x96   : > { %789 = vmatmul.bf16.gmra.mxu0 %v4087_v26  ;;  %1500 = vmatpush.bf16.msra.mxu3 %v3134_v4  ;;  %v3102_v3 = vor.u32 %v3379_v62, %v3099_v1  ;;  %v3105_v4 = vld [vmem:[#allocation9 + $0x90] sm:$0xf] }
  0x97   : > { %818 = vmatmul.bf16.gmra.mxu1 %v4089_v27  ;;  %1414 = vmatpush.bf16.msra.mxu0 %v3058_v33  ;;  %v3106_v6 = vor.u32 %v3382_v5, %v3105_v4 }
  0x98   : > { %847 = vmatmul.bf16.gmra.mxu2 %v4087_v26  ;;  %1443 = vmatpush.bf16.msra.mxu1 %v3122_v42 }
  0x99   : > { %876 = vmatmul.bf16.gmra.mxu3 %v4089_v27  ;;  %1472 = vmatpush.bf16.msra.mxu2 %v3062_v10  ;;  %v3034_v10 = vor.u32 %v3364_v8, %v3033_v7  ;;  %v4188_v7 = vperm.slane %v922_v61, 1 }
  0x9a   : > { %1501 = vmatpush.bf16.msra.mxu3 %v3126_v18 }
  0x9b   : > { %1415 = vmatpush.bf16.msra.mxu0 %v3050_v48 }
  0x9c   : > { %1444 = vmatpush.bf16.msra.mxu1 %v3114_v57 }
  0x9d   : > { %1473 = vmatpush.bf16.msra.mxu2 %v3054_v29 }
  0x9e   : > { %1502 = vmatpush.bf16.msra.mxu3 %v3118_v35 }
  0x9f   : > { %1416 = vmatpush.bf16.msra.mxu0 %v3042_v0 }
  0xa0   : > { %1445 = vmatpush.bf16.msra.mxu1 %v3106_v6 }
  0xa1   : > { %1474 = vmatpush.bf16.msra.mxu2 %v3046_v44 }
  0xa2   : > { %1503 = vmatpush.bf16.msra.mxu3 %v3110_v51 }
  0xa3   : > { %1417 = vmatpush.bf16.msra.mxu0 %v3034_v10 }
  0xa4   : > { %1446 = vmatpush.bf16.msra.mxu1 %v3098_v19 }
  0xa5   : > { %1475 = vmatpush.bf16.msra.mxu2 %v3038_v59 }
  0xa6   : > { %1096 = vmatmul.bf16.vlgmr.msrb.gmra.mxu0 %v4051_v36  ;;  %1504 = vmatpush.bf16.msra.mxu3 %v3102_v3 }
  0xa7   : > { %1125 = vmatmul.bf16.vlgmr.msrb.gmra.mxu1 %v4053_v37 }
  0xa8   : > { %1154 = vmatmul.bf16.vlgmr.msrb.gmra.mxu2 %v4051_v36 }
  0xa9   : > { %1183 = vmatmul.bf16.vlgmr.msrb.gmra.mxu3 %v4053_v37 }
  0xb6   : > { %1101 = vmatmul.bf16.gmra.mxu0 %v4063_v21 }
  0xb7   : > { %1130 = vmatmul.bf16.gmra.mxu1 %v4065_v25 }
  0xb8   : > { %1159 = vmatmul.bf16.gmra.mxu2 %v4063_v21 }
  0xb9   : > { %1188 = vmatmul.bf16.gmra.mxu3 %v4065_v25 }
  0xc6   : > { %1106 = vmatmul.bf16.gmra.mxu0 %v4075_v13 }
  0xc7   : > { %1135 = vmatmul.bf16.gmra.mxu1 %v4077_v17 }
  0xc8   : > { %1164 = vmatmul.bf16.gmra.mxu2 %v4075_v13 }
  0xc9   : > { %1193 = vmatmul.bf16.gmra.mxu3 %v4077_v17 }
  0xd6   : > { %1111 = vmatmul.bf16.gmra.mxu0 %v4087_v26 }
  0xd7   : > { %1140 = vmatmul.bf16.gmra.mxu1 %v4089_v27 }
  0xd8   : > { %1169 = vmatmul.bf16.gmra.mxu2 %v4087_v26 }
  0xd9   : > { %1198 = vmatmul.bf16.gmra.mxu3 %v4089_v27 }
  0xe3   : > { %v775_v50 = vpop.f32.mrf.mxu0 }
  0xe4   : > { %v776_v55 = vadd.f32 %v775_v50, %v4114_v41  ;;  %v804_v56 = vpop.f32.mrf.mxu1 }
  0xe6   : > { %v805_v63 = vadd.f32 %v804_v56, %v776_v55  ;;  %1418 = vmatmul.bf16.vlgmr.msra.gmra.mxu0 %v4051_v36 }
  0xe7   : > { %1447 = vmatmul.bf16.vlgmr.msra.gmra.mxu1 %v4053_v37 }
  0xe8   : > { %1476 = vmatmul.bf16.vlgmr.msra.gmra.mxu2 %v4051_v36 }
  0xe9   : > { %1505 = vmatmul.bf16.vlgmr.msra.gmra.mxu3 %v4053_v37 }
  0xeb   : > { %v833_v9 = vpop.f32.mrf.mxu2  ;;  %v4120_v14 = vpop.f32.mrf.mxu0 }
  0xec   : > { %v834_v11 = vadd.f32 %v833_v9, %v4117_v2  ;;  %v862_v12 = vpop.f32.mrf.mxu3  ;;  %v4123_v18 = vpop.f32.mrf.mxu1 }
  0xee   : > { %v863_v20 = vadd.f32 %v862_v12, %v834_v11 }
  0xf0   : > { %v4126_v22 = vpack.c.bf16 %v863_v20, %v805_v63  ;;  %v4179_v63 = vperm.slane %v922_v61, 0 }
  0xf3   : > { %v4130_v23 = vpop.f32.mrf.mxu2  ;;  %v780_v28 = vpop.f32.mrf.mxu0 }
  0xf4   : > { %v4132_v24 = vpop.f32.mrf.mxu3  ;;  %v781_v29 = vadd.f32 %v780_v28, %v4114_v41  ;;  %v809_v30 = vpop.f32.mrf.mxu1 }
  0xf6   : > { %v810_v31 = vadd.f32 %v809_v30, %v781_v29  ;;  %1423 = vmatmul.bf16.gmra.mxu0 %v4063_v21 }
  0xf7   : > { %1452 = vmatmul.bf16.gmra.mxu1 %v4065_v25 }
  0xf8   : > { %1481 = vmatmul.bf16.gmra.mxu2 %v4063_v21 }
  0xf9   : > { %1510 = vmatmul.bf16.gmra.mxu3 %v4065_v25 }
  0xfb   : > { %v838_v32 = vpop.f32.mrf.mxu2  ;;  %v4136_v35 = vpop.f32.mrf.mxu0 }
  0xfc   : > { %v839_v33 = vadd.f32 %v838_v32, %v4117_v2  ;;  %v867_v34 = vpop.f32.mrf.mxu3  ;;  %v4139_v36 = vpop.f32.mrf.mxu1 }
  0xfe   : > { %v868_v37 = vadd.f32 %v867_v34, %v839_v33 }
 0x100   : > { %v4142_v38 = vpack.c.bf16 %v868_v37, %v810_v31 }
 0x103   : > { %v4146_v39 = vpop.f32.mrf.mxu2  ;;  %v785_v42 = vpop.f32.mrf.mxu0 }
 0x104   : > { %v4148_v40 = vpop.f32.mrf.mxu3  ;;  %v786_v43 = vadd.f32 %v785_v42, %v4114_v41  ;;  %v814_v44 = vpop.f32.mrf.mxu1 }
 0x106   : > { %v815_v45 = vadd.f32 %v814_v44, %v786_v43  ;;  %1428 = vmatmul.bf16.gmra.mxu0 %v4075_v13 }
 0x107   : > { %1457 = vmatmul.bf16.gmra.mxu1 %v4077_v17 }
 0x108   : > { %1486 = vmatmul.bf16.gmra.mxu2 %v4075_v13 }
 0x109   : > { %1515 = vmatmul.bf16.gmra.mxu3 %v4077_v17 }
 0x10b   : > { %v843_v46 = vpop.f32.mrf.mxu2  ;;  %v4152_v49 = vpop.f32.mrf.mxu0 }
 0x10c   : > { %v844_v47 = vadd.f32 %v843_v46, %v4117_v2  ;;  %v872_v48 = vpop.f32.mrf.mxu3  ;;  %v4155_v21 = vpop.f32.mrf.mxu1 }
 0x10e   : > { %v873_v25 = vadd.f32 %v872_v48, %v844_v47 }
 0x110   : > { %v4158_v50 = vpack.c.bf16 %v873_v25, %v815_v45 }
 0x113   : > { %v4162_v51 = vpop.f32.mrf.mxu2  ;;  %v790_v53 = vpop.f32.mrf.mxu0 }
 0x114   : > { %v4164_v52 = vpop.f32.mrf.mxu3  ;;  %v791_v54 = vadd.f32 %v790_v53, %v4114_v41  ;;  %v819_v55 = vpop.f32.mrf.mxu1 }
 0x116   : > { %v820_v56 = vadd.f32 %v819_v55, %v791_v54  ;;  %1433 = vmatmul.bf16.gmra.mxu0 %v4087_v26 }
 0x117   : > { %1462 = vmatmul.bf16.gmra.mxu1 %v4089_v27 }
 0x118   : > { %1491 = vmatmul.bf16.gmra.mxu2 %v4087_v26 }
 0x119   : > { %1520 = vmatmul.bf16.gmra.mxu3 %v4089_v27 }
 0x11b   : > { %v848_v57 = vpop.f32.mrf.mxu2  ;;  %v4168_v60 = vpop.f32.mrf.mxu0 }
 0x11c   : > { %v849_v58 = vadd.f32 %v848_v57, %v4117_v2  ;;  %v877_v59 = vpop.f32.mrf.mxu3  ;;  %v4171_v13 = vpop.f32.mrf.mxu1 }
 0x11d   : > { %4798 = vst [vmem:[#allocation16_spill] sm:$0xff] %v4171_v13 }
 0x11e   : > { %v878_v17 = vadd.f32 %v877_v59, %v849_v58 }
 0x120   : > { %v4177_v62 = vpack.c.bf16 %v878_v17, %v820_v56 }
 0x122   : > { %4799 = vst [vmem:[#allocation17_spill] sm:$0xff] %v4177_v62 }
 0x123   : > { %v4183_v0 = vpop.f32.mrf.mxu2  ;;  %v1097_v3 = vpop.f32.mrf.mxu0 }
 0x124   : > { %4800 = vst [vmem:[#allocation18_spill] sm:$0xff] %v4183_v0  ;;  %v4185_v1 = vpop.f32.mrf.mxu3  ;;  %v1098_v4 = vadd.f32 %v1097_v3, %v4179_v63  ;;  %v1126_v5 = vpop.f32.mrf.mxu1 }
 0x125   : > { %4801 = vst [vmem:[#allocation19_spill] sm:$0xff] %v4185_v1 }
 0x126   : > { %v1127_v6 = vadd.f32 %v1126_v5, %v1098_v4 }
 0x12b   : > { %v1155_v8 = vpop.f32.mrf.mxu2  ;;  %v4191_v11 = vpop.f32.mrf.mxu0 }
 0x12c   : > { %v1156_v9 = vadd.f32 %v1155_v8, %v4188_v7  ;;  %v1184_v10 = vpop.f32.mrf.mxu3  ;;  %v4193_v26 = vpop.f32.mrf.mxu1 }
 0x12e   : > { %v1185_v27 = vadd.f32 %v1184_v10, %v1156_v9 }
 0x130   : > { %v4195_v12 = vpack.c.bf16 %v1185_v27, %v1127_v6 }
 0x133   : > { %v4197_v15 = vpop.f32.mrf.mxu2  ;;  %v1102_v19 = vpop.f32.mrf.mxu0 }
 0x134   : > { %v4199_v16 = vpop.f32.mrf.mxu3  ;;  %v1131_v20 = vpop.f32.mrf.mxu1 }
 0x13b   : > { %v1160_v28 = vpop.f32.mrf.mxu2  ;;  %v1104_v30 = vpop.f32.mrf.mxu0 }
 0x13c   : > { %v1189_v29 = vpop.f32.mrf.mxu3  ;;  %v1133_v31 = vpop.f32.mrf.mxu1 }
 0x143   : > { %v1162_v32 = vpop.f32.mrf.mxu2  ;;  %v1107_v34 = vpop.f32.mrf.mxu0 }
 0x144   : > { %v1191_v33 = vpop.f32.mrf.mxu3  ;;  %v1136_v37 = vpop.f32.mrf.mxu1  ;;  %v1108_v5 = vadd.f32 %v1107_v34, %v4179_v63  ;;  %v1163_v34 = vadd.f32 %v1162_v32, %v4188_v7 }
 0x14b   : > { %v1165_v42 = vpop.f32.mrf.mxu2  ;;  %v1109_v44 = vpop.f32.mrf.mxu0 }
 0x14c   : > { %v1194_v43 = vpop.f32.mrf.mxu3  ;;  %v1138_v45 = vpop.f32.mrf.mxu1  ;;  %v1166_v6 = vadd.f32 %v1165_v42, %v4188_v7  ;;  %v1110_v8 = vadd.f32 %v1109_v44, %v4179_v63  ;;  %v1103_v44 = vadd.f32 %v1102_v19, %v4179_v63 }
 0x153   : > { %v1167_v46 = vpop.f32.mrf.mxu2  ;;  %v1112_v48 = vpop.f32.mrf.mxu0 }
 0x154   : > { %v1196_v47 = vpop.f32.mrf.mxu3  ;;  %v1141_v25 = vpop.f32.mrf.mxu1  ;;  %v1113_v55 = vadd.f32 %v1112_v48, %v4179_v63  ;;  %v1168_v3 = vadd.f32 %v1167_v46, %v4188_v7 }
 0x156   : > { %v1142_v58 = vadd.f32 %v1141_v25, %v1113_v55  ;;  %v1197_v25 = vadd.f32 %v1196_v47, %v1168_v3  ;;  %v1137_v55 = vadd.f32 %v1136_v37, %v1108_v5 }
 0x15b   : > { %v1170_v53 = vpop.f32.mrf.mxu2  ;;  %v1114_v57 = vpop.f32.mrf.mxu0 }
 0x15c   : > { %v1199_v54 = vpop.f32.mrf.mxu3  ;;  %v1171_v56 = vadd.f32 %v1170_v53, %v4188_v7  ;;  %v1115_v17 = vadd.f32 %v1114_v57, %v4179_v63  ;;  %v1143_v9 = vpop.f32.mrf.mxu1  ;;  %v1139_v57 = vadd.f32 %v1138_v45, %v1110_v8 }
 0x15e   : > { %v1200_v59 = vadd.f32 %v1199_v54, %v1171_v56  ;;  %v1144_v48 = vadd.f32 %v1143_v9, %v1115_v17  ;;  %v1195_v56 = vadd.f32 %v1194_v43, %v1166_v6  ;;  %v1209_v1 = vpack.c.bf16 %v1197_v25, %v1139_v57 }
 0x15f   : > { %v1192_v17 = vadd.f32 %v1191_v33, %v1163_v34  ;;  %v1100_v9 = vadd.f32 %v4191_v11, %v4179_v63 }
 0x160   : > { %v1210_v27 = vpack.c.bf16 %v1200_v59, %v1142_v58  ;;  %v1161_v58 = vadd.f32 %v1160_v28, %v4188_v7  ;;  %v1105_v59 = vadd.f32 %v1104_v30, %v4179_v63  ;;  %v1208_v47 = vpack.c.bf16 %v1195_v56, %v1137_v55 }
 0x161   : > { %v1571_v32 = vunpack.c.l.b16 %v1209_v1  ;;  %v1826_v3 = vunpack.c.h.b16 %v1209_v1  ;;  %v1158_v30 = vadd.f32 %v4197_v15, %v4188_v7  ;;  %v1129_v15 = vadd.f32 %v4193_v26, %v1100_v9 }
 0x162   : > { %v1572_v62 = vunpack.c.l.b16 %v1210_v27  ;;  %v1827_v46 = vunpack.c.h.b16 %v1210_v27  ;;  %v1190_v19 = vadd.f32 %v1189_v29, %v1161_v58  ;;  %v1570_v28 = vunpack.c.l.b16 %v1208_v47 }
 0x163   : > { %v1172_v61 = vpop.f32.mrf.mxu2  ;;  %v4213_v37 = vpop.f32.mrf.mxu0  ;;  %v1825_v5 = vunpack.c.h.b16 %v1208_v47  ;;  %v1187_v29 = vadd.f32 %v4199_v16, %v1158_v30  ;;  %v836_v63 = vadd.f32 %v4130_v23, %v4117_v2  ;;  %v778_v55 = vadd.f32 %v4120_v14, %v4114_v41 }
 0x164   : > { %v1173_v4 = vadd.f32 %v1172_v61, %v4188_v7  ;;  %v1201_v10 = vpop.f32.mrf.mxu3  ;;  %v4217_v45 = vpop.f32.mrf.mxu1  ;;  %v1576_v6 = vpack.c.b16 %v1571_v32, %v1570_v28  ;;  %v1821_v14 = vunpack.c.h.b16 %v4195_v12  ;;  %v1805_v28 = vunpack.c.h.b16 %v4126_v22 }
 0x165   : > { %v1831_v8 = vpack.c.b16 %v1826_v3, %v1825_v5  ;;  %v1205_v11 = vpack.c.bf16 %v1187_v29, %v1129_v15  ;;  %v865_v56 = vadd.f32 %v4132_v24, %v836_v63  ;;  %v807_v23 = vadd.f32 %v4123_v18, %v778_v55  ;;  %v1244_v24 = vld [vmem:[%s4780_s7] sm:$0x3] }
 0x166   : > { %v1202_v53 = vadd.f32 %v1201_v10, %v1173_v4  ;;  %v1134_v4 = vadd.f32 %v1133_v31, %v1105_v59  ;;  %v4254_v3 = vperm.slane %v1244_v24, 0  ;;  %v783_v9 = vadd.f32 %v4136_v35, %v4114_v41 }
 0x168   : > { %v1211_v54 = vpack.c.bf16 %v1202_v53, %v1144_v48  ;;  %v1420_v5 = vadd.f32 %v4213_v37, %v4254_v3 }
 0x16a   : > { %v1573_v13 = vunpack.c.l.b16 %v1211_v54  ;;  %v1828_v61 = vunpack.c.h.b16 %v1211_v54 }
 0x16b   : > { %v4215_v43 = vpop.f32.mrf.mxu2  ;;  %v4225_v1 = vpop.f32.mrf.mxu0 }
 0x16c   : > { %v1577_v42 = vpack.c.b16 %v1573_v13, %v1572_v62  ;;  %v1832_v0 = vpack.c.b16 %v1828_v61, %v1827_v46  ;;  %v4219_v13 = vpop.f32.mrf.mxu3  ;;  %v1132_v62 = vadd.f32 %v1131_v20, %v1103_v44  ;;  %v4229_v20 = vpop.f32.mrf.mxu1  ;;  %v1567_v46 = vunpack.c.l.b16 %v1205_v11 }
 0x16d   : > { %v1822_v61 = vunpack.c.h.b16 %v1205_v11  ;;  %v883_v44 = vpack.c.bf16 %v865_v56, %v807_v23 }
 0x16e   : > { %1586 = vmatpush.bf16.xpose.msrb.mxu0 %v1577_v42  ;;  %1841 = vmatpush.bf16.xpose.msrb.mxu2 %v1832_v0  ;;  %v1207_v0 = vpack.c.bf16 %v1192_v17, %v1134_v4  ;;  %v1206_v10 = vpack.c.bf16 %v1190_v19, %v1132_v62  ;;  %v1566_v42 = vunpack.c.l.b16 %v4195_v12  ;;  %v4256_v62 = vperm.slane %v1244_v24, 1 }
 0x16f   : > { %v1829_v59 = vpack.c.b16 %v1822_v61, %v1821_v14  ;;  %v1543_v17 = vunpack.c.l.b16 %v883_v44  ;;  %v1806_v32 = vunpack.c.h.b16 %v883_v44  ;;  %v1542_v4 = vunpack.c.l.b16 %v4126_v22 }
 0x170   : > { %v1569_v31 = vunpack.c.l.b16 %v1207_v0  ;;  %v1824_v27 = vunpack.c.h.b16 %v1207_v0  ;;  %v1568_v48 = vunpack.c.l.b16 %v1206_v10  ;;  %v1823_v53 = vunpack.c.h.b16 %v1206_v10 }
 0x171   : > { %v1574_v58 = vpack.c.b16 %v1567_v46, %v1566_v42  ;;  %v1478_v30 = vadd.f32 %v4215_v43, %v4256_v62  ;;  %v1550_v0 = vpack.c.b16 %v1543_v17, %v1542_v4  ;;  %v1449_v10 = vadd.f32 %v4217_v45, %v1420_v5 }
 0x172   : > { %v1575_v25 = vpack.c.b16 %v1569_v31, %v1568_v48  ;;  %v1830_v54 = vpack.c.b16 %v1824_v27, %v1823_v53  ;;  %v812_v48 = vadd.f32 %v4139_v36, %v783_v9  ;;  %v1544_v45 = vunpack.c.l.b16 %v4142_v38 }
 0x173   : > { %v4227_v33 = vpop.f32.mrf.mxu2  ;;  %v4239_v16 = vpop.f32.mrf.mxu0  ;;  %v1507_v22 = vadd.f32 %v4219_v13, %v1478_v30  ;;  %v1807_v13 = vunpack.c.h.b16 %v4142_v38  ;;  %v788_v46 = vadd.f32 %v4152_v49, %v4114_v41 }
 0x174   : > { %v4232_v7 = vpop.f32.mrf.mxu3  ;;  %v4244_v26 = vpop.f32.mrf.mxu1 }
 0x175   : > { %v4275_v31 = vpack.c.bf16 %v1507_v22, %v1449_v10  ;;  %v817_v14 = vadd.f32 %v4155_v21, %v788_v46 }
 0x176   : > { %1587 = vmatpush.bf16.xpose.msrb.mxu0 %v1576_v6  ;;  %1842 = vmatpush.bf16.xpose.msrb.mxu2 %v1831_v8  ;;  %v1813_v6 = vpack.c.b16 %v1806_v32, %v1805_v28  ;;  %v841_v8 = vadd.f32 %v4146_v39, %v4117_v2  ;;  %v1425_v32 = vadd.f32 %v4239_v16, %v4254_v3 }
 0x177   : > { %v1422_v16 = vadd.f32 %v4225_v1, %v4254_v3 }
 0x178   : > { %v870_v37 = vadd.f32 %v4148_v40, %v841_v8  ;;  %v846_v40 = vadd.f32 %v4162_v51, %v4117_v2  ;;  %v1809_v8 = vunpack.c.h.b16 %v4158_v50 }
 0x17a   : > { %v885_v39 = vpack.c.bf16 %v870_v37, %v812_v48  ;;  %v875_v36 = vadd.f32 %v4164_v52, %v846_v40  ;;  %v1546_v52 = vunpack.c.l.b16 %v4158_v50 }
 0x17b   : > { %v4242_v57 = vpop.f32.mrf.mxu2  ;;  %v1426_v47 = vpop.f32.mrf.mxu0 }
 0x17c   : > { %v4246_v34 = vpop.f32.mrf.mxu3  ;;  %v4258_v19 = vpop.f32.mrf.mxu1  ;;  %v1545_v63 = vunpack.c.l.b16 %v885_v39  ;;  %v1808_v35 = vunpack.c.h.b16 %v885_v39  ;;  %v887_v24 = vpack.c.bf16 %v875_v36, %v817_v14  ;;  %v1483_v21 = vadd.f32 %v4242_v57, %v4256_v62 }
 0x17d   : > { %v1427_v5 = vadd.f32 %v1426_v47, %v4254_v3  ;;  %v1480_v57 = vadd.f32 %v4227_v33, %v4256_v62 }
 0x17e   : > { %1588 = vmatpush.bf16.xpose.msrb.mxu0 %v1575_v25  ;;  %1843 = vmatpush.bf16.xpose.msrb.mxu2 %v1830_v54  ;;  %v1551_v55 = vpack.c.b16 %v1545_v63, %v1544_v45  ;;  %v1814_v56 = vpack.c.b16 %v1808_v35, %v1807_v13  ;;  %v1547_v9 = vunpack.c.l.b16 %v887_v24  ;;  %v1810_v37 = vunpack.c.h.b16 %v887_v24 }
 0x17f   : > { %v1451_v45 = vadd.f32 %v4229_v20, %v1422_v16  ;;  %v4804_v20 = vld [vmem:[#allocation16_spill] sm:$0xff] }
 0x183   : > { %v1484_v18 = vpop.f32.mrf.mxu2  ;;  %v1429_v29 = vpop.f32.mrf.mxu0 }
 0x184   : > { %v4260_v12 = vpop.f32.mrf.mxu3  ;;  %v1458_v27 = vpop.f32.mrf.mxu1  ;;  %v1485_v30 = vadd.f32 %v1484_v18, %v4256_v62  ;;  %v1454_v18 = vadd.f32 %v4244_v26, %v1425_v32  ;;  %v4802_v26 = vld [vmem:[#allocation18_spill] sm:$0xff]  ;;  %v1974_v32 = vunpack.c.h.b16 %v4275_v31 }
 0x186   : > { %1589 = vmatpush.bf16.xpose.msrb.mxu0 %v1574_v58  ;;  %1844 = vmatpush.bf16.xpose.msrb.mxu2 %v1829_v59  ;;  %v1430_v58 = vadd.f32 %v1429_v29, %v4254_v3  ;;  %v1514_v63 = vadd.f32 %v4260_v12, %v1485_v30 }
 0x18b   : > { %v1487_v43 = vpop.f32.mrf.mxu2  ;;  %v1431_v53 = vpop.f32.mrf.mxu0 }
 0x18c   : > { %v1516_v15 = vpop.f32.mrf.mxu3  ;;  %v1460_v25 = vpop.f32.mrf.mxu1  ;;  %v1488_v51 = vadd.f32 %v1487_v43, %v4256_v62  ;;  %v1432_v49 = vadd.f32 %v1431_v53, %v4254_v3  ;;  %v1456_v53 = vadd.f32 %v4258_v19, %v1427_v5 }
 0x18d   : > { %1590 = vmatmul.bf16.vlgmr.msrb.gmra.mxu0 %v1550_v0  ;;  %1845 = vmatmul.bf16.vlgmr.msrb.gmra.mxu2 %v1813_v6  ;;  %v1459_v0 = vadd.f32 %v1458_v27, %v1430_v58  ;;  %v1512_v27 = vadd.f32 %v4246_v34, %v1483_v21  ;;  %v1815_v34 = vpack.c.b16 %v1810_v37, %v1809_v8 }
 0x18e   : > { %v1517_v6 = vadd.f32 %v1516_v15, %v1488_v51  ;;  %v1461_v10 = vadd.f32 %v1460_v25, %v1432_v49 }
 0x18f   : > { %v1528_v12 = vpack.c.bf16 %v1512_v27, %v1454_v18 }
 0x190   : > { %v1530_v1 = vpack.c.bf16 %v1517_v6, %v1459_v0  ;;  %v4805_v6 = vld [vmem:[#allocation17_spill] sm:$0xff] }
 0x191   : > { %v1976_v58 = vunpack.c.h.b16 %v1528_v12  ;;  %v1548_v8 = vunpack.c.l.b16 %v4805_v6 }
 0x192   : > { %v1978_v46 = vunpack.c.h.b16 %v1530_v1 }
 0x193   : > { %v1489_v11 = vpop.f32.mrf.mxu2  ;;  %v1434_v61 = vpop.f32.mrf.mxu0 }
 0x194   : > { %v1518_v54 = vpop.f32.mrf.mxu3  ;;  %v1463_v42 = vpop.f32.mrf.mxu1  ;;  %v1435_v44 = vadd.f32 %v1434_v61, %v4254_v3  ;;  %v1490_v17 = vadd.f32 %v1489_v11, %v4256_v62  ;;  %v1552_v11 = vpack.c.b16 %v1547_v9, %v1546_v52  ;;  %v1728_v52 = vunpack.c.l.b16 %v4275_v31  ;;  %v536_v31 = vld [vmem:[#allocation4] sm:$0xff] }
 0x195   : > { %v1811_v9 = vunpack.c.h.b16 %v4805_v6  ;;  %v2767_v16 = vadd.f32 -1.0, %v536_v31  ;;  %v542_v6 = vld [vmem:[#allocation4 + $0x30] sm:$0xff] }
 0x196   : > { %v1464_v4 = vadd.f32 %v1463_v42, %v1435_v44  ;;  %v1519_v22 = vadd.f32 %v1518_v54, %v1490_v17  ;;  %v851_v54 = vadd.f32 %v4802_v26, %v4117_v2 }
 0x198   : > { %v1531_v33 = vpack.c.bf16 %v1519_v22, %v1461_v10 }
 0x19a   : > { %v1733_v36 = vunpack.c.l.b16 %v1531_v33  ;;  %v1979_v61 = vunpack.c.h.b16 %v1531_v33 }
 0x19b   : > { %v1492_v23 = vpop.f32.mrf.mxu2  ;;  %v1436_v29 = vpop.f32.mrf.mxu0 }
 0x19c   : > { %v1521_v38 = vpop.f32.mrf.mxu3  ;;  %v1493_v59 = vadd.f32 %v1492_v23, %v4256_v62  ;;  %v1437_v43 = vadd.f32 %v1436_v29, %v4254_v3  ;;  %v1465_v48 = vpop.f32.mrf.mxu1  ;;  %v793_v3 = vadd.f32 %v4168_v60, %v4114_v41  ;;  %v4803_v23 = vld [vmem:[#allocation19_spill] sm:$0xff]  ;;  %v1984_v49 = vpack.c.b16 %v1979_v61, %v1978_v46 }
 0x19d   : > { %1595 = vmatmul.bf16.gmra.mxu0 %v1551_v55  ;;  %1850 = vmatmul.bf16.gmra.mxu2 %v1814_v56  ;;  %v1529_v55 = vpack.c.bf16 %v1514_v63, %v1456_v53  ;;  %v1732_v56 = vunpack.c.l.b16 %v1530_v1  ;;  %v880_v2 = vadd.f32 %v4803_v23, %v851_v54  ;;  %v538_v1 = vld [vmem:[#allocation4 + $0x10] sm:$0xff]  ;;  %v540_v23 = vld [vmem:[#allocation4 + $0x20] sm:$0xff] }
 0x19e   : > { %v1522_v28 = vadd.f32 %v1521_v38, %v1493_v59  ;;  %v1466_v35 = vadd.f32 %v1465_v48, %v1437_v43  ;;  %v822_v44 = vadd.f32 %v4804_v20, %v793_v3  ;;  %v1730_v38 = vunpack.c.l.b16 %v1528_v12 }
 0x19f   : > { %v1731_v51 = vunpack.c.l.b16 %v1529_v55  ;;  %v1977_v59 = vunpack.c.h.b16 %v1529_v55  ;;  %v1738_v24 = vpack.c.b16 %v1733_v36, %v1732_v56  ;;  %v2769_v3 = vadd.f32 -1.0, %v538_v1 }
 0x1a0   : > { %v1532_v50 = vpack.c.bf16 %v1522_v28, %v1464_v4  ;;  %v889_v17 = vpack.c.bf16 %v880_v2, %v822_v44  ;;  %v2771_v44 = vadd.f32 -1.0, %v540_v23 }
 0x1a1   : > { %v1737_v28 = vpack.c.b16 %v1731_v51, %v1730_v38  ;;  %v1983_v5 = vpack.c.b16 %v1977_v59, %v1976_v58 }
 0x1a2   : > { %v1734_v13 = vunpack.c.l.b16 %v1532_v50  ;;  %v1980_v19 = vunpack.c.h.b16 %v1532_v50  ;;  %v1549_v30 = vunpack.c.l.b16 %v889_v17  ;;  %v1812_v0 = vunpack.c.h.b16 %v889_v17 }
 0x1a3   : > { %v1494_v47 = vpop.f32.mrf.mxu2  ;;  %v556_v51 = vmul.f32 1e+09, %v2771_v44 }
 0x1a4   : > { %v1495_v15 = vadd.f32 %v1494_v47, %v4256_v62  ;;  %v1523_v39 = vpop.f32.mrf.mxu3  ;;  %v1509_v62 = vadd.f32 %v4232_v7, %v1480_v57  ;;  %v1553_v29 = vpack.c.b16 %v1549_v30, %v1548_v8  ;;  %v1816_v37 = vpack.c.b16 %v1812_v0, %v1811_v9  ;;  %v537_v47 = vld [vmem:[#allocation4 + $0x8] sm:$0xff] }
 0x1a5   : > { %v552_v57 = vmul.f32 1e+09, %v2767_v16  ;;  %v2768_v27 = vadd.f32 -1.0, %v537_v47  ;;  %v543_v47 = vld [vmem:[#allocation4 + $0x38] sm:$0xff] }
 0x1a6   : > { %v1524_v25 = vadd.f32 %v1523_v39, %v1495_v15  ;;  %v1527_v7 = vpack.c.bf16 %v1509_v62, %v1451_v45  ;;  %v554_v45 = vmul.f32 1e+09, %v2769_v3 }
 0x1a7   : > { %v553_v53 = vmul.f32 1e+09, %v2768_v27 }
 0x1a8   : > { %v1533_v40 = vpack.c.bf16 %v1524_v25, %v1466_v35  ;;  %v1729_v21 = vunpack.c.l.b16 %v1527_v7  ;;  %v1975_v4 = vunpack.c.h.b16 %v1527_v7 }
 0x1aa   : > { %v1735_v41 = vunpack.c.l.b16 %v1533_v40  ;;  %v1981_v60 = vunpack.c.h.b16 %v1533_v40  ;;  %v1736_v10 = vpack.c.b16 %v1729_v21, %v1728_v52  ;;  %v1982_v22 = vpack.c.b16 %v1975_v4, %v1974_v32 }
 0x1ac   : > { %v1739_v42 = vpack.c.b16 %v1735_v41, %v1734_v13  ;;  %v1985_v14 = vpack.c.b16 %v1981_v60, %v1980_v19  ;;  %v539_v13 = vld [vmem:[#allocation4 + $0x18] sm:$0xff] }
 0x1ad   : > { %1600 = vmatmul.bf16.gmra.mxu0 %v1552_v11  ;;  %1855 = vmatmul.bf16.gmra.mxu2 %v1815_v34  ;;  %v2770_v56 = vadd.f32 -1.0, %v539_v13 }
 0x1ae   : > { %1760 = vmatpush.bf16.msrb.mxu1 %v1739_v42  ;;  %2006 = vmatpush.bf16.msrb.mxu3 %v1985_v14 }
 0x1af   : > { %v555_v41 = vmul.f32 1e+09, %v2770_v56 }
 0x1b2   : > { %1761 = vmatpush.bf16.msrb.mxu1 %v1738_v24  ;;  %2007 = vmatpush.bf16.msrb.mxu3 %v1984_v49  ;;  %v541_v24 = vld [vmem:[#allocation4 + $0x28] sm:$0xff] }
 0x1b3   : > { %v2772_v21 = vadd.f32 -1.0, %v541_v24 }
 0x1b5   : > { %v557_v30 = vmul.f32 1e+09, %v2772_v21 }
 0x1b6   : > { %1762 = vmatpush.bf16.msrb.mxu1 %v1737_v28  ;;  %2008 = vmatpush.bf16.msrb.mxu3 %v1983_v5 }
 0x1ba   : > { %1763 = vmatpush.bf16.msrb.mxu1 %v1736_v10  ;;  %2009 = vmatpush.bf16.msrb.mxu3 %v1982_v22 }
 0x1bd   : > { %1605 = vmatmul.bf16.gmra.mxu0 %v1553_v29  ;;  %1860 = vmatmul.bf16.gmra.mxu2 %v1816_v37  ;;  %v2773_v29 = vadd.f32 -1.0, %v542_v6 }
 0x20a   : > { %v1591_v43 = vpop.f32.mrf.mxu0 }
 0x20b   : > { %v1611_v48 = vmul.f32 0.088388346, %v1591_v43 }
 0x20d   : > { %v4322_v18 = vadd.f32 %v1611_v48, %v552_v57 }
 0x20f   : > { %v1628_v50 = vsel %vm1627_vm0, %v4322_v18, -inf }
 0x210   : > { %v1846_v15 = vpop.f32.mrf.mxu2  ;;  %1629 = vmax.xlane.f32.xlu0 %v1628_v50 }
 0x211   : > { %v1866_v39 = vmul.f32 0.088388346, %v1846_v15 }
 0x212   : > { %v1593_v63 = vpop.f32.mrf.mxu0 }
 0x213   : > { %v1612_v35 = vmul.f32 0.088388346, %v1593_v63  ;;  %v4326_v11 = vadd.f32 %v1866_v39, %v552_v57  ;;  %v558_v57 = vmul.f32 1e+09, %v2773_v29  ;;  %v2774_v39 = vadd.f32 -1.0, %v543_v47 }
 0x215   : > { %v1882_v33 = vsel %vm1627_vm0, %v4326_v11, -inf  ;;  %v4330_v25 = vadd.f32 %v1612_v35, %v553_v53  ;;  %v559_v35 = vmul.f32 1e+09, %v2774_v39 }
 0x216   : > { %1883 = vmax.xlane.f32.xlu1 %v1882_v33 }
 0x217   : > { %v1631_v26 = vsel %vm1627_vm0, %v4330_v25, -inf }
 0x218   : > { %v1848_v54 = vpop.f32.mrf.mxu2  ;;  %1632 = vmax.xlane.f32.xlu0 %v1631_v26 }
 0x219   : > { %v1867_v34 = vmul.f32 0.088388346, %v1848_v54 }
 0x21a   : > { %v1596_v62 = vpop.f32.mrf.mxu0 }
 0x21b   : > { %v1613_v19 = vmul.f32 0.088388346, %v1596_v62  ;;  %v4334_v40 = vadd.f32 %v1867_v34, %v553_v53 }
 0x21d   : > { %v1885_v12 = vsel %vm1627_vm0, %v4334_v40, -inf  ;;  %v4338_v55 = vadd.f32 %v1613_v19, %v554_v45 }
 0x21e   : > { %1886 = vmax.xlane.f32.xlu1 %v1885_v12 }
 0x21f   : > { %v1634_v46 = vsel %vm1627_vm0, %v4338_v55, -inf }
 0x220   : > { %v1851_v36 = vpop.f32.mrf.mxu2  ;;  %1635 = vmax.xlane.f32.xlu2 %v1634_v46 }
 0x221   : > { %v1868_v61 = vmul.f32 0.088388346, %v1851_v36 }
 0x222   : > { %v1598_v60 = vpop.f32.mrf.mxu0 }
 0x223   : > { %v1614_v2 = vmul.f32 0.088388346, %v1598_v60  ;;  %v4342_v42 = vadd.f32 %v1868_v61, %v554_v45 }
 0x225   : > { %v1888_v14 = vsel %vm1627_vm0, %v4342_v42, -inf  ;;  %v4346_v20 = vadd.f32 %v1614_v2, %v555_v41 }
 0x226   : > { %1889 = vmax.xlane.f32.xlu0 %v1888_v14 }
 0x227   : > { %v1637_v7 = vsel %vm1627_vm0, %v4346_v20, -inf }
 0x228   : > { %v1853_v38 = vpop.f32.mrf.mxu2  ;;  %1638 = vmax.xlane.f32.xlu2 %v1637_v7 }
 0x229   : > { %v1869_v58 = vmul.f32 0.088388346, %v1853_v38 }
 0x22a   : > { %v1601_v59 = vpop.f32.mrf.mxu0 }
 0x22b   : > { %v1615_v49 = vmul.f32 0.088388346, %v1601_v59  ;;  %v4350_v17 = vadd.f32 %v1869_v58, %v555_v41 }
 0x22d   : > { %v1891_v52 = vsel %vm1627_vm0, %v4350_v17, -inf  ;;  %v4354_v32 = vadd.f32 %v1615_v49, %v556_v51 }
 0x22e   : > { %1892 = vmax.xlane.f32.xlu1 %v1891_v52 }
 0x22f   : > { %v1640_v4 = vsel %vm1627_vm0, %v4354_v32, -inf }
 0x230   : > { %v1856_v28 = vpop.f32.mrf.mxu2  ;;  %1641 = vmax.xlane.f32.xlu2 %v1640_v4 }
 0x231   : > { %v1870_v5 = vmul.f32 0.088388346, %v1856_v28 }
 0x232   : > { %v1603_v0 = vpop.f32.mrf.mxu0 }
 0x233   : > { %v1616_v8 = vmul.f32 0.088388346, %v1603_v0  ;;  %v4358_v9 = vadd.f32 %v1870_v5, %v556_v51 }
 0x235   : > { %v1894_v10 = vsel %vm1627_vm0, %v4358_v9, -inf  ;;  %v4362_v22 = vadd.f32 %v1616_v8, %v557_v30 }
 0x236   : > { %1895 = vmax.xlane.f32.xlu1 %v1894_v10 }
 0x237   : > { %v1643_v37 = vsel %vm1627_vm0, %v4362_v22, -inf }
 0x238   : > { %v1858_v31 = vpop.f32.mrf.mxu2  ;;  %1644 = vmax.xlane.f32.xlu0 %v1643_v37 }
 0x239   : > { %v1871_v16 = vmul.f32 0.088388346, %v1858_v31 }
 0x23a   : > { %v1606_v43 = vpop.f32.mrf.mxu0 }
 0x23b   : > { %v1617_v48 = vmul.f32 0.088388346, %v1606_v43  ;;  %v4366_v27 = vadd.f32 %v1871_v16, %v557_v30 }
 0x23d   : > { %v1897_v50 = vsel %vm1627_vm0, %v4366_v27, -inf  ;;  %v4370_v15 = vadd.f32 %v1617_v48, %v558_v57 }
 0x23e   : > { %1898 = vmax.xlane.f32.xlu2 %v1897_v50 }
 0x23f   : > { %v1646_v53 = vsel %vm1627_vm0, %v4370_v15, -inf }
 0x240   : > { %v1861_v63 = vpop.f32.mrf.mxu2  ;;  %1647 = vmax.xlane.f32.xlu0 %v1646_v53 }
 0x241   : > { %v1872_v1 = vmul.f32 0.088388346, %v1861_v63 }
 0x242   : > { %v1608_v33 = vpop.f32.mrf.mxu0 }
 0x243   : > { %v1618_v3 = vmul.f32 0.088388346, %v1608_v33  ;;  %v4374_v26 = vadd.f32 %v1872_v1, %v558_v57 }
 0x245   : > { %v1900_v54 = vsel %vm1627_vm0, %v4374_v26, -inf  ;;  %v4378_v34 = vadd.f32 %v1618_v3, %v559_v35 }
 0x246   : > { %1901 = vmax.xlane.f32.xlu2 %v1900_v54 }
 0x247   : > { %v1649_v45 = vsel %vm1627_vm0, %v4378_v34, -inf }
 0x248   : > { %v1863_v62 = vpop.f32.mrf.mxu2  ;;  %1650 = vmax.xlane.f32.xlu1 %v1649_v45 }
 0x249   : > { %v1873_v13 = vmul.f32 0.088388346, %v1863_v62 }
 0x24b   : > { %v4382_v19 = vadd.f32 %v1873_v13, %v559_v35 }
 0x24d   : > { %v1903_v12 = vsel %vm1627_vm0, %v4382_v19, -inf }
 0x24e   : > { %1904 = vmax.xlane.f32.xlu0 %v1903_v12 }
 0x283   : > { %v1630_v56 = vpop.xlane.xlu0 %1629 }
 0x284   : > { %v1652_v46 = vsub.f32 %v4322_v18, %v1630_v56 }
 0x286   : > { %v1660_v36 = vmul.f32 1.442695, %v1652_v46 }
 0x288   : > { %3522 = vpow2.f32 %v1660_v36 }
 0x289   : > { %v1884_v61 = vpop.xlane.xlu1 %1883 }
 0x28a   : > { %v1906_v41 = vsub.f32 %v4326_v11, %v1884_v61 }
 0x28b   : > { %v1633_v60 = vpop.xlane.xlu0 %1632 }
 0x28c   : > { %v1914_v23 = vmul.f32 1.442695, %v1906_v41  ;;  %v1653_v2 = vsub.f32 %v4330_v25, %v1633_v60 }
 0x28e   : > { %v4389_v14 = vpop.eup %3522  ;;  %3524 = vpow2.f32 %v1914_v23  ;;  %v1662_v44 = vmul.f32 1.442695, %v1653_v2 }
 0x28f   : > { %v1676_v7 = vsel %vm1627_vm0, %v4389_v14, 0.0 }
 0x290   : > { %3526 = vpow2.f32 %v1662_v44  ;;  %1677 = vadd.xlane.f32.xlu1 %v1676_v7 }
 0x291   : > { %v1887_v38 = vpop.xlane.xlu1 %1886 }
 0x292   : > { %v1907_v18 = vsub.f32 %v4334_v40, %v1887_v38 }
 0x293   : > { %v1636_v58 = vpop.xlane.xlu2 %1635 }
 0x294   : > { %v4394_v51 = vpop.eup %3524  ;;  %v1916_v11 = vmul.f32 1.442695, %v1907_v18  ;;  %v1654_v59 = vsub.f32 %v4338_v55, %v1636_v58 }
 0x295   : > { %v1930_v25 = vsel %vm1627_vm0, %v4394_v51, 0.0 }
 0x296   : > { %v4399_v24 = vpop.eup %3526  ;;  %3528 = vpow2.f32 %v1916_v11  ;;  %v1664_v49 = vmul.f32 1.442695, %v1654_v59  ;;  %1931 = vadd.xlane.f32.xlu0 %v1930_v25 }
 0x297   : > { %v1679_v52 = vsel %vm1627_vm0, %v4399_v24, 0.0 }
 0x298   : > { %3530 = vpow2.f32 %v1664_v49  ;;  %1680 = vadd.xlane.f32.xlu2 %v1679_v52 }
 0x299   : > { %v1890_v40 = vpop.xlane.xlu0 %1889 }
 0x29a   : > { %v1908_v21 = vsub.f32 %v4342_v42, %v1890_v40 }
 0x29b   : > { %v1639_v4 = vpop.xlane.xlu2 %1638 }
 0x29c   : > { %v4404_v28 = vpop.eup %3528  ;;  %v1918_v55 = vmul.f32 1.442695, %v1908_v21  ;;  %v1655_v5 = vsub.f32 %v4346_v20, %v1639_v4 }
 0x29d   : > { %v1933_v30 = vsel %vm1627_vm0, %v4404_v28, 0.0 }
 0x29e   : > { %v4409_v0 = vpop.eup %3530  ;;  %3532 = vpow2.f32 %v1918_v55  ;;  %v1666_v6 = vmul.f32 1.442695, %v1655_v5  ;;  %1934 = vadd.xlane.f32.xlu1 %v1933_v30 }
 0x29f   : > { %v1682_v8 = vsel %vm1627_vm0, %v4409_v0, 0.0 }
 0x2a0   : > { %3534 = vpow2.f32 %v1666_v6  ;;  %1683 = vadd.xlane.f32.xlu2 %v1682_v8 }
 0x2a1   : > { %v1893_v42 = vpop.xlane.xlu1 %1892 }
 0x2a2   : > { %v1909_v10 = vsub.f32 %v4350_v17, %v1893_v42 }
 0x2a3   : > { %v1642_v29 = vpop.xlane.xlu2 %1641 }
 0x2a4   : > { %v4414_v37 = vpop.eup %3532  ;;  %v1920_v20 = vmul.f32 1.442695, %v1909_v10  ;;  %v1656_v31 = vsub.f32 %v4354_v32, %v1642_v29 }
 0x2a5   : > { %v1936_v16 = vsel %vm1627_vm0, %v4414_v37, 0.0 }
 0x2a6   : > { %v4419_v57 = vpop.eup %3534  ;;  %3536 = vpow2.f32 %v1920_v20  ;;  %v1668_v43 = vmul.f32 1.442695, %v1656_v31  ;;  %1937 = vadd.xlane.f32.xlu1 %v1936_v16 }
 0x2a7   : > { %v1685_v47 = vsel %vm1627_vm0, %v4419_v57, 0.0 }
 0x2a8   : > { %3538 = vpow2.f32 %v1668_v43  ;;  %1686 = vadd.xlane.f32.xlu0 %v1685_v47 }
 0x2a9   : > { %v1896_v17 = vpop.xlane.xlu1 %1895 }
 0x2aa   : > { %v1910_v48 = vsub.f32 %v4358_v9, %v1896_v17 }
 0x2ab   : > { %v1645_v50 = vpop.xlane.xlu0 %1644 }
 0x2ac   : > { %v4424_v39 = vpop.eup %3536  ;;  %v1922_v32 = vmul.f32 1.442695, %v1910_v48  ;;  %v1657_v53 = vsub.f32 %v4362_v22, %v1645_v50 }
 0x2ad   : > { %v1939_v63 = vsel %vm1627_vm0, %v4424_v39, 0.0 }
 0x2ae   : > { %v4429_v1 = vpop.eup %3538  ;;  %3540 = vpow2.f32 %v1922_v32  ;;  %v1670_v35 = vmul.f32 1.442695, %v1657_v53  ;;  %1940 = vadd.xlane.f32.xlu2 %v1939_v63 }
 0x2af   : > { %v1688_v33 = vsel %vm1627_vm0, %v4429_v1, 0.0 }
 0x2b0   : > { %3542 = vpow2.f32 %v1670_v35  ;;  %1689 = vadd.xlane.f32.xlu0 %v1688_v33 }
 0x2b1   : > { %v1899_v9 = vpop.xlane.xlu2 %1898 }
 0x2b2   : > { %v1911_v3 = vsub.f32 %v4366_v27, %v1899_v9 }
 0x2b3   : > { %v1648_v54 = vpop.xlane.xlu0 %1647 }
 0x2b4   : > { %v4434_v45 = vpop.eup %3540  ;;  %v1924_v22 = vmul.f32 1.442695, %v1911_v3  ;;  %v1658_v62 = vsub.f32 %v4370_v15, %v1648_v54  ;;  %v3410_v3 = vld [vmem:[#allocation10 + $0x74] sm:$0xf0] }
 0x2b5   : > { %v1942_v13 = vsel %vm1627_vm0, %v4434_v45, 0.0 }
 0x2b6   : > { %v4439_v12 = vpop.eup %3542  ;;  %3544 = vpow2.f32 %v1924_v22  ;;  %v1672_v56 = vmul.f32 1.442695, %v1658_v62  ;;  %1943 = vadd.xlane.f32.xlu2 %v1942_v13  ;;  %v3291_v22 = vld [vmem:[#allocation10 + $0x78] sm:$0xf0]  ;;  %v3281_v62 = vld [vmem:[#allocation10 + $0x60] sm:$0xf] }
 0x2b7   : > { %v1691_v46 = vsel %vm1627_vm0, %v4439_v12, 0.0  ;;  %v3408_v13 = vld [vmem:[#allocation10 + $0x64] sm:$0xf0] }
 0x2b8   : > { %3546 = vpow2.f32 %v1672_v56  ;;  %1692 = vadd.xlane.f32.xlu1 %v1691_v46  ;;  %v3407_v46 = vld [vmem:[#allocation10 + $0x64] sm:$0xf] }
 0x2b9   : > { %v1902_v27 = vpop.xlane.xlu2 %1901 }
 0x2ba   : > { %v1912_v36 = vsub.f32 %v4374_v26, %v1902_v27  ;;  %v3283_v27 = vld [vmem:[#allocation10 + $0x68] sm:$0xf0] }
 0x2bb   : > { %v1651_v61 = vpop.xlane.xlu1 %1650 }
 0x2bc   : > { %v4444_v41 = vpop.eup %3544  ;;  %v1926_v15 = vmul.f32 1.442695, %v1912_v36  ;;  %v1659_v60 = vsub.f32 %v4378_v34, %v1651_v61  ;;  %v3406_v61 = vld [vmem:[#allocation10 + $0x54] sm:$0xf0] }
 0x2bd   : > { %v1945_v23 = vsel %vm1627_vm0, %v4444_v41, 0.0 }
 0x2be   : > { %v4449_v2 = vpop.eup %3546  ;;  %3548 = vpow2.f32 %v1926_v15  ;;  %v1674_v44 = vmul.f32 1.442695, %v1659_v60  ;;  %1946 = vadd.xlane.f32.xlu0 %v1945_v23  ;;  %v3405_v15 = vld [vmem:[#allocation10 + $0x54] sm:$0xf]  ;;  %v3275_v60 = vld [vmem:[#allocation10 + $0x58] sm:$0xf0] }
 0x2bf   : > { %v1694_v7 = vsel %vm1627_vm0, %v4449_v2, 0.0 }
 0x2c0   : > { %3550 = vpow2.f32 %v1674_v44  ;;  %1695 = vadd.xlane.f32.xlu1 %v1694_v7  ;;  %v3286_v44 = vor.u32 %v3407_v46, %v3283_v27  ;;  %v3225_v7 = vld [vmem:[#allocation10 + $0xf0] sm:$0xf]  ;;  %v3422_v46 = vld [vmem:[#allocation10 + $0xd4] sm:$0xf0]  ;;  %v3421_v27 = vld [vmem:[#allocation10 + $0xd4] sm:$0xf] }
 0x2c1   : > { %v1905_v26 = vpop.xlane.xlu0 %1904 }
 0x2c2   : > { %v1913_v38 = vsub.f32 %v4382_v19, %v1905_v26  ;;  %v3426_v26 = vld [vmem:[#allocation10 + $0xf4] sm:$0xf0] }
 0x2c4   : > { %v4454_v18 = vpop.eup %3548  ;;  %v1928_v58 = vmul.f32 1.442695, %v1913_v38  ;;  %v3425_v38 = vld [vmem:[#allocation10 + $0xf4] sm:$0xf] }
 0x2c5   : > { %v1948_v34 = vsel %vm1627_vm0, %v4454_v18, 0.0 }
 0x2c6   : > { %v4458_v11 = vpop.eup %3550  ;;  %3552 = vpow2.f32 %v1928_v58  ;;  %1949 = vadd.xlane.f32.xlu0 %v1948_v34  ;;  %v3226_v34 = vor.u32 %v3426_v26, %v3225_v7  ;;  %v3419_v7 = vld [vmem:[#allocation10 + $0xc4] sm:$0xf] }
 0x2c7   : > { %v1697_v59 = vsel %vm1627_vm0, %v4458_v11, 0.0 }
 0x2c8   : > { %1698 = vadd.xlane.f32.xlu2 %v1697_v59  ;;  %v3227_v59 = vld [vmem:[#allocation10 + $0xf8] sm:$0xf0]  ;;  %2131 = vmatpush.bf16.msra.mxu0 %v3226_v34  ;;  %v3398_v34 = vld [vmem:[#allocation10 + $0x14] sm:$0xf0] }
 0x2cc   : > { %v4462_v25 = vpop.eup %3552 }
 0x2cd   : > { %v1951_v49 = vsel %vm1627_vm0, %v4462_v25, 0.0 }
 0x2ce   : > { %1952 = vadd.xlane.f32.xlu1 %v1951_v49 }
 0x303   : > { %v1678_v19 = vpop.xlane.xlu1 %1677 }
 0x304   : > { %3554 = vrcp.f32 %v1678_v19 }
 0x309   : > { %v1932_v40 = vpop.xlane.xlu0 %1931 }
 0x30a   : > { %v3555_v21 = vpop.eup %3554 }
 0x30b   : > { %v1681_v52 = vpop.xlane.xlu2 %1680  ;;  %v1708_v5 = vmul.f32 %v3555_v21, %v4389_v14 }
 0x30c   : > { %3556 = vrcp.f32 %v1681_v52  ;;  %v3230_v52 = vor.u32 %v3425_v38, %v3227_v59  ;;  %v3397_v59 = vld [vmem:[#allocation10 + $0x14] sm:$0xf] }
 0x30d   : > { %3558 = vrcp.f32 %v1932_v40  ;;  %v3217_v40 = vld [vmem:[#allocation10 + $0xe0] sm:$0xf] }
 0x30e   : > { %2160 = vmatpush.bf16.msra.mxu1 %v3230_v52 }
 0x311   : > { %v1935_v4 = vpop.xlane.xlu1 %1934 }
 0x312   : > { %v3557_v55 = vpop.eup %3556  ;;  %3560 = vrcp.f32 %v1935_v4  ;;  %v3278_v4 = vor.u32 %v3405_v15, %v3275_v60  ;;  %v3399_v15 = vld [vmem:[#allocation10 + $0x24] sm:$0xf]  ;;  %v3251_v60 = vld [vmem:[#allocation10 + $0x28] sm:$0xf0] }
 0x313   : > { %v1709_v30 = vmul.f32 %v3557_v55, %v4399_v24  ;;  %v3559_v8 = vpop.eup %3558  ;;  %v1684_v42 = vpop.xlane.xlu2 %1683  ;;  %v3424_v55 = vld [vmem:[#allocation10 + $0xe4] sm:$0xf0] }
 0x314   : > { %v1962_v29 = vmul.f32 %v3559_v8, %v4394_v51  ;;  %3562 = vrcp.f32 %v1684_v42  ;;  %v3265_v8 = vld [vmem:[#allocation10 + $0x40] sm:$0xf]  ;;  %v3404_v42 = vld [vmem:[#allocation10 + $0x44] sm:$0xf0] }
 0x315   : > { %v1716_v6 = vpack.c.bf16 %v1709_v30, %v1708_v5  ;;  %v3423_v5 = vld [vmem:[#allocation10 + $0xe4] sm:$0xf]  ;;  %v3219_v30 = vld [vmem:[#allocation10 + $0xe8] sm:$0xf0] }
 0x317   : > { %3159 = vmatmul.msk.bf16.vlgmr.msrb.gmra.mxu1 %vm1627_vm0, %v1716_v6 }
 0x318   : > { %v3561_v10 = vpop.eup %3560 }
 0x319   : > { %v1963_v20 = vmul.f32 %v3561_v10, %v4404_v28  ;;  %v1938_v43 = vpop.xlane.xlu1 %1937  ;;  %v3218_v10 = vor.u32 %v3424_v55, %v3217_v40  ;;  %v3193_v40 = vld [vmem:[#allocation10 + $0xb0] sm:$0xf] }
 0x31a   : > { %v3563_v14 = vpop.eup %3562 }
 0x31b   : > { %v1970_v31 = vpack.c.bf16 %v1963_v20, %v1962_v29  ;;  %v1687_v16 = vpop.xlane.xlu0 %1686  ;;  %v1710_v17 = vmul.f32 %v3563_v14, %v4409_v0  ;;  %v3289_v0 = vld [vmem:[#allocation10 + $0x70] sm:$0xf]  ;;  %v3222_v29 = vor.u32 %v3423_v5, %v3219_v30  ;;  %2132 = vmatpush.bf16.msra.mxu0 %v3218_v10  ;;  %v3195_v5 = vld [vmem:[#allocation10 + $0xb8] sm:$0xf0]  ;;  %v3233_v30 = vld [vmem:[#allocation10] sm:$0xf] }
 0x31c   : > { %3564 = vrcp.f32 %v1687_v16  ;;  %v3290_v54 = vor.u32 %v3410_v3, %v3289_v0  ;;  %v3395_v10 = vld [vmem:[#allocation10 + $0x4] sm:$0xf] }
 0x31d   : > { %3163 = vmatmul.msk.bf16.vlgmr.msrb.gmra.mxu3 %vm1627_vm0, %v1970_v31  ;;  %3566 = vrcp.f32 %v1938_v43  ;;  %v3267_v31 = vld [vmem:[#allocation10 + $0x48] sm:$0xf0]  ;;  %v3266_v43 = vor.u32 %v3404_v42, %v3265_v8  ;;  %2161 = vmatpush.bf16.msra.mxu1 %v3222_v29 }
 0x31e   : > { %2269 = vmatpush.bf16.msra.mxu2 %v3290_v54  ;;  %v3235_v29 = vld [vmem:[#allocation10 + $0x8] sm:$0xf0] }
 0x321   : > { %v1941_v24 = vpop.xlane.xlu2 %1940 }
 0x322   : > { %v3565_v47 = vpop.eup %3564  ;;  %3568 = vrcp.f32 %v1941_v24 }
 0x323   : > { %v1711_v48 = vmul.f32 %v3565_v47, %v4419_v57  ;;  %v3567_v51 = vpop.eup %3566  ;;  %v1690_v32 = vpop.xlane.xlu0 %1689  ;;  %v3409_v57 = vld [vmem:[#allocation10 + $0x74] sm:$0xf]  ;;  %v3257_v47 = vld [vmem:[#allocation10 + $0x30] sm:$0xf] }
 0x324   : > { %v1964_v53 = vmul.f32 %v3567_v51, %v4414_v37  ;;  %3570 = vrcp.f32 %v1690_v32  ;;  %v3294_v56 = vor.u32 %v3409_v57, %v3291_v22  ;;  %v3273_v37 = vld [vmem:[#allocation10 + $0x50] sm:$0xf]  ;;  %v3401_v32 = vld [vmem:[#allocation10 + $0x34] sm:$0xf] }
 0x325   : > { %v1717_v50 = vpack.c.bf16 %v1711_v48, %v1710_v17  ;;  %v3274_v21 = vor.u32 %v3406_v61, %v3273_v37  ;;  %v3402_v17 = vld [vmem:[#allocation10 + $0x34] sm:$0xf0] }
 0x326   : > { %2298 = vmatpush.bf16.msra.mxu3 %v3294_v56  ;;  %v3209_v56 = vld [vmem:[#allocation10 + $0xd0] sm:$0xf] }
 0x327   : > { %3160 = vmatmul.msk.bf16.gmra.mxu1 %vm1627_vm0, %v1717_v50  ;;  %v3210_v37 = vor.u32 %v3422_v46, %v3209_v56 }
 0x328   : > { %v3569_v28 = vpop.eup %3568 }
 0x329   : > { %v1965_v63 = vmul.f32 %v3569_v28, %v4424_v39  ;;  %v1944_v9 = vpop.xlane.xlu2 %1943  ;;  %v3282_v39 = vor.u32 %v3408_v13, %v3281_v62  ;;  %v3259_v28 = vld [vmem:[#allocation10 + $0x38] sm:$0xf0]  ;;  %2133 = vmatpush.bf16.msra.mxu0 %v3210_v37 }
 0x32a   : > { %v3571_v36 = vpop.eup %3570  ;;  %2299 = vmatpush.bf16.msra.mxu3 %v3286_v44  ;;  %v3254_v44 = vor.u32 %v3399_v15, %v3251_v60 }
 0x32b   : > { %v1693_v35 = vpop.xlane.xlu1 %1692  ;;  %v1971_v33 = vpack.c.bf16 %v1965_v63, %v1964_v53  ;;  %v1712_v49 = vmul.f32 %v3571_v36, %v4429_v1  ;;  %2270 = vmatpush.bf16.msra.mxu2 %v3282_v39  ;;  %v3258_v53 = vor.u32 %v3402_v17, %v3257_v47  ;;  %v3211_v36 = vld [vmem:[#allocation10 + $0xd8] sm:$0xf0]  ;;  %v3400_v39 = vld [vmem:[#allocation10 + $0x24] sm:$0xf0]  ;;  %v3414_v47 = vld [vmem:[#allocation10 + $0x94] sm:$0xf0] }
 0x32c   : > { %3572 = vrcp.f32 %v1693_v35  ;;  %v3413_v17 = vld [vmem:[#allocation10 + $0x94] sm:$0xf] }
 0x32d   : > { %3164 = vmatmul.msk.bf16.gmra.mxu3 %vm1627_vm0, %v1971_v33  ;;  %3574 = vrcp.f32 %v1944_v9 }
 0x32e   : > { %2300 = vmatpush.bf16.msra.mxu3 %v3278_v4  ;;  %v3417_v4 = vld [vmem:[#allocation10 + $0xb4] sm:$0xf] }
 0x32f   : > { %2271 = vmatpush.bf16.msra.mxu2 %v3274_v21  ;;  %v3418_v21 = vld [vmem:[#allocation10 + $0xb4] sm:$0xf0]  ;;  %v3198_v8 = vor.u32 %v3417_v4, %v3195_v5 }
 0x330   : > { %v3194_v55 = vor.u32 %v3418_v21, %v3193_v40  ;;  %v3604_v21 = vld [vmem:[%s4029_s2] sm:$0xff] }
 0x331   : > { %v1947_v23 = vpop.xlane.xlu0 %1946 }
 0x332   : > { %v3573_v58 = vpop.eup %3572  ;;  %3576 = vrcp.f32 %v1947_v23  ;;  %v3201_v23 = vld [vmem:[#allocation10 + $0xc0] sm:$0xf] }
 0x333   : > { %v1713_v19 = vmul.f32 %v3573_v58, %v4439_v12  ;;  %v3575_v20 = vpop.eup %3574  ;;  %v1696_v1 = vpop.xlane.xlu1 %1695  ;;  %v3403_v12 = vld [vmem:[#allocation10 + $0x44] sm:$0xf]  ;;  %2272 = vmatpush.bf16.msra.mxu2 %v3266_v43  ;;  %v3241_v58 = vld [vmem:[#allocation10 + $0x10] sm:$0xf]  ;;  %v3187_v43 = vld [vmem:[#allocation10 + $0xa8] sm:$0xf0] }
 0x334   : > { %v1966_v14 = vmul.f32 %v3575_v20, %v4434_v45  ;;  %3578 = vrcp.f32 %v1696_v1  ;;  %v3270_v48 = vor.u32 %v3403_v12, %v3267_v31  ;;  %v3262_v45 = vor.u32 %v3401_v32, %v3259_v28  ;;  %v3185_v1 = vld [vmem:[#allocation10 + $0xa0] sm:$0xf]  ;;  %v3416_v12 = vld [vmem:[#allocation10 + $0xa4] sm:$0xf0]  ;;  %v3415_v31 = vld [vmem:[#allocation10 + $0xa4] sm:$0xf] }
 0x335   : > { %v1718_v6 = vpack.c.bf16 %v1713_v19, %v1712_v49  ;;  %v3242_v49 = vor.u32 %v3398_v34, %v3241_v58  ;;  %v3243_v19 = vld [vmem:[#allocation10 + $0x18] sm:$0xf0]  ;;  %v3238_v20 = vor.u32 %v3395_v10, %v3235_v29  ;;  %v3169_v32 = vld [vmem:[#allocation10 + $0x80] sm:$0xf]  ;;  %v3412_v28 = vld [vmem:[#allocation10 + $0x84] sm:$0xf0] }
 0x336   : > { %2301 = vmatpush.bf16.msra.mxu3 %v3270_v48  ;;  %v3246_v52 = vor.u32 %v3397_v59, %v3243_v19 }
 0x337   : > { %3161 = vmatmul.msk.bf16.gmra.mxu1 %vm1627_vm0, %v1718_v6  ;;  %2273 = vmatpush.bf16.msra.mxu2 %v3258_v53  ;;  %v3396_v6 = vld [vmem:[#allocation10 + $0x4] sm:$0xf0]  ;;  %v3411_v53 = vld [vmem:[#allocation10 + $0x84] sm:$0xf] }
 0x338   : > { %v3577_v16 = vpop.eup %3576  ;;  %v3234_v42 = vor.u32 %v3396_v6, %v3233_v30 }
 0x339   : > { %v1967_v24 = vmul.f32 %v3577_v16, %v4444_v41  ;;  %v1950_v63 = vpop.xlane.xlu0 %1949  ;;  %v3186_v16 = vor.u32 %v3416_v12, %v3185_v1 }
 0x33a   : > { %v3579_v35 = vpop.eup %3578  ;;  %2302 = vmatpush.bf16.msra.mxu3 %v3262_v45  ;;  %v3171_v45 = vld [vmem:[#allocation10 + $0x88] sm:$0xf0] }
 0x33b   : > { %v1699_v50 = vpop.xlane.xlu2 %1698  ;;  %v1972_v51 = vpack.c.bf16 %v1967_v24, %v1966_v14  ;;  %v1714_v9 = vmul.f32 %v3579_v35, %v4449_v2  ;;  %v3249_v2 = vld [vmem:[#allocation10 + $0x20] sm:$0xf]  ;;  %v3190_v14 = vor.u32 %v3415_v31, %v3187_v43  ;;  %v3177_v24 = vld [vmem:[#allocation10 + $0x90] sm:$0xf]  ;;  %v3174_v35 = vor.u32 %v3411_v53, %v3171_v45  ;;  %v3607_v43 = vld [vmem:[%s4029_s2 + $0x18] sm:$0xff] }
 0x33c   : > { %3580 = vrcp.f32 %v1699_v50  ;;  %v3250_v61 = vor.u32 %v3400_v39, %v3249_v2  ;;  %v3178_v48 = vor.u32 %v3414_v47, %v3177_v24  ;;  %v3179_v50 = vld [vmem:[#allocation10 + $0x98] sm:$0xf0]  ;;  %v3606_v31 = vld [vmem:[%s4029_s2 + $0x10] sm:$0xff] }
 0x33d   : > { %3165 = vmatmul.msk.bf16.gmra.mxu3 %vm1627_vm0, %v1972_v51  ;;  %3582 = vrcp.f32 %v1950_v63  ;;  %v3182_v51 = vor.u32 %v3413_v17, %v3179_v50  ;;  %v3170_v63 = vor.u32 %v3412_v28, %v3169_v32 }
 0x33e   : > { %2274 = vmatpush.bf16.msra.mxu2 %v3250_v61  ;;  %2303 = vmatpush.bf16.msra.mxu3 %v3254_v44 }
 0x341   : > { %v1953_v41 = vpop.xlane.xlu1 %1952 }
 0x342   : > { %v3581_v33 = vpop.eup %3580  ;;  %3584 = vrcp.f32 %v1953_v41  ;;  %2275 = vmatpush.bf16.msra.mxu2 %v3242_v49  ;;  %2304 = vmatpush.bf16.msra.mxu3 %v3246_v52 }
 0x343   : > { %v1715_v0 = vmul.f32 %v3581_v33, %v4458_v11  ;;  %v3583_v57 = vpop.eup %3582  ;;  %v3214_v11 = vor.u32 %v3421_v27, %v3211_v36 }
 0x344   : > { %v1968_v22 = vmul.f32 %v3583_v57, %v4454_v18  ;;  %v3420_v18 = vld [vmem:[#allocation10 + $0xc4] sm:$0xf0] }
 0x345   : > { %v1719_v3 = vpack.c.bf16 %v1715_v0, %v1714_v9  ;;  %2162 = vmatpush.bf16.msra.mxu1 %v3214_v11  ;;  %v3202_v26 = vor.u32 %v3420_v18, %v3201_v23 }
 0x346   : > { %2276 = vmatpush.bf16.msra.mxu2 %v3234_v42  ;;  %2305 = vmatpush.bf16.msra.mxu3 %v3238_v20 }
 0x347   : > { %3162 = vmatmul.msk.bf16.gmra.mxu1 %vm1627_vm0, %v1719_v3  ;;  %2134 = vmatpush.bf16.msra.mxu0 %v3202_v26  ;;  %v2343_v26 = vld [vmem:[%s4782_s9] sm:$0x3] }
 0x348   : > { %v3585_v54 = vpop.eup %3584  ;;  %v4493_v49 = vperm.slane %v2343_v26, 0  ;;  %v4495_v19 = vperm.slane %v2343_v26, 1 }
 0x349   : > { %v1969_v62 = vmul.f32 %v3585_v54, %v4462_v25  ;;  %v3203_v25 = vld [vmem:[#allocation10 + $0xc8] sm:$0xf0] }
 0x34a   : > { %v3206_v38 = vor.u32 %v3419_v7, %v3203_v25 }
 0x34b   : > { %v1973_v13 = vpack.c.bf16 %v1969_v62, %v1968_v22  ;;  %2135 = vmatpush.bf16.msra.mxu0 %v3194_v55  ;;  %v3605_v55 = vld [vmem:[%s4029_s2 + $0x8] sm:$0xff] }
 0x34c   : > { %2163 = vmatpush.bf16.msra.mxu1 %v3206_v38 }
 0x34d   : > { %3166 = vmatmul.msk.bf16.gmra.mxu3 %vm1627_vm0, %v1973_v13 }
 0x34f   : > { %2136 = vmatpush.bf16.msra.mxu0 %v3186_v16 }
 0x350   : > { %2164 = vmatpush.bf16.msra.mxu1 %v3198_v8 }
 0x353   : > { %2137 = vmatpush.bf16.msra.mxu0 %v3178_v48 }
 0x354   : > { %2165 = vmatpush.bf16.msra.mxu1 %v3190_v14 }
 0x357   : > { %2138 = vmatpush.bf16.msra.mxu0 %v3170_v63  ;;  %v3608_v63 = vld [vmem:[%s4029_s2 + $0x20] sm:$0xff] }
 0x358   : > { %2166 = vmatpush.bf16.msra.mxu1 %v3182_v51 }
 0x35c   : > { %2167 = vmatpush.bf16.msra.mxu1 %v3174_v35  ;;  %v3609_v35 = vld [vmem:[%s4029_s2 + $0x28] sm:$0xff] }
 0x394   : > { %v1765_v41 = vpop.f32.mrf.mxu1 }
 0x39c   : > { %v1767_v33 = vpop.f32.mrf.mxu1 }
 0x39d   : > { %v1785_v9 = vpack.c.bf16 %v1767_v33, %v1765_v41 }
 0x39f   : > { %2277 = vmatmul.bf16.vlgmr.msra.gmra.mxu2 %v1785_v9  ;;  %2306 = vmatmul.bf16.vlgmr.msra.gmra.mxu3 %v1785_v9 }
 0x3a0   : > { %v2011_v0 = vpop.f32.mrf.mxu3 }
 0x3a4   : > { %v1770_v3 = vpop.f32.mrf.mxu1 }
 0x3a8   : > { %v2013_v57 = vpop.f32.mrf.mxu3 }
 0x3a9   : > { %v2031_v54 = vpack.c.bf16 %v2013_v57, %v2011_v0 }
 0x3ab   : > { %2139 = vmatmul.bf16.vlgmr.msra.gmra.mxu0 %v2031_v54  ;;  %2168 = vmatmul.bf16.vlgmr.msra.gmra.mxu1 %v2031_v54 }
 0x3ac   : > { %v1772_v22 = vpop.f32.mrf.mxu1 }
 0x3ad   : > { %v1786_v62 = vpack.c.bf16 %v1772_v22, %v1770_v3 }
 0x3af   : > { %2282 = vmatmul.bf16.gmra.mxu2 %v1786_v62  ;;  %2311 = vmatmul.bf16.gmra.mxu3 %v1786_v62 }
 0x3b0   : > { %v2016_v13 = vpop.f32.mrf.mxu3 }
 0x3b4   : > { %v1775_v56 = vpop.f32.mrf.mxu1 }
 0x3b8   : > { %v2018_v46 = vpop.f32.mrf.mxu3 }
 0x3b9   : > { %v2032_v27 = vpack.c.bf16 %v2018_v46, %v2016_v13 }
 0x3bb   : > { %2144 = vmatmul.bf16.gmra.mxu0 %v2032_v27  ;;  %2173 = vmatmul.bf16.gmra.mxu1 %v2032_v27  ;;  %v3611_v27 = vld [vmem:[%s4029_s2 + $0x38] sm:$0xff] }
 0x3bc   : > { %v1777_v37 = vpop.f32.mrf.mxu1 }
 0x3bd   : > { %v1787_v36 = vpack.c.bf16 %v1777_v37, %v1775_v56  ;;  %v3610_v56 = vld [vmem:[%s4029_s2 + $0x30] sm:$0xff] }
 0x3bf   : > { %2287 = vmatmul.bf16.gmra.mxu2 %v1787_v36  ;;  %2316 = vmatmul.bf16.gmra.mxu3 %v1787_v36 }
 0x3c0   : > { %v2021_v2 = vpop.f32.mrf.mxu3 }
 0x3c4   : > { %v1780_v39 = vpop.f32.mrf.mxu1 }
 0x3c8   : > { %v2023_v11 = vpop.f32.mrf.mxu3 }
 0x3c9   : > { %v2033_v61 = vpack.c.bf16 %v2023_v11, %v2021_v2 }
 0x3cb   : > { %2149 = vmatmul.bf16.gmra.mxu0 %v2033_v61  ;;  %2178 = vmatmul.bf16.gmra.mxu1 %v2033_v61 }
 0x3cc   : > { %v1782_v15 = vpop.f32.mrf.mxu1 }
 0x3cd   : > { %v1788_v60 = vpack.c.bf16 %v1782_v15, %v1780_v39 }
 0x3cf   : > { %2292 = vmatmul.bf16.gmra.mxu2 %v1788_v60  ;;  %2321 = vmatmul.bf16.gmra.mxu3 %v1788_v60 }
 0x3d0   : > { %v2026_v23 = vpop.f32.mrf.mxu3 }
 0x3d8   : > { %v2028_v44 = vpop.f32.mrf.mxu3 }
 0x3d9   : > { %v2034_v18 = vpack.c.bf16 %v2028_v44, %v2026_v23  ;;  %v3612_v23 = vld [vmem:[%s4029_s2 + $0x40] sm:$0xff] }
 0x3db   : > { %2154 = vmatmul.bf16.gmra.mxu0 %v2034_v18  ;;  %2183 = vmatmul.bf16.gmra.mxu1 %v2034_v18  ;;  %v3613_v18 = vld [vmem:[%s4029_s2 + $0x48] sm:$0xff] }
 0x422   : > { %v2278_v7 = vpop.f32.mrf.mxu2  ;;  %v2307_v25 = vpop.f32.mrf.mxu3 }
 0x428   : > { %v2140_v38 = vpop.f32.mrf.mxu0  ;;  %v2169_v58 = vpop.f32.mrf.mxu1 }
 0x429   : > { %v2279_v34 = vadd.f32 %v2278_v7, %v2140_v38  ;;  %v2308_v59 = vadd.f32 %v2307_v25, %v2169_v58 }
 0x42a   : > { %v2280_v52 = vpop.f32.mrf.mxu2  ;;  %v2309_v40 = vpop.f32.mrf.mxu3 }
 0x42b   : > { %v2327_v4 = vadd.f32 %v3604_v21, %v2279_v34  ;;  %v2328_v5 = vadd.f32 %v3605_v55, %v2308_v59 }
 0x42d   : > { %v4500_v30 = vadd.f32 %v4493_v49, %v2327_v4  ;;  %v4503_v6 = vadd.f32 %v4495_v19, %v2328_v5  ;;  %v3614_v4 = vld [vmem:[%s4029_s2 + $0x50] sm:$0xff]  ;;  %v3615_v5 = vld [vmem:[%s4029_s2 + $0x58] sm:$0xff] }
 0x42f   : > { %v2365_v8 = vadd.f32 %v4503_v6, %v4500_v30 }
 0x430   : > { %v2142_v42 = vpop.f32.mrf.mxu0  ;;  %v2171_v10 = vpop.f32.mrf.mxu1 }
 0x431   : > { %v2281_v29 = vadd.f32 %v2280_v52, %v2142_v42  ;;  %v2310_v20 = vadd.f32 %v2309_v40, %v2171_v10  ;;  %2366 = vadd.xlane.f32.xlu2 %v2365_v8 }
 0x432   : > { %v2283_v1 = vpop.f32.mrf.mxu2  ;;  %v2312_v12 = vpop.f32.mrf.mxu3 }
 0x433   : > { %v2329_v16 = vadd.f32 %v3606_v31, %v2281_v29  ;;  %v2330_v14 = vadd.f32 %v3607_v43, %v2310_v20 }
 0x435   : > { %v4510_v24 = vadd.f32 %v4493_v49, %v2329_v16  ;;  %v4513_v47 = vadd.f32 %v4495_v19, %v2330_v14  ;;  %v3616_v14 = vld [vmem:[%s4029_s2 + $0x60] sm:$0xff] }
 0x437   : > { %v2368_v17 = vadd.f32 %v4513_v47, %v4510_v24 }
 0x438   : > { %v2145_v48 = vpop.f32.mrf.mxu0  ;;  %v2174_v50 = vpop.f32.mrf.mxu1 }
 0x439   : > { %v2284_v51 = vadd.f32 %v2283_v1, %v2145_v48  ;;  %v2313_v32 = vadd.f32 %v2312_v12, %v2174_v50  ;;  %2369 = vadd.xlane.f32.xlu0 %v2368_v17  ;;  %v3617_v48 = vld [vmem:[%s4029_s2 + $0x68] sm:$0xff] }
 0x43a   : > { %v2285_v28 = vpop.f32.mrf.mxu2  ;;  %v2314_v53 = vpop.f32.mrf.mxu3 }
 0x43b   : > { %v2331_v45 = vadd.f32 %v3608_v63, %v2284_v51  ;;  %v2332_v41 = vadd.f32 %v3609_v35, %v2313_v32 }
 0x43d   : > { %v4520_v33 = vadd.f32 %v4493_v49, %v2331_v45  ;;  %v4523_v9 = vadd.f32 %v4495_v19, %v2332_v41 }
 0x43f   : > { %v2371_v0 = vadd.f32 %v4523_v9, %v4520_v33 }
 0x440   : > { %v2147_v3 = vpop.f32.mrf.mxu0  ;;  %v2176_v57 = vpop.f32.mrf.mxu1 }
 0x441   : > { %v2286_v54 = vadd.f32 %v2285_v28, %v2147_v3  ;;  %v2315_v22 = vadd.f32 %v2314_v53, %v2176_v57  ;;  %2372 = vadd.xlane.f32.xlu1 %v2371_v0  ;;  %v3618_v3 = vld [vmem:[%s4029_s2 + $0x70] sm:$0xff] }
 0x442   : > { %v2288_v62 = vpop.f32.mrf.mxu2  ;;  %v2317_v13 = vpop.f32.mrf.mxu3 }
 0x443   : > { %v2333_v46 = vadd.f32 %v3610_v56, %v2286_v54  ;;  %v2334_v37 = vadd.f32 %v3611_v27, %v2315_v22  ;;  %v3619_v54 = vld [vmem:[%s4029_s2 + $0x78] sm:$0xff] }
 0x445   : > { %v4530_v36 = vadd.f32 %v4493_v49, %v2333_v46  ;;  %v4533_v2 = vadd.f32 %v4495_v19, %v2334_v37  ;;  %v3857_v46 = vmov 256.0  }
 0x446   : > { %3586 = vrcp.f32 %v3857_v46 }
 0x447   : > { %v2374_v39 = vadd.f32 %v4533_v2, %v4530_v36 }
 0x448   : > { %v2150_v11 = vpop.f32.mrf.mxu0  ;;  %v2179_v61 = vpop.f32.mrf.mxu1 }
 0x449   : > { %v2289_v15 = vadd.f32 %v2288_v62, %v2150_v11  ;;  %v2318_v60 = vadd.f32 %v2317_v13, %v2179_v61  ;;  %2375 = vadd.xlane.f32.xlu2 %v2374_v39 }
 0x44a   : > { %v2290_v25 = vpop.f32.mrf.mxu2  ;;  %v2319_v26 = vpop.f32.mrf.mxu3 }
 0x44b   : > { %v2335_v44 = vadd.f32 %v3612_v23, %v2289_v15  ;;  %v2336_v7 = vadd.f32 %v3613_v18, %v2318_v60 }
 0x44c   : > { %v3587_v27 = vpop.eup %3586 }
 0x44d   : > { %v4540_v38 = vadd.f32 %v4493_v49, %v2335_v44  ;;  %v4543_v58 = vadd.f32 %v4495_v19, %v2336_v7  ;;  %v2390_v37 = vmul.f32 256.0, %v3587_v27  ;;  %vm2394_vm1 = vweird.f32 %v3587_v27 }
 0x44f   : > { %v2377_v34 = vadd.f32 %v4543_v58, %v4540_v38  ;;  %v2391_v39 = vsub.f32 1.0, %v2390_v37 }
 0x450   : > { %v2152_v59 = vpop.f32.mrf.mxu0  ;;  %v2181_v52 = vpop.f32.mrf.mxu1 }
 0x451   : > { %v2291_v40 = vadd.f32 %v2290_v25, %v2152_v59  ;;  %v2320_v21 = vadd.f32 %v2319_v26, %v2181_v52  ;;  %2378 = vadd.xlane.f32.xlu0 %v2377_v34  ;;  %v2392_v11 = vmul.f32 %v3587_v27, %v2391_v39 }
 0x452   : > { %v2293_v42 = vpop.f32.mrf.mxu2  ;;  %v2322_v10 = vpop.f32.mrf.mxu3 }
 0x453   : > { %v2337_v55 = vadd.f32 %v3614_v4, %v2291_v40  ;;  %v2338_v8 = vadd.f32 %v3615_v5, %v2320_v21  ;;  %v2393_v61 = vadd.f32 %v3587_v27, %v2392_v11 }
 0x455   : > { %v4550_v29 = vadd.f32 %v4493_v49, %v2337_v55  ;;  %v4553_v20 = vadd.f32 %v4495_v19, %v2338_v8  ;;  %v4577_v15 = vsel %vm2394_vm1, %v3587_v27, %v2393_v61 }
 0x457   : > { %v2380_v1 = vadd.f32 %v4553_v20, %v4550_v29 }
 0x458   : > { %v2155_v12 = vpop.f32.mrf.mxu0  ;;  %v2184_v31 = vpop.f32.mrf.mxu1 }
 0x459   : > { %v2294_v16 = vadd.f32 %v2293_v42, %v2155_v12  ;;  %v2323_v43 = vadd.f32 %v2322_v10, %v2184_v31  ;;  %2381 = vadd.xlane.f32.xlu1 %v2380_v1 }
 0x45a   : > { %v2295_v28 = vpop.f32.mrf.mxu2  ;;  %v2324_v53 = vpop.f32.mrf.mxu3 }
 0x45b   : > { %v2339_v17 = vadd.f32 %v3616_v14, %v2294_v16  ;;  %v2340_v50 = vadd.f32 %v3617_v48, %v2323_v43 }
 0x45d   : > { %v4560_v51 = vadd.f32 %v4493_v49, %v2339_v17  ;;  %v4563_v32 = vadd.f32 %v4495_v19, %v2340_v50 }
 0x45f   : > { %v2383_v63 = vadd.f32 %v4563_v32, %v4560_v51 }
 0x460   : > { %v2157_v45 = vpop.f32.mrf.mxu0  ;;  %v2186_v35 = vpop.f32.mrf.mxu1 }
 0x461   : > { %v2296_v41 = vadd.f32 %v2295_v28, %v2157_v45  ;;  %v2325_v0 = vadd.f32 %v2324_v53, %v2186_v35  ;;  %2384 = vadd.xlane.f32.xlu2 %v2383_v63 }
 0x463   : > { %v2341_v57 = vadd.f32 %v3618_v3, %v2296_v41  ;;  %v2342_v22 = vadd.f32 %v3619_v54, %v2325_v0 }
 0x465   : > { %v4570_v62 = vadd.f32 %v4493_v49, %v2341_v57  ;;  %v4573_v13 = vadd.f32 %v4495_v19, %v2342_v22 }
 0x467   : > { %v2386_v56 = vadd.f32 %v4573_v13, %v4570_v62 }
 0x469   : > { %2387 = vadd.xlane.f32.xlu0 %v2386_v56 }
 0x4a4   : > { %v2367_v60 = vpop.xlane.xlu2 %2366 }
 0x4a5   : > { %v2396_v49 = vmul.f32 %v4577_v15, %v2367_v60 }
 0x4a7   : > { %v4581_v19 = vsub.f32 %v4500_v30, %v2396_v49  ;;  %v4584_v23 = vsub.f32 %v4503_v6, %v2396_v49 }
 0x4a9   : > { %v2420_v44 = vmul.f32 %v4581_v19, %v4581_v19  ;;  %v2421_v18 = vmul.f32 %v4584_v23, %v4584_v23 }
 0x4ab   : > { %v2436_v7 = vadd.f32 %v2421_v18, %v2420_v44 }
 0x4ac   : > { %v2370_v25 = vpop.xlane.xlu0 %2369 }
 0x4ad   : > { %v2397_v26 = vmul.f32 %v4577_v15, %v2370_v25  ;;  %2437 = vadd.xlane.f32.xlu1 %v2436_v7  ;;  %v2572_v25 = vld [vmem:[%s4783_s10] sm:$0x3] }
 0x4af   : > { %v4592_v34 = vsub.f32 %v4510_v24, %v2397_v26  ;;  %v4595_v30 = vsub.f32 %v4513_v47, %v2397_v26 }
 0x4b1   : > { %v2422_v6 = vmul.f32 %v4592_v34, %v4592_v34  ;;  %v2423_v59 = vmul.f32 %v4595_v30, %v4595_v30 }
 0x4b3   : > { %v2439_v52 = vadd.f32 %v2423_v59, %v2422_v6 }
 0x4b4   : > { %v2373_v40 = vpop.xlane.xlu1 %2372 }
 0x4b5   : > { %v2398_v21 = vmul.f32 %v4577_v15, %v2373_v40  ;;  %2440 = vadd.xlane.f32.xlu2 %v2439_v52  ;;  %v2594_v52 = vld [vmem:[%s4784_s11] sm:$0x3] }
 0x4b7   : > { %v4603_v4 = vsub.f32 %v4520_v33, %v2398_v21  ;;  %v4606_v24 = vsub.f32 %v4523_v9, %v2398_v21 }
 0x4b9   : > { %v2424_v47 = vmul.f32 %v4603_v4, %v4603_v4  ;;  %v2425_v55 = vmul.f32 %v4606_v24, %v4606_v24 }
 0x4bb   : > { %v2442_v5 = vadd.f32 %v2425_v55, %v2424_v47  ;;  %v4678_v47 = vperm.slane %v2572_v25, 0  ;;  %v4680_v55 = vperm.slane %v2572_v25, 1 }
 0x4bc   : > { %v2376_v8 = vpop.xlane.xlu2 %2375 }
 0x4bd   : > { %v2399_v42 = vmul.f32 %v4577_v15, %v2376_v8  ;;  %2443 = vadd.xlane.f32.xlu0 %v2442_v5 }
 0x4bf   : > { %v4614_v10 = vsub.f32 %v4530_v36, %v2399_v42  ;;  %v4617_v33 = vsub.f32 %v4533_v2, %v2399_v42  ;;  %v4682_v42 = vperm.slane %v2594_v52, 0 }
 0x4c1   : > { %v2426_v9 = vmul.f32 %v4614_v10, %v4614_v10  ;;  %v2427_v1 = vmul.f32 %v4617_v33, %v4617_v33 }
 0x4c3   : > { %v2445_v12 = vadd.f32 %v2427_v1, %v2426_v9  ;;  %v4684_v9 = vperm.slane %v2594_v52, 1 }
 0x4c4   : > { %v2379_v31 = vpop.xlane.xlu0 %2378 }
 0x4c5   : > { %v2400_v16 = vmul.f32 %v4577_v15, %v2379_v31  ;;  %2446 = vadd.xlane.f32.xlu1 %v2445_v12 }
 0x4c7   : > { %v4625_v43 = vsub.f32 %v4540_v38, %v2400_v16  ;;  %v4628_v36 = vsub.f32 %v4543_v58, %v2400_v16 }
 0x4c9   : > { %v2428_v2 = vmul.f32 %v4625_v43, %v4625_v43  ;;  %v2429_v14 = vmul.f32 %v4628_v36, %v4628_v36 }
 0x4cb   : > { %v2448_v17 = vadd.f32 %v2429_v14, %v2428_v2 }
 0x4cc   : > { %v2382_v48 = vpop.xlane.xlu1 %2381 }
 0x4cd   : > { %v2401_v50 = vmul.f32 %v4577_v15, %v2382_v48  ;;  %2449 = vadd.xlane.f32.xlu2 %v2448_v17 }
 0x4cf   : > { %v4636_v28 = vsub.f32 %v4550_v29, %v2401_v50  ;;  %v4639_v38 = vsub.f32 %v4553_v20, %v2401_v50 }
 0x4d1   : > { %v2430_v58 = vmul.f32 %v4636_v28, %v4636_v28  ;;  %v2431_v53 = vmul.f32 %v4639_v38, %v4639_v38 }
 0x4d3   : > { %v2451_v63 = vadd.f32 %v2431_v53, %v2430_v58 }
 0x4d4   : > { %v2385_v45 = vpop.xlane.xlu2 %2384 }
 0x4d5   : > { %v2402_v35 = vmul.f32 %v4577_v15, %v2385_v45  ;;  %2452 = vadd.xlane.f32.xlu0 %v2451_v63 }
 0x4d7   : > { %v4647_v41 = vsub.f32 %v4560_v51, %v2402_v35  ;;  %v4650_v29 = vsub.f32 %v4563_v32, %v2402_v35 }
 0x4d9   : > { %v2432_v20 = vmul.f32 %v4647_v41, %v4647_v41  ;;  %v2433_v0 = vmul.f32 %v4650_v29, %v4650_v29 }
 0x4db   : > { %v2454_v3 = vadd.f32 %v2433_v0, %v2432_v20 }
 0x4dc   : > { %v2388_v57 = vpop.xlane.xlu0 %2387 }
 0x4dd   : > { %v2403_v54 = vmul.f32 %v4577_v15, %v2388_v57  ;;  %2455 = vadd.xlane.f32.xlu1 %v2454_v3 }
 0x4df   : > { %v4658_v22 = vsub.f32 %v4570_v62, %v2403_v54  ;;  %v4661_v51 = vsub.f32 %v4573_v13, %v2403_v54 }
 0x4e1   : > { %v2434_v32 = vmul.f32 %v4658_v22, %v4658_v22  ;;  %v2435_v56 = vmul.f32 %v4661_v51, %v4661_v51 }
 0x4e3   : > { %v2457_v46 = vadd.f32 %v2435_v56, %v2434_v32 }
 0x4e5   : > { %2458 = vadd.xlane.f32.xlu2 %v2457_v46 }
 0x520   : > { %v2438_v27 = vpop.xlane.xlu1 %2437 }
 0x521   : > { %v2460_v37 = vmul.f32 %v2438_v27, %v4577_v15 }
 0x523   : > { %v2468_v39 = vadd.f32 1e-05, %v2460_v37 }
 0x525   : > { %3588 = vrsqrt.f32 %v2468_v39  ;;  %vm2482_vm3 = vweird.f32 %v2468_v39 }
 0x528   : > { %v2441_v62 = vpop.xlane.xlu2 %2440 }
 0x529   : > { %v2461_v11 = vmul.f32 %v2441_v62, %v4577_v15 }
 0x52b   : > { %v3589_v13 = vpop.eup %3588  ;;  %v2469_v61 = vadd.f32 1e-05, %v2461_v11 }
 0x52c   : > { %v2477_v60 = vmul.f32 %v3589_v13, %v2468_v39  ;;  %vm2483_vm2 = vweird.f32 %v3589_v13 }
 0x52d   : > { %3590 = vrsqrt.f32 %v2469_v61  ;;  %vm2484_vm4 = vmor %vm2482_vm3, %vm2483_vm2  ;;  %vm2492_vm6 = vweird.f32 %v2469_v61 }
 0x52e   : > { %v2478_v49 = vmul.f32 %v3589_v13, %v2477_v60 }
 0x530   : > { %v2479_v44 = vmul.f32 0.5, %v2478_v49  ;;  %v2444_v18 = vpop.xlane.xlu0 %2443 }
 0x531   : > { %v2462_v7 = vmul.f32 %v2444_v18, %v4577_v15 }
 0x532   : > { %v2480_v26 = vsub.f32 1.5, %v2479_v44 }
 0x533   : > { %v3591_v6 = vpop.eup %3590  ;;  %v2470_v59 = vadd.f32 1e-05, %v2462_v7 }
 0x534   : > { %v2481_v40 = vmul.f32 %v3589_v13, %v2480_v26  ;;  %v2487_v21 = vmul.f32 %v3591_v6, %v2469_v61  ;;  %vm2493_vm5 = vweird.f32 %v3591_v6 }
 0x535   : > { %3592 = vrsqrt.f32 %v2470_v59  ;;  %vm2494_vm7 = vmor %vm2492_vm6, %vm2493_vm5  ;;  %vm2502_vm9 = vweird.f32 %v2470_v59 }
 0x536   : > { %v2485_v5 = vsel %vm2484_vm4, %v3589_v13, %v2481_v40  ;;  %v2488_v8 = vmul.f32 %v3591_v6, %v2487_v21 }
 0x537   : > { %v2556_v1 = vmul.f32 %v2485_v5, %v4581_v19  ;;  %v2557_v12 = vmul.f32 %v2485_v5, %v4584_v23 }
 0x538   : > { %v2489_v31 = vmul.f32 0.5, %v2488_v8  ;;  %v2447_v16 = vpop.xlane.xlu1 %2446 }
 0x539   : > { %v2578_v2 = vmul.f32 %v4678_v47, %v2556_v1  ;;  %v2579_v14 = vmul.f32 %v4680_v55, %v2557_v12  ;;  %v2463_v17 = vmul.f32 %v2447_v16, %v4577_v15 }
 0x53a   : > { %v2490_v48 = vsub.f32 1.5, %v2489_v31 }
 0x53b   : > { %v3593_v19 = vpop.eup %3592  ;;  %v2600_v23 = vadd.f32 %v4682_v42, %v2578_v2  ;;  %v2601_v50 = vadd.f32 %v4684_v9, %v2579_v14  ;;  %v2471_v58 = vadd.f32 1e-05, %v2463_v17 }
 0x53c   : > { %v2491_v53 = vmul.f32 %v3591_v6, %v2490_v48  ;;  %v2497_v63 = vmul.f32 %v3593_v19, %v2470_v59  ;;  %vm2503_vm8 = vweird.f32 %v3593_v19 }
 0x53d   : > { %2616 = vst [vmem:[%s4694_s28] sm:$0xff] %v2600_v23  ;;  %3594 = vrsqrt.f32 %v2471_v58  ;;  %vm2504_vm10 = vmor %vm2502_vm9, %vm2503_vm8  ;;  %vm2512_vm12 = vweird.f32 %v2471_v58 }
 0x53e   : > { %2617 = vst [vmem:[%s4694_s28 + $0x8] sm:$0xff] %v2601_v50  ;;  %v2495_v45 = vsel %vm2494_vm7, %v3591_v6, %v2491_v53  ;;  %v2498_v35 = vmul.f32 %v3593_v19, %v2497_v63 }
 0x53f   : > { %v2558_v20 = vmul.f32 %v2495_v45, %v4592_v34  ;;  %v2559_v0 = vmul.f32 %v2495_v45, %v4595_v30 }
 0x540   : > { %v2499_v3 = vmul.f32 0.5, %v2498_v35  ;;  %v2450_v57 = vpop.xlane.xlu2 %2449 }
 0x541   : > { %v2580_v54 = vmul.f32 %v4678_v47, %v2558_v20  ;;  %v2581_v32 = vmul.f32 %v4680_v55, %v2559_v0  ;;  %v2464_v56 = vmul.f32 %v2450_v57, %v4577_v15 }
 0x542   : > { %v2500_v46 = vsub.f32 1.5, %v2499_v3 }
 0x543   : > { %v3595_v27 = vpop.eup %3594  ;;  %v2602_v37 = vadd.f32 %v4682_v42, %v2580_v54  ;;  %v2603_v39 = vadd.f32 %v4684_v9, %v2581_v32  ;;  %v2472_v34 = vadd.f32 1e-05, %v2464_v56 }
 0x544   : > { %v2501_v62 = vmul.f32 %v3593_v19, %v2500_v46  ;;  %v2507_v30 = vmul.f32 %v3595_v27, %v2471_v58  ;;  %vm2513_vm11 = vweird.f32 %v3595_v27 }
 0x545   : > { %2618 = vst [vmem:[%s4694_s28 + $0x10] sm:$0xff] %v2602_v37  ;;  %3596 = vrsqrt.f32 %v2472_v34  ;;  %vm2514_vm13 = vmor %vm2512_vm12, %vm2513_vm11  ;;  %vm2522_vm15 = vweird.f32 %v2472_v34 }
 0x546   : > { %2619 = vst [vmem:[%s4694_s28 + $0x18] sm:$0xff] %v2603_v39  ;;  %v2505_v11 = vsel %vm2504_vm10, %v3593_v19, %v2501_v62  ;;  %v2508_v13 = vmul.f32 %v3595_v27, %v2507_v30 }
 0x547   : > { %v2560_v61 = vmul.f32 %v2505_v11, %v4603_v4  ;;  %v2561_v60 = vmul.f32 %v2505_v11, %v4606_v24 }
 0x548   : > { %v2509_v49 = vmul.f32 0.5, %v2508_v13  ;;  %v2453_v44 = vpop.xlane.xlu0 %2452 }
 0x549   : > { %v2582_v18 = vmul.f32 %v4678_v47, %v2560_v61  ;;  %v2583_v7 = vmul.f32 %v4680_v55, %v2561_v60  ;;  %v2465_v25 = vmul.f32 %v2453_v44, %v4577_v15 }
 0x54a   : > { %v2510_v26 = vsub.f32 1.5, %v2509_v49 }
 0x54b   : > { %v3597_v6 = vpop.eup %3596  ;;  %v2604_v59 = vadd.f32 %v4682_v42, %v2582_v18  ;;  %v2605_v52 = vadd.f32 %v4684_v9, %v2583_v7  ;;  %v2473_v4 = vadd.f32 1e-05, %v2465_v25 }
 0x54c   : > { %v2511_v40 = vmul.f32 %v3595_v27, %v2510_v26  ;;  %v2517_v24 = vmul.f32 %v3597_v6, %v2472_v34  ;;  %vm2523_vm14 = vweird.f32 %v3597_v6 }
 0x54d   : > { %2620 = vst [vmem:[%s4694_s28 + $0x20] sm:$0xff] %v2604_v59  ;;  %3598 = vrsqrt.f32 %v2473_v4  ;;  %vm2524_vm0 = vmor %vm2522_vm15, %vm2523_vm14  ;;  %vm2532_vm2 = vweird.f32 %v2473_v4 }
 0x54e   : > { %2621 = vst [vmem:[%s4694_s28 + $0x28] sm:$0xff] %v2605_v52  ;;  %v2515_v21 = vsel %vm2514_vm13, %v3595_v27, %v2511_v40  ;;  %v2518_v5 = vmul.f32 %v3597_v6, %v2517_v24 }
 0x54f   : > { %v2562_v8 = vmul.f32 %v2515_v21, %v4614_v10  ;;  %v2563_v1 = vmul.f32 %v2515_v21, %v4617_v33 }
 0x550   : > { %v2519_v12 = vmul.f32 0.5, %v2518_v5  ;;  %v2456_v31 = vpop.xlane.xlu1 %2455 }
 0x551   : > { %v2584_v16 = vmul.f32 %v4678_v47, %v2562_v8  ;;  %v2585_v2 = vmul.f32 %v4680_v55, %v2563_v1  ;;  %v2466_v14 = vmul.f32 %v2456_v31, %v4577_v15 }
 0x552   : > { %v2520_v17 = vsub.f32 1.5, %v2519_v12 }
 0x553   : > { %v3599_v48 = vpop.eup %3598  ;;  %v2606_v19 = vadd.f32 %v4682_v42, %v2584_v16  ;;  %v2607_v23 = vadd.f32 %v4684_v9, %v2585_v2  ;;  %v2474_v10 = vadd.f32 1e-05, %v2466_v14 }
 0x554   : > { %v2521_v50 = vmul.f32 %v3597_v6, %v2520_v17  ;;  %v2527_v33 = vmul.f32 %v3599_v48, %v2473_v4  ;;  %vm2533_vm1 = vweird.f32 %v3599_v48 }
 0x555   : > { %2622 = vst [vmem:[%s4694_s28 + $0x30] sm:$0xff] %v2606_v19  ;;  %3600 = vrsqrt.f32 %v2474_v10  ;;  %vm2534_vm3 = vmor %vm2532_vm2, %vm2533_vm1  ;;  %vm2542_vm5 = vweird.f32 %v2474_v10 }
 0x556   : > { %2623 = vst [vmem:[%s4694_s28 + $0x38] sm:$0xff] %v2607_v23  ;;  %v2525_v58 = vsel %vm2524_vm0, %v3597_v6, %v2521_v50  ;;  %v2528_v53 = vmul.f32 %v3599_v48, %v2527_v33 }
 0x557   : > { %v2564_v63 = vmul.f32 %v2525_v58, %v4625_v43  ;;  %v2565_v45 = vmul.f32 %v2525_v58, %v4628_v36 }
 0x558   : > { %v2529_v35 = vmul.f32 0.5, %v2528_v53  ;;  %v2459_v20 = vpop.xlane.xlu2 %2458 }
 0x559   : > { %v2586_v0 = vmul.f32 %v4678_v47, %v2564_v63  ;;  %v2587_v3 = vmul.f32 %v4680_v55, %v2565_v45  ;;  %v2467_v57 = vmul.f32 %v2459_v20, %v4577_v15 }
 0x55a   : > { %v2530_v54 = vsub.f32 1.5, %v2529_v35 }
 0x55b   : > { %v3601_v32 = vpop.eup %3600  ;;  %v2608_v56 = vadd.f32 %v4682_v42, %v2586_v0  ;;  %v2609_v46 = vadd.f32 %v4684_v9, %v2587_v3  ;;  %v2475_v43 = vadd.f32 1e-05, %v2467_v57 }
 0x55c   : > { %v2531_v27 = vmul.f32 %v3599_v48, %v2530_v54  ;;  %v2537_v36 = vmul.f32 %v3601_v32, %v2474_v10  ;;  %vm2543_vm4 = vweird.f32 %v3601_v32 }
 0x55d   : > { %2624 = vst [vmem:[%s4694_s28 + $0x40] sm:$0xff] %v2608_v56  ;;  %3602 = vrsqrt.f32 %v2475_v43  ;;  %vm2544_vm6 = vmor %vm2542_vm5, %vm2543_vm4  ;;  %vm2552_vm8 = vweird.f32 %v2475_v43 }
 0x55e   : > { %2625 = vst [vmem:[%s4694_s28 + $0x48] sm:$0xff] %v2609_v46  ;;  %v2535_v37 = vsel %vm2534_vm3, %v3599_v48, %v2531_v27  ;;  %v2538_v39 = vmul.f32 %v3601_v32, %v2537_v36 }
 0x55f   : > { %v2566_v15 = vmul.f32 %v2535_v37, %v4636_v28  ;;  %v2567_v34 = vmul.f32 %v2535_v37, %v4639_v38 }
 0x560   : > { %v2539_v62 = vmul.f32 0.5, %v2538_v39 }
 0x561   : > { %v2588_v30 = vmul.f32 %v4678_v47, %v2566_v15  ;;  %v2589_v11 = vmul.f32 %v4680_v55, %v2567_v34 }
 0x562   : > { %v2540_v13 = vsub.f32 1.5, %v2539_v62 }
 0x563   : > { %v3603_v61 = vpop.eup %3602  ;;  %v2610_v60 = vadd.f32 %v4682_v42, %v2588_v30  ;;  %v2611_v49 = vadd.f32 %v4684_v9, %v2589_v11 }
 0x564   : > { %v2541_v44 = vmul.f32 %v3601_v32, %v2540_v13  ;;  %v2547_v18 = vmul.f32 %v3603_v61, %v2475_v43  ;;  %vm2553_vm7 = vweird.f32 %v3603_v61 }
 0x565   : > { %2626 = vst [vmem:[%s4694_s28 + $0x50] sm:$0xff] %v2610_v60  ;;  %vm2554_vm9 = vmor %vm2552_vm8, %vm2553_vm7 }
 0x566   : > { %2627 = vst [vmem:[%s4694_s28 + $0x58] sm:$0xff] %v2611_v49  ;;  %v2545_v28 = vsel %vm2544_vm6, %v3601_v32, %v2541_v44  ;;  %v2548_v38 = vmul.f32 %v3603_v61, %v2547_v18 }
 0x567   : > { %v2568_v7 = vmul.f32 %v2545_v28, %v4647_v41  ;;  %v2569_v25 = vmul.f32 %v2545_v28, %v4650_v29 }
 0x568   : > { %v2549_v26 = vmul.f32 0.5, %v2548_v38 }
 0x569   : > { %v2590_v6 = vmul.f32 %v4678_v47, %v2568_v7  ;;  %v2591_v59 = vmul.f32 %v4680_v55, %v2569_v25 }
 0x56a   : > { %v2550_v52 = vsub.f32 1.5, %v2549_v26 }
 0x56b   : > { %v2612_v4 = vadd.f32 %v4682_v42, %v2590_v6  ;;  %v2613_v40 = vadd.f32 %v4684_v9, %v2591_v59 }
 0x56c   : > { %v2551_v24 = vmul.f32 %v3603_v61, %v2550_v52 }
 0x56d   : > { %2628 = vst [vmem:[%s4694_s28 + $0x60] sm:$0xff] %v2612_v4 }
 0x56e   : > { %2629 = vst [vmem:[%s4694_s28 + $0x68] sm:$0xff] %v2613_v40  ;;  %v2555_v41 = vsel %vm2554_vm9, %v3603_v61, %v2551_v24 }
 0x56f   : > { %v2570_v29 = vmul.f32 %v2555_v41, %v4658_v22  ;;  %v2571_v21 = vmul.f32 %v2555_v41, %v4661_v51 }
 0x571   : > { %v2592_v5 = vmul.f32 %v4678_v47, %v2570_v29  ;;  %v2593_v8 = vmul.f32 %v4680_v55, %v2571_v21 }
 0x573   : > { %v2614_v1 = vadd.f32 %v4682_v42, %v2592_v5  ;;  %v2615_v12 = vadd.f32 %v4684_v9, %v2593_v8 }
 0x575   : > { %2630 = vst [vmem:[%s4694_s28 + $0x70] sm:$0xff] %v2614_v1 }
 0x576   : > { %2631 = vst [vmem:[%s4694_s28 + $0x78] sm:$0xff] %v2615_v12 }
 0x577 PF: > { %p25_p3 = scmp.ge.s32.totalorder %s3987_s20, 4   ;;  %s4807_s21 = smov %s3838_s22 }
 0x578   : > { %s4808_s22 = smov %s3842_s23  ;;  %s4809_s23 = smov %s3998_s18 }
 0x579   : > { %s4810_s24 = smov %s3987_s20  ;;  %27 = sbr.rel (!%p25_p3) target bundleno = 11 (0xb), region = 128 }
 0x57e   :  { %2653 = vsyncpa [#allocation3], 1 }
 0x57f   :  { %2655 = vsyncpa [#allocation3 + $0x1], 1 }
 0x580   :  { %2656 = vsyncpa [#allocation5], 1 }
 0x581   :  { %2657 = vsyncpa [#allocation8], 1 }
 0x582   :  { %2658 = vsyncpa [#allocation11], 1 }

// kernel: decoder_layer_forward.4
= control target key start
LH: loop header
LB: loop body
LE: loop exit
PB: predicated region body
PF: predicated region fallthrough
CT: control target
= control target key end

     0   :  { %s5185_s0 = inlined_call_operand.vmem [shape: f32[2,64,256], index: 0, kind: input, shape index: {}]   ;;  %s5186_s1 = inlined_call_operand.hbm [shape: f32[2,64,256], index: 1, kind: input, shape index: {}]   ;;  %s5187_s2 = inlined_call_operand.hbm [shape: f32[64,64], index: 2, kind: input, shape index: {}]   ;;  %s5188_s3 = inlined_call_operand.hbm [shape: bf16[256,256], index: 3, kind: input, shape index: {}]   ;;  %s5189_s4 = inlined_call_operand.hbm [shape: f32[1,256], index: 4, kind: input, shape index: {}]   ;;  %s5190_s5 = inlined_call_operand.hbm [shape: bf16[256,256], index: 5, kind: input, shape index: {}]   ;;  %s5191_s6 = inlined_call_operand.hbm [shape: f32[1,256], index: 6, kind: input, shape index: {}]   ;;  %s5192_s7 = inlined_call_operand.hbm [shape: bf16[256,256], index: 7, kind: input, shape index: {}]   ;;  %s5193_s8 = inlined_call_operand.hbm [shape: f32[1,256], index: 8, kind: input, shape index: {}]   ;;  %s5194_s9 = inlined_call_operand.hbm [shape: bf16[256,256], index: 9, kind: input, shape index: {}]   ;;  %s5195_s10 = inlined_call_operand.hbm [shape: f32[1,256], index: 10, kind: input, shape index: {}]   ;;  %s5196_s11 = inlined_call_operand.vmem [shape: f32[1,256], index: 11, kind: input, shape index: {}]   ;;  %s5197_s12 = inlined_call_operand.vmem [shape: f32[1,256], index: 12, kind: input, shape index: {}]   ;;  %s5198_s13 = inlined_call_operand.vmem [shape: f32[2,64,256], index: 13, kind: output, shape index: {}]  }
   0x1   :  { %5200 = sst [smem:[#allocation28_spill]] %s5187_s2 }
   0x2   :  { %5201 = sst [smem:[#allocation29_spill]] %s5189_s4 }
   0x3   :  { %5202 = sst [smem:[#allocation30_spill]] %s5191_s6 }
   0x4   :  { %5203 = sst [smem:[#allocation31_spill]] %s5196_s11 }
   0x5   :  { %5204 = sst [smem:[#allocation32_spill]] %s5197_s12 }
   0x6   :  { %5205 = sst [smem:[#allocation33_spill]] %s5198_s13 }
   0x7   :  { %18 = vsyncpa [#allocation3], 0 }
   0x8   :  { %20 = vsyncpa [#allocation3 + $0x1], 0 }
   0x9   :  { %21 = vsyncpa [#allocation5], 0 }
   0xa   :  { %22 = vsyncpa [#allocation8], 0 }
   0xb   :  { %23 = vsyncpa [#allocation11], 0 }
   0xc   :  { %24 = vsyncpa [#allocation14], 0 }
   0xd   :  { %25 = vsyncpa [#allocation17], 0  ;;  %s4290_s25 = smov 0   ;;  %s4292_s26 = smov 0  }
   0xe   :  { %s4294_s27 = smov 0   ;;  %s4296_s28 = smov 0  }
   0xf LB: > { %s5206_s2 = sld [smem:[#allocation28_spill]]  ;;  %s4314_s15 = sadd.s32 4294967295, %s4204_s28   ;;  %s4204_s28 = sphi %s4296_s28, %s5227_s28   ;;  %s4200_s27 = sphi %s4294_s27, %s5226_s27   ;;  %s4196_s26 = sphi %s4292_s26, %s5225_s26   ;;  %s4192_s25 = sphi %s4290_s25, %s5224_s25  }
  0x10   : > { %p2927_p0 = scmp.ge.s32.totalorder %s4204_s28, 1  ;;  %p78_p1 = scmp.eq.s32.totalorder %s4314_s15, 0 }
  0x11   : > { %p345_p2 = scmp.lt.s32.totalorder %s4204_s28, 3  ;;  %s4206_s17 = smov [#allocation4]  }
  0x12   : > { %s358_s18 = sshll.u32 %s4206_s17, 4  ;;  %s5208_s4 = sld [smem:[#allocation29_spill]]  ;;  %s359_s18 = int_to_ptr.vmem [resolvable:$true] %s358_s18 }
  0x13   : > { %p4319_p3 = pnand %p2927_p0, %p345_p2  ;;  %s5210_s6 = sld [smem:[#allocation30_spill]] }
  0x14   : > { %s4207_s30 = smov [#allocation7]   ;;  %s4209_s13 = smov 8  }
  0x15   : > { %s356_s14 = sshll.u32 %s5206_s2, 4  ;;  %p3655_p4 = pneg %p4319_p3  ;;  %s357_s14 = int_to_ptr.hbm [resolvable:$true] %s356_s14 }
  0x16   : > { %s387_s17 = sshll.u32 %s4207_s30, 4  ;;  %s4208_s2 = smov 128   ;;  %s388_s17 = int_to_ptr.vmem [resolvable:$true] %s387_s17 }
  0x17   : > { %p4330_p5 = pnand %p3655_p4, %p78_p1  ;;  %s4210_s23 = smov [#allocation10]  }
  0x18   : > { %s385_s21 = sshll.u32 %s5208_s4, 4  ;;  %s437_s4 = sshll.u32 %s5193_s8, 4  ;;  %s386_s21 = int_to_ptr.hbm [resolvable:$true] %s385_s21  ;;  %s438_s4 = int_to_ptr.hbm [resolvable:$true] %s437_s4 }
  0x19   : > { %s411_s29 = sshll.u32 %s5210_s6, 4  ;;  %s413_s24 = sshll.u32 %s4210_s23, 4  ;;  %s412_s29 = int_to_ptr.hbm [resolvable:$true] %s411_s29  ;;  %s414_s24 = int_to_ptr.vmem [resolvable:$true] %s413_s24 }
  0x1a   : > { %3658 = dma.hbm_to_vmem [thread:$0]  (!%p4330_p5), %s357_s14, 1024, %s359_s18, [#allocation5], %s4208_s2, %s4208_s2, %s4209_s13  }
  0x1b   : > { %3664 = dma.hbm_to_vmem [thread:$0]  (!%p4330_p5), %s386_s21, 32, %s388_s17, [#allocation8]  }
  0x1c   : > { %3670 = dma.hbm_to_vmem [thread:$0]  (!%p4330_p5), %s412_s29, 32, %s414_s24, [#allocation11]  }
  0x1d   : > { %s4211_s30 = smov [#allocation13]   ;;  %s370_s14 = sshll.u32 %s5188_s3, 4  ;;  %s371_s14 = int_to_ptr.hbm [resolvable:$true] %s370_s14 }
  0x1e   : > { %s439_s6 = sshll.u32 %s4211_s30, 4  ;;  %s396_s17 = sshll.u32 %s5190_s5, 4  ;;  %s440_s6 = int_to_ptr.vmem [resolvable:$true] %s439_s6  ;;  %s397_s17 = int_to_ptr.hbm [resolvable:$true] %s396_s17 }
  0x1f   : > { %3676 = dma.hbm_to_vmem [thread:$0]  (!%p4330_p5), %s438_s4, 32, %s440_s6, [#allocation14]  }
  0x20   : > { %s4212_s19 = smov [#allocation6]   ;;  %s4213_s11 = smov [#allocation9]  }
  0x21   : > { %s372_s20 = sshll.u32 %s4212_s19, 4  ;;  %s398_s12 = sshll.u32 %s4213_s11, 4  ;;  %s373_s20 = int_to_ptr.vmem [resolvable:$true] %s372_s20  ;;  %s399_s12 = int_to_ptr.vmem [resolvable:$true] %s398_s12 }
  0x22   : > { %3661 = dma.hbm_to_vmem [thread:$0]  (!%p4330_p5), %s371_s14, 4096, %s373_s20, [#allocation5], %s4208_s2, %s4208_s2, %s4209_s13  }
  0x23   : > { %s422_s4 = sshll.u32 %s5192_s7, 4  ;;  %s448_s30 = sshll.u32 %s5194_s9, 4  ;;  %s423_s4 = int_to_ptr.hbm [resolvable:$true] %s422_s4  ;;  %s449_s30 = int_to_ptr.hbm [resolvable:$true] %s448_s30 }
  0x24   : > { %3667 = dma.hbm_to_vmem [thread:$0]  (!%p4330_p5), %s397_s17, 4096, %s399_s12, [#allocation8], %s4208_s2, %s4208_s2, %s4209_s13  }
  0x25   : > { %s4214_s14 = smov [#allocation12]   ;;  %s4215_s21 = smov [#allocation15]  }
  0x26   : > { %s424_s18 = sshll.u32 %s4214_s14, 4  ;;  %s450_s17 = sshll.u32 %s4215_s21, 4  ;;  %s425_s18 = int_to_ptr.vmem [resolvable:$true] %s424_s18  ;;  %s451_s17 = int_to_ptr.vmem [resolvable:$true] %s450_s17 }
  0x27   : > { %3673 = dma.hbm_to_vmem [thread:$0]  (!%p4330_p5), %s423_s4, 4096, %s425_s18, [#allocation11], %s4208_s2, %s4208_s2, %s4209_s13  }
  0x28   : > { %s463_s11 = sshll.u32 %s5195_s10, 4  ;;  %s4216_s12 = smov [#allocation16]   ;;  %s464_s11 = int_to_ptr.hbm [resolvable:$true] %s463_s11 }
  0x29   : > { %3679 = dma.hbm_to_vmem [thread:$0]  (!%p4330_p5), %s449_s30, 4096, %s451_s17, [#allocation14], %s4208_s2, %s4208_s2, %s4209_s13  }
  0x2a   : > { %s465_s29 = sshll.u32 %s4216_s12, 4  ;;  %s4389_s23 = sadd.s32 1, %s4204_s28   ;;  %s466_s29 = int_to_ptr.vmem [resolvable:$true] %s465_s29 }
  0x2b   : > { %3682 = dma.hbm_to_vmem [thread:$0]  (!%p4330_p5), %s464_s11, 32, %s466_s29, [#allocation17]  }
  0x2c   : > { %s61_s4 = ssub.s32 %s4204_s28, %s4389_s23  ;;  %s64_s6 = sadd.s32 1, %s4200_s27 }
  0x2d   : > { %p62_p6 = scmp.eq.s32.totalorder %s61_s4, 0  ;;  %p71_p7 = scmp.ne.s32.totalorder %s4200_s27, %s4196_s26 }
  0x2e   : > { %p72_p8 = scmp.eq.s32.totalorder %s4204_s28, 0  ;;  %p77_p9 = scmp.ne.s32.totalorder %s4196_s26, %s4192_s25 }
  0x2f   : > { %s4400_s24 = scalar_select %p62_p6, %s4200_s27, %s64_s6  }
  0x30   : > { %p73_p10 = por %p72_p8, %p71_p7  ;;  %p4404_p11 = por %p78_p1, %p77_p9 }
  0x31   : > { %p3696_p12 = scmp.lt.s32.totalorder %s4204_s28, 2  ;;  %s490_s13 = sand.u32 1, %s4200_s27  }
  0x32   : > { %s2938_s22 = sshll.u32 %s490_s13, 7  ;;  %s3486_s30 = sshll.u32 %s4204_s28, 7 }
  0x33   : > { %s499_s21 = scalar_lea.hbm %s5186_s1, %s3486_s30  ;;  %s494_s17 = scalar_lea.vmem [#allocation2], %s2938_s22 }
  0x34   : > { %s502_s19 = sshll.u32 %s494_s17, 4  ;;  %s500_s20 = sshll.u32 %s499_s21, 4  ;;  %s503_s19 = int_to_ptr.vmem [resolvable:$true] %s502_s19  ;;  %s501_s20 = int_to_ptr.hbm [resolvable:$true] %s500_s20 }
  0x35   : > { %p4414_p13 = pnand %p3696_p12, %p73_p10  ;;  %s491_s11 = scalar_lea.sflag [#allocation3], %s490_s13 }
  0x36   : > { %s4120_s12 = sshra.s32 %s501_s20, 4  ;;  %s4127_s6 = scalar_lea.hbm %s5186_s1, 256  ;;  %s4121_s12 = int_to_ptr.hbm [resolvable:$true] %s4120_s12 }
  0x37   : > { %s4122_s29 = scalar_lea.hbm %s4121_s12, 128  ;;  %p4124_p2 = pneg %p4414_p13 }
  0x38   : > { %p4123_p0 = scmp.ne.s32.totalorder %s4121_s12, %s4122_s29  ;;  %p4128_p6 = scmp.lt.s32.totalorder %s4121_s12, %s5186_s1 }
  0x39   : > { %p4129_p7 = scmp.lt.s32.totalorder %s4127_s6, %s4122_s29 }
  0x3a   : > { %p4125_p4 = pnand %p4124_p2, %p4123_p0 }
  0x3b   : > { %p4130_p8 = por %p4129_p7, %p4128_p6 }
  0x3c   : > { %p4126_p5 = pneg %p4125_p4 }
  0x3e   : > { %p4131_p9 = pnand %p4130_p8, %p4126_p5 }
  0x40   : > { %4134 = shalt.err (!%p4131_p9)
}
  0x41   : > { %s4217_s13 = smov 256   ;;  %s4218_s14 = smov 16  }
  0x42   : > { %3686 = dma.hbm_to_vmem [thread:$0]  (!%p4414_p13), %s501_s20, 2048, %s503_s19, %s491_s11, %s4217_s13, %s4217_s13, %s4218_s14  }
  0x43   : > { %514 = sbr.rel (%p4319_p3) target bundleno = 1417 (0x589), region = 72 }
  0x48   : > { %s516_s18 = sand.u32 1, %s4196_s26  }
  0x49   : > { %s2942_s21 = sshll.u32 %s516_s18, 7  ;;  %s517_s17 = scalar_lea.sflag [#allocation3], %s516_s18 }
  0x4a   : > { %s4431_s28 = scalar_lea.vmem [#allocation2], %s2942_s21 }
  0x4b   : > { %4167 = dma.done.wait (%p4404_p11), %s517_s17, 2048  }
  0x4c   : > { %4169 = vsyncadd (%p4404_p11), %s517_s17, 4294965248 }
  0x4d   : > { %4171 = dma.done.wait (%p78_p1), [#allocation5], 5120  }
  0x4e   : > { %4173 = vsyncadd (%p78_p1), [#allocation5], 4294962176 }
  0x4f   : > { %4175 = dma.done.wait (%p78_p1), [#allocation8], 4128  }
  0x50   : > { %4177 = vsyncadd (%p78_p1), [#allocation8], 4294963168 }
  0x51   : > { %4179 = dma.done.wait (%p78_p1), [#allocation11], 4128  }
  0x52   : > { %4181 = vsyncadd (%p78_p1), [#allocation11], 4294963168 }
  0x53   : > { %4183 = dma.done.wait (%p78_p1), [#allocation14], 4128  }
  0x54   : > { %4185 = vsyncadd (%p78_p1), [#allocation14], 4294963168 }
  0x55   : > { %4187 = dma.done.wait (%p78_p1), [#allocation17], 32  }
  0x56   : > { %4189 = vsyncadd (%p78_p1), [#allocation17], 4294967264  ;;  %v3022_v0 = vld [vmem:[#allocation6 + $0x70] sm:$0xf]  ;;  %v3504_v1 = vld [vmem:[#allocation6 + $0x74] sm:$0xf0] }
  0x57   : > { %v3086_v2 = vld [vmem:[#allocation6 + $0xf0] sm:$0xf]  ;;  %v3023_v3 = vor.u32 %v3504_v1, %v3022_v0  ;;  %v3520_v4 = vld [vmem:[#allocation6 + $0xf4] sm:$0xf0]  ;;  %v3503_v5 = vld [vmem:[#allocation6 + $0x74] sm:$0xf] }
  0x58   : > { %v3024_v6 = vld [vmem:[#allocation6 + $0x78] sm:$0xf0]  ;;  %v3087_v7 = vor.u32 %v3520_v4, %v3086_v2  ;;  %v3519_v9 = vld [vmem:[#allocation6 + $0xf4] sm:$0xf]  ;;  %v3014_v11 = vld [vmem:[#allocation6 + $0x60] sm:$0xf] }
  0x59   : > { %v3027_v8 = vor.u32 %v3503_v5, %v3024_v6  ;;  %v3088_v10 = vld [vmem:[#allocation6 + $0xf8] sm:$0xf0]  ;;  %895 = vmatpush.bf16.msra.mxu0 %v3023_v3  ;;  %v3502_v13 = vld [vmem:[#allocation6 + $0x64] sm:$0xf0]  ;;  %v3078_v14 = vld [vmem:[#allocation6 + $0xe0] sm:$0xf] }
  0x5a   : > { %v3091_v12 = vor.u32 %v3519_v9, %v3088_v10  ;;  %v3518_v15 = vld [vmem:[#allocation6 + $0xe4] sm:$0xf0]  ;;  %924 = vmatpush.bf16.msra.mxu1 %v3087_v7  ;;  %v3015_v16 = vor.u32 %v3502_v13, %v3014_v11  ;;  %v3501_v18 = vld [vmem:[#allocation6 + $0x64] sm:$0xf]  ;;  %v3016_v19 = vld [vmem:[#allocation6 + $0x68] sm:$0xf0] }
  0x5b   : > { %953 = vmatpush.bf16.msra.mxu2 %v3027_v8  ;;  %v3079_v17 = vor.u32 %v3518_v15, %v3078_v14  ;;  %v3517_v20 = vld [vmem:[#allocation6 + $0xe4] sm:$0xf]  ;;  %v3019_v21 = vor.u32 %v3501_v18, %v3016_v19  ;;  %v3080_v22 = vld [vmem:[#allocation6 + $0xe8] sm:$0xf0]  ;;  %v3006_v23 = vld [vmem:[#allocation6 + $0x50] sm:$0xf] }
  0x5c   : > { %982 = vmatpush.bf16.msra.mxu3 %v3091_v12  ;;  %v3500_v24 = vld [vmem:[#allocation6 + $0x54] sm:$0xf0]  ;;  %v3083_v25 = vor.u32 %v3517_v20, %v3080_v22  ;;  %v3070_v26 = vld [vmem:[#allocation6 + $0xd0] sm:$0xf]  ;;  %v3499_v28 = vld [vmem:[#allocation6 + $0x54] sm:$0xf] }
  0x5d   : > { %v3516_v27 = vld [vmem:[#allocation6 + $0xd4] sm:$0xf0]  ;;  %896 = vmatpush.bf16.msra.mxu0 %v3015_v16  ;;  %v3007_v29 = vor.u32 %v3500_v24, %v3006_v23  ;;  %v3008_v30 = vld [vmem:[#allocation6 + $0x58] sm:$0xf0]  ;;  %v3515_v31 = vld [vmem:[#allocation6 + $0xd4] sm:$0xf] }
  0x5e   : > { %v3072_v32 = vld [vmem:[#allocation6 + $0xd8] sm:$0xf0]  ;;  %925 = vmatpush.bf16.msra.mxu1 %v3079_v17  ;;  %v3071_v33 = vor.u32 %v3516_v27, %v3070_v26  ;;  %v3011_v34 = vor.u32 %v3499_v28, %v3008_v30  ;;  %v2998_v35 = vld [vmem:[#allocation6 + $0x40] sm:$0xf]  ;;  %v3498_v36 = vld [vmem:[#allocation6 + $0x44] sm:$0xf0] }
  0x5f   : > { %954 = vmatpush.bf16.msra.mxu2 %v3019_v21  ;;  %v3062_v37 = vld [vmem:[#allocation6 + $0xc0] sm:$0xf]  ;;  %v3075_v38 = vor.u32 %v3515_v31, %v3072_v32  ;;  %v3514_v39 = vld [vmem:[#allocation6 + $0xc4] sm:$0xf0]  ;;  %v3497_v40 = vld [vmem:[#allocation6 + $0x44] sm:$0xf]  ;;  %v2999_v44 = vor.u32 %v3498_v36, %v2998_v35 }
  0x60   : > { %983 = vmatpush.bf16.msra.mxu3 %v3083_v25  ;;  %v3000_v41 = vld [vmem:[#allocation6 + $0x48] sm:$0xf0]  ;;  %v3513_v42 = vld [vmem:[#allocation6 + $0xc4] sm:$0xf]  ;;  %p614_p1 = scmp.lt.s32.totalorder %s4314_s15, 1  ;;  %v3063_v45 = vor.u32 %v3514_v39, %v3062_v37  ;;  %vm1756_vm0 = vcmask 523264  }
  0x61   : > { %v3064_v43 = vld [vmem:[#allocation6 + $0xc8] sm:$0xf0]  ;;  %897 = vmatpush.bf16.msra.mxu0 %v3007_v29  ;;  %v3003_v46 = vor.u32 %v3497_v40, %v3000_v41  ;;  %v2990_v47 = vld [vmem:[#allocation6 + $0x30] sm:$0xf]  ;;  %v3496_v48 = vld [vmem:[#allocation6 + $0x34] sm:$0xf0] }
  0x62   : > { %926 = vmatpush.bf16.msra.mxu1 %v3071_v33  ;;  %v3054_v49 = vld [vmem:[#allocation6 + $0xb0] sm:$0xf]  ;;  %v3067_v50 = vor.u32 %v3513_v42, %v3064_v43  ;;  %v3512_v51 = vld [vmem:[#allocation6 + $0xb4] sm:$0xf0]  ;;  %v3495_v52 = vld [vmem:[#allocation6 + $0x34] sm:$0xf]  ;;  %v2991_v56 = vor.u32 %v3496_v48, %v2990_v47 }
  0x63   : > { %955 = vmatpush.bf16.msra.mxu2 %v3011_v34  ;;  %v2992_v53 = vld [vmem:[#allocation6 + $0x38] sm:$0xf0]  ;;  %v3511_v54 = vld [vmem:[#allocation6 + $0xb4] sm:$0xf]  ;;  %s5229_s15 = smov (!%p614_p1, %s4314_s15), 1  ;;  %v3055_v57 = vor.u32 %v3512_v51, %v3054_v49  ;;  %s5221_s12 = sld [smem:[#allocation31_spill]] }
  0x64   : > { %984 = vmatpush.bf16.msra.mxu3 %v3075_v38  ;;  %v3056_v55 = vld [vmem:[#allocation6 + $0xb8] sm:$0xf0]  ;;  %v2995_v58 = vor.u32 %v3495_v52, %v2992_v53  ;;  %v2982_v59 = vld [vmem:[#allocation6 + $0x20] sm:$0xf]  ;;  %v3494_v60 = vld [vmem:[#allocation6 + $0x24] sm:$0xf0] }
  0x65   : > { %898 = vmatpush.bf16.msra.mxu0 %v2999_v44  ;;  %v3046_v61 = vld [vmem:[#allocation6 + $0xa0] sm:$0xf]  ;;  %v3059_v62 = vor.u32 %v3511_v54, %v3056_v55  ;;  %v3510_v63 = vld [vmem:[#allocation6 + $0xa4] sm:$0xf0]  ;;  %v3493_v0 = vld [vmem:[#allocation6 + $0x24] sm:$0xf]  ;;  %v2983_v4 = vor.u32 %v3494_v60, %v2982_v59 }
  0x66   : > { %927 = vmatpush.bf16.msra.mxu1 %v3063_v45  ;;  %v2984_v1 = vld [vmem:[#allocation6 + $0x28] sm:$0xf0]  ;;  %v3509_v2 = vld [vmem:[#allocation6 + $0xa4] sm:$0xf]  ;;  %s3487_s16 = sshll.u32 %s5229_s15, 7  ;;  %v3047_v5 = vor.u32 %v3510_v63, %v3046_v61  ;;  %s5222_s6 = sld [smem:[#allocation32_spill]] }
  0x67   : > { %956 = vmatpush.bf16.msra.mxu2 %v3003_v46  ;;  %v3048_v3 = vld [vmem:[#allocation6 + $0xa8] sm:$0xf0]  ;;  %v2987_v6 = vor.u32 %v3493_v0, %v2984_v1  ;;  %v2974_v7 = vld [vmem:[#allocation6 + $0x10] sm:$0xf]  ;;  %v3492_v8 = vld [vmem:[#allocation6 + $0x14] sm:$0xf0]  ;;  %s4469_s20 = scalar_lea.vmem %s5185_s0, %s3487_s16 }
  0x68   : > { %985 = vmatpush.bf16.msra.mxu3 %v3067_v50  ;;  %v3038_v9 = vld [vmem:[#allocation6 + $0x90] sm:$0xf]  ;;  %v3051_v10 = vor.u32 %v3509_v2, %v3048_v3  ;;  %v3508_v11 = vld [vmem:[#allocation6 + $0x94] sm:$0xf0]  ;;  %v3491_v12 = vld [vmem:[#allocation6 + $0x14] sm:$0xf]  ;;  %v2975_v16 = vor.u32 %v3492_v8, %v2974_v7 }
  0x69   : > { %899 = vmatpush.bf16.msra.mxu0 %v2991_v56  ;;  %v2976_v13 = vld [vmem:[#allocation6 + $0x18] sm:$0xf0]  ;;  %v3507_v14 = vld [vmem:[#allocation6 + $0x94] sm:$0xf]  ;;  %v3039_v17 = vor.u32 %v3508_v11, %v3038_v9  ;;  %v2966_v19 = vld [vmem:[#allocation6] sm:$0xf] }
  0x6a   : > { %928 = vmatpush.bf16.msra.mxu1 %v3055_v57  ;;  %v3040_v15 = vld [vmem:[#allocation6 + $0x98] sm:$0xf0]  ;;  %v2979_v18 = vor.u32 %v3491_v12, %v2976_v13  ;;  %v3490_v20 = vld [vmem:[#allocation6 + $0x4] sm:$0xf0]  ;;  %v3030_v21 = vld [vmem:[#allocation6 + $0x80] sm:$0xf] }
  0x6b   : > { %957 = vmatpush.bf16.msra.mxu2 %v2995_v58  ;;  %v3043_v22 = vor.u32 %v3507_v14, %v3040_v15  ;;  %v3506_v23 = vld [vmem:[#allocation6 + $0x84] sm:$0xf0]  ;;  %v3489_v24 = vld [vmem:[#allocation6 + $0x4] sm:$0xf]  ;;  %v2968_v25 = vld [vmem:[#allocation6 + $0x8] sm:$0xf0]  ;;  %v2967_v28 = vor.u32 %v3490_v20, %v2966_v19 }
  0x6c   : > { %986 = vmatpush.bf16.msra.mxu3 %v3059_v62  ;;  %v3505_v26 = vld [vmem:[#allocation6 + $0x84] sm:$0xf]  ;;  %v3032_v27 = vld [vmem:[#allocation6 + $0x88] sm:$0xf0]  ;;  %v627_v30 = vld [vmem:[%s4469_s20 + $0x10] sm:$0xff]  ;;  %v3031_v31 = vor.u32 %v3506_v23, %v3030_v21  ;;  %v2971_v32 = vor.u32 %v3489_v24, %v2968_v25  ;;  %s5223_s13 = sld [smem:[#allocation33_spill]] }
  0x6d   : > { %900 = vmatpush.bf16.msra.mxu0 %v2983_v4  ;;  %v625_v29 = vld [vmem:[%s4469_s20] sm:$0xff]  ;;  %v626_v33 = vld [vmem:[%s4469_s20 + $0x8] sm:$0xff]  ;;  %v628_v34 = vld [vmem:[%s4469_s20 + $0x18] sm:$0xff]  ;;  %v3035_v35 = vor.u32 %v3505_v26, %v3032_v27 }
  0x6e   : > { %929 = vmatpush.bf16.msra.mxu1 %v3047_v5  ;;  %v681_v36 = vpack.c.bf16 %v627_v30, %v625_v29  ;;  %v682_v37 = vpack.c.bf16 %v628_v34, %v626_v33  ;;  %v3150_v38 = vld [vmem:[#allocation9 + $0x70] sm:$0xf]  ;;  %v3536_v39 = vld [vmem:[#allocation9 + $0x74] sm:$0xf0]  ;;  %v3535_v43 = vld [vmem:[#allocation9 + $0x74] sm:$0xf] }
  0x6f   : > { %958 = vmatpush.bf16.msra.mxu2 %v2987_v6  ;;  %v3214_v40 = vld [vmem:[#allocation9 + $0xf0] sm:$0xf]  ;;  %v3151_v41 = vor.u32 %v3536_v39, %v3150_v38  ;;  %v3552_v42 = vld [vmem:[#allocation9 + $0xf4] sm:$0xf0]  ;;  %v3152_v44 = vld [vmem:[#allocation9 + $0x78] sm:$0xf0] }
  0x70   : > { %987 = vmatpush.bf16.msra.mxu3 %v3051_v10  ;;  %v3215_v45 = vor.u32 %v3552_v42, %v3214_v40  ;;  %v3155_v46 = vor.u32 %v3535_v43, %v3152_v44  ;;  %v3551_v47 = vld [vmem:[#allocation9 + $0xf4] sm:$0xf]  ;;  %v3216_v48 = vld [vmem:[#allocation9 + $0xf8] sm:$0xf0]  ;;  %v3142_v49 = vld [vmem:[#allocation9 + $0x60] sm:$0xf] }
  0x71   : > { %901 = vmatpush.bf16.msra.mxu0 %v2975_v16  ;;  %v3219_v50 = vor.u32 %v3551_v47, %v3216_v48  ;;  %v3534_v51 = vld [vmem:[#allocation9 + $0x64] sm:$0xf0]  ;;  %v3206_v52 = vld [vmem:[#allocation9 + $0xe0] sm:$0xf]  ;;  %v3533_v56 = vld [vmem:[#allocation9 + $0x64] sm:$0xf] }
  0x72   : > { %930 = vmatpush.bf16.msra.mxu1 %v3039_v17  ;;  %v3550_v53 = vld [vmem:[#allocation9 + $0xe4] sm:$0xf0]  ;;  %v3143_v54 = vor.u32 %v3534_v51, %v3142_v49  ;;  %v3144_v57 = vld [vmem:[#allocation9 + $0x68] sm:$0xf0]  ;;  %v3549_v58 = vld [vmem:[#allocation9 + $0xe4] sm:$0xf]  ;;  %s5106_s14 = scalar_lea.vmem %s5223_s13, %s3487_s16 }
  0x73   : > { %959 = vmatpush.bf16.msra.mxu2 %v2979_v18  ;;  %v3207_v55 = vor.u32 %v3550_v53, %v3206_v52  ;;  %v3147_v59 = vor.u32 %v3533_v56, %v3144_v57  ;;  %v3208_v60 = vld [vmem:[#allocation9 + $0xe8] sm:$0xf0]  ;;  %v3134_v61 = vld [vmem:[#allocation9 + $0x50] sm:$0xf]  ;;  %v3532_v62 = vld [vmem:[#allocation9 + $0x54] sm:$0xf0] }
  0x74   : > { %988 = vmatpush.bf16.msra.mxu3 %v3043_v22  ;;  %v3211_v63 = vor.u32 %v3549_v58, %v3208_v60  ;;  %v3198_v0 = vld [vmem:[#allocation9 + $0xd0] sm:$0xf]  ;;  %v3548_v1 = vld [vmem:[#allocation9 + $0xd4] sm:$0xf0]  ;;  %v3531_v2 = vld [vmem:[#allocation9 + $0x54] sm:$0xf]  ;;  %v3135_v3 = vor.u32 %v3532_v62, %v3134_v61 }
  0x75   : > { %902 = vmatpush.bf16.msra.mxu0 %v2967_v28  ;;  %v3136_v4 = vld [vmem:[#allocation9 + $0x58] sm:$0xf0]  ;;  %v3547_v5 = vld [vmem:[#allocation9 + $0xd4] sm:$0xf]  ;;  %v3199_v8 = vor.u32 %v3548_v1, %v3198_v0  ;;  %v3126_v10 = vld [vmem:[#allocation9 + $0x40] sm:$0xf] }
  0x76   : > { %931 = vmatpush.bf16.msra.mxu1 %v3031_v31  ;;  %v3200_v6 = vld [vmem:[#allocation9 + $0xd8] sm:$0xf0]  ;;  %v3139_v9 = vor.u32 %v3531_v2, %v3136_v4  ;;  %v3530_v11 = vld [vmem:[#allocation9 + $0x44] sm:$0xf0]  ;;  %v631_v12 = vld [vmem:[%s4469_s20 + $0x30] sm:$0xff] }
  0x77   : > { %960 = vmatpush.bf16.msra.mxu2 %v2971_v32  ;;  %v629_v7 = vld [vmem:[%s4469_s20 + $0x20] sm:$0xff]  ;;  %v3203_v13 = vor.u32 %v3547_v5, %v3200_v6  ;;  %v3546_v15 = vld [vmem:[#allocation9 + $0xc4] sm:$0xf0]  ;;  %v632_v17 = vld [vmem:[%s4469_s20 + $0x38] sm:$0xff]  ;;  %v3127_v18 = vor.u32 %v3530_v11, %v3126_v10 }
  0x78   : > { %989 = vmatpush.bf16.msra.mxu3 %v3035_v35  ;;  %903 = vmatmul.bf16.vlgmr.msra.gmra.mxu0 %v681_v36  ;;  %v3190_v14 = vld [vmem:[#allocation9 + $0xc0] sm:$0xf]  ;;  %v630_v16 = vld [vmem:[%s4469_s20 + $0x28] sm:$0xff]  ;;  %v683_v21 = vpack.c.bf16 %v631_v12, %v629_v7  ;;  %v3118_v28 = vld [vmem:[#allocation9 + $0x30] sm:$0xf] }
  0x79   : > { %932 = vmatmul.bf16.vlgmr.msra.gmra.mxu1 %v682_v37  ;;  %1217 = vmatpush.bf16.msrb.mxu0 %v3151_v41  ;;  %v3529_v19 = vld [vmem:[#allocation9 + $0x44] sm:$0xf]  ;;  %v3128_v20 = vld [vmem:[#allocation9 + $0x48] sm:$0xf0]  ;;  %v3191_v22 = vor.u32 %v3546_v15, %v3190_v14  ;;  %v684_v25 = vpack.c.bf16 %v632_v17, %v630_v16  ;;  %v3528_v29 = vld [vmem:[#allocation9 + $0x34] sm:$0xf0] }
  0x7a   : > { %961 = vmatmul.bf16.vlgmr.msra.gmra.mxu2 %v681_v36  ;;  %1246 = vmatpush.bf16.msrb.mxu1 %v3215_v45  ;;  %v3545_v23 = vld [vmem:[#allocation9 + $0xc4] sm:$0xf]  ;;  %v3192_v24 = vld [vmem:[#allocation9 + $0xc8] sm:$0xf0]  ;;  %v3131_v26 = vor.u32 %v3529_v19, %v3128_v20  ;;  %v3182_v30 = vld [vmem:[#allocation9 + $0xb0] sm:$0xf]  ;;  %v3119_v31 = vor.u32 %v3528_v29, %v3118_v28 }
  0x7b   : > { %990 = vmatmul.bf16.vlgmr.msra.gmra.mxu3 %v682_v37  ;;  %1275 = vmatpush.bf16.msrb.mxu2 %v3155_v46  ;;  %v3195_v27 = vor.u32 %v3545_v23, %v3192_v24  ;;  %v3544_v32 = vld [vmem:[#allocation9 + $0xb4] sm:$0xf0]  ;;  %v3527_v33 = vld [vmem:[#allocation9 + $0x34] sm:$0xf]  ;;  %v3120_v34 = vld [vmem:[#allocation9 + $0x38] sm:$0xf0] }
  0x7c   : > { %1304 = vmatpush.bf16.msrb.mxu3 %v3219_v50  ;;  %v3183_v35 = vor.u32 %v3544_v32, %v3182_v30  ;;  %v3123_v36 = vor.u32 %v3527_v33, %v3120_v34  ;;  %v3543_v37 = vld [vmem:[#allocation9 + $0xb4] sm:$0xf]  ;;  %v3184_v38 = vld [vmem:[#allocation9 + $0xb8] sm:$0xf0]  ;;  %v3110_v39 = vld [vmem:[#allocation9 + $0x20] sm:$0xf] }
  0x7d   : > { %1218 = vmatpush.bf16.msrb.mxu0 %v3143_v54  ;;  %v3187_v40 = vor.u32 %v3543_v37, %v3184_v38  ;;  %v3526_v41 = vld [vmem:[#allocation9 + $0x24] sm:$0xf0]  ;;  %v3174_v42 = vld [vmem:[#allocation9 + $0xa0] sm:$0xf]  ;;  %v3525_v46 = vld [vmem:[#allocation9 + $0x24] sm:$0xf] }
  0x7e   : > { %1247 = vmatpush.bf16.msrb.mxu1 %v3207_v55  ;;  %v3542_v43 = vld [vmem:[#allocation9 + $0xa4] sm:$0xf0]  ;;  %v3111_v44 = vor.u32 %v3526_v41, %v3110_v39  ;;  %v3112_v47 = vld [vmem:[#allocation9 + $0x28] sm:$0xf0]  ;;  %v3541_v48 = vld [vmem:[#allocation9 + $0xa4] sm:$0xf] }
  0x7f   : > { %1276 = vmatpush.bf16.msrb.mxu2 %v3147_v59  ;;  %v3175_v45 = vor.u32 %v3542_v43, %v3174_v42  ;;  %v3176_v49 = vld [vmem:[#allocation9 + $0xa8] sm:$0xf0]  ;;  %v3102_v50 = vld [vmem:[#allocation9 + $0x10] sm:$0xf]  ;;  %v3524_v51 = vld [vmem:[#allocation9 + $0x14] sm:$0xf0]  ;;  %v3115_v52 = vor.u32 %v3525_v46, %v3112_v47 }
  0x80   : > { %1305 = vmatpush.bf16.msrb.mxu3 %v3211_v63  ;;  %v3166_v53 = vld [vmem:[#allocation9 + $0x90] sm:$0xf]  ;;  %v3540_v54 = vld [vmem:[#allocation9 + $0x94] sm:$0xf0]  ;;  %v633_v55 = vld [vmem:[%s4469_s20 + $0x40] sm:$0xff]  ;;  %v3179_v56 = vor.u32 %v3541_v48, %v3176_v49  ;;  %v3103_v57 = vor.u32 %v3524_v51, %v3102_v50 }
  0x81   : > { %1219 = vmatpush.bf16.msrb.mxu0 %v3135_v3  ;;  %v3523_v58 = vld [vmem:[#allocation9 + $0x14] sm:$0xf]  ;;  %v3104_v59 = vld [vmem:[#allocation9 + $0x18] sm:$0xf0]  ;;  %v3167_v61 = vor.u32 %v3540_v54, %v3166_v53  ;;  %v3094_v63 = vld [vmem:[#allocation9] sm:$0xf] }
  0x82   : > { %1248 = vmatpush.bf16.msrb.mxu1 %v3199_v8  ;;  %v3539_v60 = vld [vmem:[#allocation9 + $0x94] sm:$0xf]  ;;  %v3168_v62 = vld [vmem:[#allocation9 + $0x98] sm:$0xf0]  ;;  %v3522_v0 = vld [vmem:[#allocation9 + $0x4] sm:$0xf0]  ;;  %v3107_v6 = vor.u32 %v3523_v58, %v3104_v59 }
  0x83   : > { %1277 = vmatpush.bf16.msrb.mxu2 %v3139_v9  ;;  %v635_v1 = vld [vmem:[%s4469_s20 + $0x50] sm:$0xff]  ;;  %v3158_v2 = vld [vmem:[#allocation9 + $0x80] sm:$0xf]  ;;  %v3538_v3 = vld [vmem:[#allocation9 + $0x84] sm:$0xf0]  ;;  %v3171_v7 = vor.u32 %v3539_v60, %v3168_v62  ;;  %v3095_v8 = vor.u32 %v3522_v0, %v3094_v63 }
  0x84   : > { %1306 = vmatpush.bf16.msrb.mxu3 %v3203_v13  ;;  %v634_v4 = vld [vmem:[%s4469_s20 + $0x48] sm:$0xff]  ;;  %v636_v5 = vld [vmem:[%s4469_s20 + $0x58] sm:$0xff]  ;;  %v685_v11 = vpack.c.bf16 %v635_v1, %v633_v55  ;;  %v3159_v12 = vor.u32 %v3538_v3, %v3158_v2  ;;  %v639_v19 = vld [vmem:[%s4469_s20 + $0x70] sm:$0xff] }
  0x85   : > { %1220 = vmatpush.bf16.msrb.mxu0 %v3127_v18  ;;  %v3521_v9 = vld [vmem:[#allocation9 + $0x4] sm:$0xf]  ;;  %v3096_v10 = vld [vmem:[#allocation9 + $0x8] sm:$0xf0]  ;;  %v686_v15 = vpack.c.bf16 %v636_v5, %v634_v4  ;;  %v648_v33 = vld [vmem:[%s4431_s28 + $0x38] sm:$0xff] }
  0x86   : > { %1249 = vmatpush.bf16.msrb.mxu1 %v3191_v22  ;;  %v3537_v13 = vld [vmem:[#allocation9 + $0x84] sm:$0xf]  ;;  %v3160_v14 = vld [vmem:[#allocation9 + $0x88] sm:$0xf0]  ;;  %v3099_v16 = vor.u32 %v3521_v9, %v3096_v10  ;;  %v652_v39 = vld [vmem:[%s4431_s28 + $0x58] sm:$0xff] }
  0x87   : > { %1278 = vmatpush.bf16.msrb.mxu2 %v3131_v26  ;;  %v3163_v17 = vor.u32 %v3537_v13, %v3160_v14  ;;  %v637_v18 = vld [vmem:[%s4469_s20 + $0x60] sm:$0xff]  ;;  %v638_v20 = vld [vmem:[%s4469_s20 + $0x68] sm:$0xff]  ;;  %v651_v37 = vld [vmem:[%s4431_s28 + $0x50] sm:$0xff] }
  0x88   : > { %908 = vmatmul.bf16.gmra.mxu0 %v683_v21  ;;  %1307 = vmatpush.bf16.msrb.mxu3 %v3195_v27  ;;  %v687_v22 = vpack.c.bf16 %v639_v19, %v637_v18  ;;  %v641_v24 = vld [vmem:[%s4431_s28] sm:$0xff]  ;;  %v642_v26 = vld [vmem:[%s4431_s28 + $0x8] sm:$0xff]  ;;  %v644_v27 = vld [vmem:[%s4431_s28 + $0x18] sm:$0xff] }
  0x89   : > { %937 = vmatmul.bf16.gmra.mxu1 %v684_v25  ;;  %1221 = vmatpush.bf16.msrb.mxu0 %v3119_v31  ;;  %v4493_v29 = vpack.c.bf16 %v644_v27, %v642_v26  ;;  %v645_v30 = vld [vmem:[%s4431_s28 + $0x20] sm:$0xff]  ;;  %v647_v31 = vld [vmem:[%s4431_s28 + $0x30] sm:$0xff]  ;;  %v646_v32 = vld [vmem:[%s4431_s28 + $0x28] sm:$0xff] }
  0x8a   : > { %966 = vmatmul.bf16.gmra.mxu2 %v683_v21  ;;  %1250 = vmatpush.bf16.msrb.mxu1 %v3183_v35  ;;  %v640_v21 = vld [vmem:[%s4469_s20 + $0x78] sm:$0xff]  ;;  %v4503_v34 = vpack.c.bf16 %v647_v31, %v645_v30  ;;  %v4505_v35 = vpack.c.bf16 %v648_v33, %v646_v32  ;;  %v650_v38 = vld [vmem:[%s4431_s28 + $0x48] sm:$0xff]  ;;  %v3280_v43 = vld [vmem:[#allocation12 + $0x78] sm:$0xf0] }
  0x8b   : > { %995 = vmatmul.bf16.gmra.mxu3 %v684_v25  ;;  %1279 = vmatpush.bf16.msrb.mxu2 %v3123_v36  ;;  %v688_v23 = vpack.c.bf16 %v640_v21, %v638_v20  ;;  %v643_v25 = vld [vmem:[%s4431_s28 + $0x10] sm:$0xff]  ;;  %v649_v36 = vld [vmem:[%s4431_s28 + $0x40] sm:$0xff]  ;;  %v4517_v41 = vpack.c.bf16 %v652_v39, %v650_v38  ;;  %v3567_v42 = vld [vmem:[#allocation12 + $0x74] sm:$0xf] }
  0x8c   : > { %1308 = vmatpush.bf16.msrb.mxu3 %v3187_v40  ;;  %v4491_v28 = vpack.c.bf16 %v643_v25, %v641_v24  ;;  %v4515_v40 = vpack.c.bf16 %v651_v37, %v649_v36  ;;  %v3344_v46 = vld [vmem:[#allocation12 + $0xf8] sm:$0xf0]  ;;  %v3565_v48 = vld [vmem:[#allocation12 + $0x64] sm:$0xf]  ;;  %v3272_v49 = vld [vmem:[#allocation12 + $0x68] sm:$0xf0] }
  0x8d   : > { %1222 = vmatpush.bf16.msrb.mxu0 %v3111_v44  ;;  %v3283_v44 = vor.u32 %v3567_v42, %v3280_v43  ;;  %v3275_v50 = vor.u32 %v3565_v48, %v3272_v49  ;;  %v3278_v51 = vld [vmem:[#allocation12 + $0x70] sm:$0xf]  ;;  %v3581_v53 = vld [vmem:[#allocation12 + $0xe4] sm:$0xf]  ;;  %v653_v54 = vld [vmem:[%s4431_s28 + $0x60] sm:$0xff] }
  0x8e   : > { %1251 = vmatpush.bf16.msrb.mxu1 %v3175_v45  ;;  %v3583_v45 = vld [vmem:[#allocation12 + $0xf4] sm:$0xf]  ;;  %v655_v55 = vld [vmem:[%s4431_s28 + $0x70] sm:$0xff]  ;;  %v3584_v60 = vld [vmem:[#allocation12 + $0xf4] sm:$0xf0] }
  0x8f   : > { %1280 = vmatpush.bf16.msrb.mxu2 %v3115_v52  ;;  %v3347_v47 = vor.u32 %v3583_v45, %v3344_v46  ;;  %v3568_v52 = vld [vmem:[#allocation12 + $0x74] sm:$0xf0]  ;;  %v3342_v59 = vld [vmem:[#allocation12 + $0xf0] sm:$0xf]  ;;  %v654_v62 = vld [vmem:[%s4431_s28 + $0x68] sm:$0xff] }
  0x90   : > { %1309 = vmatpush.bf16.msrb.mxu3 %v3179_v56  ;;  %v3279_v56 = vor.u32 %v3568_v52, %v3278_v51  ;;  %v656_v63 = vld [vmem:[%s4431_s28 + $0x78] sm:$0xff]  ;;  %v3343_v0 = vor.u32 %v3584_v60, %v3342_v59  ;;  %v3264_v1 = vld [vmem:[#allocation12 + $0x58] sm:$0xf0]  ;;  %v3270_v3 = vld [vmem:[#allocation12 + $0x60] sm:$0xf] }
  0x91   : > { %1223 = vmatpush.bf16.msrb.mxu0 %v3103_v57  ;;  %v3336_v57 = vld [vmem:[#allocation12 + $0xe8] sm:$0xf0]  ;;  %v3566_v4 = vld [vmem:[#allocation12 + $0x64] sm:$0xf0]  ;;  %v3579_v5 = vld [vmem:[#allocation12 + $0xd4] sm:$0xf]  ;;  %v4529_v9 = vpack.c.bf16 %v656_v63, %v654_v62 }
  0x92   : > { %1252 = vmatpush.bf16.msrb.mxu1 %v3167_v61  ;;  %v3339_v58 = vor.u32 %v3581_v53, %v3336_v57  ;;  %v3563_v61 = vld [vmem:[#allocation12 + $0x54] sm:$0xf]  ;;  %v3561_v13 = vld [vmem:[#allocation12 + $0x44] sm:$0xf]  ;;  %v3564_v18 = vld [vmem:[#allocation12 + $0x54] sm:$0xf0] }
  0x93   : > { %1281 = vmatpush.bf16.msrb.mxu2 %v3107_v6  ;;  %v3267_v2 = vor.u32 %v3563_v61, %v3264_v1  ;;  %v4527_v6 = vpack.c.bf16 %v655_v55, %v653_v54  ;;  %v3577_v19 = vld [vmem:[#allocation12 + $0xc4] sm:$0xf]  ;;  %v3320_v21 = vld [vmem:[#allocation12 + $0xc8] sm:$0xf0]  ;;  %v3580_v24 = vld [vmem:[#allocation12 + $0xd4] sm:$0xf0] }
  0x94   : > { %1310 = vmatpush.bf16.msrb.mxu3 %v3171_v7  ;;  %v3271_v7 = vor.u32 %v3566_v4, %v3270_v3  ;;  %v3559_v25 = vld [vmem:[#allocation12 + $0x34] sm:$0xf]  ;;  %v3248_v27 = vld [vmem:[#allocation12 + $0x38] sm:$0xf0]  ;;  %v3254_v31 = vld [vmem:[#allocation12 + $0x40] sm:$0xf] }
  0x95   : > { %1224 = vmatpush.bf16.msrb.mxu0 %v3095_v8  ;;  %v3328_v8 = vld [vmem:[#allocation12 + $0xd8] sm:$0xf0]  ;;  %v3251_v30 = vor.u32 %v3559_v25, %v3248_v27  ;;  %v3562_v32 = vld [vmem:[#allocation12 + $0x44] sm:$0xf0]  ;;  %v3575_v33 = vld [vmem:[#allocation12 + $0xb4] sm:$0xf] }
  0x96   : > { %1253 = vmatpush.bf16.msrb.mxu1 %v3159_v12  ;;  %v3331_v10 = vor.u32 %v3579_v5, %v3328_v8  ;;  %v3582_v12 = vld [vmem:[#allocation12 + $0xe4] sm:$0xf0]  ;;  %v3255_v36 = vor.u32 %v3562_v32, %v3254_v31  ;;  %v3312_v37 = vld [vmem:[#allocation12 + $0xb8] sm:$0xf0]  ;;  %v3318_v39 = vld [vmem:[#allocation12 + $0xc0] sm:$0xf] }
  0x97   : > { %1282 = vmatpush.bf16.msrb.mxu2 %v3099_v16  ;;  %v3315_v38 = vor.u32 %v3575_v33, %v3312_v37  ;;  %v3578_v42 = vld [vmem:[#allocation12 + $0xc4] sm:$0xf0]  ;;  %v3557_v43 = vld [vmem:[#allocation12 + $0x24] sm:$0xf]  ;;  %v3240_v46 = vld [vmem:[#allocation12 + $0x28] sm:$0xf0] }
  0x98   : > { %913 = vmatmul.bf16.gmra.mxu0 %v685_v11  ;;  %1311 = vmatpush.bf16.msrb.mxu3 %v3163_v17  ;;  %v3262_v17 = vld [vmem:[#allocation12 + $0x50] sm:$0xf]  ;;  %v3319_v45 = vor.u32 %v3578_v42, %v3318_v39  ;;  %v3560_v49 = vld [vmem:[#allocation12 + $0x34] sm:$0xf0]  ;;  %v3304_v52 = vld [vmem:[#allocation12 + $0xa8] sm:$0xf0] }
  0x99   : > { %942 = vmatmul.bf16.gmra.mxu1 %v686_v15  ;;  %1539 = vmatpush.bf16.msra.mxu0 %v3279_v56  ;;  %v3263_v20 = vor.u32 %v3564_v18, %v3262_v17  ;;  %v3246_v48 = vld [vmem:[#allocation12 + $0x30] sm:$0xf]  ;;  %v3576_v55 = vld [vmem:[#allocation12 + $0xb4] sm:$0xf0]  ;;  %v3555_v56 = vld [vmem:[#allocation12 + $0x14] sm:$0xf] }
  0x9a   : > { %971 = vmatmul.bf16.gmra.mxu2 %v685_v11  ;;  %1568 = vmatpush.bf16.msra.mxu1 %v3343_v0  ;;  %v3334_v11 = vld [vmem:[#allocation12 + $0xe0] sm:$0xf]  ;;  %v3247_v51 = vor.u32 %v3560_v49, %v3246_v48  ;;  %v3310_v54 = vld [vmem:[#allocation12 + $0xb0] sm:$0xf]  ;;  %v3232_v59 = vld [vmem:[#allocation12 + $0x18] sm:$0xf0] }
  0x9b   : > { %1000 = vmatmul.bf16.gmra.mxu3 %v686_v15  ;;  %1597 = vmatpush.bf16.msra.mxu2 %v3283_v44  ;;  %v3335_v14 = vor.u32 %v3582_v12, %v3334_v11  ;;  %v3256_v15 = vld [vmem:[#allocation12 + $0x48] sm:$0xf0]  ;;  %v729_v44 = vld [vmem:[#allocation7] sm:$0x3]  ;;  %v3235_v60 = vor.u32 %v3555_v56, %v3232_v59  ;;  %v3238_v61 = vld [vmem:[#allocation12 + $0x20] sm:$0xf] }
  0x9c   : > { %1626 = vmatpush.bf16.msra.mxu3 %v3347_v47  ;;  %v3259_v16 = vor.u32 %v3561_v13, %v3256_v15  ;;  %v3243_v47 = vor.u32 %v3557_v43, %v3240_v46  ;;  %v4535_v57 = vperm.slane %v729_v44, 0  ;;  %v3558_v62 = vld [vmem:[#allocation12 + $0x24] sm:$0xf0]  ;;  %v3571_v63 = vld [vmem:[#allocation12 + $0x94] sm:$0xf] }
  0x9d   : > { %1540 = vmatpush.bf16.msra.mxu0 %v3271_v7  ;;  %v3239_v0 = vor.u32 %v3558_v62, %v3238_v61  ;;  %v3296_v1 = vld [vmem:[#allocation12 + $0x98] sm:$0xf0]  ;;  %v3302_v4 = vld [vmem:[#allocation12 + $0xa0] sm:$0xf]  ;;  %v3574_v5 = vld [vmem:[#allocation12 + $0xa4] sm:$0xf0] }
  0x9e   : > { %1569 = vmatpush.bf16.msra.mxu1 %v3335_v14  ;;  %v3299_v3 = vor.u32 %v3571_v63, %v3296_v1  ;;  %v3553_v7 = vld [vmem:[#allocation12 + $0x4] sm:$0xf]  ;;  %v3303_v11 = vor.u32 %v3574_v5, %v3302_v4  ;;  %v3224_v12 = vld [vmem:[#allocation12 + $0x8] sm:$0xf0]  ;;  %v3230_v14 = vld [vmem:[#allocation12 + $0x10] sm:$0xf] }
  0x9f   : > { %1598 = vmatpush.bf16.msra.mxu2 %v3275_v50  ;;  %v3573_v50 = vld [vmem:[#allocation12 + $0xa4] sm:$0xf]  ;;  %v3227_v13 = vor.u32 %v3553_v7, %v3224_v12  ;;  %v3556_v15 = vld [vmem:[#allocation12 + $0x14] sm:$0xf0]  ;;  %v3222_v25 = vld [vmem:[#allocation12] sm:$0xf] }
  0xa0   : > { %1627 = vmatpush.bf16.msra.mxu3 %v3339_v58  ;;  %v3307_v53 = vor.u32 %v3573_v50, %v3304_v52  ;;  %v3311_v58 = vor.u32 %v3576_v55, %v3310_v54  ;;  %v3231_v18 = vor.u32 %v3556_v15, %v3230_v14  ;;  %v3570_v37 = vld [vmem:[#allocation12 + $0x84] sm:$0xf0]  ;;  %v1051_v15 = vld [vmem:[#allocation10] sm:$0x3] }
  0xa1   : > { %1541 = vmatpush.bf16.msra.mxu0 %v3263_v20  ;;  %v4538_v20 = vperm.slane %v729_v44, 1 }
  0xa3   : > { %1599 = vmatpush.bf16.msra.mxu2 %v3267_v2 }
  0xa4   : > { %1628 = vmatpush.bf16.msra.mxu3 %v3331_v10 }
  0xa5   : > { %1542 = vmatpush.bf16.msra.mxu0 %v3255_v36  ;;  %v3286_v36 = vld [vmem:[#allocation12 + $0x80] sm:$0xf] }
  0xa6   : > { %v3287_v39 = vor.u32 %v3570_v37, %v3286_v36 }
  0xa7   : > { %1600 = vmatpush.bf16.msra.mxu2 %v3259_v16  ;;  %v3569_v16 = vld [vmem:[#allocation12 + $0x84] sm:$0xf] }
  0xa8   : > { %918 = vmatmul.bf16.gmra.mxu0 %v687_v22 }
  0xa9   : > { %947 = vmatmul.bf16.gmra.mxu1 %v688_v23  ;;  %1543 = vmatpush.bf16.msra.mxu0 %v3247_v51 }
  0xaa   : > { %976 = vmatmul.bf16.gmra.mxu2 %v687_v22  ;;  %v3323_v22 = vor.u32 %v3577_v19, %v3320_v21  ;;  %v3288_v19 = vld [vmem:[#allocation12 + $0x88] sm:$0xf0] }
  0xab   : > { %1005 = vmatmul.bf16.gmra.mxu3 %v688_v23  ;;  %v3326_v23 = vld [vmem:[#allocation12 + $0xd0] sm:$0xf]  ;;  %1601 = vmatpush.bf16.msra.mxu2 %v3251_v30  ;;  %v3291_v21 = vor.u32 %v3569_v16, %v3288_v19 }
  0xac   : > { %v3327_v26 = vor.u32 %v3580_v24, %v3326_v23  ;;  %1629 = vmatpush.bf16.msra.mxu3 %v3323_v22  ;;  %v3294_v22 = vld [vmem:[#allocation12 + $0x90] sm:$0xf]  ;;  %v3572_v23 = vld [vmem:[#allocation12 + $0x94] sm:$0xf0] }
  0xad   : > { %1544 = vmatpush.bf16.msra.mxu0 %v3239_v0  ;;  %v3295_v24 = vor.u32 %v3572_v23, %v3294_v22 }
  0xae   : > { %1570 = vmatpush.bf16.msra.mxu1 %v3327_v26  ;;  %v3554_v26 = vld [vmem:[#allocation12 + $0x4] sm:$0xf0] }
  0xaf   : > { %1602 = vmatpush.bf16.msra.mxu2 %v3243_v47  ;;  %v3223_v30 = vor.u32 %v3554_v26, %v3222_v25  ;;  %v4606_v25 = vperm.slane %v1051_v15, 1 }
  0xb0   : > { %1630 = vmatpush.bf16.msra.mxu3 %v3315_v38 }
  0xb1   : > { %1545 = vmatpush.bf16.msra.mxu0 %v3231_v18 }
  0xb2   : > { %1571 = vmatpush.bf16.msra.mxu1 %v3319_v45 }
  0xb3   : > { %1603 = vmatpush.bf16.msra.mxu2 %v3235_v60 }
  0xb4   : > { %1631 = vmatpush.bf16.msra.mxu3 %v3307_v53 }
  0xb5   : > { %1546 = vmatpush.bf16.msra.mxu0 %v3223_v30 }
  0xb6   : > { %1572 = vmatpush.bf16.msra.mxu1 %v3311_v58 }
  0xb7   : > { %1604 = vmatpush.bf16.msra.mxu2 %v3227_v13 }
  0xb8   : > { %1225 = vmatmul.bf16.vlgmr.msrb.gmra.mxu0 %v4491_v28  ;;  %1632 = vmatpush.bf16.msra.mxu3 %v3299_v3 }
  0xb9   : > { %1254 = vmatmul.bf16.vlgmr.msrb.gmra.mxu1 %v4493_v29 }
  0xba   : > { %1283 = vmatmul.bf16.vlgmr.msrb.gmra.mxu2 %v4491_v28  ;;  %1573 = vmatpush.bf16.msra.mxu1 %v3303_v11 }
  0xbb   : > { %1312 = vmatmul.bf16.vlgmr.msrb.gmra.mxu3 %v4493_v29 }
  0xbc   : > { %1633 = vmatpush.bf16.msra.mxu3 %v3291_v21 }
  0xbe   : > { %1574 = vmatpush.bf16.msra.mxu1 %v3295_v24 }
  0xc2   : > { %1575 = vmatpush.bf16.msra.mxu1 %v3287_v39 }
  0xc8   : > { %1230 = vmatmul.bf16.gmra.mxu0 %v4503_v34 }
  0xc9   : > { %1259 = vmatmul.bf16.gmra.mxu1 %v4505_v35 }
  0xca   : > { %1288 = vmatmul.bf16.gmra.mxu2 %v4503_v34 }
  0xcb   : > { %1317 = vmatmul.bf16.gmra.mxu3 %v4505_v35 }
  0xd8   : > { %1235 = vmatmul.bf16.gmra.mxu0 %v4515_v40 }
  0xd9   : > { %1264 = vmatmul.bf16.gmra.mxu1 %v4517_v41 }
  0xda   : > { %1293 = vmatmul.bf16.gmra.mxu2 %v4515_v40 }
  0xdb   : > { %1322 = vmatmul.bf16.gmra.mxu3 %v4517_v41 }
  0xe8   : > { %1240 = vmatmul.bf16.gmra.mxu0 %v4527_v6 }
  0xe9   : > { %1269 = vmatmul.bf16.gmra.mxu1 %v4529_v9 }
  0xea   : > { %1298 = vmatmul.bf16.gmra.mxu2 %v4527_v6 }
  0xeb   : > { %1327 = vmatmul.bf16.gmra.mxu3 %v4529_v9 }
  0xf5   : > { %v904_v2 = vpop.f32.mrf.mxu0 }
  0xf6   : > { %v905_v8 = vadd.f32 %v904_v2, %v4535_v57  ;;  %v933_v10 = vpop.f32.mrf.mxu1 }
  0xf8   : > { %v934_v17 = vadd.f32 %v933_v10, %v905_v8  ;;  %1547 = vmatmul.bf16.vlgmr.msra.gmra.mxu0 %v4491_v28 }
  0xf9   : > { %1576 = vmatmul.bf16.vlgmr.msra.gmra.mxu1 %v4493_v29 }
  0xfa   : > { %1605 = vmatmul.bf16.vlgmr.msra.gmra.mxu2 %v4491_v28 }
  0xfb   : > { %1634 = vmatmul.bf16.vlgmr.msra.gmra.mxu3 %v4493_v29 }
  0xfd   : > { %v962_v27 = vpop.f32.mrf.mxu2  ;;  %v4541_v33 = vpop.f32.mrf.mxu0 }
  0xfe   : > { %v963_v31 = vadd.f32 %v962_v27, %v4538_v20  ;;  %v991_v32 = vpop.f32.mrf.mxu3  ;;  %v4544_v38 = vpop.f32.mrf.mxu1 }
 0x100   : > { %v992_v42 = vadd.f32 %v991_v32, %v963_v31 }
 0x102   : > { %v4547_v43 = vpack.c.bf16 %v992_v42, %v934_v17  ;;  %v4597_v17 = vperm.slane %v1051_v15, 0 }
 0x105   : > { %v4551_v44 = vpop.f32.mrf.mxu2  ;;  %v909_v46 = vpop.f32.mrf.mxu0 }
 0x106   : > { %v4553_v45 = vpop.f32.mrf.mxu3  ;;  %v910_v47 = vadd.f32 %v909_v46, %v4535_v57  ;;  %v938_v48 = vpop.f32.mrf.mxu1 }
 0x108   : > { %v939_v49 = vadd.f32 %v938_v48, %v910_v47  ;;  %1552 = vmatmul.bf16.gmra.mxu0 %v4503_v34 }
 0x109   : > { %1581 = vmatmul.bf16.gmra.mxu1 %v4505_v35 }
 0x10a   : > { %1610 = vmatmul.bf16.gmra.mxu2 %v4503_v34 }
 0x10b   : > { %1639 = vmatmul.bf16.gmra.mxu3 %v4505_v35 }
 0x10d   : > { %v967_v50 = vpop.f32.mrf.mxu2  ;;  %v4557_v53 = vpop.f32.mrf.mxu0 }
 0x10e   : > { %v968_v51 = vadd.f32 %v967_v50, %v4538_v20  ;;  %v996_v52 = vpop.f32.mrf.mxu3  ;;  %v4560_v28 = vpop.f32.mrf.mxu1 }
 0x110   : > { %v997_v29 = vadd.f32 %v996_v52, %v968_v51 }
 0x112   : > { %v4563_v54 = vpack.c.bf16 %v997_v29, %v939_v49 }
 0x115   : > { %v4567_v55 = vpop.f32.mrf.mxu2  ;;  %v914_v58 = vpop.f32.mrf.mxu0 }
 0x116   : > { %v4569_v56 = vpop.f32.mrf.mxu3  ;;  %v915_v59 = vadd.f32 %v914_v58, %v4535_v57  ;;  %v943_v60 = vpop.f32.mrf.mxu1 }
 0x118   : > { %v944_v61 = vadd.f32 %v943_v60, %v915_v59  ;;  %1557 = vmatmul.bf16.gmra.mxu0 %v4515_v40 }
 0x119   : > { %1586 = vmatmul.bf16.gmra.mxu1 %v4517_v41 }
 0x11a   : > { %1615 = vmatmul.bf16.gmra.mxu2 %v4515_v40 }
 0x11b   : > { %1644 = vmatmul.bf16.gmra.mxu3 %v4517_v41 }
 0x11d   : > { %v972_v62 = vpop.f32.mrf.mxu2  ;;  %v4573_v1 = vpop.f32.mrf.mxu0 }
 0x11e   : > { %v973_v63 = vadd.f32 %v972_v62, %v4538_v20  ;;  %v1001_v0 = vpop.f32.mrf.mxu3  ;;  %v4576_v34 = vpop.f32.mrf.mxu1 }
 0x120   : > { %v1002_v35 = vadd.f32 %v1001_v0, %v973_v63 }
 0x122   : > { %v4579_v2 = vpack.c.bf16 %v1002_v35, %v944_v61 }
 0x125   : > { %v4583_v3 = vpop.f32.mrf.mxu2  ;;  %v919_v5 = vpop.f32.mrf.mxu0 }
 0x126   : > { %v4585_v4 = vpop.f32.mrf.mxu3  ;;  %v920_v7 = vadd.f32 %v919_v5, %v4535_v57  ;;  %v948_v8 = vpop.f32.mrf.mxu1 }
 0x128   : > { %v949_v10 = vadd.f32 %v948_v8, %v920_v7  ;;  %1562 = vmatmul.bf16.gmra.mxu0 %v4527_v6 }
 0x129   : > { %1591 = vmatmul.bf16.gmra.mxu1 %v4529_v9 }
 0x12a   : > { %1620 = vmatmul.bf16.gmra.mxu2 %v4527_v6 }
 0x12b   : > { %1649 = vmatmul.bf16.gmra.mxu3 %v4529_v9 }
 0x12d   : > { %v977_v11 = vpop.f32.mrf.mxu2  ;;  %v4589_v14 = vpop.f32.mrf.mxu0 }
 0x12e   : > { %v978_v12 = vadd.f32 %v977_v11, %v4538_v20  ;;  %v1006_v13 = vpop.f32.mrf.mxu3  ;;  %v4592_v40 = vpop.f32.mrf.mxu1 }
 0x12f   : > { %5213 = vst [vmem:[#allocation24_spill] sm:$0xff] %v4592_v40 }
 0x130   : > { %v1007_v41 = vadd.f32 %v1006_v13, %v978_v12 }
 0x132   : > { %v4595_v16 = vpack.c.bf16 %v1007_v41, %v949_v10 }
 0x134   : > { %5214 = vst [vmem:[#allocation25_spill] sm:$0xff] %v4595_v16 }
 0x135   : > { %v4601_v18 = vpop.f32.mrf.mxu2  ;;  %v1226_v21 = vpop.f32.mrf.mxu0 }
 0x136   : > { %5215 = vst [vmem:[#allocation26_spill] sm:$0xff] %v4601_v18  ;;  %v4603_v19 = vpop.f32.mrf.mxu3  ;;  %v1227_v22 = vadd.f32 %v1226_v21, %v4597_v17  ;;  %v1255_v23 = vpop.f32.mrf.mxu1 }
 0x137   : > { %5216 = vst [vmem:[#allocation27_spill] sm:$0xff] %v4603_v19 }
 0x138   : > { %v1256_v24 = vadd.f32 %v1255_v23, %v1227_v22 }
 0x13d   : > { %v1284_v26 = vpop.f32.mrf.mxu2  ;;  %v4609_v31 = vpop.f32.mrf.mxu0 }
 0x13e   : > { %v1285_v27 = vadd.f32 %v1284_v26, %v4606_v25  ;;  %v1313_v30 = vpop.f32.mrf.mxu3  ;;  %v4611_v6 = vpop.f32.mrf.mxu1 }
 0x140   : > { %v1314_v9 = vadd.f32 %v1313_v30, %v1285_v27 }
 0x142   : > { %v4613_v32 = vpack.c.bf16 %v1314_v9, %v1256_v24 }
 0x145   : > { %v4615_v36 = vpop.f32.mrf.mxu2  ;;  %v1231_v39 = vpop.f32.mrf.mxu0 }
 0x146   : > { %v4617_v37 = vpop.f32.mrf.mxu3  ;;  %v1260_v42 = vpop.f32.mrf.mxu1 }
 0x14d   : > { %v1289_v46 = vpop.f32.mrf.mxu2  ;;  %v1233_v48 = vpop.f32.mrf.mxu0 }
 0x14e   : > { %v1318_v47 = vpop.f32.mrf.mxu3  ;;  %v1262_v49 = vpop.f32.mrf.mxu1 }
 0x155   : > { %v1291_v50 = vpop.f32.mrf.mxu2  ;;  %v1236_v52 = vpop.f32.mrf.mxu0 }
 0x156   : > { %v1320_v51 = vpop.f32.mrf.mxu3  ;;  %v1265_v29 = vpop.f32.mrf.mxu1  ;;  %v1237_v23 = vadd.f32 %v1236_v52, %v4597_v17  ;;  %v1292_v52 = vadd.f32 %v1291_v50, %v4606_v25 }
 0x15d   : > { %v1294_v58 = vpop.f32.mrf.mxu2  ;;  %v1238_v60 = vpop.f32.mrf.mxu0 }
 0x15e   : > { %v1323_v59 = vpop.f32.mrf.mxu3  ;;  %v1267_v61 = vpop.f32.mrf.mxu1  ;;  %v1295_v24 = vadd.f32 %v1294_v58, %v4606_v25  ;;  %v1239_v26 = vadd.f32 %v1238_v60, %v4597_v17  ;;  %v1232_v60 = vadd.f32 %v1231_v39, %v4597_v17 }
 0x165   : > { %v1296_v62 = vpop.f32.mrf.mxu2  ;;  %v1241_v0 = vpop.f32.mrf.mxu0 }
 0x166   : > { %v1325_v63 = vpop.f32.mrf.mxu3  ;;  %v1270_v35 = vpop.f32.mrf.mxu1  ;;  %v1242_v8 = vadd.f32 %v1241_v0, %v4597_v17  ;;  %v1297_v21 = vadd.f32 %v1296_v62, %v4606_v25 }
 0x168   : > { %v1271_v12 = vadd.f32 %v1270_v35, %v1242_v8  ;;  %v1326_v35 = vadd.f32 %v1325_v63, %v1297_v21  ;;  %v1266_v8 = vadd.f32 %v1265_v29, %v1237_v23 }
 0x16d   : > { %v1299_v5 = vpop.f32.mrf.mxu2  ;;  %v1243_v11 = vpop.f32.mrf.mxu0 }
 0x16e   : > { %v1328_v7 = vpop.f32.mrf.mxu3  ;;  %v1300_v10 = vadd.f32 %v1299_v5, %v4606_v25  ;;  %v1244_v41 = vadd.f32 %v1243_v11, %v4597_v17  ;;  %v1272_v27 = vpop.f32.mrf.mxu1  ;;  %v1268_v11 = vadd.f32 %v1267_v61, %v1239_v26 }
 0x170   : > { %v1329_v13 = vadd.f32 %v1328_v7, %v1300_v10  ;;  %v1273_v0 = vadd.f32 %v1272_v27, %v1244_v41  ;;  %v1324_v10 = vadd.f32 %v1323_v59, %v1295_v24  ;;  %v1338_v19 = vpack.c.bf16 %v1326_v35, %v1268_v11 }
 0x171   : > { %v1321_v41 = vadd.f32 %v1320_v51, %v1292_v52  ;;  %v1229_v27 = vadd.f32 %v4609_v31, %v4597_v17 }
 0x172   : > { %v1339_v9 = vpack.c.bf16 %v1329_v13, %v1271_v12  ;;  %v1290_v12 = vadd.f32 %v1289_v46, %v4606_v25  ;;  %v1234_v13 = vadd.f32 %v1233_v48, %v4597_v17  ;;  %v1337_v63 = vpack.c.bf16 %v1324_v10, %v1266_v8 }
 0x173   : > { %v1700_v50 = vunpack.c.l.b16 %v1338_v19  ;;  %v1955_v21 = vunpack.c.h.b16 %v1338_v19  ;;  %v1287_v48 = vadd.f32 %v4615_v36, %v4606_v25  ;;  %v1258_v36 = vadd.f32 %v4611_v6, %v1229_v27 }
 0x174   : > { %v1701_v16 = vunpack.c.l.b16 %v1339_v9  ;;  %v1956_v62 = vunpack.c.h.b16 %v1339_v9  ;;  %v1319_v39 = vadd.f32 %v1318_v47, %v1290_v12  ;;  %v1699_v46 = vunpack.c.l.b16 %v1337_v63 }
 0x175   : > { %v1301_v15 = vpop.f32.mrf.mxu2  ;;  %v4631_v29 = vpop.f32.mrf.mxu0  ;;  %v1954_v23 = vunpack.c.h.b16 %v1337_v63  ;;  %v1316_v47 = vadd.f32 %v4617_v37, %v1287_v48  ;;  %v965_v17 = vadd.f32 %v4551_v44, %v4538_v20  ;;  %v907_v8 = vadd.f32 %v4541_v33, %v4535_v57  ;;  %v1373_v63 = vld [vmem:[#allocation13] sm:$0x3] }
 0x176   : > { %v1302_v22 = vadd.f32 %v1301_v15, %v4606_v25  ;;  %v1330_v30 = vpop.f32.mrf.mxu3  ;;  %v4635_v61 = vpop.f32.mrf.mxu1  ;;  %v1705_v24 = vpack.c.b16 %v1700_v50, %v1699_v46  ;;  %v1950_v33 = vunpack.c.h.b16 %v4613_v32  ;;  %v1934_v46 = vunpack.c.h.b16 %v4547_v43 }
 0x177   : > { %v1960_v26 = vpack.c.b16 %v1955_v21, %v1954_v23  ;;  %v1334_v31 = vpack.c.bf16 %v1316_v47, %v1258_v36  ;;  %v994_v10 = vadd.f32 %v4553_v45, %v965_v17  ;;  %v936_v44 = vadd.f32 %v4544_v38, %v907_v8 }
 0x178   : > { %v1331_v5 = vadd.f32 %v1330_v30, %v1302_v22  ;;  %v1263_v22 = vadd.f32 %v1262_v49, %v1234_v13  ;;  %v4669_v21 = vperm.slane %v1373_v63, 0  ;;  %v912_v27 = vadd.f32 %v4557_v53, %v4535_v57 }
 0x17a   : > { %v1340_v7 = vpack.c.bf16 %v1331_v5, %v1273_v0  ;;  %v1549_v23 = vadd.f32 %v4631_v29, %v4669_v21 }
 0x17c   : > { %v1702_v40 = vunpack.c.l.b16 %v1340_v7  ;;  %v1957_v15 = vunpack.c.h.b16 %v1340_v7 }
 0x17d   : > { %v4633_v59 = vpop.f32.mrf.mxu2  ;;  %v4643_v19 = vpop.f32.mrf.mxu0 }
 0x17e   : > { %v1706_v58 = vpack.c.b16 %v1702_v40, %v1701_v16  ;;  %v1961_v18 = vpack.c.b16 %v1957_v15, %v1956_v62  ;;  %v4637_v40 = vpop.f32.mrf.mxu3  ;;  %v1261_v16 = vadd.f32 %v1260_v42, %v1232_v60  ;;  %v4647_v42 = vpop.f32.mrf.mxu1  ;;  %v1696_v62 = vunpack.c.l.b16 %v1334_v31 }
 0x17f   : > { %v1951_v15 = vunpack.c.h.b16 %v1334_v31  ;;  %v1012_v60 = vpack.c.bf16 %v994_v10, %v936_v44 }
 0x180   : > { %1715 = vmatpush.bf16.xpose.msrb.mxu0 %v1706_v58  ;;  %1970 = vmatpush.bf16.xpose.msrb.mxu2 %v1961_v18  ;;  %v1336_v18 = vpack.c.bf16 %v1321_v41, %v1263_v22  ;;  %v1335_v30 = vpack.c.bf16 %v1319_v39, %v1261_v16  ;;  %v1695_v58 = vunpack.c.l.b16 %v4613_v32  ;;  %v4671_v16 = vperm.slane %v1373_v63, 1 }
 0x181   : > { %v1958_v13 = vpack.c.b16 %v1951_v15, %v1950_v33  ;;  %v1672_v41 = vunpack.c.l.b16 %v1012_v60  ;;  %v1935_v50 = vunpack.c.h.b16 %v1012_v60  ;;  %v1671_v32 = vunpack.c.l.b16 %v4547_v43 }
 0x182   : > { %v1698_v49 = vunpack.c.l.b16 %v1336_v18  ;;  %v1953_v9 = vunpack.c.h.b16 %v1336_v18  ;;  %v1697_v0 = vunpack.c.l.b16 %v1335_v30  ;;  %v1952_v5 = vunpack.c.h.b16 %v1335_v30 }
 0x183   : > { %v1703_v12 = vpack.c.b16 %v1696_v62, %v1695_v58  ;;  %v1607_v48 = vadd.f32 %v4633_v59, %v4671_v16  ;;  %v1679_v18 = vpack.c.b16 %v1672_v41, %v1671_v32  ;;  %v1578_v30 = vadd.f32 %v4635_v61, %v1549_v23 }
 0x184   : > { %v1704_v35 = vpack.c.b16 %v1698_v49, %v1697_v0  ;;  %v1959_v7 = vpack.c.b16 %v1953_v9, %v1952_v5  ;;  %v941_v0 = vadd.f32 %v4560_v28, %v912_v27  ;;  %v1673_v61 = vunpack.c.l.b16 %v4563_v54 }
 0x185   : > { %v4645_v51 = vpop.f32.mrf.mxu2  ;;  %v4657_v37 = vpop.f32.mrf.mxu0  ;;  %v1636_v43 = vadd.f32 %v4637_v40, %v1607_v48  ;;  %v1936_v40 = vunpack.c.h.b16 %v4563_v54  ;;  %v917_v62 = vadd.f32 %v4573_v1, %v4535_v57 }
 0x186   : > { %v4650_v25 = vpop.f32.mrf.mxu3  ;;  %v4662_v6 = vpop.f32.mrf.mxu1 }
 0x187   : > { %v4690_v49 = vpack.c.bf16 %v1636_v43, %v1578_v30  ;;  %v946_v33 = vadd.f32 %v4576_v34, %v917_v62 }
 0x188   : > { %1716 = vmatpush.bf16.xpose.msrb.mxu0 %v1705_v24  ;;  %1971 = vmatpush.bf16.xpose.msrb.mxu2 %v1960_v26  ;;  %v1942_v24 = vpack.c.b16 %v1935_v50, %v1934_v46  ;;  %v970_v26 = vadd.f32 %v4567_v55, %v4538_v20  ;;  %v1554_v50 = vadd.f32 %v4657_v37, %v4669_v21 }
 0x189   : > { %v1551_v37 = vadd.f32 %v4643_v19, %v4669_v21 }
 0x18a   : > { %v999_v29 = vadd.f32 %v4569_v56, %v970_v26  ;;  %v975_v56 = vadd.f32 %v4583_v3, %v4538_v20  ;;  %v1938_v26 = vunpack.c.h.b16 %v4579_v2 }
 0x18c   : > { %v1014_v55 = vpack.c.bf16 %v999_v29, %v941_v0  ;;  %v1004_v28 = vadd.f32 %v4585_v4, %v975_v56  ;;  %v1675_v4 = vunpack.c.l.b16 %v4579_v2 }
 0x18d   : > { %v4660_v11 = vpop.f32.mrf.mxu2  ;;  %v1555_v45 = vpop.f32.mrf.mxu0 }
 0x18e   : > { %v4664_v52 = vpop.f32.mrf.mxu3  ;;  %v4673_v22 = vpop.f32.mrf.mxu1  ;;  %v1674_v17 = vunpack.c.l.b16 %v1014_v55  ;;  %v1937_v53 = vunpack.c.h.b16 %v1014_v55  ;;  %v1016_v63 = vpack.c.bf16 %v1004_v28, %v946_v33  ;;  %v1612_v34 = vadd.f32 %v4660_v11, %v4671_v16 }
 0x18f   : > { %v1556_v23 = vadd.f32 %v1555_v45, %v4669_v21  ;;  %v1609_v11 = vadd.f32 %v4645_v51, %v4671_v16 }
 0x190   : > { %1717 = vmatpush.bf16.xpose.msrb.mxu0 %v1704_v35  ;;  %1972 = vmatpush.bf16.xpose.msrb.mxu2 %v1959_v7  ;;  %v1680_v8 = vpack.c.b16 %v1674_v17, %v1673_v61  ;;  %v1943_v10 = vpack.c.b16 %v1937_v53, %v1936_v40  ;;  %v1676_v27 = vunpack.c.l.b16 %v1016_v63  ;;  %v1939_v29 = vunpack.c.h.b16 %v1016_v63 }
 0x191   : > { %v1580_v61 = vadd.f32 %v4647_v42, %v1551_v37  ;;  %v5219_v42 = vld [vmem:[#allocation24_spill] sm:$0xff] }
 0x195   : > { %v1613_v39 = vpop.f32.mrf.mxu2  ;;  %v1558_v47 = vpop.f32.mrf.mxu0 }
 0x196   : > { %v4675_v38 = vpop.f32.mrf.mxu3  ;;  %v1587_v9 = vpop.f32.mrf.mxu1  ;;  %v1614_v48 = vadd.f32 %v1613_v39, %v4671_v16  ;;  %v1583_v39 = vadd.f32 %v4662_v6, %v1554_v50  ;;  %v5217_v6 = vld [vmem:[#allocation26_spill] sm:$0xff]  ;;  %v2103_v50 = vunpack.c.h.b16 %v4690_v49 }
 0x198   : > { %1718 = vmatpush.bf16.xpose.msrb.mxu0 %v1703_v12  ;;  %1973 = vmatpush.bf16.xpose.msrb.mxu2 %v1958_v13  ;;  %v1559_v12 = vadd.f32 %v1558_v47, %v4669_v21  ;;  %v1643_v17 = vadd.f32 %v4675_v38, %v1614_v48 }
 0x19d   : > { %v1616_v59 = vpop.f32.mrf.mxu2  ;;  %v1560_v5 = vpop.f32.mrf.mxu0 }
 0x19e   : > { %v1645_v36 = vpop.f32.mrf.mxu3  ;;  %v1589_v35 = vpop.f32.mrf.mxu1  ;;  %v1617_v3 = vadd.f32 %v1616_v59, %v4671_v16  ;;  %v1561_v1 = vadd.f32 %v1560_v5, %v4669_v21  ;;  %v1585_v5 = vadd.f32 %v4673_v22, %v1556_v23 }
 0x19f   : > { %1719 = vmatmul.bf16.vlgmr.msrb.gmra.mxu0 %v1679_v18  ;;  %1974 = vmatmul.bf16.vlgmr.msrb.gmra.mxu2 %v1942_v24  ;;  %v1588_v18 = vadd.f32 %v1587_v9, %v1559_v12  ;;  %v1641_v9 = vadd.f32 %v4664_v52, %v1612_v34  ;;  %v1944_v52 = vpack.c.b16 %v1939_v29, %v1938_v26 }
 0x1a0   : > { %v1646_v24 = vadd.f32 %v1645_v36, %v1617_v3  ;;  %v1590_v30 = vadd.f32 %v1589_v35, %v1561_v1 }
 0x1a1   : > { %v1657_v38 = vpack.c.bf16 %v1641_v9, %v1583_v39 }
 0x1a2   : > { %v1659_v19 = vpack.c.bf16 %v1646_v24, %v1588_v18  ;;  %v5220_v24 = vld [vmem:[#allocation25_spill] sm:$0xff] }
 0x1a3   : > { %v2105_v12 = vunpack.c.h.b16 %v1657_v38  ;;  %v1677_v26 = vunpack.c.l.b16 %v5220_v24 }
 0x1a4   : > { %v2107_v62 = vunpack.c.h.b16 %v1659_v19 }
 0x1a5   : > { %v1618_v31 = vpop.f32.mrf.mxu2  ;;  %v1563_v15 = vpop.f32.mrf.mxu0 }
 0x1a6   : > { %v1647_v7 = vpop.f32.mrf.mxu3  ;;  %v1592_v58 = vpop.f32.mrf.mxu1  ;;  %v1564_v60 = vadd.f32 %v1563_v15, %v4669_v21  ;;  %v1619_v41 = vadd.f32 %v1618_v31, %v4671_v16  ;;  %v1681_v31 = vpack.c.b16 %v1676_v27, %v1675_v4  ;;  %v1857_v4 = vunpack.c.l.b16 %v4690_v49  ;;  %v657_v49 = vld [vmem:[#allocation4] sm:$0xff] }
 0x1a7   : > { %v1940_v27 = vunpack.c.h.b16 %v5220_v24  ;;  %v2956_v37 = vadd.f32 -1.0, %v657_v49  ;;  %v663_v24 = vld [vmem:[#allocation4 + $0x30] sm:$0xff] }
 0x1a8   : > { %v1593_v32 = vadd.f32 %v1592_v58, %v1564_v60  ;;  %v1648_v43 = vadd.f32 %v1647_v7, %v1619_v41  ;;  %v980_v7 = vadd.f32 %v5217_v6, %v4538_v20 }
 0x1aa   : > { %v1660_v51 = vpack.c.bf16 %v1648_v43, %v1590_v30 }
 0x1ac   : > { %v1862_v28 = vunpack.c.l.b16 %v1660_v51  ;;  %v2108_v15 = vunpack.c.h.b16 %v1660_v51 }
 0x1ad   : > { %v1621_v44 = vpop.f32.mrf.mxu2  ;;  %v1565_v47 = vpop.f32.mrf.mxu0 }
 0x1ae   : > { %v1650_v54 = vpop.f32.mrf.mxu3  ;;  %v1622_v13 = vadd.f32 %v1621_v44, %v4671_v16  ;;  %v1566_v59 = vadd.f32 %v1565_v47, %v4669_v21  ;;  %v1594_v0 = vpop.f32.mrf.mxu1  ;;  %v922_v21 = vadd.f32 %v4589_v14, %v4535_v57  ;;  %v5218_v44 = vld [vmem:[#allocation27_spill] sm:$0xff]  ;;  %v2113_v1 = vpack.c.b16 %v2108_v15, %v2107_v62 }
 0x1af   : > { %1724 = vmatmul.bf16.gmra.mxu0 %v1680_v8  ;;  %1979 = vmatmul.bf16.gmra.mxu2 %v1943_v10  ;;  %v1658_v8 = vpack.c.bf16 %v1643_v17, %v1585_v5  ;;  %v1861_v10 = vunpack.c.l.b16 %v1659_v19  ;;  %v1009_v20 = vadd.f32 %v5218_v44, %v980_v7  ;;  %v659_v19 = vld [vmem:[#allocation4 + $0x10] sm:$0xff]  ;;  %v661_v44 = vld [vmem:[#allocation4 + $0x20] sm:$0xff] }
 0x1b0   : > { %v1651_v46 = vadd.f32 %v1650_v54, %v1622_v13  ;;  %v1595_v53 = vadd.f32 %v1594_v0, %v1566_v59  ;;  %v951_v60 = vadd.f32 %v5219_v42, %v922_v21  ;;  %v1859_v54 = vunpack.c.l.b16 %v1657_v38 }
 0x1b1   : > { %v1860_v3 = vunpack.c.l.b16 %v1658_v8  ;;  %v2106_v13 = vunpack.c.h.b16 %v1658_v8  ;;  %v1867_v63 = vpack.c.b16 %v1862_v28, %v1861_v10  ;;  %v2958_v21 = vadd.f32 -1.0, %v659_v19 }
 0x1b2   : > { %v1661_v2 = vpack.c.bf16 %v1651_v46, %v1593_v32  ;;  %v1018_v41 = vpack.c.bf16 %v1009_v20, %v951_v60  ;;  %v2960_v60 = vadd.f32 -1.0, %v661_v44 }
 0x1b3   : > { %v1866_v46 = vpack.c.b16 %v1860_v3, %v1859_v54  ;;  %v2112_v23 = vpack.c.b16 %v2106_v13, %v2105_v12 }
 0x1b4   : > { %v1863_v40 = vunpack.c.l.b16 %v1661_v2  ;;  %v2109_v22 = vunpack.c.h.b16 %v1661_v2  ;;  %v1678_v48 = vunpack.c.l.b16 %v1018_v41  ;;  %v1941_v18 = vunpack.c.h.b16 %v1018_v41 }
 0x1b5   : > { %v1623_v45 = vpop.f32.mrf.mxu2  ;;  %v677_v3 = vmul.f32 1e+09, %v2960_v60 }
 0x1b6   : > { %v1624_v36 = vadd.f32 %v1623_v45, %v4671_v16  ;;  %v1652_v55 = vpop.f32.mrf.mxu3  ;;  %v1638_v16 = vadd.f32 %v4650_v25, %v1609_v11  ;;  %v1682_v47 = vpack.c.b16 %v1678_v48, %v1677_v26  ;;  %v1945_v29 = vpack.c.b16 %v1941_v18, %v1940_v27  ;;  %v658_v45 = vld [vmem:[#allocation4 + $0x8] sm:$0xff] }
 0x1b7   : > { %v673_v11 = vmul.f32 1e+09, %v2956_v37  ;;  %v2957_v9 = vadd.f32 -1.0, %v658_v45  ;;  %v664_v45 = vld [vmem:[#allocation4 + $0x38] sm:$0xff] }
 0x1b8   : > { %v1653_v35 = vadd.f32 %v1652_v55, %v1624_v36  ;;  %v1656_v25 = vpack.c.bf16 %v1638_v16, %v1580_v61  ;;  %v675_v61 = vmul.f32 1e+09, %v2958_v21 }
 0x1b9   : > { %v674_v5 = vmul.f32 1e+09, %v2957_v9 }
 0x1ba   : > { %v1662_v56 = vpack.c.bf16 %v1653_v35, %v1595_v53  ;;  %v1858_v34 = vunpack.c.l.b16 %v1656_v25  ;;  %v2104_v32 = vunpack.c.h.b16 %v1656_v25 }
 0x1bc   : > { %v1864_v57 = vunpack.c.l.b16 %v1662_v56  ;;  %v2110_v14 = vunpack.c.h.b16 %v1662_v56  ;;  %v1865_v30 = vpack.c.b16 %v1858_v34, %v1857_v4  ;;  %v2111_v43 = vpack.c.b16 %v2104_v32, %v2103_v50 }
 0x1be   : > { %v1868_v58 = vpack.c.b16 %v1864_v57, %v1863_v40  ;;  %v2114_v33 = vpack.c.b16 %v2110_v14, %v2109_v22  ;;  %v660_v40 = vld [vmem:[#allocation4 + $0x18] sm:$0xff] }
 0x1bf   : > { %1729 = vmatmul.bf16.gmra.mxu0 %v1681_v31  ;;  %1984 = vmatmul.bf16.gmra.mxu2 %v1944_v52  ;;  %v2959_v10 = vadd.f32 -1.0, %v660_v40 }
 0x1c0   : > { %1889 = vmatpush.bf16.msrb.mxu1 %v1868_v58  ;;  %2135 = vmatpush.bf16.msrb.mxu3 %v2114_v33 }
 0x1c1   : > { %v676_v57 = vmul.f32 1e+09, %v2959_v10 }
 0x1c4   : > { %1890 = vmatpush.bf16.msrb.mxu1 %v1867_v63  ;;  %2136 = vmatpush.bf16.msrb.mxu3 %v2113_v1  ;;  %v662_v63 = vld [vmem:[#allocation4 + $0x28] sm:$0xff] }
 0x1c5   : > { %v2961_v34 = vadd.f32 -1.0, %v662_v63 }
 0x1c7   : > { %v678_v48 = vmul.f32 1e+09, %v2961_v34 }
 0x1c8   : > { %1891 = vmatpush.bf16.msrb.mxu1 %v1866_v46  ;;  %2137 = vmatpush.bf16.msrb.mxu3 %v2112_v23 }
 0x1cc   : > { %1892 = vmatpush.bf16.msrb.mxu1 %v1865_v30  ;;  %2138 = vmatpush.bf16.msrb.mxu3 %v2111_v43 }
 0x1cf   : > { %1734 = vmatmul.bf16.gmra.mxu0 %v1682_v47  ;;  %1989 = vmatmul.bf16.gmra.mxu2 %v1945_v29  ;;  %v2962_v47 = vadd.f32 -1.0, %v663_v24 }
 0x21c   : > { %v1720_v59 = vpop.f32.mrf.mxu0 }
 0x21d   : > { %v1740_v0 = vmul.f32 0.088388346, %v1720_v59 }
 0x21f   : > { %v4737_v39 = vadd.f32 %v1740_v0, %v673_v11 }
 0x221   : > { %v1757_v2 = vsel %vm1756_vm0, %v4737_v39, -inf }
 0x222   : > { %v1975_v36 = vpop.f32.mrf.mxu2  ;;  %1758 = vmax.xlane.f32.xlu0 %v1757_v2 }
 0x223   : > { %v1995_v55 = vmul.f32 0.088388346, %v1975_v36 }
 0x224   : > { %v1722_v17 = vpop.f32.mrf.mxu0 }
 0x225   : > { %v1741_v53 = vmul.f32 0.088388346, %v1722_v17  ;;  %v4741_v31 = vadd.f32 %v1995_v55, %v673_v11  ;;  %v679_v11 = vmul.f32 1e+09, %v2962_v47  ;;  %v2963_v55 = vadd.f32 -1.0, %v664_v45 }
 0x227   : > { %v2011_v51 = vsel %vm1756_vm0, %v4741_v31, -inf  ;;  %v4745_v35 = vadd.f32 %v1741_v53, %v674_v5  ;;  %v680_v53 = vmul.f32 1e+09, %v2963_v55 }
 0x228   : > { %2012 = vmax.xlane.f32.xlu1 %v2011_v51 }
 0x229   : > { %v1760_v6 = vsel %vm1756_vm0, %v4745_v35, -inf }
 0x22a   : > { %v1977_v7 = vpop.f32.mrf.mxu2  ;;  %1761 = vmax.xlane.f32.xlu0 %v1760_v6 }
 0x22b   : > { %v1996_v52 = vmul.f32 0.088388346, %v1977_v7 }
 0x22c   : > { %v1725_v16 = vpop.f32.mrf.mxu0 }
 0x22d   : > { %v1742_v22 = vmul.f32 0.088388346, %v1725_v16  ;;  %v4749_v56 = vadd.f32 %v1996_v52, %v674_v5 }
 0x22f   : > { %v2014_v38 = vsel %vm1756_vm0, %v4749_v56, -inf  ;;  %v4753_v8 = vadd.f32 %v1742_v22, %v675_v61 }
 0x230   : > { %2015 = vmax.xlane.f32.xlu1 %v2014_v38 }
 0x231   : > { %v1763_v62 = vsel %vm1756_vm0, %v4753_v8, -inf }
 0x232   : > { %v1980_v28 = vpop.f32.mrf.mxu2  ;;  %1764 = vmax.xlane.f32.xlu2 %v1763_v62 }
 0x233   : > { %v1997_v15 = vmul.f32 0.088388346, %v1980_v28 }
 0x234   : > { %v1727_v14 = vpop.f32.mrf.mxu0 }
 0x235   : > { %v1743_v20 = vmul.f32 0.088388346, %v1727_v14  ;;  %v4757_v58 = vadd.f32 %v1997_v15, %v675_v61 }
 0x237   : > { %v2017_v33 = vsel %vm1756_vm0, %v4757_v58, -inf  ;;  %v4761_v42 = vadd.f32 %v1743_v20, %v676_v57 }
 0x238   : > { %2018 = vmax.xlane.f32.xlu0 %v2017_v33 }
 0x239   : > { %v1766_v25 = vsel %vm1756_vm0, %v4761_v42, -inf }
 0x23a   : > { %v1982_v54 = vpop.f32.mrf.mxu2  ;;  %1767 = vmax.xlane.f32.xlu2 %v1766_v25 }
 0x23b   : > { %v1998_v12 = vmul.f32 0.088388346, %v1982_v54 }
 0x23c   : > { %v1730_v13 = vpop.f32.mrf.mxu0 }
 0x23d   : > { %v1744_v1 = vmul.f32 0.088388346, %v1730_v13  ;;  %v4765_v41 = vadd.f32 %v1998_v12, %v676_v57 }
 0x23f   : > { %v2020_v4 = vsel %vm1756_vm0, %v4765_v41, -inf  ;;  %v4769_v50 = vadd.f32 %v1744_v1, %v677_v3 }
 0x240   : > { %2021 = vmax.xlane.f32.xlu1 %v2020_v4 }
 0x241   : > { %v1769_v32 = vsel %vm1756_vm0, %v4769_v50, -inf }
 0x242   : > { %v1985_v46 = vpop.f32.mrf.mxu2  ;;  %1770 = vmax.xlane.f32.xlu2 %v1769_v32 }
 0x243   : > { %v1999_v23 = vmul.f32 0.088388346, %v1985_v46 }
 0x244   : > { %v1732_v18 = vpop.f32.mrf.mxu0 }
 0x245   : > { %v1745_v26 = vmul.f32 0.088388346, %v1732_v18  ;;  %v4773_v27 = vadd.f32 %v1999_v23, %v677_v3 }
 0x247   : > { %v2023_v30 = vsel %vm1756_vm0, %v4773_v27, -inf  ;;  %v4777_v43 = vadd.f32 %v1745_v26, %v678_v48 }
 0x248   : > { %2024 = vmax.xlane.f32.xlu1 %v2023_v30 }
 0x249   : > { %v1772_v29 = vsel %vm1756_vm0, %v4777_v43, -inf }
 0x24a   : > { %v1987_v49 = vpop.f32.mrf.mxu2  ;;  %1773 = vmax.xlane.f32.xlu0 %v1772_v29 }
 0x24b   : > { %v2000_v37 = vmul.f32 0.088388346, %v1987_v49 }
 0x24c   : > { %v1735_v59 = vpop.f32.mrf.mxu0 }
 0x24d   : > { %v1746_v0 = vmul.f32 0.088388346, %v1735_v59  ;;  %v4781_v9 = vadd.f32 %v2000_v37, %v678_v48 }
 0x24f   : > { %v2026_v2 = vsel %vm1756_vm0, %v4781_v9, -inf  ;;  %v4785_v36 = vadd.f32 %v1746_v0, %v679_v11 }
 0x250   : > { %2027 = vmax.xlane.f32.xlu2 %v2026_v2 }
 0x251   : > { %v1775_v5 = vsel %vm1756_vm0, %v4785_v36, -inf }
 0x252   : > { %v1990_v17 = vpop.f32.mrf.mxu2  ;;  %1776 = vmax.xlane.f32.xlu0 %v1775_v5 }
 0x253   : > { %v2001_v19 = vmul.f32 0.088388346, %v1990_v17 }
 0x254   : > { %v1737_v51 = vpop.f32.mrf.mxu0 }
 0x255   : > { %v1747_v21 = vmul.f32 0.088388346, %v1737_v51  ;;  %v4789_v6 = vadd.f32 %v2001_v19, %v679_v11 }
 0x257   : > { %v2029_v7 = vsel %vm1756_vm0, %v4789_v6, -inf  ;;  %v4793_v52 = vadd.f32 %v1747_v21, %v680_v53 }
 0x258   : > { %2030 = vmax.xlane.f32.xlu2 %v2029_v7 }
 0x259   : > { %v1778_v61 = vsel %vm1756_vm0, %v4793_v52, -inf }
 0x25a   : > { %v1992_v16 = vpop.f32.mrf.mxu2  ;;  %1779 = vmax.xlane.f32.xlu1 %v1778_v61 }
 0x25b   : > { %v2002_v40 = vmul.f32 0.088388346, %v1992_v16 }
 0x25d   : > { %v4797_v22 = vadd.f32 %v2002_v40, %v680_v53 }
 0x25f   : > { %v2032_v38 = vsel %vm1756_vm0, %v4797_v22, -inf }
 0x260   : > { %2033 = vmax.xlane.f32.xlu0 %v2032_v38 }
 0x295   : > { %v1759_v10 = vpop.xlane.xlu0 %1758 }
 0x296   : > { %v1781_v62 = vsub.f32 %v4737_v39, %v1759_v10 }
 0x298   : > { %v1789_v28 = vmul.f32 1.442695, %v1781_v62 }
 0x29a   : > { %3752 = vpow2.f32 %v1789_v28 }
 0x29b   : > { %v2013_v15 = vpop.xlane.xlu1 %2012 }
 0x29c   : > { %v2035_v57 = vsub.f32 %v4741_v31, %v2013_v15 }
 0x29d   : > { %v1762_v14 = vpop.xlane.xlu0 %1761 }
 0x29e   : > { %v2043_v44 = vmul.f32 1.442695, %v2035_v57  ;;  %v1782_v20 = vsub.f32 %v4745_v35, %v1762_v14 }
 0x2a0   : > { %v4804_v33 = vpop.eup %3752  ;;  %3754 = vpow2.f32 %v2043_v44  ;;  %v1791_v60 = vmul.f32 1.442695, %v1782_v20 }
 0x2a1   : > { %v1805_v25 = vsel %vm1756_vm0, %v4804_v33, 0.0 }
 0x2a2   : > { %3756 = vpow2.f32 %v1791_v60  ;;  %1806 = vadd.xlane.f32.xlu1 %v1805_v25 }
 0x2a3   : > { %v2016_v54 = vpop.xlane.xlu1 %2015 }
 0x2a4   : > { %v2036_v39 = vsub.f32 %v4749_v56, %v2016_v54 }
 0x2a5   : > { %v1765_v12 = vpop.xlane.xlu2 %1764 }
 0x2a6   : > { %v4809_v3 = vpop.eup %3754  ;;  %v2045_v31 = vmul.f32 1.442695, %v2036_v39  ;;  %v1783_v13 = vsub.f32 %v4753_v8, %v1765_v12 }
 0x2a7   : > { %v2059_v35 = vsel %vm1756_vm0, %v4809_v3, 0.0 }
 0x2a8   : > { %v4814_v63 = vpop.eup %3756  ;;  %3758 = vpow2.f32 %v2045_v31  ;;  %v1793_v1 = vmul.f32 1.442695, %v1783_v13  ;;  %2060 = vadd.xlane.f32.xlu0 %v2059_v35 }
 0x2a9   : > { %v1808_v4 = vsel %vm1756_vm0, %v4814_v63, 0.0 }
 0x2aa   : > { %3760 = vpow2.f32 %v1793_v1  ;;  %1809 = vadd.xlane.f32.xlu2 %v1808_v4 }
 0x2ab   : > { %v2019_v56 = vpop.xlane.xlu0 %2018 }
 0x2ac   : > { %v2037_v34 = vsub.f32 %v4757_v58, %v2019_v56 }
 0x2ad   : > { %v1768_v32 = vpop.xlane.xlu2 %1767 }
 0x2ae   : > { %v4819_v46 = vpop.eup %3758  ;;  %v2047_v8 = vmul.f32 1.442695, %v2037_v34  ;;  %v1784_v23 = vsub.f32 %v4761_v42, %v1768_v32 }
 0x2af   : > { %v2062_v48 = vsel %vm1756_vm0, %v4819_v46, 0.0 }
 0x2b0   : > { %v4824_v18 = vpop.eup %3760  ;;  %3762 = vpow2.f32 %v2047_v8  ;;  %v1795_v24 = vmul.f32 1.442695, %v1784_v23  ;;  %2063 = vadd.xlane.f32.xlu1 %v2062_v48 }
 0x2b1   : > { %v1811_v26 = vsel %vm1756_vm0, %v4824_v18, 0.0 }
 0x2b2   : > { %3764 = vpow2.f32 %v1795_v24  ;;  %1812 = vadd.xlane.f32.xlu2 %v1811_v26 }
 0x2b3   : > { %v2022_v58 = vpop.xlane.xlu1 %2021 }
 0x2b4   : > { %v2038_v30 = vsub.f32 %v4765_v41, %v2022_v58 }
 0x2b5   : > { %v1771_v47 = vpop.xlane.xlu2 %1770 }
 0x2b6   : > { %v4829_v29 = vpop.eup %3762  ;;  %v2049_v42 = vmul.f32 1.442695, %v2038_v30  ;;  %v1785_v49 = vsub.f32 %v4769_v50, %v1771_v47 }
 0x2b7   : > { %v2065_v37 = vsel %vm1756_vm0, %v4829_v29, 0.0 }
 0x2b8   : > { %v4834_v11 = vpop.eup %3764  ;;  %3766 = vpow2.f32 %v2049_v42  ;;  %v1797_v59 = vmul.f32 1.442695, %v1785_v49  ;;  %2066 = vadd.xlane.f32.xlu1 %v2065_v37 }
 0x2b9   : > { %v1814_v45 = vsel %vm1756_vm0, %v4834_v11, 0.0 }
 0x2ba   : > { %3768 = vpow2.f32 %v1797_v59  ;;  %1815 = vadd.xlane.f32.xlu0 %v1814_v45 }
 0x2bb   : > { %v2025_v41 = vpop.xlane.xlu1 %2024 }
 0x2bc   : > { %v2039_v0 = vsub.f32 %v4773_v27, %v2025_v41 }
 0x2bd   : > { %v1774_v2 = vpop.xlane.xlu0 %1773 }
 0x2be   : > { %v4839_v55 = vpop.eup %3766  ;;  %v2051_v50 = vmul.f32 1.442695, %v2039_v0  ;;  %v1786_v5 = vsub.f32 %v4777_v43, %v1774_v2 }
 0x2bf   : > { %v2068_v17 = vsel %vm1756_vm0, %v4839_v55, 0.0 }
 0x2c0   : > { %v4844_v19 = vpop.eup %3768  ;;  %3770 = vpow2.f32 %v2051_v50  ;;  %v1799_v53 = vmul.f32 1.442695, %v1786_v5  ;;  %2069 = vadd.xlane.f32.xlu2 %v2068_v17 }
 0x2c1   : > { %v1817_v51 = vsel %vm1756_vm0, %v4844_v19, 0.0 }
 0x2c2   : > { %3772 = vpow2.f32 %v1799_v53  ;;  %1818 = vadd.xlane.f32.xlu0 %v1817_v51 }
 0x2c3   : > { %v2028_v27 = vpop.xlane.xlu2 %2027 }
 0x2c4   : > { %v2040_v21 = vsub.f32 %v4781_v9, %v2028_v27 }
 0x2c5   : > { %v1777_v7 = vpop.xlane.xlu0 %1776 }
 0x2c6   : > { %v4849_v61 = vpop.eup %3770  ;;  %v2053_v43 = vmul.f32 1.442695, %v2040_v21  ;;  %v1787_v16 = vsub.f32 %v4785_v36, %v1777_v7  ;;  %v3600_v21 = vld [vmem:[#allocation15 + $0x74] sm:$0xf0] }
 0x2c7   : > { %v2071_v40 = vsel %vm1756_vm0, %v4849_v61, 0.0 }
 0x2c8   : > { %v4854_v38 = vpop.eup %3772  ;;  %3774 = vpow2.f32 %v2053_v43  ;;  %v1801_v10 = vmul.f32 1.442695, %v1787_v16  ;;  %2072 = vadd.xlane.f32.xlu2 %v2071_v40  ;;  %v3480_v43 = vld [vmem:[#allocation15 + $0x78] sm:$0xf0]  ;;  %v3470_v16 = vld [vmem:[#allocation15 + $0x60] sm:$0xf] }
 0x2c9   : > { %v1820_v62 = vsel %vm1756_vm0, %v4854_v38, 0.0  ;;  %v3598_v40 = vld [vmem:[#allocation15 + $0x64] sm:$0xf0] }
 0x2ca   : > { %3776 = vpow2.f32 %v1801_v10  ;;  %1821 = vadd.xlane.f32.xlu1 %v1820_v62  ;;  %v3597_v62 = vld [vmem:[#allocation15 + $0x64] sm:$0xf] }
 0x2cb   : > { %v2031_v9 = vpop.xlane.xlu2 %2030 }
 0x2cc   : > { %v2041_v28 = vsub.f32 %v4789_v6, %v2031_v9  ;;  %v3472_v9 = vld [vmem:[#allocation15 + $0x68] sm:$0xf0] }
 0x2cd   : > { %v1780_v15 = vpop.xlane.xlu1 %1779 }
 0x2ce   : > { %v4859_v57 = vpop.eup %3774  ;;  %v2055_v36 = vmul.f32 1.442695, %v2041_v28  ;;  %v1788_v14 = vsub.f32 %v4793_v52, %v1780_v15  ;;  %v3596_v15 = vld [vmem:[#allocation15 + $0x54] sm:$0xf0] }
 0x2cf   : > { %v2074_v44 = vsel %vm1756_vm0, %v4859_v57, 0.0 }
 0x2d0   : > { %v4864_v20 = vpop.eup %3776  ;;  %3778 = vpow2.f32 %v2055_v36  ;;  %v1803_v60 = vmul.f32 1.442695, %v1788_v14  ;;  %2075 = vadd.xlane.f32.xlu0 %v2074_v44  ;;  %v3595_v36 = vld [vmem:[#allocation15 + $0x54] sm:$0xf]  ;;  %v3464_v14 = vld [vmem:[#allocation15 + $0x58] sm:$0xf0] }
 0x2d1   : > { %v1823_v25 = vsel %vm1756_vm0, %v4864_v20, 0.0 }
 0x2d2   : > { %3780 = vpow2.f32 %v1803_v60  ;;  %1824 = vadd.xlane.f32.xlu1 %v1823_v25  ;;  %v3475_v60 = vor.u32 %v3597_v62, %v3472_v9  ;;  %v3414_v25 = vld [vmem:[#allocation15 + $0xf0] sm:$0xf]  ;;  %v3612_v62 = vld [vmem:[#allocation15 + $0xd4] sm:$0xf0]  ;;  %v3611_v9 = vld [vmem:[#allocation15 + $0xd4] sm:$0xf] }
 0x2d3   : > { %v2034_v6 = vpop.xlane.xlu0 %2033 }
 0x2d4   : > { %v2042_v54 = vsub.f32 %v4797_v22, %v2034_v6  ;;  %v3616_v6 = vld [vmem:[#allocation15 + $0xf4] sm:$0xf0] }
 0x2d6   : > { %v4869_v39 = vpop.eup %3778  ;;  %v2057_v12 = vmul.f32 1.442695, %v2042_v54  ;;  %v3615_v54 = vld [vmem:[#allocation15 + $0xf4] sm:$0xf] }
 0x2d7   : > { %v2077_v52 = vsel %vm1756_vm0, %v4869_v39, 0.0 }
 0x2d8   : > { %v4873_v31 = vpop.eup %3780  ;;  %3782 = vpow2.f32 %v2057_v12  ;;  %2078 = vadd.xlane.f32.xlu0 %v2077_v52  ;;  %v3415_v52 = vor.u32 %v3616_v6, %v3414_v25  ;;  %v3609_v25 = vld [vmem:[#allocation15 + $0xc4] sm:$0xf] }
 0x2d9   : > { %v1826_v13 = vsel %vm1756_vm0, %v4873_v31, 0.0 }
 0x2da   : > { %1827 = vadd.xlane.f32.xlu2 %v1826_v13  ;;  %v3416_v13 = vld [vmem:[#allocation15 + $0xf8] sm:$0xf0]  ;;  %2260 = vmatpush.bf16.msra.mxu0 %v3415_v52  ;;  %v3588_v52 = vld [vmem:[#allocation15 + $0x14] sm:$0xf0] }
 0x2de   : > { %v4877_v35 = vpop.eup %3782 }
 0x2df   : > { %v2080_v1 = vsel %vm1756_vm0, %v4877_v35, 0.0 }
 0x2e0   : > { %2081 = vadd.xlane.f32.xlu1 %v2080_v1 }
 0x315   : > { %v1807_v22 = vpop.xlane.xlu1 %1806 }
 0x316   : > { %3784 = vrcp.f32 %v1807_v22 }
 0x31b   : > { %v2061_v56 = vpop.xlane.xlu0 %2060 }
 0x31c   : > { %v3785_v34 = vpop.eup %3784 }
 0x31d   : > { %v1810_v4 = vpop.xlane.xlu2 %1809  ;;  %v1837_v23 = vmul.f32 %v3785_v34, %v4804_v33 }
 0x31e   : > { %3786 = vrcp.f32 %v1810_v4  ;;  %v3419_v4 = vor.u32 %v3615_v54, %v3416_v13  ;;  %v3587_v13 = vld [vmem:[#allocation15 + $0x14] sm:$0xf] }
 0x31f   : > { %3788 = vrcp.f32 %v2061_v56  ;;  %v3406_v56 = vld [vmem:[#allocation15 + $0xe0] sm:$0xf] }
 0x320   : > { %2289 = vmatpush.bf16.msra.mxu1 %v3419_v4 }
 0x323   : > { %v2064_v32 = vpop.xlane.xlu1 %2063 }
 0x324   : > { %v3787_v8 = vpop.eup %3786  ;;  %3790 = vrcp.f32 %v2064_v32  ;;  %v3467_v32 = vor.u32 %v3595_v36, %v3464_v14  ;;  %v3589_v36 = vld [vmem:[#allocation15 + $0x24] sm:$0xf]  ;;  %v3440_v14 = vld [vmem:[#allocation15 + $0x28] sm:$0xf0] }
 0x325   : > { %v1838_v48 = vmul.f32 %v3787_v8, %v4814_v63  ;;  %v3789_v26 = vpop.eup %3788  ;;  %v1813_v58 = vpop.xlane.xlu2 %1812  ;;  %v3614_v8 = vld [vmem:[#allocation15 + $0xe4] sm:$0xf0] }
 0x326   : > { %v2091_v47 = vmul.f32 %v3789_v26, %v4809_v3  ;;  %3792 = vrcp.f32 %v1813_v58  ;;  %v3454_v26 = vld [vmem:[#allocation15 + $0x40] sm:$0xf]  ;;  %v3594_v58 = vld [vmem:[#allocation15 + $0x44] sm:$0xf0] }
 0x327   : > { %v1845_v24 = vpack.c.bf16 %v1838_v48, %v1837_v23  ;;  %v3613_v23 = vld [vmem:[#allocation15 + $0xe4] sm:$0xf]  ;;  %v3408_v48 = vld [vmem:[#allocation15 + $0xe8] sm:$0xf0] }
 0x329   : > { %3348 = vmatmul.msk.bf16.vlgmr.msrb.gmra.mxu1 %vm1756_vm0, %v1845_v24 }
 0x32a   : > { %v3791_v30 = vpop.eup %3790 }
 0x32b   : > { %v2092_v42 = vmul.f32 %v3791_v30, %v4819_v46  ;;  %v2067_v59 = vpop.xlane.xlu1 %2066  ;;  %v3407_v30 = vor.u32 %v3614_v8, %v3406_v56  ;;  %v3382_v56 = vld [vmem:[#allocation15 + $0xb0] sm:$0xf] }
 0x32c   : > { %v3793_v33 = vpop.eup %3792 }
 0x32d   : > { %v2099_v49 = vpack.c.bf16 %v2092_v42, %v2091_v47  ;;  %v1816_v37 = vpop.xlane.xlu0 %1815  ;;  %v1839_v41 = vmul.f32 %v3793_v33, %v4824_v18  ;;  %v3478_v18 = vld [vmem:[#allocation15 + $0x70] sm:$0xf]  ;;  %v3411_v47 = vor.u32 %v3613_v23, %v3408_v48  ;;  %2261 = vmatpush.bf16.msra.mxu0 %v3407_v30  ;;  %v3384_v23 = vld [vmem:[#allocation15 + $0xb8] sm:$0xf0]  ;;  %v3422_v48 = vld [vmem:[#allocation15] sm:$0xf] }
 0x32e   : > { %3794 = vrcp.f32 %v1816_v37  ;;  %v3479_v7 = vor.u32 %v3600_v21, %v3478_v18  ;;  %v3585_v30 = vld [vmem:[#allocation15 + $0x4] sm:$0xf] }
 0x32f   : > { %3352 = vmatmul.msk.bf16.vlgmr.msrb.gmra.mxu3 %vm1756_vm0, %v2099_v49  ;;  %3796 = vrcp.f32 %v2067_v59  ;;  %v3456_v49 = vld [vmem:[#allocation15 + $0x48] sm:$0xf0]  ;;  %v3455_v59 = vor.u32 %v3594_v58, %v3454_v26  ;;  %2290 = vmatpush.bf16.msra.mxu1 %v3411_v47 }
 0x330   : > { %2398 = vmatpush.bf16.msra.mxu2 %v3479_v7  ;;  %v3424_v47 = vld [vmem:[#allocation15 + $0x8] sm:$0xf0] }
 0x333   : > { %v2070_v63 = vpop.xlane.xlu2 %2069 }
 0x334   : > { %v3795_v45 = vpop.eup %3794  ;;  %3798 = vrcp.f32 %v2070_v63 }
 0x335   : > { %v1840_v0 = vmul.f32 %v3795_v45, %v4834_v11  ;;  %v3797_v3 = vpop.eup %3796  ;;  %v1819_v50 = vpop.xlane.xlu0 %1818  ;;  %v3599_v11 = vld [vmem:[#allocation15 + $0x74] sm:$0xf]  ;;  %v3446_v45 = vld [vmem:[#allocation15 + $0x30] sm:$0xf] }
 0x336   : > { %v2093_v5 = vmul.f32 %v3797_v3, %v4829_v29  ;;  %3800 = vrcp.f32 %v1819_v50  ;;  %v3483_v10 = vor.u32 %v3599_v11, %v3480_v43  ;;  %v3462_v29 = vld [vmem:[#allocation15 + $0x50] sm:$0xf]  ;;  %v3591_v50 = vld [vmem:[#allocation15 + $0x34] sm:$0xf] }
 0x337   : > { %v1846_v2 = vpack.c.bf16 %v1840_v0, %v1839_v41  ;;  %v3463_v34 = vor.u32 %v3596_v15, %v3462_v29  ;;  %v3592_v41 = vld [vmem:[#allocation15 + $0x34] sm:$0xf0] }
 0x338   : > { %2427 = vmatpush.bf16.msra.mxu3 %v3483_v10  ;;  %v3398_v10 = vld [vmem:[#allocation15 + $0xd0] sm:$0xf] }
 0x339   : > { %3349 = vmatmul.msk.bf16.gmra.mxu1 %vm1756_vm0, %v1846_v2  ;;  %v3399_v29 = vor.u32 %v3612_v62, %v3398_v10 }
 0x33a   : > { %v3799_v46 = vpop.eup %3798 }
 0x33b   : > { %v2094_v17 = vmul.f32 %v3799_v46, %v4839_v55  ;;  %v2073_v27 = vpop.xlane.xlu2 %2072  ;;  %v3471_v55 = vor.u32 %v3598_v40, %v3470_v16  ;;  %v3448_v46 = vld [vmem:[#allocation15 + $0x38] sm:$0xf0]  ;;  %2262 = vmatpush.bf16.msra.mxu0 %v3399_v29 }
 0x33c   : > { %v3801_v28 = vpop.eup %3800  ;;  %2428 = vmatpush.bf16.msra.mxu3 %v3475_v60  ;;  %v3443_v60 = vor.u32 %v3589_v36, %v3440_v14 }
 0x33d   : > { %v1822_v53 = vpop.xlane.xlu1 %1821  ;;  %v2100_v51 = vpack.c.bf16 %v2094_v17, %v2093_v5  ;;  %v1841_v1 = vmul.f32 %v3801_v28, %v4844_v19  ;;  %2399 = vmatpush.bf16.msra.mxu2 %v3471_v55  ;;  %v3447_v5 = vor.u32 %v3592_v41, %v3446_v45  ;;  %v3400_v28 = vld [vmem:[#allocation15 + $0xd8] sm:$0xf0]  ;;  %v3590_v55 = vld [vmem:[#allocation15 + $0x24] sm:$0xf0]  ;;  %v3604_v45 = vld [vmem:[#allocation15 + $0x94] sm:$0xf0] }
 0x33e   : > { %3802 = vrcp.f32 %v1822_v53  ;;  %v3603_v41 = vld [vmem:[#allocation15 + $0x94] sm:$0xf] }
 0x33f   : > { %3353 = vmatmul.msk.bf16.gmra.mxu3 %vm1756_vm0, %v2100_v51  ;;  %3804 = vrcp.f32 %v2073_v27 }
 0x340   : > { %2429 = vmatpush.bf16.msra.mxu3 %v3467_v32  ;;  %v3607_v32 = vld [vmem:[#allocation15 + $0xb4] sm:$0xf] }
 0x341   : > { %2400 = vmatpush.bf16.msra.mxu2 %v3463_v34  ;;  %v3608_v34 = vld [vmem:[#allocation15 + $0xb4] sm:$0xf0]  ;;  %v3387_v26 = vor.u32 %v3607_v32, %v3384_v23 }
 0x342   : > { %v3383_v8 = vor.u32 %v3608_v34, %v3382_v56  ;;  %v3834_v34 = vld [vmem:[%s4469_s20] sm:$0xff] }
 0x343   : > { %v2076_v44 = vpop.xlane.xlu0 %2075 }
 0x344   : > { %v3803_v12 = vpop.eup %3802  ;;  %3806 = vrcp.f32 %v2076_v44  ;;  %v3390_v44 = vld [vmem:[#allocation15 + $0xc0] sm:$0xf] }
 0x345   : > { %v1842_v22 = vmul.f32 %v3803_v12, %v4854_v38  ;;  %v3805_v42 = vpop.eup %3804  ;;  %v1825_v19 = vpop.xlane.xlu1 %1824  ;;  %v3593_v38 = vld [vmem:[#allocation15 + $0x44] sm:$0xf]  ;;  %2401 = vmatpush.bf16.msra.mxu2 %v3455_v59  ;;  %v3430_v12 = vld [vmem:[#allocation15 + $0x10] sm:$0xf]  ;;  %v3376_v59 = vld [vmem:[#allocation15 + $0xa8] sm:$0xf0] }
 0x346   : > { %v2095_v33 = vmul.f32 %v3805_v42, %v4849_v61  ;;  %3808 = vrcp.f32 %v1825_v19  ;;  %v3459_v0 = vor.u32 %v3593_v38, %v3456_v49  ;;  %v3451_v61 = vor.u32 %v3591_v50, %v3448_v46  ;;  %v3374_v19 = vld [vmem:[#allocation15 + $0xa0] sm:$0xf]  ;;  %v3606_v38 = vld [vmem:[#allocation15 + $0xa4] sm:$0xf0]  ;;  %v3605_v49 = vld [vmem:[#allocation15 + $0xa4] sm:$0xf] }
 0x347   : > { %v1847_v24 = vpack.c.bf16 %v1842_v22, %v1841_v1  ;;  %v3431_v1 = vor.u32 %v3588_v52, %v3430_v12  ;;  %v3432_v22 = vld [vmem:[#allocation15 + $0x18] sm:$0xf0]  ;;  %v3427_v42 = vor.u32 %v3585_v30, %v3424_v47  ;;  %v3358_v50 = vld [vmem:[#allocation15 + $0x80] sm:$0xf]  ;;  %v3602_v46 = vld [vmem:[#allocation15 + $0x84] sm:$0xf0] }
 0x348   : > { %2430 = vmatpush.bf16.msra.mxu3 %v3459_v0  ;;  %v3435_v4 = vor.u32 %v3587_v13, %v3432_v22 }
 0x349   : > { %3350 = vmatmul.msk.bf16.gmra.mxu1 %vm1756_vm0, %v1847_v24  ;;  %2402 = vmatpush.bf16.msra.mxu2 %v3447_v5  ;;  %v3586_v24 = vld [vmem:[#allocation15 + $0x4] sm:$0xf0]  ;;  %v3601_v5 = vld [vmem:[#allocation15 + $0x84] sm:$0xf] }
 0x34a   : > { %v3807_v37 = vpop.eup %3806  ;;  %v3423_v58 = vor.u32 %v3586_v24, %v3422_v48 }
 0x34b   : > { %v2096_v63 = vmul.f32 %v3807_v37, %v4859_v57  ;;  %v2079_v17 = vpop.xlane.xlu0 %2078  ;;  %v3375_v37 = vor.u32 %v3606_v38, %v3374_v19 }
 0x34c   : > { %v3809_v53 = vpop.eup %3808  ;;  %2431 = vmatpush.bf16.msra.mxu3 %v3451_v61  ;;  %v3360_v61 = vld [vmem:[#allocation15 + $0x88] sm:$0xf0] }
 0x34d   : > { %v1828_v2 = vpop.xlane.xlu2 %1827  ;;  %v2101_v3 = vpack.c.bf16 %v2096_v63, %v2095_v33  ;;  %v1843_v27 = vmul.f32 %v3809_v53, %v4864_v20  ;;  %v3438_v20 = vld [vmem:[#allocation15 + $0x20] sm:$0xf]  ;;  %v3379_v33 = vor.u32 %v3605_v49, %v3376_v59  ;;  %v3366_v63 = vld [vmem:[#allocation15 + $0x90] sm:$0xf]  ;;  %v3363_v53 = vor.u32 %v3601_v5, %v3360_v61 }
 0x34e   : > { %3810 = vrcp.f32 %v1828_v2  ;;  %v3439_v15 = vor.u32 %v3590_v55, %v3438_v20  ;;  %v3367_v0 = vor.u32 %v3604_v45, %v3366_v63  ;;  %v3368_v2 = vld [vmem:[#allocation15 + $0x98] sm:$0xf0]  ;;  %v3836_v49 = vld [vmem:[%s4469_s20 + $0x10] sm:$0xff]  ;;  %v3837_v59 = vld [vmem:[%s4469_s20 + $0x18] sm:$0xff] }
 0x34f   : > { %3354 = vmatmul.msk.bf16.gmra.mxu3 %vm1756_vm0, %v2101_v3  ;;  %3812 = vrcp.f32 %v2079_v17  ;;  %v3371_v3 = vor.u32 %v3603_v41, %v3368_v2  ;;  %v3359_v17 = vor.u32 %v3602_v46, %v3358_v50 }
 0x350   : > { %2403 = vmatpush.bf16.msra.mxu2 %v3439_v15  ;;  %2432 = vmatpush.bf16.msra.mxu3 %v3443_v60 }
 0x353   : > { %v2082_v57 = vpop.xlane.xlu1 %2081 }
 0x354   : > { %v3811_v51 = vpop.eup %3810  ;;  %3814 = vrcp.f32 %v2082_v57  ;;  %2404 = vmatpush.bf16.msra.mxu2 %v3431_v1  ;;  %2433 = vmatpush.bf16.msra.mxu3 %v3435_v4 }
 0x355   : > { %v1844_v18 = vmul.f32 %v3811_v51, %v4873_v31  ;;  %v3813_v11 = vpop.eup %3812  ;;  %v3403_v31 = vor.u32 %v3611_v9, %v3400_v28 }
 0x356   : > { %v2097_v43 = vmul.f32 %v3813_v11, %v4869_v39  ;;  %v3610_v39 = vld [vmem:[#allocation15 + $0xc4] sm:$0xf0] }
 0x357   : > { %v1848_v21 = vpack.c.bf16 %v1844_v18, %v1843_v27  ;;  %2291 = vmatpush.bf16.msra.mxu1 %v3403_v31  ;;  %v3391_v6 = vor.u32 %v3610_v39, %v3390_v44 }
 0x358   : > { %2405 = vmatpush.bf16.msra.mxu2 %v3423_v58  ;;  %2434 = vmatpush.bf16.msra.mxu3 %v3427_v42 }
 0x359   : > { %3351 = vmatmul.msk.bf16.gmra.mxu1 %vm1756_vm0, %v1848_v21  ;;  %2263 = vmatpush.bf16.msra.mxu0 %v3391_v6  ;;  %v2472_v6 = vld [vmem:[#allocation16] sm:$0x3] }
 0x35a   : > { %v3815_v7 = vpop.eup %3814  ;;  %v4905_v1 = vperm.slane %v2472_v6, 0  ;;  %v4907_v22 = vperm.slane %v2472_v6, 1 }
 0x35b   : > { %v2098_v16 = vmul.f32 %v3815_v7, %v4877_v35  ;;  %v3392_v35 = vld [vmem:[#allocation15 + $0xc8] sm:$0xf0] }
 0x35c   : > { %v3395_v54 = vor.u32 %v3609_v25, %v3392_v35 }
 0x35d   : > { %v2102_v40 = vpack.c.bf16 %v2098_v16, %v2097_v43  ;;  %2264 = vmatpush.bf16.msra.mxu0 %v3383_v8  ;;  %v3835_v8 = vld [vmem:[%s4469_s20 + $0x8] sm:$0xff] }
 0x35e   : > { %2292 = vmatpush.bf16.msra.mxu1 %v3395_v54 }
 0x35f   : > { %3355 = vmatmul.msk.bf16.gmra.mxu3 %vm1756_vm0, %v2102_v40 }
 0x361   : > { %2265 = vmatpush.bf16.msra.mxu0 %v3375_v37 }
 0x362   : > { %2293 = vmatpush.bf16.msra.mxu1 %v3387_v26 }
 0x365   : > { %2266 = vmatpush.bf16.msra.mxu0 %v3367_v0 }
 0x366   : > { %2294 = vmatpush.bf16.msra.mxu1 %v3379_v33 }
 0x369   : > { %2267 = vmatpush.bf16.msra.mxu0 %v3359_v17  ;;  %v3838_v17 = vld [vmem:[%s4469_s20 + $0x20] sm:$0xff] }
 0x36a   : > { %2295 = vmatpush.bf16.msra.mxu1 %v3371_v3 }
 0x36e   : > { %2296 = vmatpush.bf16.msra.mxu1 %v3363_v53  ;;  %v3839_v53 = vld [vmem:[%s4469_s20 + $0x28] sm:$0xff] }
 0x3a6   : > { %v1894_v57 = vpop.f32.mrf.mxu1 }
 0x3ae   : > { %v1896_v51 = vpop.f32.mrf.mxu1 }
 0x3af   : > { %v1914_v27 = vpack.c.bf16 %v1896_v51, %v1894_v57 }
 0x3b1   : > { %2406 = vmatmul.bf16.vlgmr.msra.gmra.mxu2 %v1914_v27  ;;  %2435 = vmatmul.bf16.vlgmr.msra.gmra.mxu3 %v1914_v27 }
 0x3b2   : > { %v2140_v18 = vpop.f32.mrf.mxu3 }
 0x3b6   : > { %v1899_v21 = vpop.f32.mrf.mxu1 }
 0x3ba   : > { %v2142_v11 = vpop.f32.mrf.mxu3 }
 0x3bb   : > { %v2160_v7 = vpack.c.bf16 %v2142_v11, %v2140_v18 }
 0x3bd   : > { %2268 = vmatmul.bf16.vlgmr.msra.gmra.mxu0 %v2160_v7  ;;  %2297 = vmatmul.bf16.vlgmr.msra.gmra.mxu1 %v2160_v7 }
 0x3be   : > { %v1901_v43 = vpop.f32.mrf.mxu1 }
 0x3bf   : > { %v1915_v16 = vpack.c.bf16 %v1901_v43, %v1899_v21 }
 0x3c1   : > { %2411 = vmatmul.bf16.gmra.mxu2 %v1915_v16  ;;  %2440 = vmatmul.bf16.gmra.mxu3 %v1915_v16 }
 0x3c2   : > { %v2145_v40 = vpop.f32.mrf.mxu3 }
 0x3c6   : > { %v1904_v10 = vpop.f32.mrf.mxu1 }
 0x3ca   : > { %v2147_v62 = vpop.f32.mrf.mxu3 }
 0x3cb   : > { %v2161_v9 = vpack.c.bf16 %v2147_v62, %v2145_v40 }
 0x3cd   : > { %2273 = vmatmul.bf16.gmra.mxu0 %v2161_v9  ;;  %2302 = vmatmul.bf16.gmra.mxu1 %v2161_v9  ;;  %v3841_v9 = vld [vmem:[%s4469_s20 + $0x38] sm:$0xff] }
 0x3ce   : > { %v1906_v29 = vpop.f32.mrf.mxu1 }
 0x3cf   : > { %v1916_v28 = vpack.c.bf16 %v1906_v29, %v1904_v10  ;;  %v3840_v10 = vld [vmem:[%s4469_s20 + $0x30] sm:$0xff] }
 0x3d1   : > { %2416 = vmatmul.bf16.gmra.mxu2 %v1916_v28  ;;  %2445 = vmatmul.bf16.gmra.mxu3 %v1916_v28 }
 0x3d2   : > { %v2150_v20 = vpop.f32.mrf.mxu3 }
 0x3d6   : > { %v1909_v55 = vpop.f32.mrf.mxu1 }
 0x3da   : > { %v2152_v31 = vpop.f32.mrf.mxu3 }
 0x3db   : > { %v2162_v15 = vpack.c.bf16 %v2152_v31, %v2150_v20 }
 0x3dd   : > { %2278 = vmatmul.bf16.gmra.mxu0 %v2162_v15  ;;  %2307 = vmatmul.bf16.gmra.mxu1 %v2162_v15 }
 0x3de   : > { %v1911_v36 = vpop.f32.mrf.mxu1 }
 0x3df   : > { %v1917_v14 = vpack.c.bf16 %v1911_v36, %v1909_v55 }
 0x3e1   : > { %2421 = vmatmul.bf16.gmra.mxu2 %v1917_v14  ;;  %2450 = vmatmul.bf16.gmra.mxu3 %v1917_v14 }
 0x3e2   : > { %v2155_v44 = vpop.f32.mrf.mxu3 }
 0x3ea   : > { %v2157_v60 = vpop.f32.mrf.mxu3 }
 0x3eb   : > { %v2163_v39 = vpack.c.bf16 %v2157_v60, %v2155_v44  ;;  %v3842_v44 = vld [vmem:[%s4469_s20 + $0x40] sm:$0xff] }
 0x3ed   : > { %2283 = vmatmul.bf16.gmra.mxu0 %v2163_v39  ;;  %2312 = vmatmul.bf16.gmra.mxu1 %v2163_v39  ;;  %v3843_v39 = vld [vmem:[%s4469_s20 + $0x48] sm:$0xff] }
 0x434   : > { %v2407_v25 = vpop.f32.mrf.mxu2  ;;  %v2436_v35 = vpop.f32.mrf.mxu3 }
 0x43a   : > { %v2269_v54 = vpop.f32.mrf.mxu0  ;;  %v2298_v12 = vpop.f32.mrf.mxu1 }
 0x43b   : > { %v2408_v52 = vadd.f32 %v2407_v25, %v2269_v54  ;;  %v2437_v13 = vadd.f32 %v2436_v35, %v2298_v12 }
 0x43c   : > { %v2409_v4 = vpop.f32.mrf.mxu2  ;;  %v2438_v56 = vpop.f32.mrf.mxu3 }
 0x43d   : > { %v2456_v32 = vadd.f32 %v3834_v34, %v2408_v52  ;;  %v2457_v23 = vadd.f32 %v3835_v8, %v2437_v13 }
 0x43f   : > { %v4912_v48 = vadd.f32 %v4905_v1, %v2456_v32  ;;  %v4915_v24 = vadd.f32 %v4907_v22, %v2457_v23  ;;  %v3844_v32 = vld [vmem:[%s4469_s20 + $0x50] sm:$0xff]  ;;  %v3845_v23 = vld [vmem:[%s4469_s20 + $0x58] sm:$0xff] }
 0x441   : > { %v2494_v26 = vadd.f32 %v4915_v24, %v4912_v48 }
 0x442   : > { %v2271_v58 = vpop.f32.mrf.mxu0  ;;  %v2300_v30 = vpop.f32.mrf.mxu1 }
 0x443   : > { %v2410_v47 = vadd.f32 %v2409_v4, %v2271_v58  ;;  %v2439_v42 = vadd.f32 %v2438_v56, %v2300_v30  ;;  %2495 = vadd.xlane.f32.xlu2 %v2494_v26 }
 0x444   : > { %v2412_v19 = vpop.f32.mrf.mxu2  ;;  %v2441_v38 = vpop.f32.mrf.mxu3 }
 0x445   : > { %v2458_v37 = vadd.f32 %v3836_v49, %v2410_v47  ;;  %v2459_v33 = vadd.f32 %v3837_v59, %v2439_v42 }
 0x447   : > { %v4922_v63 = vadd.f32 %v4905_v1, %v2458_v37  ;;  %v4925_v45 = vadd.f32 %v4907_v22, %v2459_v33  ;;  %v3846_v33 = vld [vmem:[%s4469_s20 + $0x60] sm:$0xff] }
 0x449   : > { %v2497_v41 = vadd.f32 %v4925_v45, %v4922_v63 }
 0x44a   : > { %v2274_v0 = vpop.f32.mrf.mxu0  ;;  %v2303_v2 = vpop.f32.mrf.mxu1 }
 0x44b   : > { %v2413_v3 = vadd.f32 %v2412_v19, %v2274_v0  ;;  %v2442_v50 = vadd.f32 %v2441_v38, %v2303_v2  ;;  %2498 = vadd.xlane.f32.xlu0 %v2497_v41  ;;  %v3847_v0 = vld [vmem:[%s4469_s20 + $0x68] sm:$0xff] }
 0x44c   : > { %v2414_v46 = vpop.f32.mrf.mxu2  ;;  %v2443_v5 = vpop.f32.mrf.mxu3 }
 0x44d   : > { %v2460_v61 = vadd.f32 %v3838_v17, %v2413_v3  ;;  %v2461_v57 = vadd.f32 %v3839_v53, %v2442_v50 }
 0x44f   : > { %v4932_v51 = vadd.f32 %v4905_v1, %v2460_v61  ;;  %v4935_v27 = vadd.f32 %v4907_v22, %v2461_v57 }
 0x451   : > { %v2500_v18 = vadd.f32 %v4935_v27, %v4932_v51 }
 0x452   : > { %v2276_v21 = vpop.f32.mrf.mxu0  ;;  %v2305_v11 = vpop.f32.mrf.mxu1 }
 0x453   : > { %v2415_v7 = vadd.f32 %v2414_v46, %v2276_v21  ;;  %v2444_v43 = vadd.f32 %v2443_v5, %v2305_v11  ;;  %2501 = vadd.xlane.f32.xlu1 %v2500_v18  ;;  %v3848_v21 = vld [vmem:[%s4469_s20 + $0x70] sm:$0xff] }
 0x454   : > { %v2417_v16 = vpop.f32.mrf.mxu2  ;;  %v2446_v40 = vpop.f32.mrf.mxu3 }
 0x455   : > { %v2462_v62 = vadd.f32 %v3840_v10, %v2415_v7  ;;  %v2463_v29 = vadd.f32 %v3841_v9, %v2444_v43  ;;  %v3849_v7 = vld [vmem:[%s4469_s20 + $0x78] sm:$0xff] }
 0x457   : > { %v4942_v28 = vadd.f32 %v4905_v1, %v2462_v62  ;;  %v4945_v20 = vadd.f32 %v4907_v22, %v2463_v29  ;;  %v4219_v62 = vmov 256.0  }
 0x458   : > { %3816 = vrcp.f32 %v4219_v62 }
 0x459   : > { %v2503_v55 = vadd.f32 %v4945_v20, %v4942_v28 }
 0x45a   : > { %v2279_v31 = vpop.f32.mrf.mxu0  ;;  %v2308_v15 = vpop.f32.mrf.mxu1 }
 0x45b   : > { %v2418_v36 = vadd.f32 %v2417_v16, %v2279_v31  ;;  %v2447_v14 = vadd.f32 %v2446_v40, %v2308_v15  ;;  %2504 = vadd.xlane.f32.xlu2 %v2503_v55 }
 0x45c   : > { %v2419_v35 = vpop.f32.mrf.mxu2  ;;  %v2448_v6 = vpop.f32.mrf.mxu3 }
 0x45d   : > { %v2464_v60 = vadd.f32 %v3842_v44, %v2418_v36  ;;  %v2465_v25 = vadd.f32 %v3843_v39, %v2447_v14 }
 0x45e   : > { %v3817_v9 = vpop.eup %3816 }
 0x45f   : > { %v4952_v54 = vadd.f32 %v4905_v1, %v2464_v60  ;;  %v4955_v12 = vadd.f32 %v4907_v22, %v2465_v25  ;;  %v2519_v29 = vmul.f32 256.0, %v3817_v9  ;;  %vm2523_vm1 = vweird.f32 %v3817_v9 }
 0x461   : > { %v2506_v52 = vadd.f32 %v4955_v12, %v4952_v54  ;;  %v2520_v55 = vsub.f32 1.0, %v2519_v29 }
 0x462   : > { %v2281_v13 = vpop.f32.mrf.mxu0  ;;  %v2310_v4 = vpop.f32.mrf.mxu1 }
 0x463   : > { %v2420_v56 = vadd.f32 %v2419_v35, %v2281_v13  ;;  %v2449_v34 = vadd.f32 %v2448_v6, %v2310_v4  ;;  %2507 = vadd.xlane.f32.xlu0 %v2506_v52  ;;  %v2521_v31 = vmul.f32 %v3817_v9, %v2520_v55 }
 0x464   : > { %v2422_v58 = vpop.f32.mrf.mxu2  ;;  %v2451_v30 = vpop.f32.mrf.mxu3 }
 0x465   : > { %v2466_v8 = vadd.f32 %v3844_v32, %v2420_v56  ;;  %v2467_v26 = vadd.f32 %v3845_v23, %v2449_v34  ;;  %v2522_v15 = vadd.f32 %v3817_v9, %v2521_v31 }
 0x467   : > { %v4962_v47 = vadd.f32 %v4905_v1, %v2466_v8  ;;  %v4965_v42 = vadd.f32 %v4907_v22, %v2467_v26  ;;  %v4989_v36 = vsel %vm2523_vm1, %v3817_v9, %v2522_v15 }
 0x469   : > { %v2509_v19 = vadd.f32 %v4965_v42, %v4962_v47 }
 0x46a   : > { %v2284_v38 = vpop.f32.mrf.mxu0  ;;  %v2313_v49 = vpop.f32.mrf.mxu1 }
 0x46b   : > { %v2423_v37 = vadd.f32 %v2422_v58, %v2284_v38  ;;  %v2452_v59 = vadd.f32 %v2451_v30, %v2313_v49  ;;  %2510 = vadd.xlane.f32.xlu1 %v2509_v19 }
 0x46c   : > { %v2424_v46 = vpop.f32.mrf.mxu2  ;;  %v2453_v5 = vpop.f32.mrf.mxu3 }
 0x46d   : > { %v2468_v41 = vadd.f32 %v3846_v33, %v2423_v37  ;;  %v2469_v2 = vadd.f32 %v3847_v0, %v2452_v59 }
 0x46f   : > { %v4972_v3 = vadd.f32 %v4905_v1, %v2468_v41  ;;  %v4975_v50 = vadd.f32 %v4907_v22, %v2469_v2 }
 0x471   : > { %v2512_v17 = vadd.f32 %v4975_v50, %v4972_v3 }
 0x472   : > { %v2286_v61 = vpop.f32.mrf.mxu0  ;;  %v2315_v53 = vpop.f32.mrf.mxu1 }
 0x473   : > { %v2425_v57 = vadd.f32 %v2424_v46, %v2286_v61  ;;  %v2454_v18 = vadd.f32 %v2453_v5, %v2315_v53  ;;  %2513 = vadd.xlane.f32.xlu2 %v2512_v17 }
 0x475   : > { %v2470_v11 = vadd.f32 %v3848_v21, %v2425_v57  ;;  %v2471_v43 = vadd.f32 %v3849_v7, %v2454_v18 }
 0x477   : > { %v4982_v16 = vadd.f32 %v4905_v1, %v2470_v11  ;;  %v4985_v40 = vadd.f32 %v4907_v22, %v2471_v43 }
 0x479   : > { %v2515_v10 = vadd.f32 %v4985_v40, %v4982_v16 }
 0x47b   : > { %2516 = vadd.xlane.f32.xlu0 %v2515_v10 }
 0x4b6   : > { %v2496_v14 = vpop.xlane.xlu2 %2495 }
 0x4b7   : > { %v2525_v1 = vmul.f32 %v4989_v36, %v2496_v14 }
 0x4b9   : > { %v4993_v22 = vsub.f32 %v4912_v48, %v2525_v1  ;;  %v4996_v44 = vsub.f32 %v4915_v24, %v2525_v1 }
 0x4bb   : > { %v2549_v60 = vmul.f32 %v4993_v22, %v4993_v22  ;;  %v2550_v39 = vmul.f32 %v4996_v44, %v4996_v44 }
 0x4bd   : > { %v2565_v25 = vadd.f32 %v2550_v39, %v2549_v60 }
 0x4be   : > { %v2499_v35 = vpop.xlane.xlu0 %2498 }
 0x4bf   : > { %v2526_v6 = vmul.f32 %v4989_v36, %v2499_v35  ;;  %2566 = vadd.xlane.f32.xlu1 %v2565_v25  ;;  %v2701_v35 = vld [vmem:[%s5221_s12] sm:$0x3] }
 0x4c1   : > { %v5004_v52 = vsub.f32 %v4922_v63, %v2526_v6  ;;  %v5007_v48 = vsub.f32 %v4925_v45, %v2526_v6 }
 0x4c3   : > { %v2551_v24 = vmul.f32 %v5004_v52, %v5004_v52  ;;  %v2552_v13 = vmul.f32 %v5007_v48, %v5007_v48 }
 0x4c5   : > { %v2568_v4 = vadd.f32 %v2552_v13, %v2551_v24 }
 0x4c6   : > { %v2502_v56 = vpop.xlane.xlu1 %2501 }
 0x4c7   : > { %v2527_v34 = vmul.f32 %v4989_v36, %v2502_v56  ;;  %2569 = vadd.xlane.f32.xlu2 %v2568_v4  ;;  %v2723_v4 = vld [vmem:[%s5222_s6] sm:$0x3] }
 0x4c9   : > { %v5015_v32 = vsub.f32 %v4932_v51, %v2527_v34  ;;  %v5018_v63 = vsub.f32 %v4935_v27, %v2527_v34 }
 0x4cb   : > { %v2553_v45 = vmul.f32 %v5015_v32, %v5015_v32  ;;  %v2554_v8 = vmul.f32 %v5018_v63, %v5018_v63 }
 0x4cd   : > { %v2571_v23 = vadd.f32 %v2554_v8, %v2553_v45  ;;  %v5088_v45 = vperm.slane %v2701_v35, 0  ;;  %v5090_v8 = vperm.slane %v2701_v35, 1 }
 0x4ce   : > { %v2505_v26 = vpop.xlane.xlu2 %2504 }
 0x4cf   : > { %v2528_v58 = vmul.f32 %v4989_v36, %v2505_v26  ;;  %2572 = vadd.xlane.f32.xlu0 %v2571_v23 }
 0x4d1   : > { %v5026_v30 = vsub.f32 %v4942_v28, %v2528_v58  ;;  %v5029_v51 = vsub.f32 %v4945_v20, %v2528_v58  ;;  %v5092_v58 = vperm.slane %v2723_v4, 0 }
 0x4d3   : > { %v2555_v27 = vmul.f32 %v5026_v30, %v5026_v30  ;;  %v2556_v19 = vmul.f32 %v5029_v51, %v5029_v51 }
 0x4d5   : > { %v2574_v38 = vadd.f32 %v2556_v19, %v2555_v27  ;;  %v5094_v27 = vperm.slane %v2723_v4, 1 }
 0x4d6   : > { %v2508_v49 = vpop.xlane.xlu0 %2507 }
 0x4d7   : > { %v2529_v37 = vmul.f32 %v4989_v36, %v2508_v49  ;;  %2575 = vadd.xlane.f32.xlu1 %v2574_v38 }
 0x4d9   : > { %v5037_v59 = vsub.f32 %v4952_v54, %v2529_v37  ;;  %v5040_v28 = vsub.f32 %v4955_v12, %v2529_v37 }
 0x4db   : > { %v2557_v20 = vmul.f32 %v5037_v59, %v5037_v59  ;;  %v2558_v33 = vmul.f32 %v5040_v28, %v5040_v28 }
 0x4dd   : > { %v2577_v41 = vadd.f32 %v2558_v33, %v2557_v20 }
 0x4de   : > { %v2511_v0 = vpop.xlane.xlu1 %2510 }
 0x4df   : > { %v2530_v2 = vmul.f32 %v4989_v36, %v2511_v0  ;;  %2578 = vadd.xlane.f32.xlu2 %v2577_v41 }
 0x4e1   : > { %v5048_v46 = vsub.f32 %v4962_v47, %v2530_v2  ;;  %v5051_v54 = vsub.f32 %v4965_v42, %v2530_v2 }
 0x4e3   : > { %v2559_v12 = vmul.f32 %v5048_v46, %v5048_v46  ;;  %v2560_v5 = vmul.f32 %v5051_v54, %v5051_v54 }
 0x4e5   : > { %v2580_v17 = vadd.f32 %v2560_v5, %v2559_v12 }
 0x4e6   : > { %v2514_v61 = vpop.xlane.xlu2 %2513 }
 0x4e7   : > { %v2531_v53 = vmul.f32 %v4989_v36, %v2514_v61  ;;  %2581 = vadd.xlane.f32.xlu0 %v2580_v17 }
 0x4e9   : > { %v5059_v57 = vsub.f32 %v4972_v3, %v2531_v53  ;;  %v5062_v47 = vsub.f32 %v4975_v50, %v2531_v53 }
 0x4eb   : > { %v2561_v42 = vmul.f32 %v5059_v57, %v5059_v57  ;;  %v2562_v18 = vmul.f32 %v5062_v47, %v5062_v47 }
 0x4ed   : > { %v2583_v21 = vadd.f32 %v2562_v18, %v2561_v42 }
 0x4ee   : > { %v2517_v11 = vpop.xlane.xlu0 %2516 }
 0x4ef   : > { %v2532_v7 = vmul.f32 %v4989_v36, %v2517_v11  ;;  %2584 = vadd.xlane.f32.xlu1 %v2583_v21 }
 0x4f1   : > { %v5070_v43 = vsub.f32 %v4982_v16, %v2532_v7  ;;  %v5073_v3 = vsub.f32 %v4985_v40, %v2532_v7 }
 0x4f3   : > { %v2563_v50 = vmul.f32 %v5070_v43, %v5070_v43  ;;  %v2564_v10 = vmul.f32 %v5073_v3, %v5073_v3 }
 0x4f5   : > { %v2586_v62 = vadd.f32 %v2564_v10, %v2563_v50 }
 0x4f7   : > { %2587 = vadd.xlane.f32.xlu2 %v2586_v62 }
 0x532   : > { %v2567_v9 = vpop.xlane.xlu1 %2566 }
 0x533   : > { %v2589_v29 = vmul.f32 %v2567_v9, %v4989_v36 }
 0x535   : > { %v2597_v55 = vadd.f32 1e-05, %v2589_v29 }
 0x537   : > { %3818 = vrsqrt.f32 %v2597_v55  ;;  %vm2611_vm3 = vweird.f32 %v2597_v55 }
 0x53a   : > { %v2570_v31 = vpop.xlane.xlu2 %2569 }
 0x53b   : > { %v2590_v16 = vmul.f32 %v2570_v31, %v4989_v36 }
 0x53d   : > { %v3819_v15 = vpop.eup %3818  ;;  %v2598_v14 = vadd.f32 1e-05, %v2590_v16 }
 0x53e   : > { %v2606_v40 = vmul.f32 %v3819_v15, %v2597_v55  ;;  %vm2612_vm2 = vweird.f32 %v3819_v15 }
 0x53f   : > { %3820 = vrsqrt.f32 %v2598_v14  ;;  %vm2613_vm4 = vmor %vm2611_vm3, %vm2612_vm2  ;;  %vm2621_vm6 = vweird.f32 %v2598_v14 }
 0x540   : > { %v2607_v1 = vmul.f32 %v3819_v15, %v2606_v40 }
 0x542   : > { %v2608_v60 = vmul.f32 0.5, %v2607_v1  ;;  %v2573_v39 = vpop.xlane.xlu0 %2572 }
 0x543   : > { %v2591_v25 = vmul.f32 %v2573_v39, %v4989_v36 }
 0x544   : > { %v2609_v6 = vsub.f32 1.5, %v2608_v60 }
 0x545   : > { %v3821_v24 = vpop.eup %3820  ;;  %v2599_v13 = vadd.f32 1e-05, %v2591_v25 }
 0x546   : > { %v2610_v56 = vmul.f32 %v3819_v15, %v2609_v6  ;;  %v2616_v34 = vmul.f32 %v3821_v24, %v2598_v14  ;;  %vm2622_vm5 = vweird.f32 %v3821_v24 }
 0x547   : > { %3822 = vrsqrt.f32 %v2599_v13  ;;  %vm2623_vm7 = vmor %vm2621_vm6, %vm2622_vm5  ;;  %vm2631_vm9 = vweird.f32 %v2599_v13 }
 0x548   : > { %v2614_v23 = vsel %vm2613_vm4, %v3819_v15, %v2610_v56  ;;  %v2617_v26 = vmul.f32 %v3821_v24, %v2616_v34 }
 0x549   : > { %v2685_v19 = vmul.f32 %v2614_v23, %v4993_v22  ;;  %v2686_v38 = vmul.f32 %v2614_v23, %v4996_v44 }
 0x54a   : > { %v2618_v49 = vmul.f32 0.5, %v2617_v26  ;;  %v2576_v37 = vpop.xlane.xlu1 %2575 }
 0x54b   : > { %v2707_v20 = vmul.f32 %v5088_v45, %v2685_v19  ;;  %v2708_v33 = vmul.f32 %v5090_v8, %v2686_v38  ;;  %v2592_v41 = vmul.f32 %v2576_v37, %v4989_v36 }
 0x54c   : > { %v2619_v0 = vsub.f32 1.5, %v2618_v49 }
 0x54d   : > { %v3823_v22 = vpop.eup %3822  ;;  %v2729_v44 = vadd.f32 %v5092_v58, %v2707_v20  ;;  %v2730_v2 = vadd.f32 %v5094_v27, %v2708_v33  ;;  %v2600_v12 = vadd.f32 1e-05, %v2592_v41 }
 0x54e   : > { %v2620_v5 = vmul.f32 %v3821_v24, %v2619_v0  ;;  %v2626_v17 = vmul.f32 %v3823_v22, %v2599_v13  ;;  %vm2632_vm8 = vweird.f32 %v3823_v22 }
 0x54f   : > { %2745 = vst [vmem:[%s5106_s14] sm:$0xff] %v2729_v44  ;;  %3824 = vrsqrt.f32 %v2600_v12  ;;  %vm2633_vm10 = vmor %vm2631_vm9, %vm2632_vm8  ;;  %vm2641_vm12 = vweird.f32 %v2600_v12 }
 0x550   : > { %2746 = vst [vmem:[%s5106_s14 + $0x8] sm:$0xff] %v2730_v2  ;;  %v2624_v61 = vsel %vm2623_vm7, %v3821_v24, %v2620_v5  ;;  %v2627_v53 = vmul.f32 %v3823_v22, %v2626_v17 }
 0x551   : > { %v2687_v42 = vmul.f32 %v2624_v61, %v5004_v52  ;;  %v2688_v18 = vmul.f32 %v2624_v61, %v5007_v48 }
 0x552   : > { %v2628_v21 = vmul.f32 0.5, %v2627_v53  ;;  %v2579_v11 = vpop.xlane.xlu2 %2578 }
 0x553   : > { %v2709_v7 = vmul.f32 %v5088_v45, %v2687_v42  ;;  %v2710_v50 = vmul.f32 %v5090_v8, %v2688_v18  ;;  %v2593_v10 = vmul.f32 %v2579_v11, %v4989_v36 }
 0x554   : > { %v2629_v62 = vsub.f32 1.5, %v2628_v21 }
 0x555   : > { %v3825_v9 = vpop.eup %3824  ;;  %v2731_v29 = vadd.f32 %v5092_v58, %v2709_v7  ;;  %v2732_v55 = vadd.f32 %v5094_v27, %v2710_v50  ;;  %v2601_v52 = vadd.f32 1e-05, %v2593_v10 }
 0x556   : > { %v2630_v31 = vmul.f32 %v3823_v22, %v2629_v62  ;;  %v2636_v48 = vmul.f32 %v3825_v9, %v2600_v12  ;;  %vm2642_vm11 = vweird.f32 %v3825_v9 }
 0x557   : > { %2747 = vst [vmem:[%s5106_s14 + $0x10] sm:$0xff] %v2731_v29  ;;  %3826 = vrsqrt.f32 %v2601_v52  ;;  %vm2643_vm13 = vmor %vm2641_vm12, %vm2642_vm11  ;;  %vm2651_vm15 = vweird.f32 %v2601_v52 }
 0x558   : > { %2748 = vst [vmem:[%s5106_s14 + $0x18] sm:$0xff] %v2732_v55  ;;  %v2634_v16 = vsel %vm2633_vm10, %v3823_v22, %v2630_v31  ;;  %v2637_v15 = vmul.f32 %v3825_v9, %v2636_v48 }
 0x559   : > { %v2689_v14 = vmul.f32 %v2634_v16, %v5015_v32  ;;  %v2690_v40 = vmul.f32 %v2634_v16, %v5018_v63 }
 0x55a   : > { %v2638_v1 = vmul.f32 0.5, %v2637_v15  ;;  %v2582_v60 = vpop.xlane.xlu0 %2581 }
 0x55b   : > { %v2711_v39 = vmul.f32 %v5088_v45, %v2689_v14  ;;  %v2712_v25 = vmul.f32 %v5090_v8, %v2690_v40  ;;  %v2594_v35 = vmul.f32 %v2582_v60, %v4989_v36 }
 0x55c   : > { %v2639_v6 = vsub.f32 1.5, %v2638_v1 }
 0x55d   : > { %v3827_v24 = vpop.eup %3826  ;;  %v2733_v13 = vadd.f32 %v5092_v58, %v2711_v39  ;;  %v2734_v4 = vadd.f32 %v5094_v27, %v2712_v25  ;;  %v2602_v32 = vadd.f32 1e-05, %v2594_v35 }
 0x55e   : > { %v2640_v56 = vmul.f32 %v3825_v9, %v2639_v6  ;;  %v2646_v63 = vmul.f32 %v3827_v24, %v2601_v52  ;;  %vm2652_vm14 = vweird.f32 %v3827_v24 }
 0x55f   : > { %2749 = vst [vmem:[%s5106_s14 + $0x20] sm:$0xff] %v2733_v13  ;;  %3828 = vrsqrt.f32 %v2602_v32  ;;  %vm2653_vm0 = vmor %vm2651_vm15, %vm2652_vm14  ;;  %vm2661_vm2 = vweird.f32 %v2602_v32 }
 0x560   : > { %2750 = vst [vmem:[%s5106_s14 + $0x28] sm:$0xff] %v2734_v4  ;;  %v2644_v34 = vsel %vm2643_vm13, %v3825_v9, %v2640_v56  ;;  %v2647_v23 = vmul.f32 %v3827_v24, %v2646_v63 }
 0x561   : > { %v2691_v26 = vmul.f32 %v2644_v34, %v5026_v30  ;;  %v2692_v19 = vmul.f32 %v2644_v34, %v5029_v51 }
 0x562   : > { %v2648_v38 = vmul.f32 0.5, %v2647_v23  ;;  %v2585_v49 = vpop.xlane.xlu1 %2584 }
 0x563   : > { %v2713_v37 = vmul.f32 %v5088_v45, %v2691_v26  ;;  %v2714_v20 = vmul.f32 %v5090_v8, %v2692_v19  ;;  %v2595_v33 = vmul.f32 %v2585_v49, %v4989_v36 }
 0x564   : > { %v2649_v41 = vsub.f32 1.5, %v2648_v38 }
 0x565   : > { %v3829_v0 = vpop.eup %3828  ;;  %v2735_v22 = vadd.f32 %v5092_v58, %v2713_v37  ;;  %v2736_v44 = vadd.f32 %v5094_v27, %v2714_v20  ;;  %v2603_v30 = vadd.f32 1e-05, %v2595_v33 }
 0x566   : > { %v2650_v2 = vmul.f32 %v3827_v24, %v2649_v41  ;;  %v2656_v51 = vmul.f32 %v3829_v0, %v2602_v32  ;;  %vm2662_vm1 = vweird.f32 %v3829_v0 }
 0x567   : > { %2751 = vst [vmem:[%s5106_s14 + $0x30] sm:$0xff] %v2735_v22  ;;  %3830 = vrsqrt.f32 %v2603_v30  ;;  %vm2663_vm3 = vmor %vm2661_vm2, %vm2662_vm1  ;;  %vm2671_vm5 = vweird.f32 %v2603_v30 }
 0x568   : > { %2752 = vst [vmem:[%s5106_s14 + $0x38] sm:$0xff] %v2736_v44  ;;  %v2654_v12 = vsel %vm2653_vm0, %v3827_v24, %v2650_v2  ;;  %v2657_v5 = vmul.f32 %v3829_v0, %v2656_v51 }
 0x569   : > { %v2693_v17 = vmul.f32 %v2654_v12, %v5037_v59  ;;  %v2694_v61 = vmul.f32 %v2654_v12, %v5040_v28 }
 0x56a   : > { %v2658_v53 = vmul.f32 0.5, %v2657_v5  ;;  %v2588_v42 = vpop.xlane.xlu2 %2587 }
 0x56b   : > { %v2715_v18 = vmul.f32 %v5088_v45, %v2693_v17  ;;  %v2716_v21 = vmul.f32 %v5090_v8, %v2694_v61  ;;  %v2596_v11 = vmul.f32 %v2588_v42, %v4989_v36 }
 0x56c   : > { %v2659_v7 = vsub.f32 1.5, %v2658_v53 }
 0x56d   : > { %v3831_v50 = vpop.eup %3830  ;;  %v2737_v10 = vadd.f32 %v5092_v58, %v2715_v18  ;;  %v2738_v62 = vadd.f32 %v5094_v27, %v2716_v21  ;;  %v2604_v59 = vadd.f32 1e-05, %v2596_v11 }
 0x56e   : > { %v2660_v9 = vmul.f32 %v3829_v0, %v2659_v7  ;;  %v2666_v28 = vmul.f32 %v3831_v50, %v2603_v30  ;;  %vm2672_vm4 = vweird.f32 %v3831_v50 }
 0x56f   : > { %2753 = vst [vmem:[%s5106_s14 + $0x40] sm:$0xff] %v2737_v10  ;;  %3832 = vrsqrt.f32 %v2604_v59  ;;  %vm2673_vm6 = vmor %vm2671_vm5, %vm2672_vm4  ;;  %vm2681_vm8 = vweird.f32 %v2604_v59 }
 0x570   : > { %2754 = vst [vmem:[%s5106_s14 + $0x48] sm:$0xff] %v2738_v62  ;;  %v2664_v29 = vsel %vm2663_vm3, %v3829_v0, %v2660_v9  ;;  %v2667_v55 = vmul.f32 %v3831_v50, %v2666_v28 }
 0x571   : > { %v2695_v36 = vmul.f32 %v2664_v29, %v5048_v46  ;;  %v2696_v52 = vmul.f32 %v2664_v29, %v5051_v54 }
 0x572   : > { %v2668_v31 = vmul.f32 0.5, %v2667_v55 }
 0x573   : > { %v2717_v48 = vmul.f32 %v5088_v45, %v2695_v36  ;;  %v2718_v16 = vmul.f32 %v5090_v8, %v2696_v52 }
 0x574   : > { %v2669_v15 = vsub.f32 1.5, %v2668_v31 }
 0x575   : > { %v3833_v14 = vpop.eup %3832  ;;  %v2739_v40 = vadd.f32 %v5092_v58, %v2717_v48  ;;  %v2740_v1 = vadd.f32 %v5094_v27, %v2718_v16 }
 0x576   : > { %v2670_v60 = vmul.f32 %v3831_v50, %v2669_v15  ;;  %v2676_v39 = vmul.f32 %v3833_v14, %v2604_v59  ;;  %vm2682_vm7 = vweird.f32 %v3833_v14 }
 0x577   : > { %2755 = vst [vmem:[%s5106_s14 + $0x50] sm:$0xff] %v2739_v40  ;;  %vm2683_vm9 = vmor %vm2681_vm8, %vm2682_vm7 }
 0x578   : > { %2756 = vst [vmem:[%s5106_s14 + $0x58] sm:$0xff] %v2740_v1  ;;  %v2674_v46 = vsel %vm2673_vm6, %v3831_v50, %v2670_v60  ;;  %v2677_v54 = vmul.f32 %v3833_v14, %v2676_v39 }
 0x579   : > { %v2697_v25 = vmul.f32 %v2674_v46, %v5059_v57  ;;  %v2698_v35 = vmul.f32 %v2674_v46, %v5062_v47 }
 0x57a   : > { %v2678_v6 = vmul.f32 0.5, %v2677_v54 }
 0x57b   : > { %v2719_v24 = vmul.f32 %v5088_v45, %v2697_v25  ;;  %v2720_v13 = vmul.f32 %v5090_v8, %v2698_v35 }
 0x57c   : > { %v2679_v4 = vsub.f32 1.5, %v2678_v6 }
 0x57d   : > { %v2741_v32 = vadd.f32 %v5092_v58, %v2719_v24  ;;  %v2742_v56 = vadd.f32 %v5094_v27, %v2720_v13 }
 0x57e   : > { %v2680_v63 = vmul.f32 %v3833_v14, %v2679_v4 }
 0x57f   : > { %2757 = vst [vmem:[%s5106_s14 + $0x60] sm:$0xff] %v2741_v32 }
 0x580   : > { %2758 = vst [vmem:[%s5106_s14 + $0x68] sm:$0xff] %v2742_v56  ;;  %v2684_v57 = vsel %vm2683_vm9, %v3833_v14, %v2680_v63 }
 0x581   : > { %v2699_v47 = vmul.f32 %v2684_v57, %v5070_v43  ;;  %v2700_v34 = vmul.f32 %v2684_v57, %v5073_v3 }
 0x583   : > { %v2721_v23 = vmul.f32 %v5088_v45, %v2699_v47  ;;  %v2722_v26 = vmul.f32 %v5090_v8, %v2700_v34 }
 0x585   : > { %v2743_v19 = vadd.f32 %v5092_v58, %v2721_v23  ;;  %v2744_v38 = vadd.f32 %v5094_v27, %v2722_v26 }
 0x587   : > { %2759 = vst [vmem:[%s5106_s14 + $0x70] sm:$0xff] %v2743_v19 }
 0x588   : > { %2760 = vst [vmem:[%s5106_s14 + $0x78] sm:$0xff] %v2744_v38 }
 0x589 PF: > { %p28_p3 = scmp.ge.s32.totalorder %s4389_s23, 4   ;;  %s5224_s25 = smov %s4196_s26 }
 0x58a   : > { %s5225_s26 = smov %s4200_s27  ;;  %s5226_s27 = smov %s4400_s24 }
 0x58b   : > { %s5227_s28 = smov %s4389_s23  ;;  %30 = sbr.rel (!%p28_p3) target bundleno = 15 (0xf), region = 151 }
 0x590   :  { %2782 = vsyncpa [#allocation3], 1 }
 0x591   :  { %2784 = vsyncpa [#allocation3 + $0x1], 1 }
 0x592   :  { %2785 = vsyncpa [#allocation5], 1 }
 0x593   :  { %2786 = vsyncpa [#allocation8], 1 }
 0x594   :  { %2787 = vsyncpa [#allocation11], 1 }
 0x595   :  { %2788 = vsyncpa [#allocation14], 1 }
 0x596   :  { %2789 = vsyncpa [#allocation17], 1 }

</bundles_post_ra>
